<compile_context>
chip_gen: v5e
topology: v5e:2x2
jax: 0.10.0
libtpu: 0.0.40
codegen_flags: <defaults>
</compile_context>

<pallas_src>
import functools

import jax
import jax.numpy as jnp
from jax import lax
from jax.experimental import pallas as pl
from jax.experimental.pallas import tpu as pltpu

EPS_BN = 1e-5


def _vmem_limit_bytes():
    # Never request the whole physical VMEM (v7x has only 64 MiB / TensorCore);
    # leave headroom for Mosaic's double-buffered pipeline I/O.
    try:
        cap = int(pltpu.get_tpu_info().vmem_capacity_bytes)
    except Exception:
        cap = 64 * 1024 * 1024          # conservative fallback (v7x-sized)
    return min(cap * 3 // 4, 96 * 1024 * 1024)


VMEM_LIMIT = _vmem_limit_bytes()


# ----------------------------- helpers ---------------------------------------

def _choose_tile(n, target):
    """Largest tile <= target that divides n (or n itself when small)."""
    if n <= target:
        return n
    for t in (target, 1024, 768, 512, 384, 256, 128, 64, 32, 16, 8):
        if t <= target and n % t == 0:
            return t
    return n


def bn_fold(gamma, beta, mean, var, bias=None, eps=EPS_BN):
    scale = gamma / jnp.sqrt(var + eps)
    shift = beta - mean * scale
    if bias is not None:
        shift = shift + bias * scale
    return scale, shift


def _row(v):
    return v.reshape(1, v.shape[-1]).astype(jnp.float32)


# -------------- kernel 1: leader_combine + SA_Layer (one block) ---------------
# (optionally with the conv1+conv2 stem fused in for the first block)

def _leader_sa_body(xc, f, wmsf_ref, sm_ref, shm_ref, mu_ref, wq_ref, wv_ref,
                    bv_ref, wt_ref, ssa_ref, shsa_ref, o_ref, *, c_in, tq):
    N, C = xc.shape

    # ---- right branch: relu(bn(cat(x, f) @ W_msf)) — concat via split weights
    right = jnp.dot(xc, wmsf_ref[pl.ds(0, C), :], preferred_element_type=jnp.float32)
    right = right + jnp.dot(f, wmsf_ref[pl.ds(C, C), :],
                            preferred_element_type=jnp.float32)
    right = jnp.maximum(right * sm_ref[...] + shm_ref[...], 0.0)

    # ---- left branch: circular rolls along N + channel-range selects --------
    # Channel-split boundaries use the *raw* input channel count (c_in = 6),
    # exactly as the reference (`C` from x.size()): lanes {0} -> roll(x,-1),
    # {1,2} -> roll(x,+1), {3} -> roll(f,-1), {4..127} -> roll(f,+1).
    # Only 2 rolls: build complementary lane-masked composites and roll once.
    c4, c2, c34 = c_in // 4, c_in // 2, (c_in * 3) // 4
    col = lax.broadcasted_iota(jnp.int32, (N, C), 1)
    src = jnp.where(col < c2, xc, f).astype(jnp.float32)       # x | f per lane
    up_mask = (col < c4) | ((col >= c2) & (col < c34))
    comp_up = jnp.where(up_mask, src, 0.0)
    comp_dn = src - comp_up                                    # complementary lanes
    left = (pltpu.roll(comp_up, shift=N - 1, axis=0)           # == torch.roll(., -1, 2)
            + pltpu.roll(comp_dn, shift=1, axis=0))            # == torch.roll(., +1, 2)

    x = left * mu_ref[0] + right                               # (N, C) f32
    # TODO(synk): SpatialTransformerLayer (spatial_attention*) treated as identity.

    # ---- SA_Layer (offset attention), q-tiled (no (N, N) buffer) -------------
    xb = x.astype(jnp.bfloat16)
    q_all = jnp.dot(xb, wq_ref[...],
                    preferred_element_type=jnp.float32).astype(jnp.bfloat16)  # (N, C//4)
    v_all = jnp.dot(xb, wv_ref[...], preferred_element_type=jnp.float32) + bv_ref[...]

    n_qt = N // tq
    xr = jnp.zeros((N, C), jnp.float32)     # sum_i att[i, j] * v[i, :]
    cs = jnp.zeros((N, C), jnp.float32)     # colsum[j] replicated across lanes
    for t in range(n_qt):
        lo = t * tq
        q_t = q_all[lo:lo + tq, :]
        # energy[i, j] = q_i . k_j  (k_conv weight tied to q_conv -> k == q)
        energy = lax.dot_general(q_t, q_all, (((1,), (1,)), ((), ())),
                                 preferred_element_type=jnp.float32)   # (tq, N)
        m = jnp.max(energy, axis=-1, keepdims=True)
        e = jnp.exp(energy - m)                                        # f32
        rsum = jnp.sum(e, axis=-1, keepdims=True)
        inv = pl.reciprocal(rsum, approx=True)                         # (tq, 1)
        e_b = e.astype(jnp.bfloat16)        # only N^2-sized buffer kept live
        # fold row-softmax normalisation into v (and into the colsum operand)
        v_t = (v_all[lo:lo + tq, :] * inv).astype(jnp.bfloat16)        # (tq, C)
        inv_b = jnp.broadcast_to(inv, (tq, C)).astype(jnp.bfloat16)
        xr = xr + lax.dot_general(e_b, v_t, (((0,), (0,)), ((), ())),
                                  preferred_element_type=jnp.float32)  # (N, C)
        cs = cs + lax.dot_general(e_b, inv_b, (((0,), (0,)), ((), ())),
                                  preferred_element_type=jnp.float32)  # (N, C)

    # attention / (1e-9 + attention.sum(dim=1)) applied to x_r's rows instead.
    x_r = xr * pl.reciprocal(cs + 1e-9, approx=True)

    d = (x - x_r).astype(jnp.bfloat16)
    tconv = jnp.dot(d, wt_ref[...], preferred_element_type=jnp.float32)
    tconv = jnp.maximum(tconv * ssa_ref[...] + shsa_ref[...], 0.0)     # BN(+bias)+ReLU
    o_ref[0] = (x + tconv).astype(o_ref.dtype)


def _block_kernel(xc_ref, f_ref, wmsf_ref, sm_ref, shm_ref, mu_ref, wq_ref,
                  wv_ref, bv_ref, wt_ref, ssa_ref, shsa_ref, o_ref, *, c_in, tq):
    _leader_sa_body(xc_ref[0], f_ref[0], wmsf_ref, sm_ref, shm_ref, mu_ref,
                    wq_ref, wv_ref, bv_ref, wt_ref, ssa_ref, shsa_ref, o_ref,
                    c_in=c_in, tq=tq)


def _block_stem_kernel(x8_ref, f_ref, w1_ref, s1_ref, sh1_ref, w2_ref, s2_ref,
                       sh2_ref, wmsf_ref, sm_ref, shm_ref, mu_ref, wq_ref,
                       wv_ref, bv_ref, wt_ref, ssa_ref, shsa_ref, o_ref,
                       *, c_in, tq):
    # conv1 (6->128, Cin padded to 8) + conv2 (128->128), fused into block 1.
    h = jnp.dot(x8_ref[0], w1_ref[...], preferred_element_type=jnp.float32)
    h = jnp.maximum(h * s1_ref[...] + sh1_ref[...], 0.0).astype(jnp.bfloat16)
    h = jnp.dot(h, w2_ref[...], preferred_element_type=jnp.float32)
    xc = jnp.maximum(h * s2_ref[...] + sh2_ref[...], 0.0).astype(jnp.bfloat16)
    _leader_sa_body(xc, f_ref[0], wmsf_ref, sm_ref, shm_ref, mu_ref, wq_ref,
                    wv_ref, bv_ref, wt_ref, ssa_ref, shsa_ref, o_ref,
                    c_in=c_in, tq=tq)


def leader_sa_block(x_in, f, w_msf, s_m, sh_m, mu, wq, wv, bv, wt, s_sa, sh_sa,
                    *, c_in, tq, stem=None):
    B, N, _ = x_in.shape
    C = w_msf.shape[1]
    common_specs = [
        pl.BlockSpec((2 * C, C), lambda b: (0, 0)),
        pl.BlockSpec((1, C), lambda b: (0, 0)),
        pl.BlockSpec((1, C), lambda b: (0, 0)),
        pl.BlockSpec(memory_space=pltpu.MemorySpace.SMEM),          # mu scalar
        pl.BlockSpec((C, C // 4), lambda b: (0, 0)),
        pl.BlockSpec((C, C), lambda b: (0, 0)),
        pl.BlockSpec((1, C), lambda b: (0, 0)),
        pl.BlockSpec((C, C), lambda b: (0, 0)),
        pl.BlockSpec((1, C), lambda b: (0, 0)),
        pl.BlockSpec((1, C), lambda b: (0, 0)),
    ]
    common_args = (w_msf, _row(s_m), _row(sh_m), mu.astype(jnp.float32),
                   wq, wv, _row(bv), wt, _row(s_sa), _row(sh_sa))

    if stem is None:
        kernel = functools.partial(_block_kernel, c_in=c_in, tq=tq)
        in_specs = [pl.BlockSpec((1, N, C), lambda b: (b, 0, 0)),
                    pl.BlockSpec((1, N, C), lambda b: (b, 0, 0))] + common_specs
        args = (x_in, f) + common_args
    else:
        w1, s1, sh1, w2, s2, sh2 = stem
        Cin = x_in.shape[2]
        kernel = functools.partial(_block_stem_kernel, c_in=c_in, tq=tq)
        in_specs = [pl.BlockSpec((1, N, Cin), lambda b: (b, 0, 0)),
                    pl.BlockSpec((1, N, C), lambda b: (b, 0, 0)),
                    pl.BlockSpec((Cin, C), lambda b: (0, 0)),
                    pl.BlockSpec((1, C), lambda b: (0, 0)),
                    pl.BlockSpec((1, C), lambda b: (0, 0)),
                    pl.BlockSpec((C, C), lambda b: (0, 0)),
                    pl.BlockSpec((1, C), lambda b: (0, 0)),
                    pl.BlockSpec((1, C), lambda b: (0, 0))] + common_specs
        args = (x_in, f, w1, s1, sh1, w2, s2, sh2) + common_args

    return pl.pallas_call(
        kernel,
        out_shape=jax.ShapeDtypeStruct((B, N, C), jnp.bfloat16),
        grid=(B,),
        in_specs=in_specs,
        out_specs=pl.BlockSpec((1, N, C), lambda b: (b, 0, 0)),
        compiler_params=pltpu.CompilerParams(
            dimension_semantics=("parallel",),
            vmem_limit_bytes=VMEM_LIMIT),
    )(*args)


# ------------- kernel 2: conv_fuse (4-way split) + fused max/mean pool --------

def _fuse_pool_kernel(x1_ref, x2_ref, x3_ref, x4_ref, w_ref, s_ref, sh_ref,
                      xf_ref, mx_ref, mean_ref, *, n_total):
    n = pl.program_id(1)
    C = x1_ref.shape[2]
    acc = jnp.dot(x1_ref[0], w_ref[pl.ds(0, C), :], preferred_element_type=jnp.float32)
    acc = acc + jnp.dot(x2_ref[0], w_ref[pl.ds(C, C), :], preferred_element_type=jnp.float32)
    acc = acc + jnp.dot(x3_ref[0], w_ref[pl.ds(2 * C, C), :], preferred_element_type=jnp.float32)
    acc = acc + jnp.dot(x4_ref[0], w_ref[pl.ds(3 * C, C), :], preferred_element_type=jnp.float32)
    y = acc * s_ref[...] + sh_ref[...]
    y = jnp.where(y > 0.0, y, 0.2 * y)                     # LeakyReLU(0.2)
    xf_ref[0] = y.astype(xf_ref.dtype)

    t_max = jnp.max(y, axis=0, keepdims=True)              # (1, 1024)
    t_sum = jnp.sum(y, axis=0, keepdims=True)

    @pl.when(n == 0)
    def _():
        mx_ref[0] = t_max
        mean_ref[0] = t_sum

    @pl.when(n > 0)
    def _():
        mx_ref[0] = jnp.maximum(mx_ref[0], t_max)
        mean_ref[0] = mean_ref[0] + t_sum

    @pl.when(n == pl.num_programs(1) - 1)
    def _():
        mean_ref[0] = mean_ref[0] * (1.0 / n_total)


def fuse_pool(x1, x2, x3, x4, w, s, sh, tn):
    B, N, C = x1.shape
    Cout = w.shape[1]
    kernel = functools.partial(_fuse_pool_kernel, n_total=N)
    act_spec = pl.BlockSpec((1, tn, C), lambda b, n: (b, n, 0))
    return pl.pallas_call(
        kernel,
        out_shape=(jax.ShapeDtypeStruct((B, N, Cout), jnp.bfloat16),
                   jax.ShapeDtypeStruct((B, 1, Cout), jnp.float32),
                   jax.ShapeDtypeStruct((B, 1, Cout), jnp.float32)),
        grid=(B, N // tn),
        in_specs=[act_spec, act_spec, act_spec, act_spec,
                  pl.BlockSpec((4 * C, Cout), lambda b, n: (0, 0)),
                  pl.BlockSpec((1, Cout), lambda b, n: (0, 0)),
                  pl.BlockSpec((1, Cout), lambda b, n: (0, 0))],
        out_specs=(pl.BlockSpec((1, tn, Cout), lambda b, n: (b, n, 0)),
                   pl.BlockSpec((1, 1, Cout), lambda b, n: (b, 0, 0)),
                   pl.BlockSpec((1, 1, Cout), lambda b, n: (b, 0, 0))),
        compiler_params=pltpu.CompilerParams(
            dimension_semantics=("parallel", "arbitrary"),
            vmem_limit_bytes=VMEM_LIMIT),
    )(x1, x2, x3, x4, w, s, sh)


# --------- kernel 3: head = convs1(xf part)+BN+ReLU -> convs2 -> convs3 -------

def _head_kernel(xf_ref, gb_ref, w1_ref, s1_ref, sh1_ref, w2_ref, s2_ref, sh2_ref,
                 w3_ref, b3_ref, o_ref):
    h = jnp.dot(xf_ref[0], w1_ref[...], preferred_element_type=jnp.float32) + gb_ref[0]
    h = jnp.maximum(h * s1_ref[...] + sh1_ref[...], 0.0)
    h = h.astype(jnp.bfloat16)
    # dp1 Dropout(0.5): identity in eval mode.
    h2 = jnp.dot(h, w2_ref[...], preferred_element_type=jnp.float32)
    h2 = jnp.maximum(h2 * s2_ref[...] + sh2_ref[...], 0.0)
    h2 = h2.astype(jnp.bfloat16)
    y = jnp.dot(h2, w3_ref[...], preferred_element_type=jnp.float32) + b3_ref[...]
    o_ref[0] = y.astype(o_ref.dtype)


def head(xf, gb, w1, s1, sh1, w2, s2, sh2, w3, b3, tn):
    B, N, C1 = xf.shape
    C2 = w1.shape[1]
    C3 = w2.shape[1]
    Cp = w3.shape[1]   # lane-padded class dim (128)
    return pl.pallas_call(
        _head_kernel,
        out_shape=jax.ShapeDtypeStruct((B, N, Cp), jnp.float32),
        grid=(B, N // tn),
        in_specs=[
            pl.BlockSpec((1, tn, C1), lambda b, n: (b, n, 0)),
            pl.BlockSpec((1, 1, C2), lambda b, n: (b, 0, 0)),
            pl.BlockSpec((C1, C2), lambda b, n: (0, 0)),
            pl.BlockSpec((1, C2), lambda b, n: (0, 0)),
            pl.BlockSpec((1, C2), lambda b, n: (0, 0)),
            pl.BlockSpec((C2, C3), lambda b, n: (0, 0)),
            pl.BlockSpec((1, C3), lambda b, n: (0, 0)),
            pl.BlockSpec((1, C3), lambda b, n: (0, 0)),
            pl.BlockSpec((C3, Cp), lambda b, n: (0, 0)),
            pl.BlockSpec((1, Cp), lambda b, n: (0, 0)),
        ],
        out_specs=pl.BlockSpec((1, tn, Cp), lambda b, n: (b, n, 0)),
        compiler_params=pltpu.CompilerParams(
            dimension_semantics=("parallel", "parallel"),
            vmem_limit_bytes=VMEM_LIMIT),
    )(xf, gb, w1, s1, sh1, w2, s2, sh2, w3, b3)


# ----------------------------- parameters ------------------------------------

def init_params(key):
    keys = iter(jax.random.split(key, 128))
    nk = lambda: next(keys)

    def conv_w(cin, cout):  # stored as (Cin, Cout)  (== torch weight[:, :, 0].T)
        return jax.random.normal(nk(), (cin, cout), jnp.float32) / jnp.sqrt(float(cin))

    def bias(c):
        return 0.02 * jax.random.normal(nk(), (c,), jnp.float32)

    def bn(c):
        gamma = 1.0 + 0.1 * jax.random.normal(nk(), (c,), jnp.float32)
        beta = 0.05 * jax.random.normal(nk(), (c,), jnp.float32)
        mean = 0.05 * jax.random.normal(nk(), (c,), jnp.float32)
        var = 1.0 + 0.1 * jnp.abs(jax.random.normal(nk(), (c,), jnp.float32))
        return (gamma, beta, mean, var)

    def sa(c):
        return dict(wq=conv_w(c, c // 4), wv=conv_w(c, c), bv=bias(c),
                    wt=conv_w(c, c), bt=bias(c), bn=bn(c))

    return dict(
        conv1_w=conv_w(6, 128), bn1=bn(128),
        conv2_w=conv_w(128, 128), bn2=bn(128),
        convmsf1_w=conv_w(256, 128), bnmsf1=bn(128),
        convmsf2_w=conv_w(256, 128), bnmsf2=bn(128),
        convmsf3_w=conv_w(256, 128), bnmsf3=bn(128),
        convmsf4_w=conv_w(256, 128), bnmsf4=bn(128),
        mu1=jnp.array([0.2], jnp.float32), mu2=jnp.array([0.15], jnp.float32),
        mu3=jnp.array([0.1], jnp.float32), mu4=jnp.array([0.1], jnp.float32),
        sa1=sa(128), sa2=sa(128), sa3=sa(128), sa4=sa(128),
        conv_fuse_w=conv_w(512, 1024), bn_fuse=bn(1024),
        label_w=0.1 * jax.random.normal(nk(), (64,), jnp.float32), label_bn=bn(64),
        convs1_w=conv_w(3136, 512), convs1_b=bias(512), bns1=bn(512),
        convs2_w=conv_w(512, 256), convs2_b=bias(256), bns2=bn(256),
        convs3_w=conv_w(256, 3), convs3_b=bias(3),
    )


# ----------------------------- forward ---------------------------------------

def forward(params, x_in, f1, f2, f3, f4, cls_label):
    """Eval-mode forward; x_in: (B, 6, N), f*: (B, 128, N), cls_label: (B,)."""
    B, C_in, N = x_in.shape                       # C = 6 as in the reference
    tn = _choose_tile(N, 1024)                    # HBM-bound kernels: big tiles
    tq = _choose_tile(N, 512)                     # attention q-tile
    bf = jnp.bfloat16

    xT = jnp.transpose(x_in, (0, 2, 1))                       # (B, N, 6)
    x8 = jnp.pad(xT, ((0, 0), (0, 0), (0, 8 - C_in))).astype(bf)
    fs = [jnp.transpose(f, (0, 2, 1)).astype(bf) for f in (f1, f2, f3, f4)]

    # stem (conv1 6->128 padded to 8, conv2 128->128) — fused into block 1.
    s1, sh1 = bn_fold(*params["bn1"])
    s2, sh2 = bn_fold(*params["bn2"])
    w1 = jnp.pad(params["conv1_w"], ((0, 8 - C_in), (0, 0))).astype(bf)
    w2 = params["conv2_w"].astype(bf)
    stem_args = (w1, _row(s1), _row(sh1), w2, _row(s2), _row(sh2))

    # --- 4x (leader_combine + spatial_attention(identity) + SA_Layer) ---
    mus = [params["mu1"], params["mu2"], params["mu3"], params["mu4"]]
    xs = []
    cur = x8
    for i in range(4):
        w_msf = params[f"convmsf{i + 1}_w"].astype(bf)
        s_m, sh_m = bn_fold(*params[f"bnmsf{i + 1}"])
        sap = params[f"sa{i + 1}"]
        s_sa, sh_sa = bn_fold(*sap["bn"], bias=sap["bt"])
        cur = leader_sa_block(cur, fs[i], w_msf, s_m, sh_m, mus[i],
                              sap["wq"].astype(bf), sap["wv"].astype(bf), sap["bv"],
                              sap["wt"].astype(bf), s_sa, sh_sa,
                              c_in=C_in, tq=tq,
                              stem=stem_args if i == 0 else None)
        xs.append(cur)

    # --- conv_fuse (split-weight, no concat) + fused max/mean pooling ---
    sF, shF = bn_fold(*params["bn_fuse"])
    wF = params["conv_fuse_w"].astype(bf)
    xf, x_max, x_mean = fuse_pool(xs[0], xs[1], xs[2], xs[3],
                                  wF, _row(sF), _row(shF), tn)

    # --- label feature (tiny, plain JAX glue) ---
    ls, lsh = bn_fold(*params["label_bn"])
    lab = cls_label.reshape(B, 1).astype(jnp.float32) * params["label_w"].reshape(1, 64)
    lab = lab * ls + lsh
    lab = jnp.where(lab > 0.0, lab, 0.2 * lab)                # (B, 64)

    # --- per-batch global bias replacing the (B, N, 3136) concat for convs1 ---
    W1full = params["convs1_w"]                               # (3136, 512)
    gb = (x_max.reshape(B, 1024) @ W1full[1024:2048]
          + x_mean.reshape(B, 1024) @ W1full[2048:3072]
          + lab @ W1full[3072:3136]
          + params["convs1_b"].reshape(1, 512)).reshape(B, 1, 512).astype(jnp.float32)

    # --- head: convs1(xf) + BN + ReLU -> convs2 + BN + ReLU -> convs3 (padded) ---
    s_c1, sh_c1 = bn_fold(*params["bns1"])
    s_c2, sh_c2 = bn_fold(*params["bns2"], bias=params["convs2_b"])
    w_c1 = W1full[:1024].astype(bf)
    w_c2 = params["convs2_w"].astype(bf)
    num_class = params["convs3_w"].shape[1]
    w_c3 = jnp.pad(params["convs3_w"], ((0, 0), (0, 128 - num_class))).astype(bf)
    b_c3 = jnp.pad(params["convs3_b"], (0, 128 - num_class)).reshape(1, 128)

    y = head(xf, gb, w_c1, _row(s_c1), _row(sh_c1),
             w_c2, _row(s_c2), _row(sh_c2), w_c3, b_c3.astype(jnp.float32), tn)

    # PyTorch permutes (B, num_class, N) -> (B, N, num_class); layout already (B,N,C).
    return y[:, :, :num_class], None


# ----------------------------- driver ----------------------------------------

if __name__ == "__main__":
    key = jax.random.PRNGKey(0)
    ks = jax.random.split(key, 8)
    B, N = 2, 16

    x = jax.random.normal(ks[0], (B, 6, N), jnp.float32)
    f1 = jax.random.normal(ks[1], (B, 128, N), jnp.float32)
    f2 = jax.random.normal(ks[2], (B, 128, N), jnp.float32)
    f3 = jax.random.normal(ks[3], (B, 128, N), jnp.float32)
    f4 = jax.random.normal(ks[4], (B, 128, N), jnp.float32)
    cls_label = jnp.array([0.0, 1.0], dtype=jnp.float32)
    params = init_params(ks[5])

    fwd = jax.jit(forward)
    out, _ = fwd(params, x, f1, f2, f3, f4, cls_label)
    out = jax.block_until_ready(out)
    assert out.shape == (B, N, 3), out.shape
    assert bool(jnp.all(jnp.isfinite(out)))
    print("KERNEL_OK")
</pallas_src>

<mosaic_0001>
module attributes {stable_mosaic.version = 11 : i64} {
  func.func @_block_kernel(%arg0: i32, %arg1: memref<1x16x128xbf16, #tpu.memory_space<vmem>>, %arg2: memref<1x16x128xbf16, #tpu.memory_space<vmem>>, %arg3: memref<256x128xbf16, #tpu.memory_space<vmem>>, %arg4: memref<1x128xf32, #tpu.memory_space<vmem>>, %arg5: memref<1x128xf32, #tpu.memory_space<vmem>>, %arg6: memref<1xf32, #tpu.memory_space<smem>>, %arg7: memref<128x32xbf16, #tpu.memory_space<vmem>>, %arg8: memref<128x128xbf16, #tpu.memory_space<vmem>>, %arg9: memref<1x128xf32, #tpu.memory_space<vmem>>, %arg10: memref<128x128xbf16, #tpu.memory_space<vmem>>, %arg11: memref<1x128xf32, #tpu.memory_space<vmem>>, %arg12: memref<1x128xf32, #tpu.memory_space<vmem>>, %arg13: memref<1x16x128xbf16, #tpu.memory_space<vmem>>) attributes {dimension_semantics = [#tpu.dimension_semantics<parallel>], iteration_bounds = array<i64: 2>, scalar_prefetch = 0 : i64, scratch_operands = 0 : i64, tpu.core_type = #tpu.core_type<tc>, window_params = [{transform_indices = @transform_0, window_bounds = array<i64: 1, 16, 128>}, {transform_indices = @transform_1, window_bounds = array<i64: 1, 16, 128>}, {pipeline_mode = #tpu.pipeline_mode<synchronous>, transform_indices = @transform_2, window_bounds = array<i64: 256, 128>}, {pipeline_mode = #tpu.pipeline_mode<synchronous>, transform_indices = @transform_3, window_bounds = array<i64: 1, 128>}, {pipeline_mode = #tpu.pipeline_mode<synchronous>, transform_indices = @transform_4, window_bounds = array<i64: 1, 128>}, {transform_indices = @transform_5, window_bounds = array<i64: 1>}, {pipeline_mode = #tpu.pipeline_mode<synchronous>, transform_indices = @transform_6, window_bounds = array<i64: 128, 32>}, {pipeline_mode = #tpu.pipeline_mode<synchronous>, transform_indices = @transform_7, window_bounds = array<i64: 128, 128>}, {pipeline_mode = #tpu.pipeline_mode<synchronous>, transform_indices = @transform_8, window_bounds = array<i64: 1, 128>}, {pipeline_mode = #tpu.pipeline_mode<synchronous>, transform_indices = @transform_9, window_bounds = array<i64: 128, 128>}, {pipeline_mode = #tpu.pipeline_mode<synchronous>, transform_indices = @transform_10, window_bounds = array<i64: 1, 128>}, {pipeline_mode = #tpu.pipeline_mode<synchronous>, transform_indices = @transform_11, window_bounds = array<i64: 1, 128>}, {transform_indices = @transform_12, window_bounds = array<i64: 1, 16, 128>}]} {
    %c0 = arith.constant 0 : index
    %c0_0 = arith.constant 0 : index
    %c0_1 = arith.constant 0 : index
    %0 = vector.load %arg1[%c0, %c0_0, %c0_1] : memref<1x16x128xbf16, #tpu.memory_space<vmem>>, vector<1x16x128xbf16>
    %1 = vector.shape_cast %0 : vector<1x16x128xbf16> to vector<16x128xbf16>
    %c0_2 = arith.constant 0 : index
    %c0_3 = arith.constant 0 : index
    %c0_4 = arith.constant 0 : index
    %2 = vector.load %arg2[%c0_2, %c0_3, %c0_4] : memref<1x16x128xbf16, #tpu.memory_space<vmem>>, vector<1x16x128xbf16>
    %3 = vector.shape_cast %2 : vector<1x16x128xbf16> to vector<16x128xbf16>
    %c0_5 = arith.constant 0 : index
    %c0_6 = arith.constant 0 : index
    %4 = vector.load %arg3[%c0_5, %c0_6] : memref<256x128xbf16, #tpu.memory_space<vmem>>, vector<128x128xbf16>
    %cst = arith.constant dense<0.000000e+00> : vector<16x128xf32>
    %5 = tpu.matmul %1, %4, %cst {dimension_numbers = #tpu.dot_dimension_numbers<[1], [0], [0], [1], [0, 0, 1, 1], [], []>} : vector<16x128xbf16>, vector<128x128xbf16>, vector<16x128xf32> -> vector<16x128xf32>
    %c128 = arith.constant 128 : index
    %c0_7 = arith.constant 0 : index
    %6 = vector.load %arg3[%c128, %c0_7] : memref<256x128xbf16, #tpu.memory_space<vmem>>, vector<128x128xbf16>
    %cst_8 = arith.constant dense<0.000000e+00> : vector<16x128xf32>
    %7 = tpu.matmul %3, %6, %cst_8 {dimension_numbers = #tpu.dot_dimension_numbers<[1], [0], [0], [1], [0, 0, 1, 1], [], []>} : vector<16x128xbf16>, vector<128x128xbf16>, vector<16x128xf32> -> vector<16x128xf32>
    %8 = arith.addf %5, %7 : vector<16x128xf32>
    %c0_9 = arith.constant 0 : index
    %c0_10 = arith.constant 0 : index
    %9 = vector.load %arg4[%c0_9, %c0_10] : memref<1x128xf32, #tpu.memory_space<vmem>>, vector<1x128xf32>
    %10 = vector.broadcast %9 : vector<1x128xf32> to vector<16x128xf32>
    %11 = arith.mulf %8, %10 : vector<16x128xf32>
    %c0_11 = arith.constant 0 : index
    %c0_12 = arith.constant 0 : index
    %12 = vector.load %arg5[%c0_11, %c0_12] : memref<1x128xf32, #tpu.memory_space<vmem>>, vector<1x128xf32>
    %13 = vector.broadcast %12 : vector<1x128xf32> to vector<16x128xf32>
    %14 = arith.addf %11, %13 : vector<16x128xf32>
    %cst_13 = arith.constant 0.000000e+00 : f32
    %15 = vector.broadcast %cst_13 : f32 to vector<16x128xf32>
    %16 = arith.maximumf %14, %15 : vector<16x128xf32>
    %17 = tpu.iota {dimensions = array<i32: 1>} : vector<16x128xi32>
    %c3_i32 = arith.constant 3 : i32
    %18 = vector.broadcast %c3_i32 : i32 to vector<16x128xi32>
    %19 = arith.cmpi slt, %17, %18 : vector<16x128xi32>
    %20 = arith.select %19, %1, %3 : vector<16x128xi1>, vector<16x128xbf16>
    %21 = arith.extf %20 : vector<16x128xbf16> to vector<16x128xf32>
    %c1_i32 = arith.constant 1 : i32
    %22 = vector.broadcast %c1_i32 : i32 to vector<16x128xi32>
    %23 = arith.cmpi slt, %17, %22 : vector<16x128xi32>
    %c3_i32_14 = arith.constant 3 : i32
    %24 = vector.broadcast %c3_i32_14 : i32 to vector<16x128xi32>
    %25 = arith.cmpi sge, %17, %24 : vector<16x128xi32>
    %c4_i32 = arith.constant 4 : i32
    %26 = vector.broadcast %c4_i32 : i32 to vector<16x128xi32>
    %27 = arith.cmpi slt, %17, %26 : vector<16x128xi32>
    %28 = arith.andi %25, %27 : vector<16x128xi1>
    %29 = arith.ori %23, %28 : vector<16x128xi1>
    %cst_15 = arith.constant 0.000000e+00 : f32
    %30 = vector.broadcast %cst_15 : f32 to vector<16x128xf32>
    %31 = arith.select %29, %21, %30 : vector<16x128xi1>, vector<16x128xf32>
    %32 = arith.subf %21, %31 : vector<16x128xf32>
    %c15_i32 = arith.constant 15 : i32
    %33 = tpu.dynamic_rotate %31 by %c15_i32 dim 0 : vector<16x128xf32>, i32 -> vector<16x128xf32>
    %c1_i32_16 = arith.constant 1 : i32
    %34 = tpu.dynamic_rotate %32 by %c1_i32_16 dim 0 : vector<16x128xf32>, i32 -> vector<16x128xf32>
    %35 = arith.addf %33, %34 : vector<16x128xf32>
    %c0_17 = arith.constant 0 : index
    %36 = memref.load %arg6[%c0_17] : memref<1xf32, #tpu.memory_space<smem>>
    %37 = vector.broadcast %36 : f32 to vector<16x128xf32>
    %38 = arith.mulf %35, %37 : vector<16x128xf32>
    %39 = arith.addf %38, %16 : vector<16x128xf32>
    %40 = arith.truncf %39 : vector<16x128xf32> to vector<16x128xbf16>
    %c0_18 = arith.constant 0 : index
    %c0_19 = arith.constant 0 : index
    %41 = vector.load %arg7[%c0_18, %c0_19] : memref<128x32xbf16, #tpu.memory_space<vmem>>, vector<128x32xbf16>
    %cst_20 = arith.constant dense<0.000000e+00> : vector<16x32xf32>
    %42 = tpu.matmul %40, %41, %cst_20 {dimension_numbers = #tpu.dot_dimension_numbers<[1], [0], [0], [1], [0, 0, 1, 1], [], []>} : vector<16x128xbf16>, vector<128x32xbf16>, vector<16x32xf32> -> vector<16x32xf32>
    %43 = arith.truncf %42 : vector<16x32xf32> to vector<16x32xbf16>
    %c0_21 = arith.constant 0 : index
    %c0_22 = arith.constant 0 : index
    %44 = vector.load %arg8[%c0_21, %c0_22] : memref<128x128xbf16, #tpu.memory_space<vmem>>, vector<128x128xbf16>
    %cst_23 = arith.constant dense<0.000000e+00> : vector<16x128xf32>
    %45 = tpu.matmul %40, %44, %cst_23 {dimension_numbers = #tpu.dot_dimension_numbers<[1], [0], [0], [1], [0, 0, 1, 1], [], []>} : vector<16x128xbf16>, vector<128x128xbf16>, vector<16x128xf32> -> vector<16x128xf32>
    %c0_24 = arith.constant 0 : index
    %c0_25 = arith.constant 0 : index
    %46 = vector.load %arg9[%c0_24, %c0_25] : memref<1x128xf32, #tpu.memory_space<vmem>>, vector<1x128xf32>
    %47 = vector.broadcast %46 : vector<1x128xf32> to vector<16x128xf32>
    %48 = arith.addf %45, %47 : vector<16x128xf32>
    %cst_26 = arith.constant 0.000000e+00 : f32
    %49 = vector.broadcast %cst_26 : f32 to vector<16x128xf32>
    %cst_27 = arith.constant 0.000000e+00 : f32
    %50 = vector.broadcast %cst_27 : f32 to vector<16x128xf32>
    %cst_28 = arith.constant dense<0.000000e+00> : vector<16x16xf32>
    %51 = tpu.matmul %43, %43, %cst_28 {dimension_numbers = #tpu.dot_dimension_numbers<[1], [1], [0], [0], [0, 0, 1, 0], [], []>} : vector<16x32xbf16>, vector<16x32xbf16>, vector<16x16xf32> -> vector<16x16xf32>
    %cst_29 = arith.constant dense<0xFF800000> : vector<16xf32>
    %52 = vector.multi_reduction <maximumf>, %51, %cst_29 [1] : vector<16x16xf32> to vector<16xf32>
    %53 = vector.shape_cast %52 : vector<16xf32> to vector<16x1xf32>
    %54 = vector.broadcast %53 : vector<16x1xf32> to vector<16x16xf32>
    %55 = arith.subf %51, %54 : vector<16x16xf32>
    %56 = math.exp %55 : vector<16x16xf32>
    %cst_30 = arith.constant dense<0.000000e+00> : vector<16xf32>
    %57 = vector.multi_reduction <add>, %56, %cst_30 [1] : vector<16x16xf32> to vector<16xf32>
    %58 = vector.shape_cast %57 : vector<16xf32> to vector<16x1xf32>
    %59 = tpu.reciprocal %58 {approx = true} : vector<16x1xf32> -> vector<16x1xf32>
    %60 = arith.truncf %56 : vector<16x16xf32> to vector<16x16xbf16>
    %61 = vector.broadcast %59 : vector<16x1xf32> to vector<16x128xf32>
    %62 = arith.mulf %48, %61 : vector<16x128xf32>
    %63 = arith.truncf %62 : vector<16x128xf32> to vector<16x128xbf16>
    %64 = vector.shape_cast %59 : vector<16x1xf32> to vector<16x1xf32>
    %65 = vector.broadcast %64 : vector<16x1xf32> to vector<16x128xf32>
    %66 = arith.truncf %65 : vector<16x128xf32> to vector<16x128xbf16>
    %cst_31 = arith.constant dense<0.000000e+00> : vector<16x128xf32>
    %67 = tpu.matmul %60, %63, %cst_31 {dimension_numbers = #tpu.dot_dimension_numbers<[0], [0], [1], [1], [0, 1, 1, 1], [], []>} : vector<16x16xbf16>, vector<16x128xbf16>, vector<16x128xf32> -> vector<16x128xf32>
    %68 = arith.addf %49, %67 : vector<16x128xf32>
    %cst_32 = arith.constant dense<0.000000e+00> : vector<16x128xf32>
    %69 = tpu.matmul %60, %66, %cst_32 {dimension_numbers = #tpu.dot_dimension_numbers<[0], [0], [1], [1], [0, 1, 1, 1], [], []>} : vector<16x16xbf16>, vector<16x128xbf16>, vector<16x128xf32> -> vector<16x128xf32>
    %70 = arith.addf %50, %69 : vector<16x128xf32>
    %cst_33 = arith.constant 9.99999971E-10 : f32
    %71 = vector.broadcast %cst_33 : f32 to vector<16x128xf32>
    %72 = arith.addf %70, %71 : vector<16x128xf32>
    %73 = tpu.reciprocal %72 {approx = true} : vector<16x128xf32> -> vector<16x128xf32>
    %74 = arith.mulf %68, %73 : vector<16x128xf32>
    %75 = arith.subf %39, %74 : vector<16x128xf32>
    %76 = arith.truncf %75 : vector<16x128xf32> to vector<16x128xbf16>
    %c0_34 = arith.constant 0 : index
    %c0_35 = arith.constant 0 : index
    %77 = vector.load %arg10[%c0_34, %c0_35] : memref<128x128xbf16, #tpu.memory_space<vmem>>, vector<128x128xbf16>
    %cst_36 = arith.constant dense<0.000000e+00> : vector<16x128xf32>
    %78 = tpu.matmul %76, %77, %cst_36 {dimension_numbers = #tpu.dot_dimension_numbers<[1], [0], [0], [1], [0, 0, 1, 1], [], []>} : vector<16x128xbf16>, vector<128x128xbf16>, vector<16x128xf32> -> vector<16x128xf32>
    %c0_37 = arith.constant 0 : index
    %c0_38 = arith.constant 0 : index
    %79 = vector.load %arg11[%c0_37, %c0_38] : memref<1x128xf32, #tpu.memory_space<vmem>>, vector<1x128xf32>
    %80 = vector.broadcast %79 : vector<1x128xf32> to vector<16x128xf32>
    %81 = arith.mulf %78, %80 : vector<16x128xf32>
    %c0_39 = arith.constant 0 : index
    %c0_40 = arith.constant 0 : index
    %82 = vector.load %arg12[%c0_39, %c0_40] : memref<1x128xf32, #tpu.memory_space<vmem>>, vector<1x128xf32>
    %83 = vector.broadcast %82 : vector<1x128xf32> to vector<16x128xf32>
    %84 = arith.addf %81, %83 : vector<16x128xf32>
    %cst_41 = arith.constant 0.000000e+00 : f32
    %85 = vector.broadcast %cst_41 : f32 to vector<16x128xf32>
    %86 = arith.maximumf %84, %85 : vector<16x128xf32>
    %87 = arith.addf %39, %86 : vector<16x128xf32>
    %88 = arith.truncf %87 : vector<16x128xf32> to vector<16x128xbf16>
    %c0_42 = arith.constant 0 : index
    %c0_43 = arith.constant 0 : index
    %c0_44 = arith.constant 0 : index
    %89 = vector.load %arg13[%c0_42, %c0_43, %c0_44] : memref<1x16x128xbf16, #tpu.memory_space<vmem>>, vector<1x16x128xbf16>
    %90 = vector.shape_cast %89 : vector<1x16x128xbf16> to vector<16x128xbf16>
    %91 = vector.shape_cast %88 : vector<16x128xbf16> to vector<1x16x128xbf16>
    tpu.vector_store %arg13[%c0_42, %c0_43, %c0_44], %91 {strides = array<i32>} : memref<1x16x128xbf16, #tpu.memory_space<vmem>>, vector<1x16x128xbf16>,
    return
  }
  func.func @transform_0(%arg0: i32) -> (i32, i32, i32) {
    %c0_i32 = arith.constant 0 : i32
    %c0_i32_0 = arith.constant 0 : i32
    %c0_i32_1 = arith.constant 0 : i32
    return %arg0, %c0_i32, %c0_i32_0 : i32, i32, i32
  }
  func.func @transform_1(%arg0: i32) -> (i32, i32, i32) {
    %c0_i32 = arith.constant 0 : i32
    %c0_i32_0 = arith.constant 0 : i32
    %c0_i32_1 = arith.constant 0 : i32
    return %arg0, %c0_i32, %c0_i32_0 : i32, i32, i32
  }
  func.func @transform_2(%arg0: i32) -> (i32, i32) {
    %c0_i32 = arith.constant 0 : i32
    %c0_i32_0 = arith.constant 0 : i32
    %c0_i32_1 = arith.constant 0 : i32
    return %c0_i32, %c0_i32_0 : i32, i32
  }
  func.func @transform_3(%arg0: i32) -> (i32, i32) {
    %c0_i32 = arith.constant 0 : i32
    %c0_i32_0 = arith.constant 0 : i32
    %c0_i32_1 = arith.constant 0 : i32
    return %c0_i32, %c0_i32_0 : i32, i32
  }
  func.func @transform_4(%arg0: i32) -> (i32, i32) {
    %c0_i32 = arith.constant 0 : i32
    %c0_i32_0 = arith.constant 0 : i32
    %c0_i32_1 = arith.constant 0 : i32
    return %c0_i32, %c0_i32_0 : i32, i32
  }
  func.func @transform_5(%arg0: i32) -> i32 {
    %c0_i32 = arith.constant 0 : i32
    %c0_i32_0 = arith.constant 0 : i32
    return %c0_i32 : i32
  }
  func.func @transform_6(%arg0: i32) -> (i32, i32) {
    %c0_i32 = arith.constant 0 : i32
    %c0_i32_0 = arith.constant 0 : i32
    %c0_i32_1 = arith.constant 0 : i32
    return %c0_i32, %c0_i32_0 : i32, i32
  }
  func.func @transform_7(%arg0: i32) -> (i32, i32) {
    %c0_i32 = arith.constant 0 : i32
    %c0_i32_0 = arith.constant 0 : i32
    %c0_i32_1 = arith.constant 0 : i32
    return %c0_i32, %c0_i32_0 : i32, i32
  }
  func.func @transform_8(%arg0: i32) -> (i32, i32) {
    %c0_i32 = arith.constant 0 : i32
    %c0_i32_0 = arith.constant 0 : i32
    %c0_i32_1 = arith.constant 0 : i32
    return %c0_i32, %c0_i32_0 : i32, i32
  }
  func.func @transform_9(%arg0: i32) -> (i32, i32) {
    %c0_i32 = arith.constant 0 : i32
    %c0_i32_0 = arith.constant 0 : i32
    %c0_i32_1 = arith.constant 0 : i32
    return %c0_i32, %c0_i32_0 : i32, i32
  }
  func.func @transform_10(%arg0: i32) -> (i32, i32) {
    %c0_i32 = arith.constant 0 : i32
    %c0_i32_0 = arith.constant 0 : i32
    %c0_i32_1 = arith.constant 0 : i32
    return %c0_i32, %c0_i32_0 : i32, i32
  }
  func.func @transform_11(%arg0: i32) -> (i32, i32) {
    %c0_i32 = arith.constant 0 : i32
    %c0_i32_0 = arith.constant 0 : i32
    %c0_i32_1 = arith.constant 0 : i32
    return %c0_i32, %c0_i32_0 : i32, i32
  }
  func.func @transform_12(%arg0: i32) -> (i32, i32, i32) {
    %c0_i32 = arith.constant 0 : i32
    %c0_i32_0 = arith.constant 0 : i32
    %c0_i32_1 = arith.constant 0 : i32
    return %arg0, %c0_i32, %c0_i32_0 : i32, i32, i32
  }
}

module attributes {stable_mosaic.version = 11 : i64} {
  func.func @_block_stem_kernel(%arg0: i32, %arg1: memref<1x16x8xbf16, #tpu.memory_space<vmem>>, %arg2: memref<1x16x128xbf16, #tpu.memory_space<vmem>>, %arg3: memref<8x128xbf16, #tpu.memory_space<vmem>>, %arg4: memref<1x128xf32, #tpu.memory_space<vmem>>, %arg5: memref<1x128xf32, #tpu.memory_space<vmem>>, %arg6: memref<128x128xbf16, #tpu.memory_space<vmem>>, %arg7: memref<1x128xf32, #tpu.memory_space<vmem>>, %arg8: memref<1x128xf32, #tpu.memory_space<vmem>>, %arg9: memref<256x128xbf16, #tpu.memory_space<vmem>>, %arg10: memref<1x128xf32, #tpu.memory_space<vmem>>, %arg11: memref<1x128xf32, #tpu.memory_space<vmem>>, %arg12: memref<1xf32, #tpu.memory_space<smem>>, %arg13: memref<128x32xbf16, #tpu.memory_space<vmem>>, %arg14: memref<128x128xbf16, #tpu.memory_space<vmem>>, %arg15: memref<1x128xf32, #tpu.memory_space<vmem>>, %arg16: memref<128x128xbf16, #tpu.memory_space<vmem>>, %arg17: memref<1x128xf32, #tpu.memory_space<vmem>>, %arg18: memref<1x128xf32, #tpu.memory_space<vmem>>, %arg19: memref<1x16x128xbf16, #tpu.memory_space<vmem>>) attributes {dimension_semantics = [#tpu.dimension_semantics<parallel>], iteration_bounds = array<i64: 2>, scalar_prefetch = 0 : i64, scratch_operands = 0 : i64, tpu.core_type = #tpu.core_type<tc>, window_params = [{transform_indices = @transform_0, window_bounds = array<i64: 1, 16, 8>}, {transform_indices = @transform_1, window_bounds = array<i64: 1, 16, 128>}, {pipeline_mode = #tpu.pipeline_mode<synchronous>, transform_indices = @transform_2, window_bounds = array<i64: 8, 128>}, {pipeline_mode = #tpu.pipeline_mode<synchronous>, transform_indices = @transform_3, window_bounds = array<i64: 1, 128>}, {pipeline_mode = #tpu.pipeline_mode<synchronous>, transform_indices = @transform_4, window_bounds = array<i64: 1, 128>}, {pipeline_mode = #tpu.pipeline_mode<synchronous>, transform_indices = @transform_5, window_bounds = array<i64: 128, 128>}, {pipeline_mode = #tpu.pipeline_mode<synchronous>, transform_indices = @transform_6, window_bounds = array<i64: 1, 128>}, {pipeline_mode = #tpu.pipeline_mode<synchronous>, transform_indices = @transform_7, window_bounds = array<i64: 1, 128>}, {pipeline_mode = #tpu.pipeline_mode<synchronous>, transform_indices = @transform_8, window_bounds = array<i64: 256, 128>}, {pipeline_mode = #tpu.pipeline_mode<synchronous>, transform_indices = @transform_9, window_bounds = array<i64: 1, 128>}, {pipeline_mode = #tpu.pipeline_mode<synchronous>, transform_indices = @transform_10, window_bounds = array<i64: 1, 128>}, {transform_indices = @transform_11, window_bounds = array<i64: 1>}, {pipeline_mode = #tpu.pipeline_mode<synchronous>, transform_indices = @transform_12, window_bounds = array<i64: 128, 32>}, {pipeline_mode = #tpu.pipeline_mode<synchronous>, transform_indices = @transform_13, window_bounds = array<i64: 128, 128>}, {pipeline_mode = #tpu.pipeline_mode<synchronous>, transform_indices = @transform_14, window_bounds = array<i64: 1, 128>}, {pipeline_mode = #tpu.pipeline_mode<synchronous>, transform_indices = @transform_15, window_bounds = array<i64: 128, 128>}, {pipeline_mode = #tpu.pipeline_mode<synchronous>, transform_indices = @transform_16, window_bounds = array<i64: 1, 128>}, {pipeline_mode = #tpu.pipeline_mode<synchronous>, transform_indices = @transform_17, window_bounds = array<i64: 1, 128>}, {transform_indices = @transform_18, window_bounds = array<i64: 1, 16, 128>}]} {
    %c0 = arith.constant 0 : index
    %c0_0 = arith.constant 0 : index
    %c0_1 = arith.constant 0 : index
    %0 = vector.load %arg1[%c0, %c0_0, %c0_1] : memref<1x16x8xbf16, #tpu.memory_space<vmem>>, vector<1x16x8xbf16>
    %1 = vector.shape_cast %0 : vector<1x16x8xbf16> to vector<16x8xbf16>
    %c0_2 = arith.constant 0 : index
    %c0_3 = arith.constant 0 : index
    %2 = vector.load %arg3[%c0_2, %c0_3] : memref<8x128xbf16, #tpu.memory_space<vmem>>, vector<8x128xbf16>
    %cst = arith.constant dense<0.000000e+00> : vector<16x128xf32>
    %3 = tpu.matmul %1, %2, %cst {dimension_numbers = #tpu.dot_dimension_numbers<[1], [0], [0], [1], [0, 0, 1, 1], [], []>} : vector<16x8xbf16>, vector<8x128xbf16>, vector<16x128xf32> -> vector<16x128xf32>
    %c0_4 = arith.constant 0 : index
    %c0_5 = arith.constant 0 : index
    %4 = vector.load %arg4[%c0_4, %c0_5] : memref<1x128xf32, #tpu.memory_space<vmem>>, vector<1x128xf32>
    %5 = vector.broadcast %4 : vector<1x128xf32> to vector<16x128xf32>
    %6 = arith.mulf %3, %5 : vector<16x128xf32>
    %c0_6 = arith.constant 0 : index
    %c0_7 = arith.constant 0 : index
    %7 = vector.load %arg5[%c0_6, %c0_7] : memref<1x128xf32, #tpu.memory_space<vmem>>, vector<1x128xf32>
    %8 = vector.broadcast %7 : vector<1x128xf32> to vector<16x128xf32>
    %9 = arith.addf %6, %8 : vector<16x128xf32>
    %cst_8 = arith.constant 0.000000e+00 : f32
    %10 = vector.broadcast %cst_8 : f32 to vector<16x128xf32>
    %11 = arith.maximumf %9, %10 : vector<16x128xf32>
    %12 = arith.truncf %11 : vector<16x128xf32> to vector<16x128xbf16>
    %c0_9 = arith.constant 0 : index
    %c0_10 = arith.constant 0 : index
    %13 = vector.load %arg6[%c0_9, %c0_10] : memref<128x128xbf16, #tpu.memory_space<vmem>>, vector<128x128xbf16>
    %cst_11 = arith.constant dense<0.000000e+00> : vector<16x128xf32>
    %14 = tpu.matmul %12, %13, %cst_11 {dimension_numbers = #tpu.dot_dimension_numbers<[1], [0], [0], [1], [0, 0, 1, 1], [], []>} : vector<16x128xbf16>, vector<128x128xbf16>, vector<16x128xf32> -> vector<16x128xf32>
    %c0_12 = arith.constant 0 : index
    %c0_13 = arith.constant 0 : index
    %15 = vector.load %arg7[%c0_12, %c0_13] : memref<1x128xf32, #tpu.memory_space<vmem>>, vector<1x128xf32>
    %16 = vector.broadcast %15 : vector<1x128xf32> to vector<16x128xf32>
    %17 = arith.mulf %14, %16 : vector<16x128xf32>
    %c0_14 = arith.constant 0 : index
    %c0_15 = arith.constant 0 : index
    %18 = vector.load %arg8[%c0_14, %c0_15] : memref<1x128xf32, #tpu.memory_space<vmem>>, vector<1x128xf32>
    %19 = vector.broadcast %18 : vector<1x128xf32> to vector<16x128xf32>
    %20 = arith.addf %17, %19 : vector<16x128xf32>
    %cst_16 = arith.constant 0.000000e+00 : f32
    %21 = vector.broadcast %cst_16 : f32 to vector<16x128xf32>
    %22 = arith.maximumf %20, %21 : vector<16x128xf32>
    %23 = arith.truncf %22 : vector<16x128xf32> to vector<16x128xbf16>
    %c0_17 = arith.constant 0 : index
    %c0_18 = arith.constant 0 : index
    %c0_19 = arith.constant 0 : index
    %24 = vector.load %arg2[%c0_17, %c0_18, %c0_19] : memref<1x16x128xbf16, #tpu.memory_space<vmem>>, vector<1x16x128xbf16>
    %25 = vector.shape_cast %24 : vector<1x16x128xbf16> to vector<16x128xbf16>
    %c0_20 = arith.constant 0 : index
    %c0_21 = arith.constant 0 : index
    %26 = vector.load %arg9[%c0_20, %c0_21] : memref<256x128xbf16, #tpu.memory_space<vmem>>, vector<128x128xbf16>
    %cst_22 = arith.constant dense<0.000000e+00> : vector<16x128xf32>
    %27 = tpu.matmul %23, %26, %cst_22 {dimension_numbers = #tpu.dot_dimension_numbers<[1], [0], [0], [1], [0, 0, 1, 1], [], []>} : vector<16x128xbf16>, vector<128x128xbf16>, vector<16x128xf32> -> vector<16x128xf32>
    %c128 = arith.constant 128 : index
    %c0_23 = arith.constant 0 : index
    %28 = vector.load %arg9[%c128, %c0_23] : memref<256x128xbf16, #tpu.memory_space<vmem>>, vector<128x128xbf16>
    %cst_24 = arith.constant dense<0.000000e+00> : vector<16x128xf32>
    %29 = tpu.matmul %25, %28, %cst_24 {dimension_numbers = #tpu.dot_dimension_numbers<[1], [0], [0], [1], [0, 0, 1, 1], [], []>} : vector<16x128xbf16>, vector<128x128xbf16>, vector<16x128xf32> -> vector<16x128xf32>
    %30 = arith.addf %27, %29 : vector<16x128xf32>
    %c0_25 = arith.constant 0 : index
    %c0_26 = arith.constant 0 : index
    %31 = vector.load %arg10[%c0_25, %c0_26] : memref<1x128xf32, #tpu.memory_space<vmem>>, vector<1x128xf32>
    %32 = vector.broadcast %31 : vector<1x128xf32> to vector<16x128xf32>
    %33 = arith.mulf %30, %32 : vector<16x128xf32>
    %c0_27 = arith.constant 0 : index
    %c0_28 = arith.constant 0 : index
    %34 = vector.load %arg11[%c0_27, %c0_28] : memref<1x128xf32, #tpu.memory_space<vmem>>, vector<1x128xf32>
    %35 = vector.broadcast %34 : vector<1x128xf32> to vector<16x128xf32>
    %36 = arith.addf %33, %35 : vector<16x128xf32>
    %cst_29 = arith.constant 0.000000e+00 : f32
    %37 = vector.broadcast %cst_29 : f32 to vector<16x128xf32>
    %38 = arith.maximumf %36, %37 : vector<16x128xf32>
    %39 = tpu.iota {dimensions = array<i32: 1>} : vector<16x128xi32>
    %c3_i32 = arith.constant 3 : i32
    %40 = vector.broadcast %c3_i32 : i32 to vector<16x128xi32>
    %41 = arith.cmpi slt, %39, %40 : vector<16x128xi32>
    %42 = arith.select %41, %23, %25 : vector<16x128xi1>, vector<16x128xbf16>
    %43 = arith.extf %42 : vector<16x128xbf16> to vector<16x128xf32>
    %c1_i32 = arith.constant 1 : i32
    %44 = vector.broadcast %c1_i32 : i32 to vector<16x128xi32>
    %45 = arith.cmpi slt, %39, %44 : vector<16x128xi32>
    %c3_i32_30 = arith.constant 3 : i32
    %46 = vector.broadcast %c3_i32_30 : i32 to vector<16x128xi32>
    %47 = arith.cmpi sge, %39, %46 : vector<16x128xi32>
    %c4_i32 = arith.constant 4 : i32
    %48 = vector.broadcast %c4_i32 : i32 to vector<16x128xi32>
    %49 = arith.cmpi slt, %39, %48 : vector<16x128xi32>
    %50 = arith.andi %47, %49 : vector<16x128xi1>
    %51 = arith.ori %45, %50 : vector<16x128xi1>
    %cst_31 = arith.constant 0.000000e+00 : f32
    %52 = vector.broadcast %cst_31 : f32 to vector<16x128xf32>
    %53 = arith.select %51, %43, %52 : vector<16x128xi1>, vector<16x128xf32>
    %54 = arith.subf %43, %53 : vector<16x128xf32>
    %c15_i32 = arith.constant 15 : i32
    %55 = tpu.dynamic_rotate %53 by %c15_i32 dim 0 : vector<16x128xf32>, i32 -> vector<16x128xf32>
    %c1_i32_32 = arith.constant 1 : i32
    %56 = tpu.dynamic_rotate %54 by %c1_i32_32 dim 0 : vector<16x128xf32>, i32 -> vector<16x128xf32>
    %57 = arith.addf %55, %56 : vector<16x128xf32>
    %c0_33 = arith.constant 0 : index
    %58 = memref.load %arg12[%c0_33] : memref<1xf32, #tpu.memory_space<smem>>
    %59 = vector.broadcast %58 : f32 to vector<16x128xf32>
    %60 = arith.mulf %57, %59 : vector<16x128xf32>
    %61 = arith.addf %60, %38 : vector<16x128xf32>
    %62 = arith.truncf %61 : vector<16x128xf32> to vector<16x128xbf16>
    %c0_34 = arith.constant 0 : index
    %c0_35 = arith.constant 0 : index
    %63 = vector.load %arg13[%c0_34, %c0_35] : memref<128x32xbf16, #tpu.memory_space<vmem>>, vector<128x32xbf16>
    %cst_36 = arith.constant dense<0.000000e+00> : vector<16x32xf32>
    %64 = tpu.matmul %62, %63, %cst_36 {dimension_numbers = #tpu.dot_dimension_numbers<[1], [0], [0], [1], [0, 0, 1, 1], [], []>} : vector<16x128xbf16>, vector<128x32xbf16>, vector<16x32xf32> -> vector<16x32xf32>
    %65 = arith.truncf %64 : vector<16x32xf32> to vector<16x32xbf16>
    %c0_37 = arith.constant 0 : index
    %c0_38 = arith.constant 0 : index
    %66 = vector.load %arg14[%c0_37, %c0_38] : memref<128x128xbf16, #tpu.memory_space<vmem>>, vector<128x128xbf16>
    %cst_39 = arith.constant dense<0.000000e+00> : vector<16x128xf32>
    %67 = tpu.matmul %62, %66, %cst_39 {dimension_numbers = #tpu.dot_dimension_numbers<[1], [0], [0], [1], [0, 0, 1, 1], [], []>} : vector<16x128xbf16>, vector<128x128xbf16>, vector<16x128xf32> -> vector<16x128xf32>
    %c0_40 = arith.constant 0 : index
    %c0_41 = arith.constant 0 : index
    %68 = vector.load %arg15[%c0_40, %c0_41] : memref<1x128xf32, #tpu.memory_space<vmem>>, vector<1x128xf32>
    %69 = vector.broadcast %68 : vector<1x128xf32> to vector<16x128xf32>
    %70 = arith.addf %67, %69 : vector<16x128xf32>
    %cst_42 = arith.constant 0.000000e+00 : f32
    %71 = vector.broadcast %cst_42 : f32 to vector<16x128xf32>
    %cst_43 = arith.constant 0.000000e+00 : f32
    %72 = vector.broadcast %cst_43 : f32 to vector<16x128xf32>
    %cst_44 = arith.constant dense<0.000000e+00> : vector<16x16xf32>
    %73 = tpu.matmul %65, %65, %cst_44 {dimension_numbers = #tpu.dot_dimension_numbers<[1], [1], [0], [0], [0, 0, 1, 0], [], []>} : vector<16x32xbf16>, vector<16x32xbf16>, vector<16x16xf32> -> vector<16x16xf32>
    %cst_45 = arith.constant dense<0xFF800000> : vector<16xf32>
    %74 = vector.multi_reduction <maximumf>, %73, %cst_45 [1] : vector<16x16xf32> to vector<16xf32>
    %75 = vector.shape_cast %74 : vector<16xf32> to vector<16x1xf32>
    %76 = vector.broadcast %75 : vector<16x1xf32> to vector<16x16xf32>
    %77 = arith.subf %73, %76 : vector<16x16xf32>
    %78 = math.exp %77 : vector<16x16xf32>
    %cst_46 = arith.constant dense<0.000000e+00> : vector<16xf32>
    %79 = vector.multi_reduction <add>, %78, %cst_46 [1] : vector<16x16xf32> to vector<16xf32>
    %80 = vector.shape_cast %79 : vector<16xf32> to vector<16x1xf32>
    %81 = tpu.reciprocal %80 {approx = true} : vector<16x1xf32> -> vector<16x1xf32>
    %82 = arith.truncf %78 : vector<16x16xf32> to vector<16x16xbf16>
    %83 = vector.broadcast %81 : vector<16x1xf32> to vector<16x128xf32>
    %84 = arith.mulf %70, %83 : vector<16x128xf32>
    %85 = arith.truncf %84 : vector<16x128xf32> to vector<16x128xbf16>
    %86 = vector.shape_cast %81 : vector<16x1xf32> to vector<16x1xf32>
    %87 = vector.broadcast %86 : vector<16x1xf32> to vector<16x128xf32>
    %88 = arith.truncf %87 : vector<16x128xf32> to vector<16x128xbf16>
    %cst_47 = arith.constant dense<0.000000e+00> : vector<16x128xf32>
    %89 = tpu.matmul %82, %85, %cst_47 {dimension_numbers = #tpu.dot_dimension_numbers<[0], [0], [1], [1], [0, 1, 1, 1], [], []>} : vector<16x16xbf16>, vector<16x128xbf16>, vector<16x128xf32> -> vector<16x128xf32>
    %90 = arith.addf %71, %89 : vector<16x128xf32>
    %cst_48 = arith.constant dense<0.000000e+00> : vector<16x128xf32>
    %91 = tpu.matmul %82, %88, %cst_48 {dimension_numbers = #tpu.dot_dimension_numbers<[0], [0], [1], [1], [0, 1, 1, 1], [], []>} : vector<16x16xbf16>, vector<16x128xbf16>, vector<16x128xf32> -> vector<16x128xf32>
    %92 = arith.addf %72, %91 : vector<16x128xf32>
    %cst_49 = arith.constant 9.99999971E-10 : f32
    %93 = vector.broadcast %cst_49 : f32 to vector<16x128xf32>
    %94 = arith.addf %92, %93 : vector<16x128xf32>
    %95 = tpu.reciprocal %94 {approx = true} : vector<16x128xf32> -> vector<16x128xf32>
    %96 = arith.mulf %90, %95 : vector<16x128xf32>
    %97 = arith.subf %61, %96 : vector<16x128xf32>
    %98 = arith.truncf %97 : vector<16x128xf32> to vector<16x128xbf16>
    %c0_50 = arith.constant 0 : index
    %c0_51 = arith.constant 0 : index
    %99 = vector.load %arg16[%c0_50, %c0_51] : memref<128x128xbf16, #tpu.memory_space<vmem>>, vector<128x128xbf16>
    %cst_52 = arith.constant dense<0.000000e+00> : vector<16x128xf32>
    %100 = tpu.matmul %98, %99, %cst_52 {dimension_numbers = #tpu.dot_dimension_numbers<[1], [0], [0], [1], [0, 0, 1, 1], [], []>} : vector<16x128xbf16>, vector<128x128xbf16>, vector<16x128xf32> -> vector<16x128xf32>
    %c0_53 = arith.constant 0 : index
    %c0_54 = arith.constant 0 : index
    %101 = vector.load %arg17[%c0_53, %c0_54] : memref<1x128xf32, #tpu.memory_space<vmem>>, vector<1x128xf32>
    %102 = vector.broadcast %101 : vector<1x128xf32> to vector<16x128xf32>
    %103 = arith.mulf %100, %102 : vector<16x128xf32>
    %c0_55 = arith.constant 0 : index
    %c0_56 = arith.constant 0 : index
    %104 = vector.load %arg18[%c0_55, %c0_56] : memref<1x128xf32, #tpu.memory_space<vmem>>, vector<1x128xf32>
    %105 = vector.broadcast %104 : vector<1x128xf32> to vector<16x128xf32>
    %106 = arith.addf %103, %105 : vector<16x128xf32>
    %cst_57 = arith.constant 0.000000e+00 : f32
    %107 = vector.broadcast %cst_57 : f32 to vector<16x128xf32>
    %108 = arith.maximumf %106, %107 : vector<16x128xf32>
    %109 = arith.addf %61, %108 : vector<16x128xf32>
    %110 = arith.truncf %109 : vector<16x128xf32> to vector<16x128xbf16>
    %c0_58 = arith.constant 0 : index
    %c0_59 = arith.constant 0 : index
    %c0_60 = arith.constant 0 : index
    %111 = vector.load %arg19[%c0_58, %c0_59, %c0_60] : memref<1x16x128xbf16, #tpu.memory_space<vmem>>, vector<1x16x128xbf16>
    %112 = vector.shape_cast %111 : vector<1x16x128xbf16> to vector<16x128xbf16>
    %113 = vector.shape_cast %110 : vector<16x128xbf16> to vector<1x16x128xbf16>
    tpu.vector_store %arg19[%c0_58, %c0_59, %c0_60], %113 {strides = array<i32>} : memref<1x16x128xbf16, #tpu.memory_space<vmem>>, vector<1x16x128xbf16>,
    return
  }
  func.func @transform_0(%arg0: i32) -> (i32, i32, i32) {
    %c0_i32 = arith.constant 0 : i32
    %c0_i32_0 = arith.constant 0 : i32
    %c0_i32_1 = arith.constant 0 : i32
    return %arg0, %c0_i32, %c0_i32_0 : i32, i32, i32
  }
  func.func @transform_1(%arg0: i32) -> (i32, i32, i32) {
    %c0_i32 = arith.constant 0 : i32
    %c0_i32_0 = arith.constant 0 : i32
    %c0_i32_1 = arith.constant 0 : i32
    return %arg0, %c0_i32, %c0_i32_0 : i32, i32, i32
  }
  func.func @transform_2(%arg0: i32) -> (i32, i32) {
    %c0_i32 = arith.constant 0 : i32
    %c0_i32_0 = arith.constant 0 : i32
    %c0_i32_1 = arith.constant 0 : i32
    return %c0_i32, %c0_i32_0 : i32, i32
  }
  func.func @transform_3(%arg0: i32) -> (i32, i32) {
    %c0_i32 = arith.constant 0 : i32
    %c0_i32_0 = arith.constant 0 : i32
    %c0_i32_1 = arith.constant 0 : i32
    return %c0_i32, %c0_i32_0 : i32, i32
  }
  func.func @transform_4(%arg0: i32) -> (i32, i32) {
    %c0_i32 = arith.constant 0 : i32
    %c0_i32_0 = arith.constant 0 : i32
    %c0_i32_1 = arith.constant 0 : i32
    return %c0_i32, %c0_i32_0 : i32, i32
  }
  func.func @transform_5(%arg0: i32) -> (i32, i32) {
    %c0_i32 = arith.constant 0 : i32
    %c0_i32_0 = arith.constant 0 : i32
    %c0_i32_1 = arith.constant 0 : i32
    return %c0_i32, %c0_i32_0 : i32, i32
  }
  func.func @transform_6(%arg0: i32) -> (i32, i32) {
    %c0_i32 = arith.constant 0 : i32
    %c0_i32_0 = arith.constant 0 : i32
    %c0_i32_1 = arith.constant 0 : i32
    return %c0_i32, %c0_i32_0 : i32, i32
  }
  func.func @transform_7(%arg0: i32) -> (i32, i32) {
    %c0_i32 = arith.constant 0 : i32
    %c0_i32_0 = arith.constant 0 : i32
    %c0_i32_1 = arith.constant 0 : i32
    return %c0_i32, %c0_i32_0 : i32, i32
  }
  func.func @transform_8(%arg0: i32) -> (i32, i32) {
    %c0_i32 = arith.constant 0 : i32
    %c0_i32_0 = arith.constant 0 : i32
    %c0_i32_1 = arith.constant 0 : i32
    return %c0_i32, %c0_i32_0 : i32, i32
  }
  func.func @transform_9(%arg0: i32) -> (i32, i32) {
    %c0_i32 = arith.constant 0 : i32
    %c0_i32_0 = arith.constant 0 : i32
    %c0_i32_1 = arith.constant 0 : i32
    return %c0_i32, %c0_i32_0 : i32, i32
  }
  func.func @transform_10(%arg0: i32) -> (i32, i32) {
    %c0_i32 = arith.constant 0 : i32
    %c0_i32_0 = arith.constant 0 : i32
    %c0_i32_1 = arith.constant 0 : i32
    return %c0_i32, %c0_i32_0 : i32, i32
  }
  func.func @transform_11(%arg0: i32) -> i32 {
    %c0_i32 = arith.constant 0 : i32
    %c0_i32_0 = arith.constant 0 : i32
    return %c0_i32 : i32
  }
  func.func @transform_12(%arg0: i32) -> (i32, i32) {
    %c0_i32 = arith.constant 0 : i32
    %c0_i32_0 = arith.constant 0 : i32
    %c0_i32_1 = arith.constant 0 : i32
    return %c0_i32, %c0_i32_0 : i32, i32
  }
  func.func @transform_13(%arg0: i32) -> (i32, i32) {
    %c0_i32 = arith.constant 0 : i32
    %c0_i32_0 = arith.constant 0 : i32
    %c0_i32_1 = arith.constant 0 : i32
    return %c0_i32, %c0_i32_0 : i32, i32
  }
  func.func @transform_14(%arg0: i32) -> (i32, i32) {
    %c0_i32 = arith.constant 0 : i32
    %c0_i32_0 = arith.constant 0 : i32
    %c0_i32_1 = arith.constant 0 : i32
    return %c0_i32, %c0_i32_0 : i32, i32
  }
  func.func @transform_15(%arg0: i32) -> (i32, i32) {
    %c0_i32 = arith.constant 0 : i32
    %c0_i32_0 = arith.constant 0 : i32
    %c0_i32_1 = arith.constant 0 : i32
    return %c0_i32, %c0_i32_0 : i32, i32
  }
  func.func @transform_16(%arg0: i32) -> (i32, i32) {
    %c0_i32 = arith.constant 0 : i32
    %c0_i32_0 = arith.constant 0 : i32
    %c0_i32_1 = arith.constant 0 : i32
    return %c0_i32, %c0_i32_0 : i32, i32
  }
  func.func @transform_17(%arg0: i32) -> (i32, i32) {
    %c0_i32 = arith.constant 0 : i32
    %c0_i32_0 = arith.constant 0 : i32
    %c0_i32_1 = arith.constant 0 : i32
    return %c0_i32, %c0_i32_0 : i32, i32
  }
  func.func @transform_18(%arg0: i32) -> (i32, i32, i32) {
    %c0_i32 = arith.constant 0 : i32
    %c0_i32_0 = arith.constant 0 : i32
    %c0_i32_1 = arith.constant 0 : i32
    return %arg0, %c0_i32, %c0_i32_0 : i32, i32, i32
  }
}

module attributes {stable_mosaic.version = 11 : i64} {
  func.func @_fuse_pool_kernel(%arg0: i32, %arg1: i32, %arg2: memref<1x16x128xbf16, #tpu.memory_space<vmem>>, %arg3: memref<1x16x128xbf16, #tpu.memory_space<vmem>>, %arg4: memref<1x16x128xbf16, #tpu.memory_space<vmem>>, %arg5: memref<1x16x128xbf16, #tpu.memory_space<vmem>>, %arg6: memref<512x1024xbf16, #tpu.memory_space<vmem>>, %arg7: memref<1x1024xf32, #tpu.memory_space<vmem>>, %arg8: memref<1x1024xf32, #tpu.memory_space<vmem>>, %arg9: memref<1x16x1024xbf16, #tpu.memory_space<vmem>>, %arg10: memref<1x1x1024xf32, #tpu.memory_space<vmem>>, %arg11: memref<1x1x1024xf32, #tpu.memory_space<vmem>>) attributes {dimension_semantics = [#tpu.dimension_semantics<parallel>, #tpu.dimension_semantics<arbitrary>], iteration_bounds = array<i64: 2, 1>, scalar_prefetch = 0 : i64, scratch_operands = 0 : i64, tpu.core_type = #tpu.core_type<tc>, window_params = [{transform_indices = @transform_0, window_bounds = array<i64: 1, 16, 128>}, {transform_indices = @transform_1, window_bounds = array<i64: 1, 16, 128>}, {transform_indices = @transform_2, window_bounds = array<i64: 1, 16, 128>}, {transform_indices = @transform_3, window_bounds = array<i64: 1, 16, 128>}, {pipeline_mode = #tpu.pipeline_mode<synchronous>, transform_indices = @transform_4, window_bounds = array<i64: 512, 1024>}, {pipeline_mode = #tpu.pipeline_mode<synchronous>, transform_indices = @transform_5, window_bounds = array<i64: 1, 1024>}, {pipeline_mode = #tpu.pipeline_mode<synchronous>, transform_indices = @transform_6, window_bounds = array<i64: 1, 1024>}, {transform_indices = @transform_7, window_bounds = array<i64: 1, 16, 1024>}, {transform_indices = @transform_8, window_bounds = array<i64: 1, 1, 1024>}, {transform_indices = @transform_9, window_bounds = array<i64: 1, 1, 1024>}]} {
    %c0 = arith.constant 0 : index
    %c0_0 = arith.constant 0 : index
    %c0_1 = arith.constant 0 : index
    %0 = vector.load %arg2[%c0, %c0_0, %c0_1] : memref<1x16x128xbf16, #tpu.memory_space<vmem>>, vector<1x16x128xbf16>
    %1 = vector.shape_cast %0 : vector<1x16x128xbf16> to vector<16x128xbf16>
    %c0_2 = arith.constant 0 : index
    %c0_3 = arith.constant 0 : index
    %2 = vector.load %arg6[%c0_2, %c0_3] : memref<512x1024xbf16, #tpu.memory_space<vmem>>, vector<128x1024xbf16>
    %cst = arith.constant dense<0.000000e+00> : vector<16x1024xf32>
    %3 = tpu.matmul %1, %2, %cst {dimension_numbers = #tpu.dot_dimension_numbers<[1], [0], [0], [1], [0, 0, 1, 1], [], []>} : vector<16x128xbf16>, vector<128x1024xbf16>, vector<16x1024xf32> -> vector<16x1024xf32>
    %c0_4 = arith.constant 0 : index
    %c0_5 = arith.constant 0 : index
    %c0_6 = arith.constant 0 : index
    %4 = vector.load %arg3[%c0_4, %c0_5, %c0_6] : memref<1x16x128xbf16, #tpu.memory_space<vmem>>, vector<1x16x128xbf16>
    %5 = vector.shape_cast %4 : vector<1x16x128xbf16> to vector<16x128xbf16>
    %c128 = arith.constant 128 : index
    %c0_7 = arith.constant 0 : index
    %6 = vector.load %arg6[%c128, %c0_7] : memref<512x1024xbf16, #tpu.memory_space<vmem>>, vector<128x1024xbf16>
    %cst_8 = arith.constant dense<0.000000e+00> : vector<16x1024xf32>
    %7 = tpu.matmul %5, %6, %cst_8 {dimension_numbers = #tpu.dot_dimension_numbers<[1], [0], [0], [1], [0, 0, 1, 1], [], []>} : vector<16x128xbf16>, vector<128x1024xbf16>, vector<16x1024xf32> -> vector<16x1024xf32>
    %8 = arith.addf %3, %7 : vector<16x1024xf32>
    %c0_9 = arith.constant 0 : index
    %c0_10 = arith.constant 0 : index
    %c0_11 = arith.constant 0 : index
    %9 = vector.load %arg4[%c0_9, %c0_10, %c0_11] : memref<1x16x128xbf16, #tpu.memory_space<vmem>>, vector<1x16x128xbf16>
    %10 = vector.shape_cast %9 : vector<1x16x128xbf16> to vector<16x128xbf16>
    %c256 = arith.constant 256 : index
    %c0_12 = arith.constant 0 : index
    %11 = vector.load %arg6[%c256, %c0_12] : memref<512x1024xbf16, #tpu.memory_space<vmem>>, vector<128x1024xbf16>
    %cst_13 = arith.constant dense<0.000000e+00> : vector<16x1024xf32>
    %12 = tpu.matmul %10, %11, %cst_13 {dimension_numbers = #tpu.dot_dimension_numbers<[1], [0], [0], [1], [0, 0, 1, 1], [], []>} : vector<16x128xbf16>, vector<128x1024xbf16>, vector<16x1024xf32> -> vector<16x1024xf32>
    %13 = arith.addf %8, %12 : vector<16x1024xf32>
    %c0_14 = arith.constant 0 : index
    %c0_15 = arith.constant 0 : index
    %c0_16 = arith.constant 0 : index
    %14 = vector.load %arg5[%c0_14, %c0_15, %c0_16] : memref<1x16x128xbf16, #tpu.memory_space<vmem>>, vector<1x16x128xbf16>
    %15 = vector.shape_cast %14 : vector<1x16x128xbf16> to vector<16x128xbf16>
    %c384 = arith.constant 384 : index
    %c0_17 = arith.constant 0 : index
    %16 = vector.load %arg6[%c384, %c0_17] : memref<512x1024xbf16, #tpu.memory_space<vmem>>, vector<128x1024xbf16>
    %cst_18 = arith.constant dense<0.000000e+00> : vector<16x1024xf32>
    %17 = tpu.matmul %15, %16, %cst_18 {dimension_numbers = #tpu.dot_dimension_numbers<[1], [0], [0], [1], [0, 0, 1, 1], [], []>} : vector<16x128xbf16>, vector<128x1024xbf16>, vector<16x1024xf32> -> vector<16x1024xf32>
    %18 = arith.addf %13, %17 : vector<16x1024xf32>
    %c0_19 = arith.constant 0 : index
    %c0_20 = arith.constant 0 : index
    %19 = vector.load %arg7[%c0_19, %c0_20] : memref<1x1024xf32, #tpu.memory_space<vmem>>, vector<1x1024xf32>
    %20 = vector.broadcast %19 : vector<1x1024xf32> to vector<16x1024xf32>
    %21 = arith.mulf %18, %20 : vector<16x1024xf32>
    %c0_21 = arith.constant 0 : index
    %c0_22 = arith.constant 0 : index
    %22 = vector.load %arg8[%c0_21, %c0_22] : memref<1x1024xf32, #tpu.memory_space<vmem>>, vector<1x1024xf32>
    %23 = vector.broadcast %22 : vector<1x1024xf32> to vector<16x1024xf32>
    %24 = arith.addf %21, %23 : vector<16x1024xf32>
    %cst_23 = arith.constant 0.000000e+00 : f32
    %25 = vector.broadcast %cst_23 : f32 to vector<16x1024xf32>
    %26 = arith.cmpf ogt, %24, %25 : vector<16x1024xf32>
    %cst_24 = arith.constant 2.000000e-01 : f32
    %27 = vector.broadcast %cst_24 : f32 to vector<16x1024xf32>
    %28 = arith.mulf %27, %24 : vector<16x1024xf32>
    %29 = arith.select %26, %24, %28 : vector<16x1024xi1>, vector<16x1024xf32>
    %30 = arith.truncf %29 : vector<16x1024xf32> to vector<16x1024xbf16>
    %c0_25 = arith.constant 0 : index
    %c0_26 = arith.constant 0 : index
    %c0_27 = arith.constant 0 : index
    %31 = vector.load %arg9[%c0_25, %c0_26, %c0_27] : memref<1x16x1024xbf16, #tpu.memory_space<vmem>>, vector<1x16x1024xbf16>
    %32 = vector.shape_cast %31 : vector<1x16x1024xbf16> to vector<16x1024xbf16>
    %33 = vector.shape_cast %30 : vector<16x1024xbf16> to vector<1x16x1024xbf16>
    tpu.vector_store %arg9[%c0_25, %c0_26, %c0_27], %33 {strides = array<i32>} : memref<1x16x1024xbf16, #tpu.memory_space<vmem>>, vector<1x16x1024xbf16>,
    %cst_28 = arith.constant dense<0xFF800000> : vector<1024xf32>
    %34 = vector.multi_reduction <maximumf>, %29, %cst_28 [0] : vector<16x1024xf32> to vector<1024xf32>
    %35 = vector.shape_cast %34 : vector<1024xf32> to vector<1x1024xf32>
    %cst_29 = arith.constant dense<0.000000e+00> : vector<1024xf32>
    %36 = vector.multi_reduction <add>, %29, %cst_29 [0] : vector<16x1024xf32> to vector<1024xf32>
    %37 = vector.shape_cast %36 : vector<1024xf32> to vector<1x1024xf32>
    %c0_i32 = arith.constant 0 : i32
    %38 = arith.cmpi eq, %arg1, %c0_i32 : i32
    %39 = arith.extui %38 : i1 to i32
    %c0_i32_30 = arith.constant 0 : i32
    %40 = arith.cmpi ne, %39, %c0_i32_30 : i32
    scf.if %40 {
      %c0_35 = arith.constant 0 : index
      %c0_36 = arith.constant 0 : index
      %c0_37 = arith.constant 0 : index
      %47 = vector.load %arg10[%c0_35, %c0_36, %c0_37] : memref<1x1x1024xf32, #tpu.memory_space<vmem>>, vector<1x1x1024xf32>
      %48 = vector.shape_cast %47 : vector<1x1x1024xf32> to vector<1x1024xf32>
      %49 = vector.shape_cast %35 : vector<1x1024xf32> to vector<1x1x1024xf32>
      tpu.vector_store %arg10[%c0_35, %c0_36, %c0_37], %49 {strides = array<i32>} : memref<1x1x1024xf32, #tpu.memory_space<vmem>>, vector<1x1x1024xf32>,
      %c0_38 = arith.constant 0 : index
      %c0_39 = arith.constant 0 : index
      %c0_40 = arith.constant 0 : index
      %50 = vector.load %arg11[%c0_38, %c0_39, %c0_40] : memref<1x1x1024xf32, #tpu.memory_space<vmem>>, vector<1x1x1024xf32>
      %51 = vector.shape_cast %50 : vector<1x1x1024xf32> to vector<1x1024xf32>
      %52 = vector.shape_cast %37 : vector<1x1024xf32> to vector<1x1x1024xf32>
      tpu.vector_store %arg11[%c0_38, %c0_39, %c0_40], %52 {strides = array<i32>} : memref<1x1x1024xf32, #tpu.memory_space<vmem>>, vector<1x1x1024xf32>,
    } else {
    }
    %c0_i32_31 = arith.constant 0 : i32
    %41 = arith.cmpi sgt, %arg1, %c0_i32_31 : i32
    %42 = arith.extui %41 : i1 to i32
    %c0_i32_32 = arith.constant 0 : i32
    %43 = arith.cmpi ne, %42, %c0_i32_32 : i32
    scf.if %43 {
      %c0_35 = arith.constant 0 : index
      %c0_36 = arith.constant 0 : index
      %c0_37 = arith.constant 0 : index
      %47 = vector.load %arg10[%c0_35, %c0_36, %c0_37] : memref<1x1x1024xf32, #tpu.memory_space<vmem>>, vector<1x1x1024xf32>
      %48 = vector.shape_cast %47 : vector<1x1x1024xf32> to vector<1x1024xf32>
      %49 = arith.maximumf %48, %35 : vector<1x1024xf32>
      %c0_38 = arith.constant 0 : index
      %c0_39 = arith.constant 0 : index
      %c0_40 = arith.constant 0 : index
      %50 = vector.load %arg10[%c0_38, %c0_39, %c0_40] : memref<1x1x1024xf32, #tpu.memory_space<vmem>>, vector<1x1x1024xf32>
      %51 = vector.shape_cast %50 : vector<1x1x1024xf32> to vector<1x1024xf32>
      %52 = vector.shape_cast %49 : vector<1x1024xf32> to vector<1x1x1024xf32>
      tpu.vector_store %arg10[%c0_38, %c0_39, %c0_40], %52 {strides = array<i32>} : memref<1x1x1024xf32, #tpu.memory_space<vmem>>, vector<1x1x1024xf32>,
      %c0_41 = arith.constant 0 : index
      %c0_42 = arith.constant 0 : index
      %c0_43 = arith.constant 0 : index
      %53 = vector.load %arg11[%c0_41, %c0_42, %c0_43] : memref<1x1x1024xf32, #tpu.memory_space<vmem>>, vector<1x1x1024xf32>
      %54 = vector.shape_cast %53 : vector<1x1x1024xf32> to vector<1x1024xf32>
      %55 = arith.addf %54, %37 : vector<1x1024xf32>
      %c0_44 = arith.constant 0 : index
      %c0_45 = arith.constant 0 : index
      %c0_46 = arith.constant 0 : index
      %56 = vector.load %arg11[%c0_44, %c0_45, %c0_46] : memref<1x1x1024xf32, #tpu.memory_space<vmem>>, vector<1x1x1024xf32>
      %57 = vector.shape_cast %56 : vector<1x1x1024xf32> to vector<1x1024xf32>
      %58 = vector.shape_cast %55 : vector<1x1024xf32> to vector<1x1x1024xf32>
      tpu.vector_store %arg11[%c0_44, %c0_45, %c0_46], %58 {strides = array<i32>} : memref<1x1x1024xf32, #tpu.memory_space<vmem>>, vector<1x1x1024xf32>,
    } else {
    }
    %c0_i32_33 = arith.constant 0 : i32
    %44 = arith.cmpi eq, %arg1, %c0_i32_33 : i32
    %45 = arith.extui %44 : i1 to i32
    %c0_i32_34 = arith.constant 0 : i32
    %46 = arith.cmpi ne, %45, %c0_i32_34 : i32
    scf.if %46 {
      %c0_35 = arith.constant 0 : index
      %c0_36 = arith.constant 0 : index
      %c0_37 = arith.constant 0 : index
      %47 = vector.load %arg11[%c0_35, %c0_36, %c0_37] : memref<1x1x1024xf32, #tpu.memory_space<vmem>>, vector<1x1x1024xf32>
      %48 = vector.shape_cast %47 : vector<1x1x1024xf32> to vector<1x1024xf32>
      %cst_38 = arith.constant 6.250000e-02 : f32
      %49 = vector.broadcast %cst_38 : f32 to vector<1x1024xf32>
      %50 = arith.mulf %48, %49 : vector<1x1024xf32>
      %c0_39 = arith.constant 0 : index
      %c0_40 = arith.constant 0 : index
      %c0_41 = arith.constant 0 : index
      %51 = vector.load %arg11[%c0_39, %c0_40, %c0_41] : memref<1x1x1024xf32, #tpu.memory_space<vmem>>, vector<1x1x1024xf32>
      %52 = vector.shape_cast %51 : vector<1x1x1024xf32> to vector<1x1024xf32>
      %53 = vector.shape_cast %50 : vector<1x1024xf32> to vector<1x1x1024xf32>
      tpu.vector_store %arg11[%c0_39, %c0_40, %c0_41], %53 {strides = array<i32>} : memref<1x1x1024xf32, #tpu.memory_space<vmem>>, vector<1x1x1024xf32>,
    } else {
    }
    return
  }
  func.func @transform_0(%arg0: i32, %arg1: i32) -> (i32, i32, i32) {
    %c0_i32 = arith.constant 0 : i32
    %c0_i32_0 = arith.constant 0 : i32
    return %arg0, %arg1, %c0_i32 : i32, i32, i32
  }
  func.func @transform_1(%arg0: i32, %arg1: i32) -> (i32, i32, i32) {
    %c0_i32 = arith.constant 0 : i32
    %c0_i32_0 = arith.constant 0 : i32
    return %arg0, %arg1, %c0_i32 : i32, i32, i32
  }
  func.func @transform_2(%arg0: i32, %arg1: i32) -> (i32, i32, i32) {
    %c0_i32 = arith.constant 0 : i32
    %c0_i32_0 = arith.constant 0 : i32
    return %arg0, %arg1, %c0_i32 : i32, i32, i32
  }
  func.func @transform_3(%arg0: i32, %arg1: i32) -> (i32, i32, i32) {
    %c0_i32 = arith.constant 0 : i32
    %c0_i32_0 = arith.constant 0 : i32
    return %arg0, %arg1, %c0_i32 : i32, i32, i32
  }
  func.func @transform_4(%arg0: i32, %arg1: i32) -> (i32, i32) {
    %c0_i32 = arith.constant 0 : i32
    %c0_i32_0 = arith.constant 0 : i32
    %c0_i32_1 = arith.constant 0 : i32
    return %c0_i32, %c0_i32_0 : i32, i32
  }
  func.func @transform_5(%arg0: i32, %arg1: i32) -> (i32, i32) {
    %c0_i32 = arith.constant 0 : i32
    %c0_i32_0 = arith.constant 0 : i32
    %c0_i32_1 = arith.constant 0 : i32
    return %c0_i32, %c0_i32_0 : i32, i32
  }
  func.func @transform_6(%arg0: i32, %arg1: i32) -> (i32, i32) {
    %c0_i32 = arith.constant 0 : i32
    %c0_i32_0 = arith.constant 0 : i32
    %c0_i32_1 = arith.constant 0 : i32
    return %c0_i32, %c0_i32_0 : i32, i32
  }
  func.func @transform_7(%arg0: i32, %arg1: i32) -> (i32, i32, i32) {
    %c0_i32 = arith.constant 0 : i32
    %c0_i32_0 = arith.constant 0 : i32
    return %arg0, %arg1, %c0_i32 : i32, i32, i32
  }
  func.func @transform_8(%arg0: i32, %arg1: i32) -> (i32, i32, i32) {
    %c0_i32 = arith.constant 0 : i32
    %c0_i32_0 = arith.constant 0 : i32
    %c0_i32_1 = arith.constant 0 : i32
    return %arg0, %c0_i32, %c0_i32_0 : i32, i32, i32
  }
  func.func @transform_9(%arg0: i32, %arg1: i32) -> (i32, i32, i32) {
    %c0_i32 = arith.constant 0 : i32
    %c0_i32_0 = arith.constant 0 : i32
    %c0_i32_1 = arith.constant 0 : i32
    return %arg0, %c0_i32, %c0_i32_0 : i32, i32, i32
  }
}

module attributes {stable_mosaic.version = 11 : i64} {
  func.func @_head_kernel(%arg0: i32, %arg1: i32, %arg2: memref<1x16x1024xbf16, #tpu.memory_space<vmem>>, %arg3: memref<1x1x512xf32, #tpu.memory_space<vmem>>, %arg4: memref<1024x512xbf16, #tpu.memory_space<vmem>>, %arg5: memref<1x512xf32, #tpu.memory_space<vmem>>, %arg6: memref<1x512xf32, #tpu.memory_space<vmem>>, %arg7: memref<512x256xbf16, #tpu.memory_space<vmem>>, %arg8: memref<1x256xf32, #tpu.memory_space<vmem>>, %arg9: memref<1x256xf32, #tpu.memory_space<vmem>>, %arg10: memref<256x128xbf16, #tpu.memory_space<vmem>>, %arg11: memref<1x128xf32, #tpu.memory_space<vmem>>, %arg12: memref<1x16x128xf32, #tpu.memory_space<vmem>>) attributes {dimension_semantics = [#tpu.dimension_semantics<parallel>, #tpu.dimension_semantics<parallel>], iteration_bounds = array<i64: 2, 1>, scalar_prefetch = 0 : i64, scratch_operands = 0 : i64, tpu.core_type = #tpu.core_type<tc>, window_params = [{transform_indices = @transform_0, window_bounds = array<i64: 1, 16, 1024>}, {transform_indices = @transform_1, window_bounds = array<i64: 1, 1, 512>}, {pipeline_mode = #tpu.pipeline_mode<synchronous>, transform_indices = @transform_2, window_bounds = array<i64: 1024, 512>}, {pipeline_mode = #tpu.pipeline_mode<synchronous>, transform_indices = @transform_3, window_bounds = array<i64: 1, 512>}, {pipeline_mode = #tpu.pipeline_mode<synchronous>, transform_indices = @transform_4, window_bounds = array<i64: 1, 512>}, {pipeline_mode = #tpu.pipeline_mode<synchronous>, transform_indices = @transform_5, window_bounds = array<i64: 512, 256>}, {pipeline_mode = #tpu.pipeline_mode<synchronous>, transform_indices = @transform_6, window_bounds = array<i64: 1, 256>}, {pipeline_mode = #tpu.pipeline_mode<synchronous>, transform_indices = @transform_7, window_bounds = array<i64: 1, 256>}, {pipeline_mode = #tpu.pipeline_mode<synchronous>, transform_indices = @transform_8, window_bounds = array<i64: 256, 128>}, {pipeline_mode = #tpu.pipeline_mode<synchronous>, transform_indices = @transform_9, window_bounds = array<i64: 1, 128>}, {transform_indices = @transform_10, window_bounds = array<i64: 1, 16, 128>}]} {
    %c0 = arith.constant 0 : index
    %c0_0 = arith.constant 0 : index
    %c0_1 = arith.constant 0 : index
    %0 = vector.load %arg2[%c0, %c0_0, %c0_1] : memref<1x16x1024xbf16, #tpu.memory_space<vmem>>, vector<1x16x1024xbf16>
    %1 = vector.shape_cast %0 : vector<1x16x1024xbf16> to vector<16x1024xbf16>
    %c0_2 = arith.constant 0 : index
    %c0_3 = arith.constant 0 : index
    %2 = vector.load %arg4[%c0_2, %c0_3] : memref<1024x512xbf16, #tpu.memory_space<vmem>>, vector<1024x512xbf16>
    %cst = arith.constant dense<0.000000e+00> : vector<16x512xf32>
    %3 = tpu.matmul %1, %2, %cst {dimension_numbers = #tpu.dot_dimension_numbers<[1], [0], [0], [1], [0, 0, 1, 1], [], []>} : vector<16x1024xbf16>, vector<1024x512xbf16>, vector<16x512xf32> -> vector<16x512xf32>
    %c0_4 = arith.constant 0 : index
    %c0_5 = arith.constant 0 : index
    %c0_6 = arith.constant 0 : index
    %4 = vector.load %arg3[%c0_4, %c0_5, %c0_6] : memref<1x1x512xf32, #tpu.memory_space<vmem>>, vector<1x1x512xf32>
    %5 = vector.shape_cast %4 : vector<1x1x512xf32> to vector<1x512xf32>
    %6 = vector.broadcast %5 : vector<1x512xf32> to vector<16x512xf32>
    %7 = arith.addf %3, %6 : vector<16x512xf32>
    %c0_7 = arith.constant 0 : index
    %c0_8 = arith.constant 0 : index
    %8 = vector.load %arg5[%c0_7, %c0_8] : memref<1x512xf32, #tpu.memory_space<vmem>>, vector<1x512xf32>
    %9 = vector.broadcast %8 : vector<1x512xf32> to vector<16x512xf32>
    %10 = arith.mulf %7, %9 : vector<16x512xf32>
    %c0_9 = arith.constant 0 : index
    %c0_10 = arith.constant 0 : index
    %11 = vector.load %arg6[%c0_9, %c0_10] : memref<1x512xf32, #tpu.memory_space<vmem>>, vector<1x512xf32>
    %12 = vector.broadcast %11 : vector<1x512xf32> to vector<16x512xf32>
    %13 = arith.addf %10, %12 : vector<16x512xf32>
    %cst_11 = arith.constant 0.000000e+00 : f32
    %14 = vector.broadcast %cst_11 : f32 to vector<16x512xf32>
    %15 = arith.maximumf %13, %14 : vector<16x512xf32>
    %16 = arith.truncf %15 : vector<16x512xf32> to vector<16x512xbf16>
    %c0_12 = arith.constant 0 : index
    %c0_13 = arith.constant 0 : index
    %17 = vector.load %arg7[%c0_12, %c0_13] : memref<512x256xbf16, #tpu.memory_space<vmem>>, vector<512x256xbf16>
    %cst_14 = arith.constant dense<0.000000e+00> : vector<16x256xf32>
    %18 = tpu.matmul %16, %17, %cst_14 {dimension_numbers = #tpu.dot_dimension_numbers<[1], [0], [0], [1], [0, 0, 1, 1], [], []>} : vector<16x512xbf16>, vector<512x256xbf16>, vector<16x256xf32> -> vector<16x256xf32>
    %c0_15 = arith.constant 0 : index
    %c0_16 = arith.constant 0 : index
    %19 = vector.load %arg8[%c0_15, %c0_16] : memref<1x256xf32, #tpu.memory_space<vmem>>, vector<1x256xf32>
    %20 = vector.broadcast %19 : vector<1x256xf32> to vector<16x256xf32>
    %21 = arith.mulf %18, %20 : vector<16x256xf32>
    %c0_17 = arith.constant 0 : index
    %c0_18 = arith.constant 0 : index
    %22 = vector.load %arg9[%c0_17, %c0_18] : memref<1x256xf32, #tpu.memory_space<vmem>>, vector<1x256xf32>
    %23 = vector.broadcast %22 : vector<1x256xf32> to vector<16x256xf32>
    %24 = arith.addf %21, %23 : vector<16x256xf32>
    %cst_19 = arith.constant 0.000000e+00 : f32
    %25 = vector.broadcast %cst_19 : f32 to vector<16x256xf32>
    %26 = arith.maximumf %24, %25 : vector<16x256xf32>
    %27 = arith.truncf %26 : vector<16x256xf32> to vector<16x256xbf16>
    %c0_20 = arith.constant 0 : index
    %c0_21 = arith.constant 0 : index
    %28 = vector.load %arg10[%c0_20, %c0_21] : memref<256x128xbf16, #tpu.memory_space<vmem>>, vector<256x128xbf16>
    %cst_22 = arith.constant dense<0.000000e+00> : vector<16x128xf32>
    %29 = tpu.matmul %27, %28, %cst_22 {dimension_numbers = #tpu.dot_dimension_numbers<[1], [0], [0], [1], [0, 0, 1, 1], [], []>} : vector<16x256xbf16>, vector<256x128xbf16>, vector<16x128xf32> -> vector<16x128xf32>
    %c0_23 = arith.constant 0 : index
    %c0_24 = arith.constant 0 : index
    %30 = vector.load %arg11[%c0_23, %c0_24] : memref<1x128xf32, #tpu.memory_space<vmem>>, vector<1x128xf32>
    %31 = vector.broadcast %30 : vector<1x128xf32> to vector<16x128xf32>
    %32 = arith.addf %29, %31 : vector<16x128xf32>
    %c0_25 = arith.constant 0 : index
    %c0_26 = arith.constant 0 : index
    %c0_27 = arith.constant 0 : index
    %33 = vector.load %arg12[%c0_25, %c0_26, %c0_27] : memref<1x16x128xf32, #tpu.memory_space<vmem>>, vector<1x16x128xf32>
    %34 = vector.shape_cast %33 : vector<1x16x128xf32> to vector<16x128xf32>
    %35 = vector.shape_cast %32 : vector<16x128xf32> to vector<1x16x128xf32>
    tpu.vector_store %arg12[%c0_25, %c0_26, %c0_27], %35 {strides = array<i32>} : memref<1x16x128xf32, #tpu.memory_space<vmem>>, vector<1x16x128xf32>,
    return
  }
  func.func @transform_0(%arg0: i32, %arg1: i32) -> (i32, i32, i32) {
    %c0_i32 = arith.constant 0 : i32
    %c0_i32_0 = arith.constant 0 : i32
    return %arg0, %arg1, %c0_i32 : i32, i32, i32
  }
  func.func @transform_1(%arg0: i32, %arg1: i32) -> (i32, i32, i32) {
    %c0_i32 = arith.constant 0 : i32
    %c0_i32_0 = arith.constant 0 : i32
    %c0_i32_1 = arith.constant 0 : i32
    return %arg0, %c0_i32, %c0_i32_0 : i32, i32, i32
  }
  func.func @transform_2(%arg0: i32, %arg1: i32) -> (i32, i32) {
    %c0_i32 = arith.constant 0 : i32
    %c0_i32_0 = arith.constant 0 : i32
    %c0_i32_1 = arith.constant 0 : i32
    return %c0_i32, %c0_i32_0 : i32, i32
  }
  func.func @transform_3(%arg0: i32, %arg1: i32) -> (i32, i32) {
    %c0_i32 = arith.constant 0 : i32
    %c0_i32_0 = arith.constant 0 : i32
    %c0_i32_1 = arith.constant 0 : i32
    return %c0_i32, %c0_i32_0 : i32, i32
  }
  func.func @transform_4(%arg0: i32, %arg1: i32) -> (i32, i32) {
    %c0_i32 = arith.constant 0 : i32
    %c0_i32_0 = arith.constant 0 : i32
    %c0_i32_1 = arith.constant 0 : i32
    return %c0_i32, %c0_i32_0 : i32, i32
  }
  func.func @transform_5(%arg0: i32, %arg1: i32) -> (i32, i32) {
    %c0_i32 = arith.constant 0 : i32
    %c0_i32_0 = arith.constant 0 : i32
    %c0_i32_1 = arith.constant 0 : i32
    return %c0_i32, %c0_i32_0 : i32, i32
  }
  func.func @transform_6(%arg0: i32, %arg1: i32) -> (i32, i32) {
    %c0_i32 = arith.constant 0 : i32
    %c0_i32_0 = arith.constant 0 : i32
    %c0_i32_1 = arith.constant 0 : i32
    return %c0_i32, %c0_i32_0 : i32, i32
  }
  func.func @transform_7(%arg0: i32, %arg1: i32) -> (i32, i32) {
    %c0_i32 = arith.constant 0 : i32
    %c0_i32_0 = arith.constant 0 : i32
    %c0_i32_1 = arith.constant 0 : i32
    return %c0_i32, %c0_i32_0 : i32, i32
  }
  func.func @transform_8(%arg0: i32, %arg1: i32) -> (i32, i32) {
    %c0_i32 = arith.constant 0 : i32
    %c0_i32_0 = arith.constant 0 : i32
    %c0_i32_1 = arith.constant 0 : i32
    return %c0_i32, %c0_i32_0 : i32, i32
  }
  func.func @transform_9(%arg0: i32, %arg1: i32) -> (i32, i32) {
    %c0_i32 = arith.constant 0 : i32
    %c0_i32_0 = arith.constant 0 : i32
    %c0_i32_1 = arith.constant 0 : i32
    return %c0_i32, %c0_i32_0 : i32, i32
  }
  func.func @transform_10(%arg0: i32, %arg1: i32) -> (i32, i32, i32) {
    %c0_i32 = arith.constant 0 : i32
    %c0_i32_0 = arith.constant 0 : i32
    return %arg0, %arg1, %c0_i32 : i32, i32, i32
  }
}

</mosaic_0001>

<bundles_post_ra>
// kernel: forward.7
= control target key start
LH: loop header
LB: loop body
LE: loop exit
PB: predicated region body
PF: predicated region fallthrough
CT: control target
= control target key end

     0   :  { %s1691_s0 = inlined_call_operand.vmem [shape: bf16[2,16,128], index: 0, kind: input, shape index: {}]   ;;  %s1692_s1 = inlined_call_operand.vmem [shape: bf16[2,16,128], index: 1, kind: input, shape index: {}]   ;;  %s1693_s2 = inlined_call_operand.vmem [shape: bf16[256,128], index: 2, kind: input, shape index: {}]   ;;  %s1694_s3 = inlined_call_operand.vmem [shape: f32[1,128], index: 3, kind: input, shape index: {}]   ;;  %s1695_s4 = inlined_call_operand.vmem [shape: f32[1,128], index: 4, kind: input, shape index: {}]   ;;  %s1696_s5 = inlined_call_operand.<no memory space> [shape: f32[1], index: 5, kind: input, shape index: {}]   ;;  %s1697_s6 = inlined_call_operand.vmem [shape: bf16[128,32], index: 6, kind: input, shape index: {}]   ;;  %s1698_s7 = inlined_call_operand.vmem [shape: bf16[128,128], index: 7, kind: input, shape index: {}]   ;;  %s1699_s8 = inlined_call_operand.hbm [shape: f32[1,128], index: 8, kind: input, shape index: {}]   ;;  %s1700_s9 = inlined_call_operand.vmem [shape: bf16[128,128], index: 9, kind: input, shape index: {}]   ;;  %s1701_s10 = inlined_call_operand.vmem [shape: f32[1,128], index: 10, kind: input, shape index: {}]   ;;  %s1702_s11 = inlined_call_operand.vmem [shape: f32[1,128], index: 11, kind: input, shape index: {}]   ;;  %s1703_s12 = inlined_call_operand.vmem [shape: bf16[2,16,128], index: 12, kind: output, shape index: {}]  }
   0x1   :  { %17 = sst [smem:[#allocation2]] %s1696_s5 }
   0x2   :  { %18 = vsyncpa [#allocation4], 0  ;;  %s1495_s23 = smov 0  }
   0x3 LB: > { %s1111_s24 = sadd.s32 4294967295, %s1424_s23   ;;  %p1113_p0 = scmp.ge.s32.totalorder %s1424_s23, 1  ;;  %s1424_s23 = sphi %s1495_s23, %s24_s23  }
   0x4   : > { %p317_p1 = scmp.lt.s32.totalorder %s1424_s23, 3  ;;  %s347_s27 = sshll.u32 %s1699_s8, 4  ;;  %s348_s27 = int_to_ptr.hbm [resolvable:$true] %s347_s27 }
   0x5   : > { %p1355_p3 = scmp.eq.s32.totalorder %s1111_s24, 0  ;;  %s1426_s5 = smov [#allocation3]  }
   0x6   : > { %p318_p2 = pnand %p1113_p0, %p317_p1  ;;  %s349_s28 = sshll.u32 %s1426_s5, 4  ;;  %s350_s28 = int_to_ptr.vmem [resolvable:$true] %s349_s28 }
   0x8   : > { %p1351_p4 = pneg %p318_p2  ;;  %387 = sbr.rel (%p318_p2) target bundleno = 1075 (0x433), region = 68 }
   0xa   : > { %p1352_p5 = pnand %p1355_p3, %p1351_p4 }
   0xc   : > { %1354 = dma.hbm_to_vmem [thread:$0]  (!%p1352_p5), %s348_s27, 16, %s350_s28, [#allocation4]  }
   0xd   : > { %1419 = dma.done.wait (%p1355_p3), [#allocation4], 16  }
   0xe   : > { %1421 = vsyncadd (%p1355_p3), [#allocation4], 4294967280  ;;  %p435_p6 = scmp.lt.s32.totalorder %s1111_s24, 1  ;;  %v1317_v0 = vld [vmem:[%s1693_s2 + $0x78] sm:$0xff]  ;;  %v637_v2 = vlaneseq  ;;  %v1316_v3 = vld [vmem:[%s1693_s2 + $0x70] sm:$0xff]  ;;  %s668_s18 = sld [smem:[#allocation2]] }
   0xf   : > { %v1309_v1 = vld [vmem:[%s1693_s2 + $0x38] sm:$0xff]  ;;  %541 = vmatpush.bf16.msra.mxu0 %v1317_v0  ;;  %v1308_v4 = vld [vmem:[%s1693_s2 + $0x30] sm:$0xff]  ;;  %v1315_v6 = vld [vmem:[%s1693_s2 + $0x68] sm:$0xff]  ;;  %vm836_vm9 = vcmask 261120   ;;  %vm854_vm10 = vcmask 130048  }
  0x10   : > { %s1707_s24 = smov (!%p435_p6, %s1111_s24), 1  ;;  %609 = vmatpush.bf16.msra.mxu1 %v1309_v1  ;;  %v638_v5 = vand.u32 127, %v637_v2  ;;  %v1307_v9 = vld [vmem:[%s1693_s2 + $0x28] sm:$0xff]  ;;  %v1325_v13 = vld [vmem:[%s1697_s6 + $0x38] sm:$0xff]  ;;  %v1314_v17 = vld [vmem:[%s1693_s2 + $0x60] sm:$0xff]  ;;  %v657_v41 = vshrl.u32 %v637_v2, 7 }
  0x11   : > { %s1512_s15 = sshll.u32 %s1707_s24, 3  ;;  %v1333_v16 = vld [vmem:[%s1698_s7 + $0x38] sm:$0xff]  ;;  %739 = vmatpush.bf16.msra.mxu2 %v1325_v13  ;;  %v1324_v18 = vld [vmem:[%s1697_s6 + $0x30] sm:$0xff]  ;;  %v1306_v19 = vld [vmem:[%s1693_s2 + $0x20] sm:$0xff] }
  0x12   : > { %s1525_s22 = scalar_lea.vmem %s1692_s1, %s1512_s15  ;;  %s1536_s5 = scalar_lea.vmem %s1691_s0, %s1512_s15  ;;  %vm639_vm0 = vcmp.lt.s32.totalorder %v638_v5, 3  ;;  %822 = vmatpush.bf16.msra.mxu3 %v1333_v16  ;;  %v1332_v20 = vld [vmem:[%s1698_s7 + $0x30] sm:$0xff]  ;;  %v1323_v21 = vld [vmem:[%s1697_s6 + $0x28] sm:$0xff]  ;;  %v1313_v22 = vld [vmem:[%s1693_s2 + $0x58] sm:$0xff]  ;;  %vm646_vm2 = vcmp.ge.s32.totalorder %v638_v5, 3  ;;  %vm647_vm3 = vcmp.lt.s32.totalorder %v638_v5, 4 }
  0x13   : > { %v453_v7 = vld [vmem:[%s1525_s22] sm:$0xf]  ;;  %v454_v8 = vld [vmem:[%s1525_s22 + $0x4] sm:$0xf]  ;;  %542 = vmatpush.bf16.msra.mxu0 %v1316_v3  ;;  %vm1543_vm1 = vmpackc.low %vm639_vm0, %vm639_vm0  ;;  %vm645_vm4 = vcmp.lt.s32.totalorder %v638_v5, 1  ;;  %vm658_vm7 = vcmp.lt.s32.totalorder %v657_v41, 7  ;;  %s449_s28 = scalar_lea.vmem %s1703_s12, %s1512_s15 }
  0x14   : > { %610 = vmatpush.bf16.msra.mxu1 %v1308_v4  ;;  %v451_v10 = vld [vmem:[%s1536_s5] sm:$0xf]  ;;  %v452_v11 = vld [vmem:[%s1536_s5 + $0x4] sm:$0xf]  ;;  %v1305_v23 = vld [vmem:[%s1693_s2 + $0x18] sm:$0xff]  ;;  %vm663_vm8 = vcmp.lt.s32.totalorder %v657_v41, 1 }
  0x15   : > { %v641_v14 = vsel %vm1543_vm1, %v451_v10, %v453_v7  ;;  %v642_v15 = vsel %vm1543_vm1, %v452_v11, %v454_v8  ;;  %740 = vmatpush.bf16.msra.mxu2 %v1324_v18  ;;  %v1331_v24 = vld [vmem:[%s1698_s7 + $0x28] sm:$0xff]  ;;  %v1312_v25 = vld [vmem:[%s1693_s2 + $0x50] sm:$0xff]  ;;  %v1310_v29 = vld [vmem:[%s1693_s2 + $0x40] sm:$0xff] }
  0x16   : > { %823 = vmatpush.bf16.msra.mxu3 %v1332_v20  ;;  %v1304_v26 = vld [vmem:[%s1693_s2 + $0x10] sm:$0xff]  ;;  %v1311_v27 = vld [vmem:[%s1693_s2 + $0x48] sm:$0xff]  ;;  %v1302_v30 = vld [vmem:[%s1693_s2] sm:$0xff]  ;;  %v643_v33 = vunpack.c.l.bf16 %v641_v14  ;;  %v644_v34 = vunpack.c.l.bf16 %v642_v15 }
  0x17   : > { %543 = vmatpush.bf16.msra.mxu0 %v1315_v6  ;;  %v1303_v28 = vld [vmem:[%s1693_s2 + $0x8] sm:$0xff]  ;;  %v1301_v31 = vld [vmem:[%s1525_s22] sm:$0xff]  ;;  %vm648_vm5 = vmand %vm646_vm2, %vm647_vm3  ;;  %v669_v6 = vstv %s668_s18 }
  0x18   : > { %611 = vmatpush.bf16.msra.mxu1 %v1307_v9  ;;  %v1300_v32 = vld [vmem:[%s1536_s5] sm:$0xff]  ;;  %vm649_vm6 = vmor %vm645_vm4, %vm648_vm5  ;;  %v1321_v46 = vld [vmem:[%s1697_s6 + $0x18] sm:$0xff] }
  0x19   : > { %741 = vmatpush.bf16.msra.mxu2 %v1323_v21  ;;  %v650_v35 = vsel %vm649_vm6, %v643_v33, 0.0  ;;  %v651_v36 = vsel %vm649_vm6, %v644_v34, 0.0  ;;  %v1322_v39 = vld [vmem:[%s1697_s6 + $0x20] sm:$0xff]  ;;  %v1329_v47 = vld [vmem:[%s1698_s7 + $0x18] sm:$0xff]  ;;  %v1320_v51 = vld [vmem:[%s1697_s6 + $0x10] sm:$0xff] }
  0x1a   : > { %824 = vmatpush.bf16.msra.mxu3 %v1331_v24  ;;  %v652_v37 = vsub.f32 %v643_v33, %v650_v35  ;;  %v653_v38 = vsub.f32 %v644_v34, %v651_v36  ;;  %v1330_v40 = vld [vmem:[%s1698_s7 + $0x20] sm:$0xff]  ;;  %v654_v42 = vrot.slane %v650_v35, 1  ;;  %v655_v43 = vrot.slane %v651_v36, 1  ;;  %v1328_v52 = vld [vmem:[%s1698_s7 + $0x10] sm:$0xff]  ;;  %v1319_v53 = vld [vmem:[%s1697_s6 + $0x8] sm:$0xff] }
  0x1b   : > { %544 = vmatpush.bf16.msra.mxu0 %v1314_v17  ;;  %v1327_v54 = vld [vmem:[%s1698_s7 + $0x8] sm:$0xff]  ;;  %v1318_v58 = vld [vmem:[%s1697_s6] sm:$0xff] }
  0x1c   : > { %612 = vmatpush.bf16.msra.mxu1 %v1306_v19  ;;  %v661_v44 = vrot.slane %v652_v37, 7  ;;  %v662_v45 = vrot.slane %v653_v38, 7  ;;  %v659_v48 = vsel %vm658_vm7, %v654_v42, %v655_v43  ;;  %v660_v55 = vsel %vm658_vm7, %v655_v43, %v654_v42  ;;  %v1326_v59 = vld [vmem:[%s1698_s7] sm:$0xff] }
  0x1d   : > { %742 = vmatpush.bf16.msra.mxu2 %v1322_v39  ;;  %v1367_v63 = vld [vmem:[%s1694_s3] ss:$0 sm:$0xff] }
  0x1e   : > { %825 = vmatpush.bf16.msra.mxu3 %v1330_v40  ;;  %v665_v49 = vsel %vm663_vm8, %v662_v45, %v661_v44  ;;  %v664_v56 = vsel %vm663_vm8, %v661_v44, %v662_v45  ;;  %v1368_v1 = vld [vmem:[%s1695_s4] ss:$0 sm:$0xff] }
  0x1f   : > { %545 = vmatpush.bf16.msra.mxu0 %v1313_v22  ;;  %v666_v50 = vadd.f32 %v665_v49, %v659_v48  ;;  %v667_v57 = vadd.f32 %v664_v56, %v660_v55  ;;  %v1369_v38 = vld [vmem:[#allocation3] ss:$0 sm:$0xff]  ;;  %v1341_v48 = vld [vmem:[%s1700_s9 + $0x38] sm:$0xff]  ;;  %v1335_v55 = vld [vmem:[%s1700_s9 + $0x8] sm:$0xff] }
  0x20   : > { %613 = vmatpush.bf16.msra.mxu1 %v1305_v23  ;;  %v1334_v56 = vld [vmem:[%s1700_s9] sm:$0xff] }
  0x21   : > { %743 = vmatpush.bf16.msra.mxu2 %v1321_v46  ;;  %v670_v10 = vmul.f32 %v669_v6, %v666_v50  ;;  %v671_v11 = vmul.f32 %v669_v6, %v667_v57  ;;  %v1340_v50 = vld [vmem:[%s1700_s9 + $0x30] sm:$0xff]  ;;  %v1370_v6 = vld [vmem:[%s1701_s10] ss:$0 sm:$0xff] }
  0x22   : > { %826 = vmatpush.bf16.msra.mxu3 %v1329_v47 }
  0x23   : > { %546 = vmatpush.bf16.msra.mxu0 %v1312_v25 }
  0x24   : > { %614 = vmatpush.bf16.msra.mxu1 %v1304_v26 }
  0x25   : > { %744 = vmatpush.bf16.msra.mxu2 %v1320_v51  ;;  %v1339_v51 = vld [vmem:[%s1700_s9 + $0x28] sm:$0xff] }
  0x26   : > { %827 = vmatpush.bf16.msra.mxu3 %v1328_v52  ;;  %v1338_v52 = vld [vmem:[%s1700_s9 + $0x20] sm:$0xff] }
  0x27   : > { %547 = vmatpush.bf16.msra.mxu0 %v1311_v27 }
  0x28   : > { %615 = vmatpush.bf16.msra.mxu1 %v1303_v28 }
  0x29   : > { %745 = vmatpush.bf16.msra.mxu2 %v1319_v53  ;;  %v1337_v53 = vld [vmem:[%s1700_s9 + $0x18] sm:$0xff] }
  0x2a   : > { %828 = vmatpush.bf16.msra.mxu3 %v1327_v54  ;;  %v1336_v54 = vld [vmem:[%s1700_s9 + $0x10] sm:$0xff] }
  0x2b   : > { %548 = vmatpush.bf16.msra.mxu0 %v1310_v29 }
  0x2c   : > { %616 = vmatpush.bf16.msra.mxu1 %v1302_v30 }
  0x2d   : > { %746 = vmatpush.bf16.msra.mxu2 %v1318_v58 }
  0x2e   : > { %549 = vmatmul.bf16.vlgmr.msra.gmra.mxu0 %v1301_v31  ;;  %829 = vmatpush.bf16.msra.mxu3 %v1326_v59 }
  0x2f   : > { %617 = vmatmul.bf16.vlgmr.msra.gmra.mxu1 %v1300_v32 }
  0x32   : > { %998 = vmatpush.bf16.msrb.mxu3 %v1341_v48 }
  0x36   : > { %999 = vmatpush.bf16.msrb.mxu3 %v1340_v50 }
  0x3a   : > { %1000 = vmatpush.bf16.msrb.mxu3 %v1339_v51 }
  0x3e   : > { %1001 = vmatpush.bf16.msrb.mxu3 %v1338_v52 }
  0x42   : > { %1002 = vmatpush.bf16.msrb.mxu3 %v1337_v53 }
  0x46   : > { %1003 = vmatpush.bf16.msrb.mxu3 %v1336_v54 }
  0x4a   : > { %1004 = vmatpush.bf16.msrb.mxu3 %v1335_v55 }
  0x4e   : > { %1005 = vmatpush.bf16.msrb.mxu3 %v1334_v56 }
  0xab   : > { %v550_v60 = vpop.f32.mrf.mxu0 }
  0xac   : > { %v618_v61 = vpop.f32.mrf.mxu1 }
  0xad   : > { %v619_v62 = vadd.f32 %v618_v61, %v550_v60 }
  0xaf   : > { %v627_v0 = vmul.f32 %v1367_v63, %v619_v62 }
  0xb1   : > { %v633_v4 = vadd.f32 %v1368_v1, %v627_v0 }
  0xb3   : > { %v552_v2 = vpop.f32.mrf.mxu0  ;;  %v635_v8 = vmax.f32 %v633_v4, 0.0 }
  0xb4   : > { %v620_v3 = vpop.f32.mrf.mxu1 }
  0xb5   : > { %v621_v5 = vadd.f32 %v620_v3, %v552_v2  ;;  %v1638_v13 = vadd.f32 %v670_v10, %v635_v8 }
  0xb7   : > { %v628_v7 = vmul.f32 %v1367_v63, %v621_v5 }
  0xb9   : > { %v634_v9 = vadd.f32 %v1368_v1, %v628_v7 }
  0xbb   : > { %v636_v12 = vmax.f32 %v634_v9, 0.0  ;;  %v1371_v9 = vld [vmem:[%s1702_s11] ss:$0 sm:$0xff] }
  0xbd   : > { %v1640_v14 = vadd.f32 %v671_v11, %v636_v12 }
  0xbf   : > { %v674_v15 = vpack.c.bf16 %v1640_v14, %v1638_v13 }
  0xc1   : > { %747 = vmatmul.bf16.vlgmr.msra.gmra.mxu2 %v674_v15  ;;  %830 = vmatmul.bf16.vlgmr.msra.gmra.mxu3 %v674_v15 }
 0x144   : > { %v748_v16 = vpop.f32.mrf.mxu2  ;;  %v831_v36 = vpop.f32.mrf.mxu3 }
 0x145   : > { %v832_v41 = vadd.f32 %v1369_v38, %v831_v36 }
 0x14c   : > { %v750_v17 = vpop.f32.mrf.mxu2  ;;  %v833_v39 = vpop.f32.mrf.mxu3 }
 0x14d   : > { %v753_v18 = vpack.c.bf16 %v750_v17, %v748_v16  ;;  %v834_v42 = vadd.f32 %v1369_v38, %v833_v39 }
 0x14f   : > { %v838_v19 = vsel %vm836_vm9, %v753_v18, 0 }
 0x150   : > { %847 = vmatpush.bf16.xpose.msrb.mxu0 %v838_v19 }
 0x157   : > { %1260 = vmatmul.msk.bf16.vlgmr.msrb.gmra.mxu0 %vm836_vm9, %v753_v18 }
 0x1d4   : > { %v849_v20 = vpop.f32.mrf.mxu0 }
 0x1d5   : > { %v855_v21 = vsel %vm854_vm10, %v849_v20, -inf }
 0x1d6   : > { %856 = vmax.xlane.f32.xlu0 %v855_v21 }
 0x1dc   : > { %v851_v22 = vpop.f32.mrf.mxu0 }
 0x1dd   : > { %v858_v23 = vsel %vm854_vm10, %v851_v22, -inf }
 0x1de   : > { %859 = vmax.xlane.f32.xlu0 %v858_v23 }
 0x249   : > { %v857_v24 = vpop.xlane.xlu0 %856 }
 0x24a   : > { %v861_v25 = vsub.f32 %v849_v20, %v857_v24 }
 0x24c   : > { %v863_v26 = vmul.f32 1.442695, %v861_v25 }
 0x24e   : > { %1372 = vpow2.f32 %v863_v26 }
 0x251   : > { %v860_v27 = vpop.xlane.xlu0 %859 }
 0x252   : > { %v862_v28 = vsub.f32 %v851_v22, %v860_v27 }
 0x254   : > { %v1373_v29 = vpop.eup %1372  ;;  %v865_v30 = vmul.f32 1.442695, %v862_v28 }
 0x255   : > { %v867_v31 = vsel %vm854_vm10, %v1373_v29, 0.0 }
 0x256   : > { %1374 = vpow2.f32 %v865_v30  ;;  %868 = vadd.xlane.f32.xlu1 %v867_v31 }
 0x25c   : > { %v1375_v32 = vpop.eup %1374 }
 0x25d   : > { %v870_v33 = vsel %vm854_vm10, %v1375_v32, 0.0  ;;  %v875_v34 = vpack.c.bf16 %v1375_v32, %v1373_v29 }
 0x25e   : > { %871 = vadd.xlane.f32.xlu1 %v870_v33 }
 0x25f   : > { %880 = vxpose.xlu2.c.b16.start.end [1/1] (short) (narrow) %v875_v34, 16 }
 0x2c9   : > { %v869_v35 = vpop.xlane.xlu1 %868 }
 0x2ca   : > { %1376 = vrcp.f32 %v869_v35 }
 0x2d0   : > { %v1377_v40 = vpop.eup %1376 }
 0x2d1   : > { %v872_v37 = vpop.xlane.xlu1 %871  ;;  %v876_v45 = vmul.f32 %v1377_v40, %v832_v41 }
 0x2d2   : > { %1378 = vrcp.f32 %v872_v37 }
 0x2d8   : > { %v1379_v43 = vpop.eup %1378 }
 0x2d9   : > { %v879_v44 = vpack.c.bf16 %v1379_v43, %v1377_v40  ;;  %v877_v46 = vmul.f32 %v1379_v43, %v834_v42 }
 0x2db   : > { %920 = vmatpush.bf16.msrb.mxu2 %v879_v44  ;;  %v878_v47 = vpack.c.bf16 %v877_v46, %v876_v45 }
 0x2dd   : > { %906 = vmatpush.bf16.msrb.mxu1 %v878_v47 }
 0x300   : > { %v888_v49 = vpop.trf.xlu2 }
 0x301   : > { %1262 = vmatmul.msk.bf16.vlgmr.msrb.gmra.mxu2 %vm854_vm10, %v888_v49  ;;  %1261 = vmatmul.msk.bf16.vlgmr.msrb.gmra.mxu1 %vm854_vm10, %v888_v49 }
 0x37e   : > { %v908_v59 = vpop.f32.mrf.mxu1 }
 0x384   : > { %v922_v57 = vpop.f32.mrf.mxu2 }
 0x385   : > { %v923_v58 = vadd.f32 1e-09, %v922_v57 }
 0x386   : > { %v910_v1 = vpop.f32.mrf.mxu1 }
 0x387   : > { %1380 = vrcp.f32 %v923_v58 }
 0x38c   : > { %v924_v60 = vpop.f32.mrf.mxu2 }
 0x38d   : > { %v925_v61 = vadd.f32 1e-09, %v924_v60  ;;  %v1381_v62 = vpop.eup %1380 }
 0x38e   : > { %v929_v63 = vmul.f32 %v1381_v62, %v908_v59 }
 0x38f   : > { %1382 = vrcp.f32 %v925_v61 }
 0x390   : > { %v931_v3 = vsub.f32 %v1638_v13, %v929_v63 }
 0x395   : > { %v1383_v0 = vpop.eup %1382 }
 0x396   : > { %v930_v2 = vmul.f32 %v1383_v0, %v910_v1 }
 0x398   : > { %v932_v4 = vsub.f32 %v1640_v14, %v930_v2 }
 0x39a   : > { %v933_v5 = vpack.c.bf16 %v932_v4, %v931_v3 }
 0x39c   : > { %1006 = vmatmul.bf16.vlgmr.msrb.gmra.mxu3 %v933_v5 }
 0x41f   : > { %v1007_v7 = vpop.f32.mrf.mxu3 }
 0x420   : > { %v1016_v8 = vmul.f32 %v1370_v6, %v1007_v7 }
 0x422   : > { %v1022_v10 = vadd.f32 %v1371_v9, %v1016_v8 }
 0x424   : > { %v1024_v15 = vmax.f32 %v1022_v10, 0.0 }
 0x426   : > { %v1026_v18 = vadd.f32 %v1024_v15, %v1638_v13 }
 0x427   : > { %v1009_v11 = vpop.f32.mrf.mxu3 }
 0x428   : > { %v1017_v12 = vmul.f32 %v1370_v6, %v1009_v11 }
 0x42a   : > { %v1023_v16 = vadd.f32 %v1371_v9, %v1017_v12 }
 0x42c   : > { %v1025_v17 = vmax.f32 %v1023_v16, 0.0 }
 0x42e   : > { %v1027_v19 = vadd.f32 %v1025_v17, %v1640_v14 }
 0x430   : > { %v1345_v20 = vpack.c.bf16 %v1027_v19, %v1026_v18 }
 0x432   : > { %1346 = vst [vmem:[%s449_s28] sm:$0xff] %v1345_v20  }
 0x433 PF: > { %s24_s23 = sadd.s32 1, %s1424_s23  }
 0x434   : > { %p21_p7 = scmp.ge.s32.totalorder %s24_s23, 4  }
 0x436   :  { %23 = sbr.rel (!%p21_p7) target bundleno = 3 (0x3), region = 106 }
 0x43b   :  { %1053 = vsyncpa [#allocation4], 1 }
 0x43c   :  { %1055 = vsyncpa [#allocation4 + $0x1], 1 }

// kernel: forward.6
= control target key start
LH: loop header
LB: loop body
LE: loop exit
PB: predicated region body
PF: predicated region fallthrough
CT: control target
= control target key end

     0   :  { %s2097_s0 = inlined_call_operand.vmem [shape: bf16[2,16,8], index: 0, kind: input, shape index: {}]   ;;  %s2098_s1 = inlined_call_operand.vmem [shape: bf16[2,16,128], index: 1, kind: input, shape index: {}]   ;;  %s2099_s2 = inlined_call_operand.vmem [shape: bf16[8,128], index: 2, kind: input, shape index: {}]   ;;  %s2100_s3 = inlined_call_operand.vmem [shape: f32[1,128], index: 3, kind: input, shape index: {}]   ;;  %s2101_s4 = inlined_call_operand.vmem [shape: f32[1,128], index: 4, kind: input, shape index: {}]   ;;  %s2102_s5 = inlined_call_operand.vmem [shape: bf16[128,128], index: 5, kind: input, shape index: {}]   ;;  %s2103_s6 = inlined_call_operand.vmem [shape: f32[1,128], index: 6, kind: input, shape index: {}]   ;;  %s2104_s7 = inlined_call_operand.vmem [shape: f32[1,128], index: 7, kind: input, shape index: {}]   ;;  %s2105_s8 = inlined_call_operand.vmem [shape: bf16[256,128], index: 8, kind: input, shape index: {}]   ;;  %s2106_s9 = inlined_call_operand.vmem [shape: f32[1,128], index: 9, kind: input, shape index: {}]   ;;  %s2107_s10 = inlined_call_operand.vmem [shape: f32[1,128], index: 10, kind: input, shape index: {}]   ;;  %s2108_s11 = inlined_call_operand.<no memory space> [shape: f32[1], index: 11, kind: input, shape index: {}]   ;;  %s2109_s12 = inlined_call_operand.vmem [shape: bf16[128,32], index: 12, kind: input, shape index: {}]   ;;  %s2110_s13 = inlined_call_operand.vmem [shape: bf16[128,128], index: 13, kind: input, shape index: {}]   ;;  %s2111_s14 = inlined_call_operand.hbm [shape: f32[1,128], index: 14, kind: input, shape index: {}]   ;;  %s2112_s15 = inlined_call_operand.vmem [shape: bf16[128,128], index: 15, kind: input, shape index: {}]   ;;  %s2113_s16 = inlined_call_operand.vmem [shape: f32[1,128], index: 16, kind: input, shape index: {}]   ;;  %s2114_s17 = inlined_call_operand.vmem [shape: f32[1,128], index: 17, kind: input, shape index: {}]   ;;  %s2115_s18 = inlined_call_operand.vmem [shape: bf16[2,16,128], index: 18, kind: output, shape index: {}]  }
   0x1   :  { %2116 = sst [smem:[#allocation6_spill]] %s2097_s0 }
   0x2   :  { %2117 = sst [smem:[#allocation7_spill]] %s2098_s1 }
   0x3   :  { %2118 = sst [smem:[#allocation8_spill]] %s2099_s2 }
   0x4   :  { %23 = sst [smem:[#allocation2]] %s2108_s11 }
   0x5   :  { %24 = vsyncpa [#allocation4], 0  ;;  %s1869_s29 = smov 0  }
   0x6 LB: > { %s1410_s30 = sadd.s32 4294967295, %s1768_s29   ;;  %p1412_p0 = scmp.ge.s32.totalorder %s1768_s29, 1  ;;  %s1768_s29 = sphi %s1869_s29, %s30_s29  }
   0x7   : > { %p449_p1 = scmp.lt.s32.totalorder %s1768_s29, 3  ;;  %s497_s1 = sshll.u32 %s2111_s14, 4  ;;  %s498_s1 = int_to_ptr.hbm [resolvable:$true] %s497_s1 }
   0x8   : > { %p1695_p3 = scmp.eq.s32.totalorder %s1410_s30, 0  ;;  %s1770_s11 = smov [#allocation3]  }
   0x9   : > { %p450_p2 = pnand %p1412_p0, %p449_p1  ;;  %s499_s20 = sshll.u32 %s1770_s11, 4  ;;  %s500_s20 = int_to_ptr.vmem [resolvable:$true] %s499_s20 }
   0xb   : > { %p1691_p4 = pneg %p450_p2  ;;  %537 = sbr.rel (%p450_p2) target bundleno = 1345 (0x541), region = 92 }
   0xd   : > { %p1692_p5 = pnand %p1695_p3, %p1691_p4 }
   0xf   : > { %1694 = dma.hbm_to_vmem [thread:$0]  (!%p1692_p5), %s498_s1, 16, %s500_s20, [#allocation4]  }
  0x10   : > { %1763 = dma.done.wait (%p1695_p3), [#allocation4], 16  }
  0x11   : > { %1765 = vsyncadd (%p1695_p3), [#allocation4], 4294967280  ;;  %p597_p6 = scmp.lt.s32.totalorder %s1410_s30, 1  ;;  %vm625_vm0 = vcmask 1043456   ;;  %s2119_s23 = sld [smem:[#allocation6_spill]]  ;;  %v1640_v1 = vld [vmem:[%s2102_s5 + $0x38] sm:$0xff]  ;;  %v936_v41 = vlaneseq }
  0x12   : > { %s2120_s27 = sld [smem:[#allocation8_spill]]  ;;  %vm621_vm1 = vcmask 64512   ;;  %v1639_v4 = vld [vmem:[%s2102_s5 + $0x30] sm:$0xff]  ;;  %722 = vmatpush.bf16.msra.mxu1 %v1640_v1  ;;  %v1638_v5 = vld [vmem:[%s2102_s5 + $0x28] sm:$0xff]  ;;  %v1637_v6 = vld [vmem:[%s2102_s5 + $0x20] sm:$0xff]  ;;  %vm1135_vm11 = vcmask 261120  }
  0x13   : > { %s2125_s30 = smov (!%p597_p6, %s1410_s30), 1  ;;  %v1636_v7 = vld [vmem:[%s2102_s5 + $0x18] sm:$0xff]  ;;  %v1635_v8 = vld [vmem:[%s2102_s5 + $0x10] sm:$0xff]  ;;  %v1634_v9 = vld [vmem:[%s2102_s5 + $0x8] sm:$0xff]  ;;  %s2121_s2 = sld [smem:[#allocation7_spill]]  ;;  %v937_v44 = vand.u32 127, %v936_v41 }
  0x14   : > { %s1880_s21 = sshll.u32 %s2125_s30, 3  ;;  %v1633_v10 = vld [vmem:[%s2102_s5] sm:$0xff]  ;;  %v1657_v11 = vld [vmem:[%s2105_s8 + $0x78] sm:$0xff]  ;;  %v1656_v13 = vld [vmem:[%s2105_s8 + $0x70] sm:$0xff]  ;;  %v956_v61 = vshrl.u32 %v936_v41, 7  ;;  %vm1153_vm12 = vcmask 130048  }
  0x15   : > { %v1649_v12 = vld [vmem:[%s2105_s8 + $0x38] sm:$0xff]  ;;  %840 = vmatpush.bf16.msra.mxu2 %v1657_v11  ;;  %v1648_v14 = vld [vmem:[%s2105_s8 + $0x30] sm:$0xff]  ;;  %v1655_v15 = vld [vmem:[%s2105_s8 + $0x68] sm:$0xff]  ;;  %vm938_vm2 = vcmp.lt.s32.totalorder %v937_v44, 3  ;;  %vm945_vm4 = vcmp.ge.s32.totalorder %v937_v44, 3  ;;  %vm946_vm5 = vcmp.lt.s32.totalorder %v937_v44, 4  ;;  %s611_s22 = scalar_lea.vmem %s2115_s18, %s1880_s21 }
  0x16   : > { %723 = vmatpush.bf16.msra.mxu1 %v1639_v4  ;;  %908 = vmatpush.bf16.msra.mxu3 %v1649_v12  ;;  %v1647_v16 = vld [vmem:[%s2105_s8 + $0x28] sm:$0xff]  ;;  %v1654_v17 = vld [vmem:[%s2105_s8 + $0x60] sm:$0xff]  ;;  %v1653_v18 = vld [vmem:[%s2105_s8 + $0x58] sm:$0xff]  ;;  %vm944_vm6 = vcmp.lt.s32.totalorder %v937_v44, 1  ;;  %vm957_vm9 = vcmp.lt.s32.totalorder %v956_v61, 7  ;;  %vm962_vm10 = vcmp.lt.s32.totalorder %v956_v61, 1 }
  0x17   : > { %s601_s24 = scalar_lea.vmem %s2119_s23, %s1880_s21  ;;  %v1707_v20 = vld [vmem:[%s2100_s3] ss:$0 sm:$0xff]  ;;  %v1652_v30 = vld [vmem:[%s2105_s8 + $0x50] sm:$0xff]  ;;  %v1651_v32 = vld [vmem:[%s2105_s8 + $0x48] sm:$0xff] }
  0x18   : > { %v615_v0 = vld [vmem:[%s2120_s27] sm:$0xf]  ;;  %v1645_v33 = vld [vmem:[%s2105_s8 + $0x18] sm:$0xff]  ;;  %v1644_v35 = vld [vmem:[%s2105_s8 + $0x10] sm:$0xff] }
  0x19   : > { %v627_v2 = vsel %vm625_vm0, %v615_v0, 0  ;;  %v1632_v3 = vld [vmem:[%s601_s24] sm:$0xff]  ;;  %841 = vmatpush.bf16.msra.mxu2 %v1656_v13  ;;  %s1965_s23 = scalar_lea.vmem %s2121_s2, %s1880_s21  ;;  %v1643_v37 = vld [vmem:[%s2105_s8 + $0x8] sm:$0xff]  ;;  %v1665_v39 = vld [vmem:[%s2109_s12 + $0x38] sm:$0xff]  ;;  %s967_s24 = sld [smem:[#allocation2]] }
  0x1a   : > { %636 = vmatpush.bf16.msra.mxu0 %v627_v2  ;;  %724 = vmatpush.bf16.msra.mxu1 %v1638_v5  ;;  %v1708_v22 = vld [vmem:[%s2101_s4] ss:$0 sm:$0xff]  ;;  %v1673_v40 = vld [vmem:[%s2110_s13 + $0x38] sm:$0xff]  ;;  %vm1987_vm3 = vmpackc.low %vm938_vm2, %vm938_vm2 }
  0x1b   : > { %909 = vmatpush.bf16.msra.mxu3 %v1648_v14  ;;  %v1646_v31 = vld [vmem:[%s2105_s8 + $0x20] sm:$0xff]  ;;  %vm947_vm7 = vmand %vm945_vm4, %vm946_vm5 }
  0x1c   : > { %v1650_v34 = vld [vmem:[%s2105_s8 + $0x40] sm:$0xff]  ;;  %vm948_vm8 = vmor %vm944_vm6, %vm947_vm7 }
  0x1d   : > { %1427 = vmatmul.msk.bf16.vlgmr.msra.gmra.mxu0 %vm621_vm1, %v1632_v3  ;;  %842 = vmatpush.bf16.msra.mxu2 %v1655_v15  ;;  %v1641_v36 = vld [vmem:[%s1965_s23] sm:$0xff] }
  0x1e   : > { %725 = vmatpush.bf16.msra.mxu1 %v1637_v6  ;;  %v1642_v38 = vld [vmem:[%s2105_s8] sm:$0xff]  ;;  %1038 = vmatpush.bf16.msrb.mxu0 %v1665_v39 }
  0x1f   : > { %910 = vmatpush.bf16.msra.mxu3 %v1647_v16  ;;  %v1709_v42 = vld [vmem:[%s2103_s6] ss:$0 sm:$0xff]  ;;  %v753_v58 = vld [vmem:[%s1965_s23 + $0x4] sm:$0xf]  ;;  %v1664_v16 = vld [vmem:[%s2109_s12 + $0x30] sm:$0xff]  ;;  %v968_v41 = vstv %s967_s24 }
  0x20   : > { %v1710_v43 = vld [vmem:[%s2104_s7] ss:$0 sm:$0xff] }
  0x21   : > { %843 = vmatpush.bf16.msra.mxu2 %v1654_v17  ;;  %v752_v49 = vld [vmem:[%s1965_s23] sm:$0xf]  ;;  %v1672_v17 = vld [vmem:[%s2110_s13 + $0x30] sm:$0xff] }
  0x22   : > { %726 = vmatpush.bf16.msra.mxu1 %v1636_v7  ;;  %1039 = vmatpush.bf16.msrb.mxu0 %v1664_v16 }
  0x23   : > { %911 = vmatpush.bf16.msra.mxu3 %v1646_v31 }
  0x25   : > { %844 = vmatpush.bf16.msra.mxu2 %v1653_v18  ;;  %v1663_v18 = vld [vmem:[%s2109_s12 + $0x28] sm:$0xff] }
  0x26   : > { %727 = vmatpush.bf16.msra.mxu1 %v1635_v8  ;;  %1040 = vmatpush.bf16.msrb.mxu0 %v1663_v18  ;;  %v1681_v18 = vld [vmem:[%s2112_s15 + $0x38] sm:$0xff] }
  0x27   : > { %912 = vmatpush.bf16.msra.mxu3 %v1645_v33  ;;  %v1711_v33 = vld [vmem:[%s2106_s9] ss:$0 sm:$0xff] }
  0x29   : > { %845 = vmatpush.bf16.msra.mxu2 %v1652_v30 }
  0x2a   : > { %728 = vmatpush.bf16.msra.mxu1 %v1634_v9 }
  0x2b   : > { %913 = vmatpush.bf16.msra.mxu3 %v1644_v35  ;;  %v1712_v35 = vld [vmem:[%s2107_s10] ss:$0 sm:$0xff] }
  0x2d   : > { %846 = vmatpush.bf16.msra.mxu2 %v1651_v32 }
  0x2e   : > { %729 = vmatpush.bf16.msra.mxu1 %v1633_v10 }
  0x2f   : > { %914 = vmatpush.bf16.msra.mxu3 %v1643_v37 }
  0x31   : > { %847 = vmatpush.bf16.msra.mxu2 %v1650_v34 }
  0x32   : > { %1121 = vmatpush.bf16.msrb.mxu1 %v1673_v40 }
  0x33   : > { %915 = vmatpush.bf16.msra.mxu3 %v1642_v38 }
  0x34   : > { %848 = vmatmul.bf16.vlgmr.msra.gmra.mxu2 %v1641_v36 }
  0x35   : > { %1297 = vmatpush.bf16.msrb.mxu2 %v1681_v18 }
  0x36   : > { %1122 = vmatpush.bf16.msrb.mxu1 %v1672_v17 }
  0x9a   : > { %v638_v19 = vpop.f32.mrf.mxu0 }
  0x9b   : > { %v647_v21 = vmul.f32 %v1707_v20, %v638_v19  ;;  %v1671_v19 = vld [vmem:[%s2110_s13 + $0x28] sm:$0xff] }
  0x9c   : > { %1123 = vmatpush.bf16.msrb.mxu1 %v1671_v19  ;;  %v1680_v19 = vld [vmem:[%s2112_s15 + $0x30] sm:$0xff] }
  0x9d   : > { %v653_v24 = vadd.f32 %v1708_v22, %v647_v21  ;;  %v1670_v21 = vld [vmem:[%s2110_s13 + $0x20] sm:$0xff]  ;;  %1298 = vmatpush.bf16.msrb.mxu2 %v1680_v19 }
  0x9f   : > { %v655_v27 = vmax.f32 %v653_v24, 0.0  ;;  %v1660_v24 = vld [vmem:[%s2109_s12 + $0x10] sm:$0xff] }
  0xa0   : > { %1124 = vmatpush.bf16.msrb.mxu1 %v1670_v21  ;;  %v1679_v21 = vld [vmem:[%s2112_s15 + $0x28] sm:$0xff] }
  0xa1   : > { %1299 = vmatpush.bf16.msrb.mxu2 %v1679_v21 }
  0xa2   : > { %v640_v23 = vpop.f32.mrf.mxu0 }
  0xa3   : > { %v648_v25 = vmul.f32 %v1707_v20, %v640_v23  ;;  %v1662_v20 = vld [vmem:[%s2109_s12 + $0x20] sm:$0xff]  ;;  %v1669_v23 = vld [vmem:[%s2110_s13 + $0x18] sm:$0xff] }
  0xa4   : > { %1041 = vmatpush.bf16.msrb.mxu0 %v1662_v20  ;;  %1125 = vmatpush.bf16.msrb.mxu1 %v1669_v23  ;;  %v1677_v23 = vld [vmem:[%s2112_s15 + $0x18] sm:$0xff] }
  0xa5   : > { %v654_v26 = vadd.f32 %v1708_v22, %v648_v25  ;;  %v1661_v22 = vld [vmem:[%s2109_s12 + $0x18] sm:$0xff]  ;;  %v1668_v25 = vld [vmem:[%s2110_s13 + $0x10] sm:$0xff] }
  0xa7   : > { %v656_v28 = vmax.f32 %v654_v26, 0.0  ;;  %v1659_v26 = vld [vmem:[%s2109_s12 + $0x8] sm:$0xff] }
  0xa8   : > { %1042 = vmatpush.bf16.msrb.mxu0 %v1661_v22  ;;  %1126 = vmatpush.bf16.msrb.mxu1 %v1668_v25  ;;  %v1678_v22 = vld [vmem:[%s2112_s15 + $0x20] sm:$0xff]  ;;  %v1675_v25 = vld [vmem:[%s2112_s15 + $0x8] sm:$0xff] }
  0xa9   : > { %v657_v29 = vpack.c.bf16 %v656_v28, %v655_v27  ;;  %v1667_v27 = vld [vmem:[%s2110_s13 + $0x8] sm:$0xff]  ;;  %v1658_v28 = vld [vmem:[%s2109_s12] sm:$0xff]  ;;  %1300 = vmatpush.bf16.msrb.mxu2 %v1678_v22 }
  0xab   : > { %730 = vmatmul.bf16.vlgmr.msra.gmra.mxu1 %v657_v29  ;;  %v1666_v29 = vld [vmem:[%s2110_s13] sm:$0xff] }
  0xac   : > { %1043 = vmatpush.bf16.msrb.mxu0 %v1660_v24  ;;  %1127 = vmatpush.bf16.msrb.mxu1 %v1667_v27  ;;  %v1676_v24 = vld [vmem:[%s2112_s15 + $0x10] sm:$0xff] }
  0xad   : > { %1301 = vmatpush.bf16.msrb.mxu2 %v1677_v23 }
  0xb0   : > { %1044 = vmatpush.bf16.msrb.mxu0 %v1659_v26  ;;  %1128 = vmatpush.bf16.msrb.mxu1 %v1666_v29  ;;  %v1674_v26 = vld [vmem:[%s2112_s15] sm:$0xff] }
  0xb1   : > { %1302 = vmatpush.bf16.msrb.mxu2 %v1676_v24 }
  0xb4   : > { %1045 = vmatpush.bf16.msrb.mxu0 %v1658_v28 }
  0xb5   : > { %1303 = vmatpush.bf16.msrb.mxu2 %v1675_v25 }
  0xb7   : > { %v849_v30 = vpop.f32.mrf.mxu2 }
  0xb9   : > { %1304 = vmatpush.bf16.msrb.mxu2 %v1674_v26 }
  0xbf   : > { %v851_v36 = vpop.f32.mrf.mxu2 }
 0x128   : > { %v731_v45 = vpop.f32.mrf.mxu1 }
 0x129   : > { %v740_v46 = vmul.f32 %v1709_v42, %v731_v45 }
 0x12b   : > { %v746_v47 = vadd.f32 %v1710_v43, %v740_v46 }
 0x12d   : > { %v748_v48 = vmax.f32 %v746_v47, 0.0 }
 0x12f   : > { %v750_v51 = vpack.c.bf16 %v748_v48, %v748_v48 }
 0x130   : > { %v733_v52 = vpop.f32.mrf.mxu1 }
 0x131   : > { %v741_v53 = vmul.f32 %v1709_v42, %v733_v52  ;;  %v940_v54 = vsel %vm1987_vm3, %v750_v51, %v752_v49  ;;  %v856_v63 = vunpack.c.l.b16 %v750_v51 }
 0x132   : > { %v942_v56 = vunpack.c.l.bf16 %v940_v54 }
 0x133   : > { %v747_v55 = vadd.f32 %v1710_v43, %v741_v53 }
 0x134   : > { %v949_v60 = vsel %vm948_vm8, %v942_v56, 0.0 }
 0x135   : > { %v749_v57 = vmax.f32 %v747_v55, 0.0  ;;  %v951_v2 = vsub.f32 %v942_v56, %v949_v60  ;;  %v953_v6 = vrot.slane %v949_v60, 1 }
 0x137   : > { %v751_v59 = vpack.c.bf16 %v749_v57, %v749_v57  ;;  %v960_v8 = vrot.slane %v951_v2, 7 }
 0x139   : > { %v941_v62 = vsel %vm1987_vm3, %v751_v59, %v753_v58  ;;  %v857_v0 = vunpack.c.l.b16 %v751_v59 }
 0x13a   : > { %v943_v1 = vunpack.c.l.bf16 %v941_v62 }
 0x13b   : > { %v858_v3 = vpack.c.b16 %v857_v0, %v856_v63 }
 0x13c   : > { %v950_v4 = vsel %vm948_vm8, %v943_v1, 0.0 }
 0x13d   : > { %v952_v5 = vsub.f32 %v943_v1, %v950_v4  ;;  %v954_v7 = vrot.slane %v950_v4, 1  ;;  %916 = vmatmul.bf16.vlgmr.msra.gmra.mxu3 %v858_v3 }
 0x13f   : > { %v961_v9 = vrot.slane %v952_v5, 7  ;;  %v958_v10 = vsel %vm957_vm9, %v953_v6, %v954_v7  ;;  %v959_v11 = vsel %vm957_vm9, %v954_v7, %v953_v6 }
 0x141   : > { %v964_v12 = vsel %vm962_vm10, %v961_v9, %v960_v8  ;;  %v963_v13 = vsel %vm962_vm10, %v960_v8, %v961_v9  ;;  %v1713_v8 = vld [vmem:[#allocation3] ss:$0 sm:$0xff] }
 0x142   : > { %v965_v14 = vadd.f32 %v964_v12, %v958_v10  ;;  %v966_v15 = vadd.f32 %v963_v13, %v959_v11 }
 0x144   : > { %v969_v44 = vmul.f32 %v968_v41, %v965_v14  ;;  %v970_v46 = vmul.f32 %v968_v41, %v966_v15 }
 0x1c0   : > { %v917_v31 = vpop.f32.mrf.mxu3 }
 0x1c1   : > { %v918_v32 = vadd.f32 %v917_v31, %v849_v30 }
 0x1c3   : > { %v926_v34 = vmul.f32 %v1711_v33, %v918_v32 }
 0x1c5   : > { %v932_v38 = vadd.f32 %v1712_v35, %v926_v34 }
 0x1c7   : > { %v934_v42 = vmax.f32 %v932_v38, 0.0 }
 0x1c8   : > { %v919_v37 = vpop.f32.mrf.mxu3 }
 0x1c9   : > { %v920_v39 = vadd.f32 %v919_v37, %v851_v36  ;;  %v2044_v47 = vadd.f32 %v969_v44, %v934_v42 }
 0x1cb   : > { %v927_v40 = vmul.f32 %v1711_v33, %v920_v39 }
 0x1cd   : > { %v933_v43 = vadd.f32 %v1712_v35, %v927_v40  ;;  %v1714_v40 = vld [vmem:[%s2113_s16] ss:$0 sm:$0xff] }
 0x1cf   : > { %v935_v45 = vmax.f32 %v933_v43, 0.0  ;;  %v1715_v43 = vld [vmem:[%s2114_s17] ss:$0 sm:$0xff] }
 0x1d1   : > { %v2046_v48 = vadd.f32 %v970_v46, %v935_v45 }
 0x1d3   : > { %v973_v49 = vpack.c.bf16 %v2046_v48, %v2044_v47 }
 0x1d5   : > { %1046 = vmatmul.bf16.vlgmr.msrb.gmra.mxu0 %v973_v49  ;;  %1129 = vmatmul.bf16.vlgmr.msrb.gmra.mxu1 %v973_v49 }
 0x252   : > { %v1047_v50 = vpop.f32.mrf.mxu0  ;;  %v1130_v6 = vpop.f32.mrf.mxu1 }
 0x253   : > { %v1131_v11 = vadd.f32 %v1713_v8, %v1130_v6 }
 0x25a   : > { %v1049_v51 = vpop.f32.mrf.mxu0  ;;  %v1132_v9 = vpop.f32.mrf.mxu1 }
 0x25b   : > { %v1052_v52 = vpack.c.bf16 %v1049_v51, %v1047_v50  ;;  %v1133_v12 = vadd.f32 %v1713_v8, %v1132_v9 }
 0x25d   : > { %v1137_v53 = vsel %vm1135_vm11, %v1052_v52, 0 }
 0x25e   : > { %1146 = vmatpush.bf16.xpose.msrb.mxu3 %v1137_v53 }
 0x265   : > { %1592 = vmatmul.msk.bf16.vlgmr.msrb.gmra.mxu3 %vm1135_vm11, %v1052_v52 }
 0x2e8   : > { %v1148_v54 = vpop.f32.mrf.mxu3 }
 0x2e9   : > { %v1154_v55 = vsel %vm1153_vm12, %v1148_v54, -inf }
 0x2ea   : > { %1155 = vmax.xlane.f32.xlu0 %v1154_v55 }
 0x2f0   : > { %v1150_v56 = vpop.f32.mrf.mxu3 }
 0x2f1   : > { %v1157_v57 = vsel %vm1153_vm12, %v1150_v56, -inf }
 0x2f2   : > { %1158 = vmax.xlane.f32.xlu0 %v1157_v57 }
 0x35d   : > { %v1156_v58 = vpop.xlane.xlu0 %1155 }
 0x35e   : > { %v1160_v59 = vsub.f32 %v1148_v54, %v1156_v58 }
 0x360   : > { %v1162_v60 = vmul.f32 1.442695, %v1160_v59 }
 0x362   : > { %1716 = vpow2.f32 %v1162_v60 }
 0x365   : > { %v1159_v61 = vpop.xlane.xlu0 %1158 }
 0x366   : > { %v1161_v62 = vsub.f32 %v1150_v56, %v1159_v61 }
 0x368   : > { %v1717_v63 = vpop.eup %1716  ;;  %v1164_v0 = vmul.f32 1.442695, %v1161_v62 }
 0x369   : > { %v1166_v1 = vsel %vm1153_vm12, %v1717_v63, 0.0 }
 0x36a   : > { %1718 = vpow2.f32 %v1164_v0  ;;  %1167 = vadd.xlane.f32.xlu1 %v1166_v1 }
 0x370   : > { %v1719_v2 = vpop.eup %1718 }
 0x371   : > { %v1169_v3 = vsel %vm1153_vm12, %v1719_v2, 0.0  ;;  %v1174_v4 = vpack.c.bf16 %v1719_v2, %v1717_v63 }
 0x372   : > { %1170 = vadd.xlane.f32.xlu1 %v1169_v3 }
 0x373   : > { %1179 = vxpose.xlu2.c.b16.start.end [1/1] (short) (narrow) %v1174_v4, 16 }
 0x3dd   : > { %v1168_v5 = vpop.xlane.xlu1 %1167 }
 0x3de   : > { %1720 = vrcp.f32 %v1168_v5 }
 0x3e4   : > { %v1721_v10 = vpop.eup %1720 }
 0x3e5   : > { %v1171_v7 = vpop.xlane.xlu1 %1170  ;;  %v1175_v14 = vmul.f32 %v1721_v10, %v1131_v11 }
 0x3e6   : > { %1722 = vrcp.f32 %v1171_v7 }
 0x3ec   : > { %v1723_v13 = vpop.eup %1722 }
 0x3ed   : > { %v1176_v15 = vmul.f32 %v1723_v13, %v1133_v12  ;;  %v1178_v16 = vpack.c.bf16 %v1723_v13, %v1721_v10 }
 0x3ef   : > { %1219 = vmatpush.bf16.msra.mxu0 %v1178_v16  ;;  %v1177_v17 = vpack.c.bf16 %v1176_v15, %v1175_v14 }
 0x3f1   : > { %1205 = vmatpush.bf16.msra.mxu3 %v1177_v17 }
 0x414   : > { %v1187_v20 = vpop.trf.xlu2 }
 0x415   : > { %1594 = vmatmul.msk.bf16.vlgmr.msra.gmra.mxu0 %vm1153_vm12, %v1187_v20  ;;  %1593 = vmatmul.msk.bf16.vlgmr.msra.gmra.mxu3 %vm1153_vm12, %v1187_v20 }
 0x492   : > { %v1221_v27 = vpop.f32.mrf.mxu0 }
 0x493   : > { %v1222_v28 = vadd.f32 1e-09, %v1221_v27 }
 0x495   : > { %1724 = vrcp.f32 %v1222_v28 }
 0x498   : > { %v1207_v29 = vpop.f32.mrf.mxu3 }
 0x49a   : > { %v1223_v30 = vpop.f32.mrf.mxu0 }
 0x49b   : > { %v1224_v31 = vadd.f32 1e-09, %v1223_v30  ;;  %v1725_v32 = vpop.eup %1724 }
 0x49c   : > { %v1228_v33 = vmul.f32 %v1725_v32, %v1207_v29 }
 0x49d   : > { %1726 = vrcp.f32 %v1224_v31 }
 0x49e   : > { %v1230_v37 = vsub.f32 %v2044_v47, %v1228_v33 }
 0x4a0   : > { %v1209_v35 = vpop.f32.mrf.mxu3 }
 0x4a3   : > { %v1727_v34 = vpop.eup %1726 }
 0x4a4   : > { %v1229_v36 = vmul.f32 %v1727_v34, %v1209_v35 }
 0x4a6   : > { %v1231_v38 = vsub.f32 %v2046_v48, %v1229_v36 }
 0x4a8   : > { %v1232_v39 = vpack.c.bf16 %v1231_v38, %v1230_v37 }
 0x4aa   : > { %1305 = vmatmul.bf16.vlgmr.msrb.gmra.mxu2 %v1232_v39 }
 0x52d   : > { %v1306_v41 = vpop.f32.mrf.mxu2 }
 0x52e   : > { %v1315_v42 = vmul.f32 %v1714_v40, %v1306_v41 }
 0x530   : > { %v1321_v44 = vadd.f32 %v1715_v43, %v1315_v42 }
 0x532   : > { %v1323_v49 = vmax.f32 %v1321_v44, 0.0 }
 0x534   : > { %v1325_v52 = vadd.f32 %v1323_v49, %v2044_v47 }
 0x535   : > { %v1308_v45 = vpop.f32.mrf.mxu2 }
 0x536   : > { %v1316_v46 = vmul.f32 %v1714_v40, %v1308_v45 }
 0x538   : > { %v1322_v50 = vadd.f32 %v1715_v43, %v1316_v46 }
 0x53a   : > { %v1324_v51 = vmax.f32 %v1322_v50, 0.0 }
 0x53c   : > { %v1326_v53 = vadd.f32 %v1324_v51, %v2046_v48 }
 0x53e   : > { %v1685_v54 = vpack.c.bf16 %v1326_v53, %v1325_v52 }
 0x540   : > { %1686 = vst [vmem:[%s611_s22] sm:$0xff] %v1685_v54  }
 0x541 PF: > { %s30_s29 = sadd.s32 1, %s1768_s29  }
 0x542   : > { %p27_p7 = scmp.ge.s32.totalorder %s30_s29, 4  }
 0x544   :  { %29 = sbr.rel (!%p27_p7) target bundleno = 6 (0x6), region = 130 }
 0x549   :  { %1352 = vsyncpa [#allocation4], 1 }
 0x54a   :  { %1354 = vsyncpa [#allocation4 + $0x1], 1 }

// kernel: forward.10
= control target key start
LH: loop header
LB: loop body
LE: loop exit
PB: predicated region body
PF: predicated region fallthrough
CT: control target
= control target key end

     0   :  { %s4554_s30 = smov 0   ;;  %s4556_s10 = smov 0   ;;  %s6377_s0 = inlined_call_operand.vmem [shape: bf16[2,16,128], index: 0, kind: input, shape index: {}]   ;;  %s6378_s1 = inlined_call_operand.vmem [shape: bf16[2,16,128], index: 1, kind: input, shape index: {}]   ;;  %s6379_s2 = inlined_call_operand.vmem [shape: bf16[2,16,128], index: 2, kind: input, shape index: {}]   ;;  %s6380_s3 = inlined_call_operand.vmem [shape: bf16[2,16,128], index: 3, kind: input, shape index: {}]   ;;  %s6381_s4 = inlined_call_operand.vmem [shape: bf16[512,1024], index: 4, kind: input, shape index: {}]   ;;  %s6382_s5 = inlined_call_operand.vmem [shape: f32[1,1024], index: 5, kind: input, shape index: {}]   ;;  %s6383_s6 = inlined_call_operand.vmem [shape: f32[1,1024], index: 6, kind: input, shape index: {}]   ;;  %s6384_s7 = inlined_call_operand.vmem [shape: bf16[2,16,1024], index: 7, kind: output, shape index: {0}]   ;;  %s6385_s8 = inlined_call_operand.vmem [shape: f32[2,1,1024], index: 8, kind: output, shape index: {1}]   ;;  %s6386_s9 = inlined_call_operand.vmem [shape: f32[2,1,1024], index: 9, kind: output, shape index: {2}]  }
   0x1   :  { %s4558_s11 = smov 0  }
   0x2 LB: > { %s32_s12 = sadd.s32 1, %s4498_s10  ;;  %p3136_p0 = scmp.ge.s32.totalorder %s4502_s11, 1  ;;  %s4502_s11 = sphi %s4558_s11, %s20_s11   ;;  %s4498_s10 = sphi %s4556_s10, %s6388_s10   ;;  %s4494_s30 = sphi %s4554_s30, %s6387_s30  }
   0x3   : > { %p34_p1 = scmp.ge.s32.totalorder %s32_s12, 2  ;;  %p364_p2 = scmp.lt.s32.totalorder %s4502_s11, 3 }
   0x5   : > { %s6390_s12 = smov (%p34_p1, %s32_s12), 0  ;;  %p365_p3 = pnand %p3136_p0, %p364_p2 }
   0x6   : > { %p445_p4 = scmp.lt.s32.totalorder (!%p365_p3), %s4494_s30, 1 }
   0x7   : > { %368 = sbr.rel (%p365_p3) target bundleno = 450 (0x1c2), region = 48 }
   0xc   : > { %v3379_v0 = vld [vmem:[%s6381_s4 + $0x3c0] sm:$0xf]  ;;  %v4318_v2 = vld [vmem:[%s6381_s4 + $0x3c4] sm:$0xf]  ;;  %v3387_v5 = vld [vmem:[%s6381_s4 + $0x3c8] sm:$0xf] }
   0xd   : > { %v4322_v1 = vld [vmem:[%s6381_s4 + $0x3dc] sm:$0xf0]  ;;  %v3381_v4 = vld [vmem:[%s6381_s4 + $0x3e0] sm:$0xf0]  ;;  %v4323_v6 = vld [vmem:[%s6381_s4 + $0x3e4] sm:$0xf0] }
   0xe   : > { %v3380_v3 = vor.u32 %v4322_v1, %v3379_v0  ;;  %v3384_v7 = vor.u32 %v4318_v2, %v3381_v4  ;;  %v3388_v8 = vor.u32 %v4323_v6, %v3387_v5  ;;  %v4319_v9 = vld [vmem:[%s6381_s4 + $0x3cc] sm:$0xf]  ;;  %v3347_v11 = vld [vmem:[%s6381_s4 + $0x380] sm:$0xf]  ;;  %v4310_v14 = vld [vmem:[%s6381_s4 + $0x384] sm:$0xf] }
   0xf   : > { %v3389_v10 = vld [vmem:[%s6381_s4 + $0x3e8] sm:$0xf0]  ;;  %v4314_v13 = vld [vmem:[%s6381_s4 + $0x39c] sm:$0xf0]  ;;  %v3349_v15 = vld [vmem:[%s6381_s4 + $0x3a0] sm:$0xf0] }
  0x10   : > { %961 = vmatpush.bf16.msra.mxu0 %v3380_v3  ;;  %v3392_v12 = vor.u32 %v4319_v9, %v3389_v10  ;;  %975 = vmatpush.bf16.msra.mxu1 %v3384_v7  ;;  %v3348_v16 = vor.u32 %v4314_v13, %v3347_v11  ;;  %v3352_v17 = vor.u32 %v4310_v14, %v3349_v15  ;;  %v3355_v18 = vld [vmem:[%s6381_s4 + $0x388] sm:$0xf]  ;;  %v4311_v20 = vld [vmem:[%s6381_s4 + $0x38c] sm:$0xf]  ;;  %v3315_v23 = vld [vmem:[%s6381_s4 + $0x340] sm:$0xf] }
  0x11   : > { %989 = vmatpush.bf16.msra.mxu2 %v3388_v8  ;;  %v4315_v19 = vld [vmem:[%s6381_s4 + $0x3a4] sm:$0xf0]  ;;  %v3357_v22 = vld [vmem:[%s6381_s4 + $0x3a8] sm:$0xf0]  ;;  %v4306_v24 = vld [vmem:[%s6381_s4 + $0x35c] sm:$0xf0] }
  0x12   : > { %1003 = vmatpush.bf16.msra.mxu3 %v3392_v12  ;;  %v3356_v21 = vor.u32 %v4315_v19, %v3355_v18  ;;  %v3360_v25 = vor.u32 %v4311_v20, %v3357_v22  ;;  %v4302_v26 = vld [vmem:[%s6381_s4 + $0x344] sm:$0xf]  ;;  %v3323_v28 = vld [vmem:[%s6381_s4 + $0x348] sm:$0xf]  ;;  %v3316_v29 = vor.u32 %v4306_v24, %v3315_v23  ;;  %v4303_v31 = vld [vmem:[%s6381_s4 + $0x34c] sm:$0xf] }
  0x13   : > { %v3317_v27 = vld [vmem:[%s6381_s4 + $0x360] sm:$0xf0]  ;;  %v4307_v30 = vld [vmem:[%s6381_s4 + $0x364] sm:$0xf0]  ;;  %v3325_v32 = vld [vmem:[%s6381_s4 + $0x368] sm:$0xf0] }
  0x14   : > { %962 = vmatpush.bf16.msra.mxu0 %v3348_v16  ;;  %976 = vmatpush.bf16.msra.mxu1 %v3352_v17  ;;  %v3320_v33 = vor.u32 %v4302_v26, %v3317_v27  ;;  %v3324_v34 = vor.u32 %v4307_v30, %v3323_v28  ;;  %v3283_v35 = vld [vmem:[%s6381_s4 + $0x300] sm:$0xf]  ;;  %v4294_v37 = vld [vmem:[%s6381_s4 + $0x304] sm:$0xf]  ;;  %v3328_v38 = vor.u32 %v4303_v31, %v3325_v32  ;;  %v3291_v40 = vld [vmem:[%s6381_s4 + $0x308] sm:$0xf] }
  0x15   : > { %990 = vmatpush.bf16.msra.mxu2 %v3356_v21  ;;  %v4298_v36 = vld [vmem:[%s6381_s4 + $0x31c] sm:$0xf0]  ;;  %v3285_v39 = vld [vmem:[%s6381_s4 + $0x320] sm:$0xf0]  ;;  %v4299_v41 = vld [vmem:[%s6381_s4 + $0x324] sm:$0xf0] }
  0x16   : > { %1004 = vmatpush.bf16.msra.mxu3 %v3360_v25  ;;  %v4295_v42 = vld [vmem:[%s6381_s4 + $0x30c] sm:$0xf]  ;;  %v3284_v44 = vor.u32 %v4298_v36, %v3283_v35  ;;  %v3288_v45 = vor.u32 %v4294_v37, %v3285_v39  ;;  %v3292_v46 = vor.u32 %v4299_v41, %v3291_v40  ;;  %v3251_v47 = vld [vmem:[%s6381_s4 + $0x2c0] sm:$0xf]  ;;  %v4286_v49 = vld [vmem:[%s6381_s4 + $0x2c4] sm:$0xf] }
  0x17   : > { %v3293_v43 = vld [vmem:[%s6381_s4 + $0x328] sm:$0xf0]  ;;  %v4290_v48 = vld [vmem:[%s6381_s4 + $0x2dc] sm:$0xf0]  ;;  %v3253_v51 = vld [vmem:[%s6381_s4 + $0x2e0] sm:$0xf0] }
  0x18   : > { %963 = vmatpush.bf16.msra.mxu0 %v3316_v29  ;;  %977 = vmatpush.bf16.msra.mxu1 %v3320_v33  ;;  %v3296_v50 = vor.u32 %v4295_v42, %v3293_v43  ;;  %v3259_v52 = vld [vmem:[%s6381_s4 + $0x2c8] sm:$0xf]  ;;  %v4287_v54 = vld [vmem:[%s6381_s4 + $0x2cc] sm:$0xf]  ;;  %v3252_v56 = vor.u32 %v4290_v48, %v3251_v47  ;;  %v3256_v57 = vor.u32 %v4286_v49, %v3253_v51  ;;  %v3219_v59 = vld [vmem:[%s6381_s4 + $0x280] sm:$0xf] }
  0x19   : > { %991 = vmatpush.bf16.msra.mxu2 %v3324_v34  ;;  %v4291_v53 = vld [vmem:[%s6381_s4 + $0x2e4] sm:$0xf0]  ;;  %v3261_v55 = vld [vmem:[%s6381_s4 + $0x2e8] sm:$0xf0]  ;;  %v4282_v60 = vld [vmem:[%s6381_s4 + $0x29c] sm:$0xf0] }
  0x1a   : > { %1005 = vmatpush.bf16.msra.mxu3 %v3328_v38  ;;  %v3260_v58 = vor.u32 %v4291_v53, %v3259_v52  ;;  %v4278_v61 = vld [vmem:[%s6381_s4 + $0x284] sm:$0xf]  ;;  %v3264_v62 = vor.u32 %v4287_v54, %v3261_v55  ;;  %v3227_v0 = vld [vmem:[%s6381_s4 + $0x288] sm:$0xf]  ;;  %v4279_v2 = vld [vmem:[%s6381_s4 + $0x28c] sm:$0xf]  ;;  %v3220_v4 = vor.u32 %v4282_v60, %v3219_v59 }
  0x1b   : > { %v3221_v63 = vld [vmem:[%s6381_s4 + $0x2a0] sm:$0xf0]  ;;  %v4283_v1 = vld [vmem:[%s6381_s4 + $0x2a4] sm:$0xf0]  ;;  %v3229_v3 = vld [vmem:[%s6381_s4 + $0x2a8] sm:$0xf0] }
  0x1c   : > { %964 = vmatpush.bf16.msra.mxu0 %v3284_v44  ;;  %978 = vmatpush.bf16.msra.mxu1 %v3288_v45  ;;  %v3224_v5 = vor.u32 %v4278_v61, %v3221_v63  ;;  %v3228_v6 = vor.u32 %v4283_v1, %v3227_v0  ;;  %v3187_v7 = vld [vmem:[%s6381_s4 + $0x240] sm:$0xf]  ;;  %v4270_v9 = vld [vmem:[%s6381_s4 + $0x244] sm:$0xf]  ;;  %v3232_v10 = vor.u32 %v4279_v2, %v3229_v3  ;;  %v3195_v12 = vld [vmem:[%s6381_s4 + $0x248] sm:$0xf] }
  0x1d   : > { %992 = vmatpush.bf16.msra.mxu2 %v3292_v46  ;;  %v4274_v8 = vld [vmem:[%s6381_s4 + $0x25c] sm:$0xf0]  ;;  %v3189_v11 = vld [vmem:[%s6381_s4 + $0x260] sm:$0xf0]  ;;  %v4275_v13 = vld [vmem:[%s6381_s4 + $0x264] sm:$0xf0] }
  0x1e   : > { %1006 = vmatpush.bf16.msra.mxu3 %v3296_v50  ;;  %v4271_v14 = vld [vmem:[%s6381_s4 + $0x24c] sm:$0xf]  ;;  %v3188_v16 = vor.u32 %v4274_v8, %v3187_v7  ;;  %v3155_v17 = vld [vmem:[%s6381_s4 + $0x200] sm:$0xf]  ;;  %v3192_v19 = vor.u32 %v4270_v9, %v3189_v11  ;;  %v3196_v20 = vor.u32 %v4275_v13, %v3195_v12  ;;  %v4262_v21 = vld [vmem:[%s6381_s4 + $0x204] sm:$0xf] }
  0x1f   : > { %v3197_v15 = vld [vmem:[%s6381_s4 + $0x268] sm:$0xf0]  ;;  %v4266_v18 = vld [vmem:[%s6381_s4 + $0x21c] sm:$0xf0]  ;;  %v3157_v22 = vld [vmem:[%s6381_s4 + $0x220] sm:$0xf0] }
  0x20   : > { %965 = vmatpush.bf16.msra.mxu0 %v3252_v56  ;;  %979 = vmatpush.bf16.msra.mxu1 %v3256_v57  ;;  %v3163_v23 = vld [vmem:[%s6381_s4 + $0x208] sm:$0xf]  ;;  %v3200_v24 = vor.u32 %v4271_v14, %v3197_v15  ;;  %v4263_v26 = vld [vmem:[%s6381_s4 + $0x20c] sm:$0xf]  ;;  %v3395_v28 = vld [vmem:[%s6381_s4 + $0x3d0] sm:$0xf]  ;;  %v3156_v31 = vor.u32 %v4266_v18, %v3155_v17  ;;  %v3160_v35 = vor.u32 %v4262_v21, %v3157_v22 }
  0x21   : > { %993 = vmatpush.bf16.msra.mxu2 %v3260_v58  ;;  %v4267_v25 = vld [vmem:[%s6381_s4 + $0x224] sm:$0xf0]  ;;  %v3165_v27 = vld [vmem:[%s6381_s4 + $0x228] sm:$0xf0]  ;;  %v4324_v29 = vld [vmem:[%s6381_s4 + $0x3ec] sm:$0xf0] }
  0x22   : > { %1007 = vmatpush.bf16.msra.mxu3 %v3264_v62  ;;  %v4320_v30 = vld [vmem:[%s6381_s4 + $0x3d4] sm:$0xf]  ;;  %v3403_v33 = vld [vmem:[%s6381_s4 + $0x3d8] sm:$0xf]  ;;  %v3164_v36 = vor.u32 %v4267_v25, %v3163_v23  ;;  %v4321_v37 = vld [vmem:[%s6381_s4 + $0x3dc] sm:$0xf]  ;;  %v3168_v39 = vor.u32 %v4263_v26, %v3165_v27  ;;  %v3396_v40 = vor.u32 %v4324_v29, %v3395_v28 }
  0x23   : > { %v3397_v32 = vld [vmem:[%s6381_s4 + $0x3f0] sm:$0xf0]  ;;  %v4325_v34 = vld [vmem:[%s6381_s4 + $0x3f4] sm:$0xf0]  ;;  %v3405_v38 = vld [vmem:[%s6381_s4 + $0x3f8] sm:$0xf0] }
  0x24   : > { %966 = vmatpush.bf16.msra.mxu0 %v3220_v4  ;;  %980 = vmatpush.bf16.msra.mxu1 %v3224_v5  ;;  %v3400_v41 = vor.u32 %v4320_v30, %v3397_v32  ;;  %v3404_v42 = vor.u32 %v4325_v34, %v3403_v33  ;;  %v3363_v43 = vld [vmem:[%s6381_s4 + $0x390] sm:$0xf]  ;;  %v4312_v45 = vld [vmem:[%s6381_s4 + $0x394] sm:$0xf]  ;;  %v3408_v46 = vor.u32 %v4321_v37, %v3405_v38  ;;  %v3371_v48 = vld [vmem:[%s6381_s4 + $0x398] sm:$0xf] }
  0x25   : > { %994 = vmatpush.bf16.msra.mxu2 %v3228_v6  ;;  %v4316_v44 = vld [vmem:[%s6381_s4 + $0x3ac] sm:$0xf0]  ;;  %v3365_v47 = vld [vmem:[%s6381_s4 + $0x3b0] sm:$0xf0]  ;;  %v4317_v49 = vld [vmem:[%s6381_s4 + $0x3b4] sm:$0xf0] }
  0x26   : > { %1008 = vmatpush.bf16.msra.mxu3 %v3232_v10  ;;  %v4313_v50 = vld [vmem:[%s6381_s4 + $0x39c] sm:$0xf]  ;;  %v3364_v52 = vor.u32 %v4316_v44, %v3363_v43  ;;  %v3368_v53 = vor.u32 %v4312_v45, %v3365_v47  ;;  %v3372_v54 = vor.u32 %v4317_v49, %v3371_v48  ;;  %v3331_v55 = vld [vmem:[%s6381_s4 + $0x350] sm:$0xf]  ;;  %v4304_v57 = vld [vmem:[%s6381_s4 + $0x354] sm:$0xf] }
  0x27   : > { %v3373_v51 = vld [vmem:[%s6381_s4 + $0x3b8] sm:$0xf0]  ;;  %v4308_v56 = vld [vmem:[%s6381_s4 + $0x36c] sm:$0xf0]  ;;  %v3333_v59 = vld [vmem:[%s6381_s4 + $0x370] sm:$0xf0] }
  0x28   : > { %967 = vmatpush.bf16.msra.mxu0 %v3188_v16  ;;  %981 = vmatpush.bf16.msra.mxu1 %v3192_v19  ;;  %v3376_v58 = vor.u32 %v4313_v50, %v3373_v51  ;;  %v3339_v60 = vld [vmem:[%s6381_s4 + $0x358] sm:$0xf]  ;;  %v4305_v62 = vld [vmem:[%s6381_s4 + $0x35c] sm:$0xf]  ;;  %v3332_v0 = vor.u32 %v4308_v56, %v3331_v55  ;;  %v3299_v1 = vld [vmem:[%s6381_s4 + $0x310] sm:$0xf]  ;;  %v3336_v2 = vor.u32 %v4304_v57, %v3333_v59 }
  0x29   : > { %995 = vmatpush.bf16.msra.mxu2 %v3196_v20  ;;  %v4309_v61 = vld [vmem:[%s6381_s4 + $0x374] sm:$0xf0]  ;;  %v3341_v63 = vld [vmem:[%s6381_s4 + $0x378] sm:$0xf0]  ;;  %v4300_v4 = vld [vmem:[%s6381_s4 + $0x32c] sm:$0xf0] }
  0x2a   : > { %1009 = vmatpush.bf16.msra.mxu3 %v3200_v24  ;;  %v3340_v3 = vor.u32 %v4309_v61, %v3339_v60  ;;  %v4296_v5 = vld [vmem:[%s6381_s4 + $0x314] sm:$0xf]  ;;  %v3344_v7 = vor.u32 %v4305_v62, %v3341_v63  ;;  %v3307_v8 = vld [vmem:[%s6381_s4 + $0x318] sm:$0xf]  ;;  %s6392_s30 = smov (!%p445_p4, %s4494_s30), 1  ;;  %v3300_v12 = vor.u32 %v4300_v4, %v3299_v1  ;;  %vm2814_vm7 = vcmask 1040384  }
  0x2b   : > { %v3301_v6 = vld [vmem:[%s6381_s4 + $0x330] sm:$0xf0]  ;;  %v4301_v9 = vld [vmem:[%s6381_s4 + $0x334] sm:$0xf0]  ;;  %v4297_v10 = vld [vmem:[%s6381_s4 + $0x31c] sm:$0xf] }
  0x2c   : > { %968 = vmatpush.bf16.msra.mxu0 %v3156_v31  ;;  %982 = vmatpush.bf16.msra.mxu1 %v3160_v35  ;;  %v3309_v11 = vld [vmem:[%s6381_s4 + $0x338] sm:$0xf0]  ;;  %v3267_v13 = vld [vmem:[%s6381_s4 + $0x2d0] sm:$0xf]  ;;  %s4870_s20 = sshll.u32 %s6392_s30, 3  ;;  %v3304_v14 = vor.u32 %v4296_v5, %v3301_v6  ;;  %v3308_v15 = vor.u32 %v4301_v9, %v3307_v8  ;;  %s4195_s19 = sshll.u32 %s6392_s30, 6 }
  0x2d   : > { %996 = vmatpush.bf16.msra.mxu2 %v3164_v36  ;;  %v4292_v16 = vld [vmem:[%s6381_s4 + $0x2ec] sm:$0xf0]  ;;  %v4288_v17 = vld [vmem:[%s6381_s4 + $0x2d4] sm:$0xf]  ;;  %s462_s29 = scalar_lea.vmem %s6378_s1, %s4870_s20  ;;  %v3312_v19 = vor.u32 %v4297_v10, %v3309_v11  ;;  %v3275_v20 = vld [vmem:[%s6381_s4 + $0x2d8] sm:$0xf]  ;;  %s452_s13 = scalar_lea.vmem %s6377_s0, %s4870_s20 }
  0x2e   : > { %1010 = vmatpush.bf16.msra.mxu3 %v3168_v39  ;;  %v3269_v18 = vld [vmem:[%s6381_s4 + $0x2f0] sm:$0xf0]  ;;  %v4293_v21 = vld [vmem:[%s6381_s4 + $0x2f4] sm:$0xf0]  ;;  %v4891_v22 = vld [vmem:[%s462_s29] sm:$0xff]  ;;  %v3268_v25 = vor.u32 %v4292_v16, %v3267_v13  ;;  %vm2816_vm9 = vcmask 1042434   ;;  %s498_s24 = scalar_lea.vmem %s6385_s8, %s4870_s20  ;;  %s502_s27 = scalar_lea.vmem %s6386_s9, %s4870_s20 }
  0x2f   : > { %v4289_v23 = vld [vmem:[%s6381_s4 + $0x2dc] sm:$0xf]  ;;  %v3272_v26 = vor.u32 %v4288_v17, %v3269_v18  ;;  %v3276_v27 = vor.u32 %v4293_v21, %v3275_v20  ;;  %v3235_v28 = vld [vmem:[%s6381_s4 + $0x290] sm:$0xf]  ;;  %v4280_v30 = vld [vmem:[%s6381_s4 + $0x294] sm:$0xf]  ;;  %969 = vmatmul.bf16.vlgmr.msra.gmra.mxu0 %v4891_v22  ;;  %983 = vmatmul.bf16.vlgmr.msra.gmra.mxu1 %v4891_v22 }
  0x30   : > { %1017 = vmatpush.bf16.msrb.mxu0 %v3396_v40  ;;  %1031 = vmatpush.bf16.msrb.mxu1 %v3400_v41  ;;  %v3277_v24 = vld [vmem:[%s6381_s4 + $0x2f8] sm:$0xf0]  ;;  %v4284_v29 = vld [vmem:[%s6381_s4 + $0x2ac] sm:$0xf0]  ;;  %v3237_v32 = vld [vmem:[%s6381_s4 + $0x2b0] sm:$0xf0] }
  0x31   : > { %1045 = vmatpush.bf16.msrb.mxu2 %v3404_v42  ;;  %v3280_v31 = vor.u32 %v4289_v23, %v3277_v24  ;;  %v3243_v33 = vld [vmem:[%s6381_s4 + $0x298] sm:$0xf]  ;;  %v4281_v35 = vld [vmem:[%s6381_s4 + $0x29c] sm:$0xf]  ;;  %1011 = vmatmul.bf16.vlgmr.msra.gmra.mxu3 %v4891_v22  ;;  %v3236_v37 = vor.u32 %v4284_v29, %v3235_v28  ;;  %v3240_v38 = vor.u32 %v4280_v30, %v3237_v32  ;;  %v3203_v40 = vld [vmem:[%s6381_s4 + $0x250] sm:$0xf] }
  0x32   : > { %1059 = vmatpush.bf16.msrb.mxu3 %v3408_v46  ;;  %997 = vmatmul.bf16.vlgmr.msra.gmra.mxu2 %v4891_v22  ;;  %v4285_v34 = vld [vmem:[%s6381_s4 + $0x2b4] sm:$0xf0]  ;;  %v3245_v36 = vld [vmem:[%s6381_s4 + $0x2b8] sm:$0xf0]  ;;  %v4276_v41 = vld [vmem:[%s6381_s4 + $0x26c] sm:$0xf0] }
  0x33   : > { %v3244_v39 = vor.u32 %v4285_v34, %v3243_v33  ;;  %v4272_v42 = vld [vmem:[%s6381_s4 + $0x254] sm:$0xf]  ;;  %v3248_v43 = vor.u32 %v4281_v35, %v3245_v36  ;;  %v3211_v45 = vld [vmem:[%s6381_s4 + $0x258] sm:$0xf]  ;;  %v4273_v47 = vld [vmem:[%s6381_s4 + $0x25c] sm:$0xf]  ;;  %v3204_v49 = vor.u32 %v4276_v41, %v3203_v40 }
  0x34   : > { %1018 = vmatpush.bf16.msrb.mxu0 %v3364_v52  ;;  %1032 = vmatpush.bf16.msrb.mxu1 %v3368_v53  ;;  %v3205_v44 = vld [vmem:[%s6381_s4 + $0x270] sm:$0xf0]  ;;  %v4277_v46 = vld [vmem:[%s6381_s4 + $0x274] sm:$0xf0]  ;;  %v3213_v48 = vld [vmem:[%s6381_s4 + $0x278] sm:$0xf0] }
  0x35   : > { %1046 = vmatpush.bf16.msrb.mxu2 %v3372_v54  ;;  %v3171_v50 = vld [vmem:[%s6381_s4 + $0x210] sm:$0xf]  ;;  %v3208_v52 = vor.u32 %v4272_v42, %v3205_v44  ;;  %v3212_v53 = vor.u32 %v4277_v46, %v3211_v45  ;;  %v4264_v54 = vld [vmem:[%s6381_s4 + $0x214] sm:$0xf]  ;;  %v3179_v56 = vld [vmem:[%s6381_s4 + $0x218] sm:$0xf]  ;;  %v3216_v57 = vor.u32 %v4273_v47, %v3213_v48 }
  0x36   : > { %1060 = vmatpush.bf16.msrb.mxu3 %v3376_v58  ;;  %v4268_v51 = vld [vmem:[%s6381_s4 + $0x22c] sm:$0xf0]  ;;  %v3173_v55 = vld [vmem:[%s6381_s4 + $0x230] sm:$0xf0]  ;;  %v4269_v58 = vld [vmem:[%s6381_s4 + $0x234] sm:$0xf0] }
  0x37   : > { %v4265_v59 = vld [vmem:[%s6381_s4 + $0x21c] sm:$0xf]  ;;  %v3639_v61 = vld [vmem:[%s6381_s4 + $0x1c0] sm:$0xf]  ;;  %v4253_v63 = vld [vmem:[%s6381_s4 + $0x1c4] sm:$0xf]  ;;  %v3176_v4 = vor.u32 %v4264_v54, %v3173_v55  ;;  %v3180_v5 = vor.u32 %v4269_v58, %v3179_v56 }
  0x38   : > { %1019 = vmatpush.bf16.msrb.mxu0 %v3332_v0  ;;  %1033 = vmatpush.bf16.msrb.mxu1 %v3336_v2  ;;  %v3181_v60 = vld [vmem:[%s6381_s4 + $0x238] sm:$0xf0]  ;;  %v4257_v62 = vld [vmem:[%s6381_s4 + $0x1dc] sm:$0xf0]  ;;  %v3172_v0 = vor.u32 %v4268_v51, %v3171_v50  ;;  %v3641_v1 = vld [vmem:[%s6381_s4 + $0x1e0] sm:$0xf0] }
  0x39   : > { %1047 = vmatpush.bf16.msrb.mxu2 %v3340_v3  ;;  %v3647_v2 = vld [vmem:[%s6381_s4 + $0x1c8] sm:$0xf]  ;;  %v4254_v6 = vld [vmem:[%s6381_s4 + $0x1cc] sm:$0xf]  ;;  %v3184_v8 = vor.u32 %v4265_v59, %v3181_v60  ;;  %v3640_v9 = vor.u32 %v4257_v62, %v3639_v61  ;;  %v3644_v10 = vor.u32 %v4253_v63, %v3641_v1  ;;  %v4249_v13 = vld [vmem:[%s6381_s4 + $0x19c] sm:$0xf0] }
  0x3a   : > { %1061 = vmatpush.bf16.msrb.mxu3 %v3344_v7  ;;  %v4258_v3 = vld [vmem:[%s6381_s4 + $0x1e4] sm:$0xf0]  ;;  %v3649_v7 = vld [vmem:[%s6381_s4 + $0x1e8] sm:$0xf0]  ;;  %v3609_v16 = vld [vmem:[%s6381_s4 + $0x1a0] sm:$0xf0] }
  0x3b   : > { %v3648_v11 = vor.u32 %v4258_v3, %v3647_v2  ;;  %v3615_v17 = vld [vmem:[%s6381_s4 + $0x188] sm:$0xf]  ;;  %v3617_v20 = vld [vmem:[%s6381_s4 + $0x1a8] sm:$0xf0]  ;;  %v3577_v29 = vld [vmem:[%s6381_s4 + $0x160] sm:$0xf0] }
  0x3c   : > { %1020 = vmatpush.bf16.msrb.mxu0 %v3300_v12  ;;  %1034 = vmatpush.bf16.msrb.mxu1 %v3304_v14  ;;  %v3607_v12 = vld [vmem:[%s6381_s4 + $0x180] sm:$0xf]  ;;  %v4245_v14 = vld [vmem:[%s6381_s4 + $0x184] sm:$0xf]  ;;  %v4250_v18 = vld [vmem:[%s6381_s4 + $0x1a4] sm:$0xf0] }
  0x3d   : > { %1048 = vmatpush.bf16.msrb.mxu2 %v3308_v15  ;;  %v3652_v15 = vor.u32 %v4254_v6, %v3649_v7  ;;  %v3608_v21 = vor.u32 %v4249_v13, %v3607_v12  ;;  %v3612_v23 = vor.u32 %v4245_v14, %v3609_v16  ;;  %v3616_v24 = vor.u32 %v4250_v18, %v3615_v17  ;;  %v3583_v30 = vld [vmem:[%s6381_s4 + $0x148] sm:$0xf]  ;;  %v4238_v32 = vld [vmem:[%s6381_s4 + $0x14c] sm:$0xf]  ;;  %v3511_v48 = vld [vmem:[%s6381_s4 + $0xc0] sm:$0xf] }
  0x3e   : > { %1062 = vmatpush.bf16.msrb.mxu3 %v3312_v19  ;;  %v4246_v19 = vld [vmem:[%s6381_s4 + $0x18c] sm:$0xf]  ;;  %v3551_v41 = vld [vmem:[%s6381_s4 + $0x108] sm:$0xf]  ;;  %v4221_v50 = vld [vmem:[%s6381_s4 + $0xc4] sm:$0xf] }
  0x3f   : > { %v3620_v28 = vor.u32 %v4246_v19, %v3617_v20  ;;  %v3585_v33 = vld [vmem:[%s6381_s4 + $0x168] sm:$0xf0]  ;;  %v4234_v42 = vld [vmem:[%s6381_s4 + $0x124] sm:$0xf0]  ;;  %v3479_v60 = vld [vmem:[%s6381_s4 + $0x80] sm:$0xf] }
  0x40   : > { %1021 = vmatpush.bf16.msrb.mxu0 %v3268_v25  ;;  %1035 = vmatpush.bf16.msrb.mxu1 %v3272_v26  ;;  %v3575_v25 = vld [vmem:[%s6381_s4 + $0x140] sm:$0xf]  ;;  %v3588_v40 = vor.u32 %v4238_v32, %v3585_v33  ;;  %v3553_v44 = vld [vmem:[%s6381_s4 + $0x128] sm:$0xf0]  ;;  %v3552_v47 = vor.u32 %v4234_v42, %v3551_v41  ;;  %v4226_v54 = vld [vmem:[%s6381_s4 + $0xe4] sm:$0xf0] }
  0x41   : > { %1049 = vmatpush.bf16.msrb.mxu2 %v3276_v27  ;;  %v4241_v26 = vld [vmem:[%s6381_s4 + $0x15c] sm:$0xf0]  ;;  %v4237_v27 = vld [vmem:[%s6381_s4 + $0x144] sm:$0xf]  ;;  %v4222_v55 = vld [vmem:[%s6381_s4 + $0xcc] sm:$0xf] }
  0x42   : > { %1063 = vmatpush.bf16.msrb.mxu3 %v3280_v31  ;;  %v4242_v31 = vld [vmem:[%s6381_s4 + $0x164] sm:$0xf0]  ;;  %v3576_v34 = vor.u32 %v4241_v26, %v3575_v25  ;;  %v3580_v35 = vor.u32 %v4237_v27, %v3577_v29  ;;  %v3521_v56 = vld [vmem:[%s6381_s4 + $0xe8] sm:$0xf0]  ;;  %v4217_v61 = vld [vmem:[%s6381_s4 + $0x9c] sm:$0xf0] }
  0x43   : > { %v3584_v36 = vor.u32 %v4242_v31, %v3583_v30  ;;  %v4213_v62 = vld [vmem:[%s6381_s4 + $0x84] sm:$0xf]  ;;  %v3524_v63 = vor.u32 %v4222_v55, %v3521_v56  ;;  %v3487_v1 = vld [vmem:[%s6381_s4 + $0x88] sm:$0xf]  ;;  %v4214_v3 = vld [vmem:[%s6381_s4 + $0x8c] sm:$0xf] }
  0x44   : > { %1022 = vmatpush.bf16.msrb.mxu0 %v3236_v37  ;;  %1036 = vmatpush.bf16.msrb.mxu1 %v3240_v38  ;;  %v3543_v37 = vld [vmem:[%s6381_s4 + $0x100] sm:$0xf]  ;;  %v4218_v2 = vld [vmem:[%s6381_s4 + $0xa4] sm:$0xf0]  ;;  %v3449_v12 = vld [vmem:[%s6381_s4 + $0x60] sm:$0xf0] }
  0x45   : > { %1050 = vmatpush.bf16.msrb.mxu2 %v3244_v39  ;;  %v4233_v38 = vld [vmem:[%s6381_s4 + $0x11c] sm:$0xf0]  ;;  %v4229_v39 = vld [vmem:[%s6381_s4 + $0x104] sm:$0xf]  ;;  %v3488_v7 = vor.u32 %v4218_v2, %v3487_v1  ;;  %v3455_v13 = vld [vmem:[%s6381_s4 + $0x48] sm:$0xf] }
  0x46   : > { %1064 = vmatpush.bf16.msrb.mxu3 %v3248_v43  ;;  %v4230_v43 = vld [vmem:[%s6381_s4 + $0x10c] sm:$0xf]  ;;  %v3544_v45 = vor.u32 %v4233_v38, %v3543_v37  ;;  %v4210_v14 = vld [vmem:[%s6381_s4 + $0x64] sm:$0xf0]  ;;  %v3415_v18 = vld [vmem:[%s6381_s4] sm:$0xf] }
  0x47   : > { %v3556_v51 = vor.u32 %v4230_v43, %v3553_v44  ;;  %v3457_v16 = vld [vmem:[%s6381_s4 + $0x68] sm:$0xf0]  ;;  %v4201_v19 = vld [vmem:[%s6381_s4 + $0x1c] sm:$0xf0]  ;;  %v3423_v25 = vld [vmem:[%s6381_s4 + $0x8] sm:$0xf] }
  0x48   : > { %1023 = vmatpush.bf16.msrb.mxu0 %v3204_v49  ;;  %1037 = vmatpush.bf16.msrb.mxu1 %v3208_v52  ;;  %v4225_v49 = vld [vmem:[%s6381_s4 + $0xdc] sm:$0xf0]  ;;  %v3513_v52 = vld [vmem:[%s6381_s4 + $0xe0] sm:$0xf0]  ;;  %v4202_v27 = vld [vmem:[%s6381_s4 + $0x24] sm:$0xf0]  ;;  %v3416_v33 = vor.u32 %v4201_v19, %v3415_v18 }
  0x49   : > { %1051 = vmatpush.bf16.msrb.mxu2 %v3212_v53  ;;  %v3519_v53 = vld [vmem:[%s6381_s4 + $0xc8] sm:$0xf]  ;;  %v3516_v58 = vor.u32 %v4221_v50, %v3513_v52  ;;  %v3425_v29 = vld [vmem:[%s6381_s4 + $0x28] sm:$0xf0]  ;;  %v3655_v30 = vld [vmem:[%s6381_s4 + $0x1d0] sm:$0xf]  ;;  %v3424_v38 = vor.u32 %v4202_v27, %v3423_v25 }
  0x4a   : > { %1065 = vmatpush.bf16.msrb.mxu3 %v3216_v57  ;;  %v3512_v57 = vor.u32 %v4225_v49, %v3511_v48  ;;  %v3520_v59 = vor.u32 %v4226_v54, %v3519_v53  ;;  %v4259_v31 = vld [vmem:[%s6381_s4 + $0x1ec] sm:$0xf0]  ;;  %v4255_v32 = vld [vmem:[%s6381_s4 + $0x1d4] sm:$0xf]  ;;  %v5199_v42 = vld [vmem:[%s452_s13] sm:$0xff]  ;;  %s472_s13 = scalar_lea.vmem %s6379_s2, %s4870_s20  ;;  %vm2818_vm10 = vcmask 1041408  }
  0x4b   : > { %v3656_v41 = vor.u32 %v4259_v31, %v3655_v30  ;;  %v3625_v49 = vld [vmem:[%s6381_s4 + $0x1b0] sm:$0xf0]  ;;  %v3631_v50 = vld [vmem:[%s6381_s4 + $0x198] sm:$0xf]  ;;  %v4248_v52 = vld [vmem:[%s6381_s4 + $0x19c] sm:$0xf] }
  0x4c   : > { %1024 = vmatpush.bf16.msrb.mxu0 %v3172_v0  ;;  %1038 = vmatpush.bf16.msrb.mxu1 %v3176_v4  ;;  %v3481_v0 = vld [vmem:[%s6381_s4 + $0xa0] sm:$0xf0]  ;;  %v3489_v4 = vld [vmem:[%s6381_s4 + $0xa8] sm:$0xf0]  ;;  %v3633_v53 = vld [vmem:[%s6381_s4 + $0x1b8] sm:$0xf0] }
  0x4d   : > { %1052 = vmatpush.bf16.msrb.mxu2 %v3180_v5  ;;  %v3480_v5 = vor.u32 %v4217_v61, %v3479_v60  ;;  %v3484_v6 = vor.u32 %v4213_v62, %v3481_v0  ;;  %v3636_v60 = vor.u32 %v4248_v52, %v3633_v53  ;;  %v3593_v61 = vld [vmem:[%s6381_s4 + $0x170] sm:$0xf0]  ;;  %v3599_v62 = vld [vmem:[%s6381_s4 + $0x158] sm:$0xf]  ;;  %v4240_v0 = vld [vmem:[%s6381_s4 + $0x15c] sm:$0xf] }
  0x4e   : > { %1066 = vmatpush.bf16.msrb.mxu3 %v3184_v8  ;;  %v3447_v8 = vld [vmem:[%s6381_s4 + $0x40] sm:$0xf]  ;;  %v3601_v1 = vld [vmem:[%s6381_s4 + $0x178] sm:$0xf0]  ;;  %v4227_v18 = vld [vmem:[%s6381_s4 + $0xec] sm:$0xf0] }
  0x4f   : > { %1025 = vmatmul.bf16.vlgmr.msrb.gmra.mxu0 %v4891_v22  ;;  %1039 = vmatmul.bf16.vlgmr.msrb.gmra.mxu1 %v4891_v22  ;;  %v4223_v19 = vld [vmem:[%s6381_s4 + $0xd4] sm:$0xf]  ;;  %v4224_v25 = vld [vmem:[%s6381_s4 + $0xdc] sm:$0xf]  ;;  %v3495_v30 = vld [vmem:[%s6381_s4 + $0x90] sm:$0xf] }
  0x50   : > { %1399 = vmatpush.bf16.msra.mxu0 %v3640_v9  ;;  %1413 = vmatpush.bf16.msra.mxu1 %v3644_v10  ;;  %v4209_v9 = vld [vmem:[%s6381_s4 + $0x5c] sm:$0xf0]  ;;  %v4205_v10 = vld [vmem:[%s6381_s4 + $0x44] sm:$0xf]  ;;  %v4219_v31 = vld [vmem:[%s6381_s4 + $0xac] sm:$0xf0] }
  0x51   : > { %1427 = vmatpush.bf16.msra.mxu2 %v3648_v11  ;;  %1067 = vmatmul.bf16.vlgmr.msrb.gmra.mxu3 %v4891_v22  ;;  %v3492_v11 = vor.u32 %v4214_v3, %v3489_v4  ;;  %v3448_v17 = vor.u32 %v4209_v9, %v3447_v8  ;;  %v3452_v20 = vor.u32 %v4205_v10, %v3449_v12  ;;  %v3561_v9 = vld [vmem:[%s6381_s4 + $0x130] sm:$0xf0]  ;;  %v3567_v10 = vld [vmem:[%s6381_s4 + $0x118] sm:$0xf]  ;;  %v4232_v12 = vld [vmem:[%s6381_s4 + $0x11c] sm:$0xf] }
  0x52   : > { %1441 = vmatpush.bf16.msra.mxu3 %v3652_v15  ;;  %1053 = vmatmul.bf16.vlgmr.msrb.gmra.mxu2 %v4891_v22  ;;  %v3545_v22 = vld [vmem:[%s6381_s4 + $0x120] sm:$0xf0]  ;;  %v4206_v15 = vld [vmem:[%s6381_s4 + $0x4c] sm:$0xf]  ;;  %v3604_v8 = vor.u32 %v4240_v0, %v3601_v1  ;;  %v3431_v52 = vld [vmem:[%s6381_s4 + $0x10] sm:$0xf] }
  0x53   : > { %v3548_v46 = vor.u32 %v4229_v39, %v3545_v22  ;;  %v3460_v26 = vor.u32 %v4206_v15, %v3457_v16  ;;  %v4256_v39 = vld [vmem:[%s6381_s4 + $0x1dc] sm:$0xf]  ;;  %v4203_v53 = vld [vmem:[%s6381_s4 + $0x2c] sm:$0xf0]  ;;  %v4387_v0 = vld [vmem:[%s6381_s4 + $0x5dc] sm:$0xf0] }
  0x54   : > { %1400 = vmatpush.bf16.msra.mxu0 %v3608_v21  ;;  %1414 = vmatpush.bf16.msra.mxu1 %v3612_v23  ;;  %v3456_v21 = vor.u32 %v4210_v14, %v3455_v13  ;;  %v4197_v23 = vld [vmem:[%s6381_s4 + $0x4] sm:$0xf]  ;;  %v3569_v13 = vld [vmem:[%s6381_s4 + $0x138] sm:$0xf0] }
  0x55   : > { %1428 = vmatpush.bf16.msra.mxu2 %v3616_v24  ;;  %v3417_v24 = vld [vmem:[%s6381_s4 + $0x20] sm:$0xf0] }
  0x56   : > { %1442 = vmatpush.bf16.msra.mxu3 %v3620_v28  ;;  %v4198_v28 = vld [vmem:[%s6381_s4 + $0xc] sm:$0xf]  ;;  %v3420_v37 = vor.u32 %v4197_v23, %v3417_v24  ;;  %v3535_v23 = vld [vmem:[%s6381_s4 + $0xd8] sm:$0xf]  ;;  %v4383_v1 = vld [vmem:[%s6381_s4 + $0x5c4] sm:$0xf] }
  0x57   : > { %v3428_v22 = vor.u32 %v4198_v28, %v3425_v29  ;;  %v4228_v24 = vld [vmem:[%s6381_s4 + $0xf4] sm:$0xf0] }
  0x58   : > { %1401 = vmatpush.bf16.msra.mxu0 %v3576_v34  ;;  %1415 = vmatpush.bf16.msra.mxu1 %v3580_v35  ;;  %v3657_v34 = vld [vmem:[%s6381_s4 + $0x1f0] sm:$0xf0]  ;;  %v3663_v35 = vld [vmem:[%s6381_s4 + $0x1d8] sm:$0xf]  ;;  %v3536_v29 = vor.u32 %v4228_v24, %v3535_v23  ;;  %v3877_v23 = vld [vmem:[%s6381_s4 + $0x5a8] sm:$0xf0] }
  0x59   : > { %1429 = vmatpush.bf16.msra.mxu2 %v3584_v36  ;;  %v4260_v36 = vld [vmem:[%s6381_s4 + $0x1f4] sm:$0xf0]  ;;  %v3660_v43 = vor.u32 %v4255_v32, %v3657_v34  ;;  %v4215_v32 = vld [vmem:[%s6381_s4 + $0x94] sm:$0xf] }
  0x5a   : > { %1443 = vmatpush.bf16.msra.mxu3 %v3588_v40  ;;  %v3665_v40 = vld [vmem:[%s6381_s4 + $0x1f8] sm:$0xf0]  ;;  %v3664_v44 = vor.u32 %v4260_v36, %v3663_v35  ;;  %v3497_v34 = vld [vmem:[%s6381_s4 + $0xb0] sm:$0xf0]  ;;  %v3503_v35 = vld [vmem:[%s6381_s4 + $0x98] sm:$0xf] }
  0x5b   : > { %v3668_v48 = vor.u32 %v4256_v39, %v3665_v40  ;;  %v4220_v36 = vld [vmem:[%s6381_s4 + $0xb4] sm:$0xf0]  ;;  %v3496_v39 = vor.u32 %v4219_v31, %v3495_v30  ;;  %v3500_v40 = vor.u32 %v4215_v32, %v3497_v34  ;;  %v3837_v31 = vld [vmem:[%s6381_s4 + $0x560] sm:$0xf0]  ;;  %v3843_v32 = vld [vmem:[%s6381_s4 + $0x548] sm:$0xf] }
  0x5c   : > { %1402 = vmatpush.bf16.msra.mxu0 %v3544_v45  ;;  %1416 = vmatpush.bf16.msra.mxu1 %v3548_v46  ;;  %v3623_v45 = vld [vmem:[%s6381_s4 + $0x190] sm:$0xf]  ;;  %v4368_v34 = vld [vmem:[%s6381_s4 + $0x54c] sm:$0xf] }
  0x5d   : > { %1430 = vmatpush.bf16.msra.mxu2 %v3552_v47  ;;  %v4251_v46 = vld [vmem:[%s6381_s4 + $0x1ac] sm:$0xf0]  ;;  %v4247_v47 = vld [vmem:[%s6381_s4 + $0x194] sm:$0xf] }
  0x5e   : > { %1444 = vmatpush.bf16.msra.mxu3 %v3556_v51  ;;  %v4252_v51 = vld [vmem:[%s6381_s4 + $0x1b4] sm:$0xf0]  ;;  %v3624_v54 = vor.u32 %v4251_v46, %v3623_v45  ;;  %v3628_v55 = vor.u32 %v4247_v47, %v3625_v49  ;;  %v3465_v46 = vld [vmem:[%s6381_s4 + $0x70] sm:$0xf0]  ;;  %v4208_v49 = vld [vmem:[%s6381_s4 + $0x5c] sm:$0xf] }
  0x5f   : > { %v3632_v56 = vor.u32 %v4252_v51, %v3631_v50  ;;  %v3471_v47 = vld [vmem:[%s6381_s4 + $0x58] sm:$0xf]  ;;  %v3473_v50 = vld [vmem:[%s6381_s4 + $0x78] sm:$0xf0] }
  0x60   : > { %1403 = vmatpush.bf16.msra.mxu0 %v3512_v57  ;;  %1417 = vmatpush.bf16.msra.mxu1 %v3516_v58  ;;  %v3591_v57 = vld [vmem:[%s6381_s4 + $0x150] sm:$0xf] }
  0x61   : > { %1431 = vmatpush.bf16.msra.mxu2 %v3520_v59  ;;  %v4243_v58 = vld [vmem:[%s6381_s4 + $0x16c] sm:$0xf0]  ;;  %v4239_v59 = vld [vmem:[%s6381_s4 + $0x154] sm:$0xf] }
  0x62   : > { %1445 = vmatpush.bf16.msra.mxu3 %v3524_v63  ;;  %v4244_v63 = vld [vmem:[%s6381_s4 + $0x174] sm:$0xf0]  ;;  %v3592_v2 = vor.u32 %v4243_v58, %v3591_v57  ;;  %v3596_v3 = vor.u32 %v4239_v59, %v3593_v61  ;;  %v3433_v57 = vld [vmem:[%s6381_s4 + $0x30] sm:$0xf0]  ;;  %v3476_v59 = vor.u32 %v4208_v49, %v3473_v50  ;;  %v4200_v61 = vld [vmem:[%s6381_s4 + $0x1c] sm:$0xf] }
  0x63   : > { %v3600_v4 = vor.u32 %v4244_v63, %v3599_v62  ;;  %v3439_v58 = vld [vmem:[%s6381_s4 + $0x18] sm:$0xf]  ;;  %v3441_v62 = vld [vmem:[%s6381_s4 + $0x38] sm:$0xf0]  ;;  %v3899_v63 = vld [vmem:[%s6381_s4 + $0x5c0] sm:$0xf] }
  0x64   : > { %1404 = vmatpush.bf16.msra.mxu0 %v3480_v5  ;;  %1418 = vmatpush.bf16.msra.mxu1 %v3484_v6  ;;  %v3559_v5 = vld [vmem:[%s6381_s4 + $0x110] sm:$0xf]  ;;  %v3771_v50 = vld [vmem:[%s6381_s4 + $0x4c0] sm:$0xf] }
  0x65   : > { %1432 = vmatpush.bf16.msra.mxu2 %v3488_v7  ;;  %v4235_v6 = vld [vmem:[%s6381_s4 + $0x12c] sm:$0xf0]  ;;  %v4231_v7 = vld [vmem:[%s6381_s4 + $0x114] sm:$0xf] }
  0x66   : > { %1446 = vmatpush.bf16.msra.mxu3 %v3492_v11  ;;  %v4236_v11 = vld [vmem:[%s6381_s4 + $0x134] sm:$0xf0]  ;;  %v3560_v14 = vor.u32 %v4235_v6, %v3559_v5  ;;  %v3564_v15 = vor.u32 %v4231_v7, %v3561_v9  ;;  %v4388_v5 = vld [vmem:[%s6381_s4 + $0x5e4] sm:$0xf0]  ;;  %v3909_v9 = vld [vmem:[%s6381_s4 + $0x5e8] sm:$0xf0] }
  0x67   : > { %v3568_v16 = vor.u32 %v4236_v11, %v3567_v10  ;;  %v3444_v10 = vor.u32 %v4200_v61, %v3441_v62  ;;  %v3900_v11 = vor.u32 %v4387_v0, %v3899_v63  ;;  %v3739_v62 = vld [vmem:[%s6381_s4 + $0x480] sm:$0xf]  ;;  %v4343_v0 = vld [vmem:[%s6381_s4 + $0x484] sm:$0xf] }
  0x68   : > { %1405 = vmatpush.bf16.msra.mxu0 %v3448_v17  ;;  %1419 = vmatpush.bf16.msra.mxu1 %v3452_v20  ;;  %v3527_v17 = vld [vmem:[%s6381_s4 + $0xd0] sm:$0xf]  ;;  %v3572_v20 = vor.u32 %v4232_v12, %v3569_v13  ;;  %v4347_v63 = vld [vmem:[%s6381_s4 + $0x49c] sm:$0xf0] }
  0x69   : > { %1433 = vmatpush.bf16.msra.mxu2 %v3456_v21  ;;  %v3529_v21 = vld [vmem:[%s6381_s4 + $0xf0] sm:$0xf0]  ;;  %v3528_v27 = vor.u32 %v4227_v18, %v3527_v17  ;;  %v3869_v18 = vld [vmem:[%s6381_s4 + $0x5a0] sm:$0xf0] }
  0x6a   : > { %1447 = vmatpush.bf16.msra.mxu3 %v3460_v26  ;;  %v3537_v26 = vld [vmem:[%s6381_s4 + $0xf8] sm:$0xf0]  ;;  %v3532_v28 = vor.u32 %v4223_v19, %v3529_v21  ;;  %v3875_v19 = vld [vmem:[%s6381_s4 + $0x588] sm:$0xf]  ;;  %v4376_v21 = vld [vmem:[%s6381_s4 + $0x58c] sm:$0xf] }
  0x6b   : > { %v3880_v30 = vor.u32 %v4376_v21, %v3877_v23  ;;  %v4331_v21 = vld [vmem:[%s6381_s4 + $0x41c] sm:$0xf0] }
  0x6c   : > { %1406 = vmatpush.bf16.msra.mxu0 %v3416_v33  ;;  %1420 = vmatpush.bf16.msra.mxu1 %v3420_v37  ;;  %v3540_v33 = vor.u32 %v4224_v25, %v3537_v26  ;;  %v4216_v37 = vld [vmem:[%s6381_s4 + $0x9c] sm:$0xf] }
  0x6d   : > { %1434 = vmatpush.bf16.msra.mxu2 %v3424_v38  ;;  %v3505_v38 = vld [vmem:[%s6381_s4 + $0xb8] sm:$0xf0] }
  0x6e   : > { %1448 = vmatpush.bf16.msra.mxu3 %v3428_v22  ;;  %v3504_v22 = vor.u32 %v4220_v36, %v3503_v35  ;;  %v3508_v45 = vor.u32 %v4216_v37, %v3505_v38  ;;  %v3845_v35 = vld [vmem:[%s6381_s4 + $0x568] sm:$0xf0] }
  0x6f   : > { %1407 = vmatmul.bf16.vlgmr.msra.gmra.mxu0 %v5199_v42  ;;  %1421 = vmatmul.bf16.vlgmr.msra.gmra.mxu1 %v5199_v42 }
  0x70   : > { %1455 = vmatpush.bf16.msrb.mxu0 %v3656_v41  ;;  %1469 = vmatpush.bf16.msrb.mxu1 %v3660_v43  ;;  %v3463_v41 = vld [vmem:[%s6381_s4 + $0x50] sm:$0xf] }
  0x71   : > { %1483 = vmatpush.bf16.msrb.mxu2 %v3664_v44  ;;  %1449 = vmatmul.bf16.vlgmr.msra.gmra.mxu3 %v5199_v42  ;;  %v4211_v43 = vld [vmem:[%s6381_s4 + $0x6c] sm:$0xf0]  ;;  %v4207_v44 = vld [vmem:[%s6381_s4 + $0x54] sm:$0xf] }
  0x72   : > { %1497 = vmatpush.bf16.msrb.mxu3 %v3668_v48  ;;  %1435 = vmatmul.bf16.vlgmr.msra.gmra.mxu2 %v5199_v42  ;;  %v4212_v48 = vld [vmem:[%s6381_s4 + $0x74] sm:$0xf0]  ;;  %v3464_v51 = vor.u32 %v4211_v43, %v3463_v41  ;;  %v3805_v41 = vld [vmem:[%s6381_s4 + $0x520] sm:$0xf0]  ;;  %v3811_v43 = vld [vmem:[%s6381_s4 + $0x508] sm:$0xf] }
  0x74   : > { %1456 = vmatpush.bf16.msrb.mxu0 %v3624_v54  ;;  %1470 = vmatpush.bf16.msrb.mxu1 %v3628_v55  ;;  %v3468_v54 = vor.u32 %v4207_v44, %v3465_v46  ;;  %v3472_v55 = vor.u32 %v4212_v48, %v3471_v47  ;;  %v4364_v44 = vld [vmem:[%s6381_s4 + $0x524] sm:$0xf0]  ;;  %v3813_v46 = vld [vmem:[%s6381_s4 + $0x528] sm:$0xf0] }
  0x75   : > { %1484 = vmatpush.bf16.msrb.mxu2 %v3632_v56  ;;  %v4199_v56 = vld [vmem:[%s6381_s4 + $0x14] sm:$0xf]  ;;  %v3812_v49 = vor.u32 %v4364_v44, %v3811_v43  ;;  %v5597_v44 = vld [vmem:[%s472_s13] sm:$0xff]  ;;  %s482_s13 = scalar_lea.vmem %s6380_s3, %s4870_s20 }
  0x76   : > { %1498 = vmatpush.bf16.msrb.mxu3 %v3636_v60  ;;  %v4204_v60 = vld [vmem:[%s6381_s4 + $0x34] sm:$0xf0]  ;;  %v3436_v6 = vor.u32 %v4199_v56, %v3433_v57  ;;  %v4356_v56 = vld [vmem:[%s6381_s4 + $0x4e4] sm:$0xf0]  ;;  %v4352_v57 = vld [vmem:[%s6381_s4 + $0x4cc] sm:$0xf] }
  0x77   : > { %v3440_v7 = vor.u32 %v4204_v60, %v3439_v58  ;;  %v3781_v58 = vld [vmem:[%s6381_s4 + $0x4e8] sm:$0xf0] }
  0x78   : > { %1457 = vmatpush.bf16.msrb.mxu0 %v3592_v2  ;;  %1471 = vmatpush.bf16.msrb.mxu1 %v3596_v3  ;;  %v3432_v2 = vor.u32 %v4203_v53, %v3431_v52  ;;  %v3901_v3 = vld [vmem:[%s6381_s4 + $0x5e0] sm:$0xf0] }
  0x79   : > { %1485 = vmatpush.bf16.msrb.mxu2 %v3600_v4  ;;  %v3907_v4 = vld [vmem:[%s6381_s4 + $0x5c8] sm:$0xf]  ;;  %v3904_v12 = vor.u32 %v4383_v1, %v3901_v3  ;;  %v4351_v52 = vld [vmem:[%s6381_s4 + $0x4c4] sm:$0xf]  ;;  %v3784_v1 = vor.u32 %v4352_v57, %v3781_v58 }
  0x7a   : > { %1499 = vmatpush.bf16.msrb.mxu3 %v3604_v8  ;;  %v4384_v8 = vld [vmem:[%s6381_s4 + $0x5cc] sm:$0xf]  ;;  %v3908_v13 = vor.u32 %v4388_v5, %v3907_v4  ;;  %v3747_v3 = vld [vmem:[%s6381_s4 + $0x488] sm:$0xf] }
  0x7b   : > { %v3912_v17 = vor.u32 %v4384_v8, %v3909_v9  ;;  %v4348_v4 = vld [vmem:[%s6381_s4 + $0x4a4] sm:$0xf0]  ;;  %v4344_v5 = vld [vmem:[%s6381_s4 + $0x48c] sm:$0xf] }
  0x7c   : > { %1458 = vmatpush.bf16.msrb.mxu0 %v3560_v14  ;;  %1472 = vmatpush.bf16.msrb.mxu1 %v3564_v15  ;;  %v3867_v14 = vld [vmem:[%s6381_s4 + $0x580] sm:$0xf]  ;;  %v3748_v9 = vor.u32 %v4348_v4, %v3747_v3  ;;  %v3861_v3 = vld [vmem:[%s6381_s4 + $0x578] sm:$0xf0] }
  0x7d   : > { %1486 = vmatpush.bf16.msrb.mxu2 %v3568_v16  ;;  %v4379_v15 = vld [vmem:[%s6381_s4 + $0x59c] sm:$0xf0]  ;;  %v4375_v16 = vld [vmem:[%s6381_s4 + $0x584] sm:$0xf] }
  0x7e   : > { %1500 = vmatpush.bf16.msrb.mxu3 %v3572_v20  ;;  %v4380_v20 = vld [vmem:[%s6381_s4 + $0x5a4] sm:$0xf0]  ;;  %v3868_v24 = vor.u32 %v4379_v15, %v3867_v14  ;;  %v3872_v25 = vor.u32 %v4375_v16, %v3869_v18  ;;  %v3709_v14 = vld [vmem:[%s6381_s4 + $0x460] sm:$0xf0]  ;;  %v3717_v18 = vld [vmem:[%s6381_s4 + $0x468] sm:$0xf0] }
  0x7f   : > { %v3876_v26 = vor.u32 %v4380_v20, %v3875_v19  ;;  %v3715_v15 = vld [vmem:[%s6381_s4 + $0x448] sm:$0xf]  ;;  %v3675_v20 = vld [vmem:[%s6381_s4 + $0x400] sm:$0xf] }
  0x80   : > { %1459 = vmatpush.bf16.msrb.mxu0 %v3528_v27  ;;  %1473 = vmatpush.bf16.msrb.mxu1 %v3532_v28  ;;  %v3835_v27 = vld [vmem:[%s6381_s4 + $0x540] sm:$0xf]  ;;  %v4340_v16 = vld [vmem:[%s6381_s4 + $0x464] sm:$0xf0] }
  0x81   : > { %1487 = vmatpush.bf16.msrb.mxu2 %v3536_v29  ;;  %v4371_v28 = vld [vmem:[%s6381_s4 + $0x55c] sm:$0xf0]  ;;  %v4367_v29 = vld [vmem:[%s6381_s4 + $0x544] sm:$0xf] }
  0x82   : > { %1501 = vmatpush.bf16.msrb.mxu3 %v3540_v33  ;;  %v4372_v33 = vld [vmem:[%s6381_s4 + $0x564] sm:$0xf0]  ;;  %v3836_v36 = vor.u32 %v4371_v28, %v3835_v27  ;;  %v3840_v37 = vor.u32 %v4367_v29, %v3837_v31  ;;  %v3685_v31 = vld [vmem:[%s6381_s4 + $0x428] sm:$0xf0] }
  0x83   : > { %v3844_v38 = vor.u32 %v4372_v33, %v3843_v32  ;;  %v3683_v27 = vld [vmem:[%s6381_s4 + $0x408] sm:$0xf]  ;;  %v3915_v32 = vld [vmem:[%s6381_s4 + $0x5d0] sm:$0xf] }
  0x84   : > { %1460 = vmatpush.bf16.msrb.mxu0 %v3496_v39  ;;  %1474 = vmatpush.bf16.msrb.mxu1 %v3500_v40  ;;  %v3803_v39 = vld [vmem:[%s6381_s4 + $0x500] sm:$0xf]  ;;  %v4332_v29 = vld [vmem:[%s6381_s4 + $0x424] sm:$0xf0]  ;;  %v4389_v33 = vld [vmem:[%s6381_s4 + $0x5ec] sm:$0xf0] }
  0x85   : > { %1488 = vmatpush.bf16.msrb.mxu2 %v3504_v22  ;;  %v4363_v40 = vld [vmem:[%s6381_s4 + $0x51c] sm:$0xf0]  ;;  %v4359_v22 = vld [vmem:[%s6381_s4 + $0x504] sm:$0xf]  ;;  %v3916_v43 = vor.u32 %v4389_v33, %v3915_v32  ;;  %v3755_v32 = vld [vmem:[%s6381_s4 + $0x490] sm:$0xf] }
  0x86   : > { %1502 = vmatpush.bf16.msrb.mxu3 %v3508_v45  ;;  %v4360_v45 = vld [vmem:[%s6381_s4 + $0x50c] sm:$0xf]  ;;  %v3804_v47 = vor.u32 %v4363_v40, %v3803_v39  ;;  %v3808_v48 = vor.u32 %v4359_v22, %v3805_v41  ;;  %v3684_v40 = vor.u32 %v4332_v29, %v3683_v27  ;;  %v4386_v22 = vld [vmem:[%s6381_s4 + $0x5dc] sm:$0xf]  ;;  %v4349_v33 = vld [vmem:[%s6381_s4 + $0x4ac] sm:$0xf0] }
  0x87   : > { %v3816_v53 = vor.u32 %v4360_v45, %v3813_v46  ;;  %v4354_v27 = vld [vmem:[%s6381_s4 + $0x4dc] sm:$0xf] }
  0x88   : > { %1461 = vmatpush.bf16.msrb.mxu0 %v3464_v51  ;;  %1475 = vmatpush.bf16.msrb.mxu1 %v3468_v54  ;;  %v4355_v51 = vld [vmem:[%s6381_s4 + $0x4dc] sm:$0xf0]  ;;  %v3773_v54 = vld [vmem:[%s6381_s4 + $0x4e0] sm:$0xf0] }
  0x89   : > { %1489 = vmatpush.bf16.msrb.mxu2 %v3472_v55  ;;  %v3779_v55 = vld [vmem:[%s6381_s4 + $0x4c8] sm:$0xf]  ;;  %v3776_v60 = vor.u32 %v4351_v52, %v3773_v54  ;;  %v3891_v52 = vld [vmem:[%s6381_s4 + $0x598] sm:$0xf]  ;;  %v4378_v54 = vld [vmem:[%s6381_s4 + $0x59c] sm:$0xf] }
  0x8a   : > { %1503 = vmatpush.bf16.msrb.mxu3 %v3476_v59  ;;  %v3772_v59 = vor.u32 %v4355_v51, %v3771_v50  ;;  %v3780_v61 = vor.u32 %v4356_v56, %v3779_v55  ;;  %v3885_v51 = vld [vmem:[%s6381_s4 + $0x5b0] sm:$0xf0]  ;;  %v3893_v55 = vld [vmem:[%s6381_s4 + $0x5b8] sm:$0xf0] }
  0x8c   : > { %1462 = vmatpush.bf16.msrb.mxu0 %v3432_v2  ;;  %1476 = vmatpush.bf16.msrb.mxu1 %v3436_v6  ;;  %v3741_v2 = vld [vmem:[%s6381_s4 + $0x4a0] sm:$0xf0]  ;;  %v3749_v6 = vld [vmem:[%s6381_s4 + $0x4a8] sm:$0xf0] }
  0x8d   : > { %1490 = vmatpush.bf16.msrb.mxu2 %v3440_v7  ;;  %v3740_v7 = vor.u32 %v4347_v63, %v3739_v62  ;;  %v3744_v8 = vor.u32 %v4343_v0, %v3741_v2  ;;  %v3896_v62 = vor.u32 %v4378_v54, %v3893_v55  ;;  %v3853_v63 = vld [vmem:[%s6381_s4 + $0x570] sm:$0xf0]  ;;  %v3859_v0 = vld [vmem:[%s6381_s4 + $0x558] sm:$0xf]  ;;  %v4370_v2 = vld [vmem:[%s6381_s4 + $0x55c] sm:$0xf] }
  0x8e   : > { %1504 = vmatpush.bf16.msrb.mxu3 %v3444_v10  ;;  %v3707_v10 = vld [vmem:[%s6381_s4 + $0x440] sm:$0xf]  ;;  %v3691_v54 = vld [vmem:[%s6381_s4 + $0x410] sm:$0xf] }
  0x8f   : > { %1463 = vmatmul.bf16.vlgmr.msrb.gmra.mxu0 %v5199_v42  ;;  %1477 = vmatmul.bf16.vlgmr.msrb.gmra.mxu1 %v5199_v42  ;;  %v4333_v55 = vld [vmem:[%s6381_s4 + $0x42c] sm:$0xf0] }
  0x90   : > { %1903 = vmatpush.bf16.msra.mxu0 %v3900_v11  ;;  %1917 = vmatpush.bf16.msra.mxu1 %v3904_v12  ;;  %v4339_v11 = vld [vmem:[%s6381_s4 + $0x45c] sm:$0xf0]  ;;  %v4335_v12 = vld [vmem:[%s6381_s4 + $0x444] sm:$0xf] }
  0x91   : > { %1931 = vmatpush.bf16.msra.mxu2 %v3908_v13  ;;  %1505 = vmatmul.bf16.vlgmr.msrb.gmra.mxu3 %v5199_v42  ;;  %v3752_v13 = vor.u32 %v4344_v5, %v3749_v6  ;;  %v3708_v19 = vor.u32 %v4339_v11, %v3707_v10  ;;  %v3712_v23 = vor.u32 %v4335_v12, %v3709_v14  ;;  %v3821_v11 = vld [vmem:[%s6381_s4 + $0x530] sm:$0xf0]  ;;  %v3827_v12 = vld [vmem:[%s6381_s4 + $0x518] sm:$0xf]  ;;  %v4362_v14 = vld [vmem:[%s6381_s4 + $0x51c] sm:$0xf] }
  0x92   : > { %1945 = vmatpush.bf16.msra.mxu3 %v3912_v17  ;;  %1491 = vmatmul.bf16.vlgmr.msrb.gmra.mxu2 %v5199_v42  ;;  %v3848_v42 = vor.u32 %v4368_v34, %v3845_v35  ;;  %v4336_v17 = vld [vmem:[%s6381_s4 + $0x44c] sm:$0xf]  ;;  %v4385_v34 = vld [vmem:[%s6381_s4 + $0x5d4] sm:$0xf]  ;;  %v3676_v35 = vor.u32 %v4331_v21, %v3675_v20  ;;  %v3864_v10 = vor.u32 %v4370_v2, %v3861_v3  ;;  %v4357_v20 = vld [vmem:[%s6381_s4 + $0x4ec] sm:$0xf0] }
  0x93   : > { %v3720_v28 = vor.u32 %v4336_v17, %v3717_v18  ;;  %v4353_v21 = vld [vmem:[%s6381_s4 + $0x4d4] sm:$0xf]  ;;  %v4452_v2 = vld [vmem:[%s6381_s4 + $0x7dc] sm:$0xf0]  ;;  %v4448_v3 = vld [vmem:[%s6381_s4 + $0x7c4] sm:$0xf] }
  0x94   : > { %1904 = vmatpush.bf16.msra.mxu0 %v3868_v24  ;;  %1918 = vmatpush.bf16.msra.mxu1 %v3872_v25  ;;  %v3716_v24 = vor.u32 %v4340_v16, %v3715_v15  ;;  %v4327_v25 = vld [vmem:[%s6381_s4 + $0x404] sm:$0xf]  ;;  %v3829_v15 = vld [vmem:[%s6381_s4 + $0x538] sm:$0xf0] }
  0x95   : > { %1932 = vmatpush.bf16.msra.mxu2 %v3876_v26  ;;  %v3677_v26 = vld [vmem:[%s6381_s4 + $0x420] sm:$0xf0] }
  0x96   : > { %1946 = vmatpush.bf16.msra.mxu3 %v3880_v30  ;;  %v4328_v30 = vld [vmem:[%s6381_s4 + $0x40c] sm:$0xf]  ;;  %v3680_v39 = vor.u32 %v4327_v25, %v3677_v26  ;;  %v3795_v25 = vld [vmem:[%s6381_s4 + $0x4d8] sm:$0xf] }
  0x97   : > { %v3688_v41 = vor.u32 %v4328_v30, %v3685_v31  ;;  %v4358_v26 = vld [vmem:[%s6381_s4 + $0x4f4] sm:$0xf0] }
  0x98   : > { %1905 = vmatpush.bf16.msra.mxu0 %v3836_v36  ;;  %1919 = vmatpush.bf16.msra.mxu1 %v3840_v37  ;;  %v3917_v36 = vld [vmem:[%s6381_s4 + $0x5f0] sm:$0xf0]  ;;  %v3923_v37 = vld [vmem:[%s6381_s4 + $0x5d8] sm:$0xf]  ;;  %v3796_v31 = vor.u32 %v4358_v26, %v3795_v25  ;;  %v4137_v25 = vld [vmem:[%s6381_s4 + $0x7a8] sm:$0xf0] }
  0x99   : > { %1933 = vmatpush.bf16.msra.mxu2 %v3844_v38  ;;  %v4390_v38 = vld [vmem:[%s6381_s4 + $0x5f4] sm:$0xf0]  ;;  %v3920_v45 = vor.u32 %v4385_v34, %v3917_v36  ;;  %v4345_v34 = vld [vmem:[%s6381_s4 + $0x494] sm:$0xf] }
  0x9a   : > { %1947 = vmatpush.bf16.msra.mxu3 %v3848_v42  ;;  %v3925_v42 = vld [vmem:[%s6381_s4 + $0x5f8] sm:$0xf0]  ;;  %v3924_v46 = vor.u32 %v4390_v38, %v3923_v37  ;;  %v3757_v36 = vld [vmem:[%s6381_s4 + $0x4b0] sm:$0xf0]  ;;  %v3763_v37 = vld [vmem:[%s6381_s4 + $0x498] sm:$0xf] }
  0x9b   : > { %v3928_v50 = vor.u32 %v4386_v22, %v3925_v42  ;;  %v4350_v38 = vld [vmem:[%s6381_s4 + $0x4b4] sm:$0xf0]  ;;  %v3756_v22 = vor.u32 %v4349_v33, %v3755_v32  ;;  %v3760_v42 = vor.u32 %v4345_v34, %v3757_v36  ;;  %v4097_v33 = vld [vmem:[%s6381_s4 + $0x760] sm:$0xf0]  ;;  %v4103_v34 = vld [vmem:[%s6381_s4 + $0x748] sm:$0xf] }
  0x9c   : > { %1906 = vmatpush.bf16.msra.mxu0 %v3804_v47  ;;  %1920 = vmatpush.bf16.msra.mxu1 %v3808_v48  ;;  %v3883_v47 = vld [vmem:[%s6381_s4 + $0x590] sm:$0xf]  ;;  %v4433_v36 = vld [vmem:[%s6381_s4 + $0x74c] sm:$0xf] }
  0x9d   : > { %1934 = vmatpush.bf16.msra.mxu2 %v3812_v49  ;;  %v4381_v48 = vld [vmem:[%s6381_s4 + $0x5ac] sm:$0xf0]  ;;  %v4377_v49 = vld [vmem:[%s6381_s4 + $0x594] sm:$0xf] }
  0x9e   : > { %1948 = vmatpush.bf16.msra.mxu3 %v3816_v53  ;;  %v4382_v53 = vld [vmem:[%s6381_s4 + $0x5b4] sm:$0xf0]  ;;  %v3884_v56 = vor.u32 %v4381_v48, %v3883_v47  ;;  %v3888_v57 = vor.u32 %v4377_v49, %v3885_v51  ;;  %v3725_v48 = vld [vmem:[%s6381_s4 + $0x470] sm:$0xf0]  ;;  %v4338_v51 = vld [vmem:[%s6381_s4 + $0x45c] sm:$0xf] }
  0x9f   : > { %v3892_v58 = vor.u32 %v4382_v53, %v3891_v52  ;;  %v3731_v49 = vld [vmem:[%s6381_s4 + $0x458] sm:$0xf]  ;;  %v3733_v52 = vld [vmem:[%s6381_s4 + $0x478] sm:$0xf0] }
  0xa0   : > { %1907 = vmatpush.bf16.msra.mxu0 %v3772_v59  ;;  %1921 = vmatpush.bf16.msra.mxu1 %v3776_v60  ;;  %v3851_v59 = vld [vmem:[%s6381_s4 + $0x550] sm:$0xf] }
  0xa1   : > { %1935 = vmatpush.bf16.msra.mxu2 %v3780_v61  ;;  %v4373_v60 = vld [vmem:[%s6381_s4 + $0x56c] sm:$0xf0]  ;;  %v4369_v61 = vld [vmem:[%s6381_s4 + $0x554] sm:$0xf] }
  0xa2   : > { %1949 = vmatpush.bf16.msra.mxu3 %v3784_v1  ;;  %v4374_v1 = vld [vmem:[%s6381_s4 + $0x574] sm:$0xf0]  ;;  %v3852_v4 = vor.u32 %v4373_v60, %v3851_v59  ;;  %v3856_v5 = vor.u32 %v4369_v61, %v3853_v63  ;;  %v3693_v59 = vld [vmem:[%s6381_s4 + $0x430] sm:$0xf0]  ;;  %v3736_v61 = vor.u32 %v4338_v51, %v3733_v52  ;;  %v4330_v63 = vld [vmem:[%s6381_s4 + $0x41c] sm:$0xf] }
  0xa3   : > { %v3860_v6 = vor.u32 %v4374_v1, %v3859_v0  ;;  %v3699_v60 = vld [vmem:[%s6381_s4 + $0x418] sm:$0xf]  ;;  %v3701_v0 = vld [vmem:[%s6381_s4 + $0x438] sm:$0xf0]  ;;  %v4159_v1 = vld [vmem:[%s6381_s4 + $0x7c0] sm:$0xf] }
  0xa4   : > { %1908 = vmatpush.bf16.msra.mxu0 %v3740_v7  ;;  %1922 = vmatpush.bf16.msra.mxu1 %v3744_v8  ;;  %v3819_v7 = vld [vmem:[%s6381_s4 + $0x510] sm:$0xf] }
  0xa5   : > { %1936 = vmatpush.bf16.msra.mxu2 %v3748_v9  ;;  %v4365_v8 = vld [vmem:[%s6381_s4 + $0x52c] sm:$0xf0]  ;;  %v4361_v9 = vld [vmem:[%s6381_s4 + $0x514] sm:$0xf] }
  0xa6   : > { %1950 = vmatpush.bf16.msra.mxu3 %v3752_v13  ;;  %v4366_v13 = vld [vmem:[%s6381_s4 + $0x534] sm:$0xf0]  ;;  %v3820_v16 = vor.u32 %v4365_v8, %v3819_v7  ;;  %v3824_v17 = vor.u32 %v4361_v9, %v3821_v11  ;;  %v4453_v7 = vld [vmem:[%s6381_s4 + $0x7e4] sm:$0xf0]  ;;  %v4169_v11 = vld [vmem:[%s6381_s4 + $0x7e8] sm:$0xf0] }
  0xa7   : > { %v3828_v18 = vor.u32 %v4366_v13, %v3827_v12  ;;  %v3704_v12 = vor.u32 %v4330_v63, %v3701_v0  ;;  %v4160_v13 = vor.u32 %v4452_v2, %v4159_v1  ;;  %v3999_v2 = vld [vmem:[%s6381_s4 + $0x680] sm:$0xf] }
  0xa8   : > { %1909 = vmatpush.bf16.msra.mxu0 %v3708_v19  ;;  %1923 = vmatpush.bf16.msra.mxu1 %v3712_v23  ;;  %v3787_v19 = vld [vmem:[%s6381_s4 + $0x4d0] sm:$0xf]  ;;  %v3832_v23 = vor.u32 %v4362_v14, %v3829_v15 }
  0xa9   : > { %1937 = vmatpush.bf16.msra.mxu2 %v3716_v24  ;;  %v3789_v24 = vld [vmem:[%s6381_s4 + $0x4f0] sm:$0xf0]  ;;  %v3788_v29 = vor.u32 %v4357_v20, %v3787_v19  ;;  %v4129_v20 = vld [vmem:[%s6381_s4 + $0x7a0] sm:$0xf0] }
  0xaa   : > { %1951 = vmatpush.bf16.msra.mxu3 %v3720_v28  ;;  %v3797_v28 = vld [vmem:[%s6381_s4 + $0x4f8] sm:$0xf0]  ;;  %v3792_v30 = vor.u32 %v4353_v21, %v3789_v24  ;;  %v4135_v21 = vld [vmem:[%s6381_s4 + $0x788] sm:$0xf]  ;;  %v4441_v24 = vld [vmem:[%s6381_s4 + $0x78c] sm:$0xf] }
  0xab   : > { %v4140_v32 = vor.u32 %v4441_v24, %v4137_v25  ;;  %v4401_v25 = vld [vmem:[%s6381_s4 + $0x64c] sm:$0xf] }
  0xac   : > { %1910 = vmatpush.bf16.msra.mxu0 %v3676_v35  ;;  %1924 = vmatpush.bf16.msra.mxu1 %v3680_v39  ;;  %v3800_v35 = vor.u32 %v4354_v27, %v3797_v28  ;;  %v4346_v39 = vld [vmem:[%s6381_s4 + $0x49c] sm:$0xf] }
  0xad   : > { %1938 = vmatpush.bf16.msra.mxu2 %v3684_v40  ;;  %v3765_v40 = vld [vmem:[%s6381_s4 + $0x4b8] sm:$0xf0] }
  0xae   : > { %1952 = vmatpush.bf16.msra.mxu3 %v3688_v41  ;;  %v3764_v41 = vor.u32 %v4350_v38, %v3763_v37  ;;  %v3768_v47 = vor.u32 %v4346_v39, %v3765_v40  ;;  %v4105_v37 = vld [vmem:[%s6381_s4 + $0x768] sm:$0xf0] }
  0xaf   : > { %1911 = vmatmul.bf16.vlgmr.msra.gmra.mxu0 %v5597_v44  ;;  %1925 = vmatmul.bf16.vlgmr.msra.gmra.mxu1 %v5597_v44 }
  0xb0   : > { %1959 = vmatpush.bf16.msrb.mxu0 %v3916_v43  ;;  %1973 = vmatpush.bf16.msrb.mxu1 %v3920_v45  ;;  %v3723_v43 = vld [vmem:[%s6381_s4 + $0x450] sm:$0xf] }
  0xb1   : > { %1987 = vmatpush.bf16.msrb.mxu2 %v3924_v46  ;;  %1953 = vmatmul.bf16.vlgmr.msra.gmra.mxu3 %v5597_v44  ;;  %v4341_v45 = vld [vmem:[%s6381_s4 + $0x46c] sm:$0xf0]  ;;  %v4337_v46 = vld [vmem:[%s6381_s4 + $0x454] sm:$0xf] }
  0xb2   : > { %2001 = vmatpush.bf16.msrb.mxu3 %v3928_v50  ;;  %1939 = vmatmul.bf16.vlgmr.msra.gmra.mxu2 %v5597_v44  ;;  %v4342_v50 = vld [vmem:[%s6381_s4 + $0x474] sm:$0xf0]  ;;  %v3724_v53 = vor.u32 %v4341_v45, %v3723_v43  ;;  %v4065_v43 = vld [vmem:[%s6381_s4 + $0x720] sm:$0xf0]  ;;  %v4071_v45 = vld [vmem:[%s6381_s4 + $0x708] sm:$0xf] }
  0xb4   : > { %1960 = vmatpush.bf16.msrb.mxu0 %v3884_v56  ;;  %1974 = vmatpush.bf16.msrb.mxu1 %v3888_v57  ;;  %v3728_v56 = vor.u32 %v4337_v46, %v3725_v48  ;;  %v3732_v57 = vor.u32 %v4342_v50, %v3731_v49  ;;  %v4429_v46 = vld [vmem:[%s6381_s4 + $0x724] sm:$0xf0]  ;;  %v4073_v48 = vld [vmem:[%s6381_s4 + $0x728] sm:$0xf0]  ;;  %v5871_v50 = vpop.f32.mrf.mxu0 }
  0xb5   : > { %1988 = vmatpush.bf16.msrb.mxu2 %v3892_v58  ;;  %v4329_v58 = vld [vmem:[%s6381_s4 + $0x414] sm:$0xf]  ;;  %v4072_v52 = vor.u32 %v4429_v46, %v4071_v45  ;;  %v4455_v45 = vld [vmem:[%s6381_s4 + $0x7f4] sm:$0xf0] }
  0xb6   : > { %2002 = vmatpush.bf16.msrb.mxu3 %v3896_v62  ;;  %v4334_v62 = vld [vmem:[%s6381_s4 + $0x434] sm:$0xf0]  ;;  %v3696_v8 = vor.u32 %v4329_v58, %v3693_v59  ;;  %v4033_v58 = vld [vmem:[%s6381_s4 + $0x6e0] sm:$0xf0]  ;;  %v4039_v59 = vld [vmem:[%s6381_s4 + $0x6c8] sm:$0xf] }
  0xb7   : > { %v3700_v9 = vor.u32 %v4334_v62, %v3699_v60  ;;  %v4421_v60 = vld [vmem:[%s6381_s4 + $0x6e4] sm:$0xf0]  ;;  %v4041_v62 = vld [vmem:[%s6381_s4 + $0x6e8] sm:$0xf0] }
  0xb8   : > { %1961 = vmatpush.bf16.msrb.mxu0 %v3852_v4  ;;  %1975 = vmatpush.bf16.msrb.mxu1 %v3856_v5  ;;  %v3692_v4 = vor.u32 %v4333_v55, %v3691_v54  ;;  %v4161_v5 = vld [vmem:[%s6381_s4 + $0x7e0] sm:$0xf0]  ;;  %v4420_v54 = vld [vmem:[%s6381_s4 + $0x6dc] sm:$0xf0]  ;;  %v4040_v1 = vor.u32 %v4421_v60, %v4039_v59  ;;  %v4442_v59 = vld [vmem:[%s6381_s4 + $0x794] sm:$0xf] }
  0xb9   : > { %1989 = vmatpush.bf16.msrb.mxu2 %v3860_v6  ;;  %v4167_v6 = vld [vmem:[%s6381_s4 + $0x7c8] sm:$0xf]  ;;  %v4164_v14 = vor.u32 %v4448_v3, %v4161_v5  ;;  %v4416_v55 = vld [vmem:[%s6381_s4 + $0x6c4] sm:$0xf]  ;;  %v4412_v3 = vld [vmem:[%s6381_s4 + $0x69c] sm:$0xf0] }
  0xba   : > { %2003 = vmatpush.bf16.msrb.mxu3 %v3864_v10  ;;  %v4449_v10 = vld [vmem:[%s6381_s4 + $0x7cc] sm:$0xf]  ;;  %v4168_v15 = vor.u32 %v4453_v7, %v4167_v6  ;;  %v4036_v0 = vor.u32 %v4416_v55, %v4033_v58  ;;  %v4001_v6 = vld [vmem:[%s6381_s4 + $0x6a0] sm:$0xf0]  ;;  %v4007_v7 = vld [vmem:[%s6381_s4 + $0x688] sm:$0xf] }
  0xbb   : > { %v4172_v19 = vor.u32 %v4449_v10, %v4169_v11  ;;  %v4009_v10 = vld [vmem:[%s6381_s4 + $0x6a8] sm:$0xf0]  ;;  %v4000_v11 = vor.u32 %v4412_v3, %v3999_v2  ;;  %v4446_v58 = vld [vmem:[%s6381_s4 + $0x7ac] sm:$0xf0]  ;;  %v4443_v3 = vld [vmem:[%s6381_s4 + $0x79c] sm:$0xf] }
  0xbc   : > { %1962 = vmatpush.bf16.msrb.mxu0 %v3820_v16  ;;  %1976 = vmatpush.bf16.msrb.mxu1 %v3824_v17  ;;  %v4127_v16 = vld [vmem:[%s6381_s4 + $0x780] sm:$0xf]  ;;  %v5945_v24 = vpop.f32.mrf.mxu0 }
  0xbd   : > { %1990 = vmatpush.bf16.msrb.mxu2 %v3828_v18  ;;  %v4444_v17 = vld [vmem:[%s6381_s4 + $0x79c] sm:$0xf0]  ;;  %v4440_v18 = vld [vmem:[%s6381_s4 + $0x784] sm:$0xf] }
  0xbe   : > { %2004 = vmatpush.bf16.msrb.mxu3 %v3832_v23  ;;  %v4445_v23 = vld [vmem:[%s6381_s4 + $0x7a4] sm:$0xf0]  ;;  %v4128_v26 = vor.u32 %v4444_v17, %v4127_v16  ;;  %v4132_v27 = vor.u32 %v4440_v18, %v4129_v20  ;;  %v4400_v16 = vld [vmem:[%s6381_s4 + $0x644] sm:$0xf]  ;;  %v5932_v17 = vpop.f32.mrf.mxu2 }
  0xbf   : > { %v4136_v28 = vor.u32 %v4445_v23, %v4135_v21  ;;  %v3975_v20 = vld [vmem:[%s6381_s4 + $0x648] sm:$0xf]  ;;  %v5943_v23 = vpop.f32.mrf.mxu3 }
  0xc0   : > { %1963 = vmatpush.bf16.msrb.mxu0 %v3788_v29  ;;  %1977 = vmatpush.bf16.msrb.mxu1 %v3792_v30  ;;  %v4095_v29 = vld [vmem:[%s6381_s4 + $0x740] sm:$0xf]  ;;  %v4405_v21 = vld [vmem:[%s6381_s4 + $0x664] sm:$0xf0] }
  0xc1   : > { %1991 = vmatpush.bf16.msrb.mxu2 %v3796_v31  ;;  %v4436_v30 = vld [vmem:[%s6381_s4 + $0x75c] sm:$0xf0]  ;;  %v4432_v31 = vld [vmem:[%s6381_s4 + $0x744] sm:$0xf] }
  0xc2   : > { %2005 = vmatpush.bf16.msrb.mxu3 %v3800_v35  ;;  %v4437_v35 = vld [vmem:[%s6381_s4 + $0x764] sm:$0xf0]  ;;  %v4096_v38 = vor.u32 %v4436_v30, %v4095_v29  ;;  %v4100_v39 = vor.u32 %v4432_v31, %v4097_v33  ;;  %v3935_v29 = vld [vmem:[%s6381_s4 + $0x600] sm:$0xf]  ;;  %v4392_v33 = vld [vmem:[%s6381_s4 + $0x604] sm:$0xf] }
  0xc3   : > { %v4104_v40 = vor.u32 %v4437_v35, %v4103_v34  ;;  %v4396_v30 = vld [vmem:[%s6381_s4 + $0x61c] sm:$0xf0]  ;;  %v3937_v34 = vld [vmem:[%s6381_s4 + $0x620] sm:$0xf0]  ;;  %v3943_v35 = vld [vmem:[%s6381_s4 + $0x608] sm:$0xf] }
  0xc4   : > { %1964 = vmatpush.bf16.msrb.mxu0 %v3756_v22  ;;  %1978 = vmatpush.bf16.msrb.mxu1 %v3760_v42  ;;  %v4063_v22 = vld [vmem:[%s6381_s4 + $0x700] sm:$0xf]  ;;  %v3940_v46 = vor.u32 %v4392_v33, %v3937_v34  ;;  %v4431_v33 = vld [vmem:[%s6381_s4 + $0x734] sm:$0xf0] }
  0xc5   : > { %1992 = vmatpush.bf16.msrb.mxu2 %v3764_v41  ;;  %v4428_v42 = vld [vmem:[%s6381_s4 + $0x71c] sm:$0xf0]  ;;  %v4424_v41 = vld [vmem:[%s6381_s4 + $0x704] sm:$0xf] }
  0xc6   : > { %2006 = vmatpush.bf16.msrb.mxu3 %v3768_v47  ;;  %v4425_v47 = vld [vmem:[%s6381_s4 + $0x70c] sm:$0xf]  ;;  %v4064_v49 = vor.u32 %v4428_v42, %v4063_v22  ;;  %v4068_v51 = vor.u32 %v4424_v41, %v4065_v43  ;;  %v4454_v22 = vld [vmem:[%s6381_s4 + $0x7ec] sm:$0xf0]  ;;  %v4450_v42 = vld [vmem:[%s6381_s4 + $0x7d4] sm:$0xf]  ;;  %v3936_v41 = vor.u32 %v4396_v30, %v3935_v29  ;;  %v6018_v60 = vpop.f32.mrf.mxu2 }
  0xc7   : > { %v4183_v43 = vld [vmem:[%s6381_s4 + $0x7d8] sm:$0xf] }
  0xc8   : > { %1965 = vmatpush.bf16.msrb.mxu0 %v3724_v53  ;;  %1979 = vmatpush.bf16.msrb.mxu1 %v3728_v56  ;;  %v4031_v53 = vld [vmem:[%s6381_s4 + $0x6c0] sm:$0xf]  ;;  %v5882_v56 = vpop.f32.mrf.mxu1  ;;  %v4184_v55 = vor.u32 %v4455_v45, %v4183_v43  ;;  %v4049_v45 = vld [vmem:[%s6381_s4 + $0x6f0] sm:$0xf0] }
  0xc9   : > { %1993 = vmatpush.bf16.msrb.mxu2 %v3732_v57  ;;  %v4076_v57 = vor.u32 %v4425_v47, %v4073_v48  ;;  %v4032_v63 = vor.u32 %v4420_v54, %v4031_v53  ;;  %v4451_v48 = vld [vmem:[%s6381_s4 + $0x7dc] sm:$0xf]  ;;  %v6007_v53 = vld [vmem:[%s482_s13] sm:$0xff]  ;;  %s6270_s13 = scalar_lea.vmem %s6384_s7, %s4195_s19 }
  0xca   : > { %2007 = vmatpush.bf16.msrb.mxu3 %v3736_v61  ;;  %v4417_v61 = vld [vmem:[%s6381_s4 + $0x6cc] sm:$0xf] }
  0xcb   : > { %v4044_v5 = vor.u32 %v4417_v61, %v4041_v62  ;;  %v4145_v62 = vld [vmem:[%s6381_s4 + $0x7b0] sm:$0xf0] }
  0xcc   : > { %1966 = vmatpush.bf16.msrb.mxu0 %v3692_v4  ;;  %1980 = vmatpush.bf16.msrb.mxu1 %v3696_v8  ;;  %v4408_v4 = vld [vmem:[%s6381_s4 + $0x684] sm:$0xf]  ;;  %v4413_v8 = vld [vmem:[%s6381_s4 + $0x6a4] sm:$0xf0]  ;;  %v6031_v2 = vpop.f32.mrf.mxu0 }
  0xcd   : > { %1994 = vmatpush.bf16.msrb.mxu2 %v3700_v9  ;;  %v4409_v9 = vld [vmem:[%s6381_s4 + $0x68c] sm:$0xf] }
  0xce   : > { %2008 = vmatpush.bf16.msrb.mxu3 %v3704_v12  ;;  %v4004_v12 = vor.u32 %v4408_v4, %v4001_v6  ;;  %v4012_v18 = vor.u32 %v4409_v9, %v4009_v10  ;;  %v4153_v4 = vld [vmem:[%s6381_s4 + $0x7b8] sm:$0xf0]  ;;  %v4111_v9 = vld [vmem:[%s6381_s4 + $0x750] sm:$0xf] }
  0xcf   : > { %1967 = vmatmul.bf16.vlgmr.msrb.gmra.mxu0 %v5597_v44  ;;  %1981 = vmatmul.bf16.vlgmr.msrb.gmra.mxu1 %v5597_v44  ;;  %v4438_v10 = vld [vmem:[%s6381_s4 + $0x76c] sm:$0xf0] }
  0xd0   : > { %2423 = vmatpush.bf16.msra.mxu0 %v4160_v13  ;;  %2437 = vmatpush.bf16.msra.mxu1 %v4164_v14  ;;  %v4008_v13 = vor.u32 %v4413_v8, %v4007_v7  ;;  %v3967_v14 = vld [vmem:[%s6381_s4 + $0x640] sm:$0xf]  ;;  %v4148_v7 = vor.u32 %v4442_v59, %v4145_v62  ;;  %v4023_v62 = vld [vmem:[%s6381_s4 + $0x698] sm:$0xf] }
  0xd1   : > { %2451 = vmatpush.bf16.msra.mxu2 %v4168_v15  ;;  %2009 = vmatmul.bf16.vlgmr.msrb.gmra.mxu3 %v5597_v44  ;;  %v4404_v15 = vld [vmem:[%s6381_s4 + $0x65c] sm:$0xf0] }
  0xd2   : > { %2465 = vmatpush.bf16.msra.mxu3 %v4172_v19  ;;  %1995 = vmatmul.bf16.vlgmr.msrb.gmra.mxu2 %v5597_v44  ;;  %v4108_v44 = vor.u32 %v4433_v36, %v4105_v37  ;;  %v3969_v19 = vld [vmem:[%s6381_s4 + $0x660] sm:$0xf0]  ;;  %v4397_v37 = vld [vmem:[%s6381_s4 + $0x624] sm:$0xf0] }
  0xd3   : > { %v3972_v31 = vor.u32 %v4400_v16, %v3969_v19  ;;  %v3944_v47 = vor.u32 %v4397_v37, %v3943_v35  ;;  %v4435_v16 = vld [vmem:[%s6381_s4 + $0x75c] sm:$0xf]  ;;  %v4112_v19 = vor.u32 %v4438_v10, %v4111_v9  ;;  %v3983_v10 = vld [vmem:[%s6381_s4 + $0x650] sm:$0xf] }
  0xd4   : > { %2424 = vmatpush.bf16.msra.mxu0 %v4128_v26  ;;  %2438 = vmatpush.bf16.msra.mxu1 %v4132_v27  ;;  %v3977_v26 = vld [vmem:[%s6381_s4 + $0x668] sm:$0xf0]  ;;  %v5953_v27 = vpop.f32.mrf.mxu1  ;;  %v4427_v35 = vld [vmem:[%s6381_s4 + $0x71c] sm:$0xf] }
  0xd5   : > { %2452 = vmatpush.bf16.msra.mxu2 %v4136_v28  ;;  %v3968_v28 = vor.u32 %v4404_v15, %v3967_v14  ;;  %v3980_v36 = vor.u32 %v4401_v25, %v3977_v26  ;;  %v4119_v14 = vld [vmem:[%s6381_s4 + $0x758] sm:$0xf]  ;;  %v4079_v25 = vld [vmem:[%s6381_s4 + $0x710] sm:$0xf]  ;;  %v6078_v29 = vpop.f32.mrf.mxu2 }
  0xd6   : > { %2466 = vmatpush.bf16.msra.mxu3 %v4140_v32  ;;  %v3976_v32 = vor.u32 %v4405_v21, %v3975_v20  ;;  %v4439_v15 = vld [vmem:[%s6381_s4 + $0x774] sm:$0xf0]  ;;  %v4430_v26 = vld [vmem:[%s6381_s4 + $0x72c] sm:$0xf0] }
  0xd7   : > { %v4120_v21 = vor.u32 %v4439_v15, %v4119_v14  ;;  %v4080_v37 = vor.u32 %v4430_v26, %v4079_v25  ;;  %v3985_v14 = vld [vmem:[%s6381_s4 + $0x670] sm:$0xf0]  ;;  %v3991_v15 = vld [vmem:[%s6381_s4 + $0x658] sm:$0xf] }
  0xd8   : > { %2425 = vmatpush.bf16.msra.mxu0 %v4096_v38  ;;  %2439 = vmatpush.bf16.msra.mxu1 %v4100_v39  ;;  %v4393_v38 = vld [vmem:[%s6381_s4 + $0x60c] sm:$0xf] }
  0xd9   : > { %2453 = vmatpush.bf16.msra.mxu2 %v4104_v40  ;;  %v3945_v39 = vld [vmem:[%s6381_s4 + $0x628] sm:$0xf0]  ;;  %v4175_v40 = vld [vmem:[%s6381_s4 + $0x7d0] sm:$0xf] }
  0xda   : > { %2467 = vmatpush.bf16.msra.mxu3 %v4108_v44  ;;  %v4177_v44 = vld [vmem:[%s6381_s4 + $0x7f0] sm:$0xf0] }
  0xdb   : > { %v4180_v54 = vor.u32 %v4450_v42, %v4177_v44  ;;  %v4422_v42 = vld [vmem:[%s6381_s4 + $0x6ec] sm:$0xf0] }
  0xdc   : > { %2426 = vmatpush.bf16.msra.mxu0 %v4064_v49  ;;  %2440 = vmatpush.bf16.msra.mxu1 %v4068_v51  ;;  %v4185_v49 = vld [vmem:[%s6381_s4 + $0x7f8] sm:$0xf0]  ;;  %v3948_v51 = vor.u32 %v4393_v38, %v3945_v39  ;;  %v6097_v38 = vpop.f32.mrf.mxu0 }
  0xdd   : > { %2454 = vmatpush.bf16.msra.mxu2 %v4072_v52  ;;  %v4176_v52 = vor.u32 %v4454_v22, %v4175_v40  ;;  %v4188_v61 = vor.u32 %v4451_v48, %v4185_v49  ;;  %v4047_v22 = vld [vmem:[%s6381_s4 + $0x6d0] sm:$0xf]  ;;  %v4419_v48 = vld [vmem:[%s6381_s4 + $0x6dc] sm:$0xf] }
  0xde   : > { %2468 = vmatpush.bf16.msra.mxu3 %v4076_v57  ;;  %v4143_v57 = vld [vmem:[%s6381_s4 + $0x790] sm:$0xf]  ;;  %v4057_v49 = vld [vmem:[%s6381_s4 + $0x6f8] sm:$0xf0] }
  0xdf   : > { %v4144_v6 = vor.u32 %v4446_v58, %v4143_v57  ;;  %v4414_v57 = vld [vmem:[%s6381_s4 + $0x6ac] sm:$0xf0]  ;;  %v4410_v58 = vld [vmem:[%s6381_s4 + $0x694] sm:$0xf]  ;;  %v4060_v59 = vor.u32 %v4419_v48, %v4057_v49 }
  0xe0   : > { %2427 = vmatpush.bf16.msra.mxu0 %v4032_v63  ;;  %2441 = vmatpush.bf16.msra.mxu1 %v4036_v0  ;;  %v4151_v63 = vld [vmem:[%s6381_s4 + $0x798] sm:$0xf] }
  0xe1   : > { %2455 = vmatpush.bf16.msra.mxu2 %v4040_v1  ;;  %v4447_v0 = vld [vmem:[%s6381_s4 + $0x7b4] sm:$0xf0]  ;;  %v6029_v1 = vpop.f32.mrf.mxu3 }
  0xe2   : > { %2469 = vmatpush.bf16.msra.mxu3 %v4044_v5  ;;  %v6039_v5 = vpop.f32.mrf.mxu1  ;;  %v4152_v8 = vor.u32 %v4447_v0, %v4151_v63  ;;  %v4415_v63 = vld [vmem:[%s6381_s4 + $0x6b4] sm:$0xf0]  ;;  %v4411_v0 = vld [vmem:[%s6381_s4 + $0x69c] sm:$0xf] }
  0xe3   : > { %v4024_v9 = vor.u32 %v4415_v63, %v4023_v62 }
  0xe4   : > { %2428 = vmatpush.bf16.msra.mxu0 %v4000_v11  ;;  %2442 = vmatpush.bf16.msra.mxu1 %v4004_v12  ;;  %v4434_v11 = vld [vmem:[%s6381_s4 + $0x754] sm:$0xf]  ;;  %v4156_v12 = vor.u32 %v4443_v3, %v4153_v4  ;;  %v4025_v3 = vld [vmem:[%s6381_s4 + $0x6b8] sm:$0xf0]  ;;  %v6149_v4 = vpop.f32.mrf.mxu2 }
  0xe5   : > { %2456 = vmatpush.bf16.msra.mxu2 %v4008_v13  ;;  %v4113_v13 = vld [vmem:[%s6381_s4 + $0x770] sm:$0xf0] }
  0xe6   : > { %2470 = vmatpush.bf16.msra.mxu3 %v4012_v18  ;;  %v4121_v18 = vld [vmem:[%s6381_s4 + $0x778] sm:$0xf0]  ;;  %v4116_v20 = vor.u32 %v4434_v11, %v4113_v13  ;;  %v4406_v11 = vld [vmem:[%s6381_s4 + $0x66c] sm:$0xf0]  ;;  %v4028_v13 = vor.u32 %v4411_v0, %v4025_v3 }
  0xe7   : > { %v4124_v30 = vor.u32 %v4435_v16, %v4121_v18  ;;  %v4407_v16 = vld [vmem:[%s6381_s4 + $0x674] sm:$0xf0]  ;;  %v3984_v25 = vor.u32 %v4406_v11, %v3983_v10 }
  0xe8   : > { %2429 = vmatpush.bf16.msra.mxu0 %v3968_v28  ;;  %2443 = vmatpush.bf16.msra.mxu1 %v3972_v31  ;;  %v4426_v28 = vld [vmem:[%s6381_s4 + $0x714] sm:$0xf] }
  0xe9   : > { %2457 = vmatpush.bf16.msra.mxu2 %v3976_v32  ;;  %v4081_v31 = vld [vmem:[%s6381_s4 + $0x730] sm:$0xf0]  ;;  %v4087_v32 = vld [vmem:[%s6381_s4 + $0x718] sm:$0xf]  ;;  %v6089_v34 = vpop.f32.mrf.mxu3 }
  0xea   : > { %2471 = vmatpush.bf16.msra.mxu3 %v3980_v36  ;;  %v4089_v36 = vld [vmem:[%s6381_s4 + $0x738] sm:$0xf0]  ;;  %v4084_v39 = vor.u32 %v4426_v28, %v4081_v31  ;;  %v4088_v40 = vor.u32 %v4431_v33, %v4087_v32  ;;  %v6108_v44 = vpop.f32.mrf.mxu1  ;;  %v3992_v28 = vor.u32 %v4407_v16, %v3991_v15  ;;  %v4398_v31 = vld [vmem:[%s6381_s4 + $0x62c] sm:$0xf0]  ;;  %v4394_v32 = vld [vmem:[%s6381_s4 + $0x614] sm:$0xf] }
  0xeb   : > { %v4092_v43 = vor.u32 %v4427_v35, %v4089_v36  ;;  %v3953_v35 = vld [vmem:[%s6381_s4 + $0x630] sm:$0xf0]  ;;  %v3959_v36 = vld [vmem:[%s6381_s4 + $0x618] sm:$0xf] }
  0xec   : > { %2430 = vmatpush.bf16.msra.mxu0 %v3936_v41  ;;  %2444 = vmatpush.bf16.msra.mxu1 %v3940_v46  ;;  %v4418_v41 = vld [vmem:[%s6381_s4 + $0x6d4] sm:$0xf]  ;;  %v4055_v46 = vld [vmem:[%s6381_s4 + $0x6d8] sm:$0xf]  ;;  %v6171_v18 = vpop.f32.mrf.mxu0 }
  0xed   : > { %2458 = vmatpush.bf16.msra.mxu2 %v3944_v47  ;;  %v4423_v47 = vld [vmem:[%s6381_s4 + $0x6f4] sm:$0xf0] }
  0xee   : > { %2472 = vmatpush.bf16.msra.mxu3 %v3948_v51  ;;  %v4048_v51 = vor.u32 %v4422_v42, %v4047_v22  ;;  %v3956_v42 = vor.u32 %v4394_v32, %v3953_v35 }
  0xef   : > { %2431 = vmatmul.bf16.vlgmr.msra.gmra.mxu0 %v6007_v53  ;;  %2445 = vmatmul.bf16.vlgmr.msra.gmra.mxu1 %v6007_v53 }
  0xf0   : > { %2479 = vmatpush.bf16.msrb.mxu0 %v4176_v52  ;;  %2493 = vmatpush.bf16.msrb.mxu1 %v4180_v54  ;;  %v4052_v52 = vor.u32 %v4418_v41, %v4049_v45  ;;  %v4056_v54 = vor.u32 %v4423_v47, %v4055_v46 }
  0xf1   : > { %2507 = vmatpush.bf16.msrb.mxu2 %v4184_v55  ;;  %2473 = vmatmul.bf16.vlgmr.msra.gmra.mxu3 %v6007_v53  ;;  %v4015_v55 = vld [vmem:[%s6381_s4 + $0x690] sm:$0xf] }
  0xf2   : > { %2521 = vmatpush.bf16.msrb.mxu3 %v4188_v61  ;;  %2459 = vmatmul.bf16.vlgmr.msra.gmra.mxu2 %v6007_v53  ;;  %v4017_v61 = vld [vmem:[%s6381_s4 + $0x6b0] sm:$0xf0] }
  0xf4   : > { %2480 = vmatpush.bf16.msrb.mxu0 %v4144_v6  ;;  %2494 = vmatpush.bf16.msrb.mxu1 %v4148_v7  ;;  %v4016_v6 = vor.u32 %v4414_v57, %v4015_v55  ;;  %v6151_v7 = vpop.f32.mrf.mxu3  ;;  %v1410_v47 = vpop.f32.mrf.mxu0 }
  0xf5   : > { %2508 = vmatpush.bf16.msrb.mxu2 %v4152_v8  ;;  %v4020_v8 = vor.u32 %v4410_v58, %v4017_v61 }
  0xf6   : > { %2522 = vmatpush.bf16.msrb.mxu3 %v4156_v12  ;;  %v4402_v12 = vld [vmem:[%s6381_s4 + $0x654] sm:$0xf] }
  0xf7   : > { %v3988_v26 = vor.u32 %v4402_v12, %v3985_v14 }
  0xf8   : > { %2481 = vmatpush.bf16.msrb.mxu0 %v4112_v19  ;;  %2495 = vmatpush.bf16.msrb.mxu1 %v4116_v20  ;;  %v4403_v19 = vld [vmem:[%s6381_s4 + $0x65c] sm:$0xf] }
  0xf9   : > { %2509 = vmatpush.bf16.msrb.mxu2 %v4120_v21  ;;  %v3993_v20 = vld [vmem:[%s6381_s4 + $0x678] sm:$0xf0]  ;;  %v6179_v21 = vpop.f32.mrf.mxu1 }
  0xfa   : > { %2523 = vmatpush.bf16.msrb.mxu3 %v4124_v30  ;;  %v3951_v30 = vld [vmem:[%s6381_s4 + $0x610] sm:$0xf]  ;;  %v3996_v33 = vor.u32 %v4403_v19, %v3993_v20 }
  0xfb   : > { %v3952_v22 = vor.u32 %v4398_v31, %v3951_v30 }
  0xfc   : > { %2482 = vmatpush.bf16.msrb.mxu0 %v4080_v37  ;;  %2496 = vmatpush.bf16.msrb.mxu1 %v4084_v39  ;;  %v4399_v37 = vld [vmem:[%s6381_s4 + $0x634] sm:$0xf0]  ;;  %v4395_v39 = vld [vmem:[%s6381_s4 + $0x61c] sm:$0xf]  ;;  %v1450_v46 = vpop.f32.mrf.mxu3 }
  0xfd   : > { %2510 = vmatpush.bf16.msrb.mxu2 %v4088_v40  ;;  %v3961_v40 = vld [vmem:[%s6381_s4 + $0x638] sm:$0xf0]  ;;  %v3960_v41 = vor.u32 %v4399_v37, %v3959_v36 }
  0xfe   : > { %2524 = vmatpush.bf16.msrb.mxu3 %v4092_v43  ;;  %v1436_v43 = vpop.f32.mrf.mxu2  ;;  %v3964_v45 = vor.u32 %v4395_v39, %v3961_v40  ;;  %v1451_v40 = vadd.f32 %v1450_v46, %v5943_v23 }
 0x100   : > { %2483 = vmatpush.bf16.msrb.mxu0 %v4048_v51  ;;  %2497 = vmatpush.bf16.msrb.mxu1 %v4052_v52 }
 0x101   : > { %2511 = vmatpush.bf16.msrb.mxu2 %v4056_v54  ;;  %v1424_v48 = vpop.f32.mrf.mxu1 }
 0x102   : > { %2525 = vmatpush.bf16.msrb.mxu3 %v4060_v59 }
 0x104   : > { %2484 = vmatpush.bf16.msrb.mxu0 %v4016_v6  ;;  %2498 = vmatpush.bf16.msrb.mxu1 %v4020_v8  ;;  %v1452_v51 = vpop.f32.mrf.mxu3 }
 0x105   : > { %2512 = vmatpush.bf16.msrb.mxu2 %v4024_v9 }
 0x106   : > { %2526 = vmatpush.bf16.msrb.mxu3 %v4028_v13  ;;  %v1438_v49 = vpop.f32.mrf.mxu2 }
 0x108   : > { %2485 = vmatpush.bf16.msrb.mxu0 %v3984_v25  ;;  %2499 = vmatpush.bf16.msrb.mxu1 %v3988_v26  ;;  %v1423_v25 = vadd.f32 %v6179_v21, %v5882_v56  ;;  %v6245_v26 = vld [vmem:[%s6383_s6] sm:$0xff]  ;;  %v1437_v56 = vadd.f32 %v1436_v43, %v5932_v17 }
 0x109   : > { %2513 = vmatpush.bf16.msrb.mxu2 %v3992_v28  ;;  %v2588_v39 = vperm.slane %v6245_v26, 1 }
 0x10a   : > { %2527 = vmatpush.bf16.msrb.mxu3 %v3996_v33 }
 0x10c   : > { %2486 = vmatpush.bf16.msrb.mxu0 %v3952_v22  ;;  %2500 = vmatpush.bf16.msrb.mxu1 %v3956_v42  ;;  %v1464_v52 = vpop.f32.mrf.mxu0  ;;  %v1478_v55 = vpop.f32.mrf.mxu1  ;;  %v1411_v22 = vadd.f32 %v1410_v47, %v5945_v24  ;;  %v1425_v42 = vadd.f32 %v1424_v48, %v5953_v27  ;;  %v2589_v48 = vperm.slane %v6245_v26, 2 }
 0x10d   : > { %2514 = vmatpush.bf16.msrb.mxu2 %v3960_v41  ;;  %v1465_v54 = vadd.f32 %v1464_v52, %v6031_v2  ;;  %v6211_v57 = vadd.f32 %v1478_v55, %v6039_v5  ;;  %v1453_v52 = vadd.f32 %v1452_v51, %v6029_v1 }
 0x10e   : > { %2528 = vmatpush.bf16.msrb.mxu3 %v3964_v45  ;;  %v1439_v45 = vadd.f32 %v1438_v49, %v6018_v60 }
 0x10f   : > { %2487 = vmatmul.bf16.vlgmr.msrb.gmra.mxu0 %v6007_v53  ;;  %2501 = vmatmul.bf16.vlgmr.msrb.gmra.mxu1 %v6007_v53 }
 0x110   : > { %2515 = vmatmul.bf16.vlgmr.msrb.gmra.mxu2 %v6007_v53 }
 0x111   : > { %2529 = vmatmul.bf16.vlgmr.msrb.gmra.mxu3 %v6007_v53 }
 0x114   : > { %v1506_v61 = vpop.f32.mrf.mxu3  ;;  %v1466_v62 = vpop.f32.mrf.mxu0 }
 0x115   : > { %v1492_v58 = vpop.f32.mrf.mxu2  ;;  %v6217_v63 = vadd.f32 %v1506_v61, %v6089_v34  ;;  %v6220_v53 = vadd.f32 %v1466_v62, %v6097_v38  ;;  %v1480_v0 = vpop.f32.mrf.mxu1 }
 0x116   : > { %v6214_v59 = vadd.f32 %v1492_v58, %v6078_v29  ;;  %v6223_v3 = vadd.f32 %v1480_v0, %v6108_v44 }
 0x11c   : > { %v1508_v6 = vpop.f32.mrf.mxu3 }
 0x11d   : > { %v1494_v2 = vpop.f32.mrf.mxu2  ;;  %v6229_v29 = vadd.f32 %v1508_v6, %v6151_v7  ;;  %v1409_v7 = vadd.f32 %v6171_v18, %v5871_v50  ;;  %v2587_v50 = vperm.slane %v6245_v26, 0 }
 0x11e   : > { %v6226_v5 = vadd.f32 %v1494_v2, %v6149_v4  ;;  %v6236_v4 = vld [vmem:[%s6382_s5] sm:$0xff] }
 0x11f   : > { %v2553_v31 = vperm.slane %v6236_v4, 0  ;;  %v2554_v36 = vperm.slane %v6236_v4, 1  ;;  %v2555_v23 = vperm.slane %v6236_v4, 2  ;;  %v2556_v60 = vperm.slane %v6236_v4, 3 }
 0x12c   : > { %v1912_v8 = vpop.f32.mrf.mxu0  ;;  %v1926_v9 = vpop.f32.mrf.mxu1 }
 0x12d   : > { %v2015_v28 = vadd.f32 %v1912_v8, %v1409_v7  ;;  %v2016_v32 = vadd.f32 %v1926_v9, %v1423_v25 }
 0x134   : > { %v1954_v34 = vpop.f32.mrf.mxu3  ;;  %v1914_v11 = vpop.f32.mrf.mxu0 }
 0x135   : > { %v1940_v10 = vpop.f32.mrf.mxu2  ;;  %v1928_v12 = vpop.f32.mrf.mxu1  ;;  %v2018_v61 = vadd.f32 %v1954_v34, %v1451_v40  ;;  %v2023_v62 = vadd.f32 %v1914_v11, %v1411_v22 }
 0x136   : > { %v2017_v55 = vadd.f32 %v1940_v10, %v1437_v56  ;;  %v2024_v17 = vadd.f32 %v1928_v12, %v1425_v42  ;;  %v2590_v10 = vperm.slane %v6245_v26, 3 }
 0x13c   : > { %v1956_v13 = vpop.f32.mrf.mxu3 }
 0x13d   : > { %v1942_v38 = vpop.f32.mrf.mxu2  ;;  %v2026_v2 = vadd.f32 %v1956_v13, %v1453_v52 }
 0x13e   : > { %v2025_v0 = vadd.f32 %v1942_v38, %v1439_v45 }
 0x14c   : > { %v1968_v14 = vpop.f32.mrf.mxu0  ;;  %v1982_v15 = vpop.f32.mrf.mxu1 }
 0x14d   : > { %v6258_v24 = vadd.f32 %v1968_v14, %v1465_v54  ;;  %v6265_v11 = vadd.f32 %v1982_v15, %v6211_v57 }
 0x154   : > { %v2010_v16 = vpop.f32.mrf.mxu3  ;;  %v1970_v19 = vpop.f32.mrf.mxu0 }
 0x155   : > { %v1996_v44 = vpop.f32.mrf.mxu2  ;;  %v6231_v20 = vpop.f32.mrf.mxu1  ;;  %v6279_v57 = vadd.f32 %v1970_v19, %v6220_v53 }
 0x156   : > { %v6273_v14 = vadd.f32 %v1996_v44, %v6214_v59 }
 0x15c   : > { %v2012_v33 = vpop.f32.mrf.mxu3 }
 0x15d   : > { %v1998_v30 = vpop.f32.mrf.mxu2 }
 0x16c   : > { %v2432_v35 = vpop.f32.mrf.mxu0  ;;  %v2446_v18 = vpop.f32.mrf.mxu1 }
 0x16d   : > { %v2535_v37 = vadd.f32 %v2432_v35, %v2015_v28  ;;  %v2536_v21 = vadd.f32 %v2446_v18, %v2016_v32  ;;  %v6276_v32 = vadd.f32 %v2010_v16, %v6217_v63  ;;  %v6286_v18 = vadd.f32 %v1998_v30, %v6226_v5 }
 0x16f   : > { %v2569_v41 = vmul.f32 %v2553_v31, %v2535_v37  ;;  %v2570_v58 = vmul.f32 %v2554_v36, %v2536_v21  ;;  %v6283_v37 = vadd.f32 %v6231_v20, %v6223_v3 }
 0x171   : > { %v2603_v43 = vadd.f32 %v2587_v50, %v2569_v41  ;;  %v2604_v6 = vadd.f32 %v2588_v39, %v2570_v58 }
 0x173   : > { %vm2619_vm0 = vcmp.gt.f32.partialorder %v2603_v43, 0.0  ;;  %v2635_v27 = vmul.f32 0.2, %v2603_v43  ;;  %vm2620_vm1 = vcmp.gt.f32.partialorder %v2604_v6, 0.0  ;;  %v2636_v1 = vmul.f32 0.2, %v2604_v6 }
 0x174   : > { %v2474_v49 = vpop.f32.mrf.mxu3  ;;  %v2434_v51 = vpop.f32.mrf.mxu0 }
 0x175   : > { %v2460_v46 = vpop.f32.mrf.mxu2  ;;  %v2651_v8 = vsel %vm2619_vm0, %v2603_v43, %v2635_v27  ;;  %v2538_v9 = vadd.f32 %v2474_v49, %v2018_v61  ;;  %v2543_v34 = vadd.f32 %v2434_v51, %v2023_v62  ;;  %v2448_v54 = vpop.f32.mrf.mxu1  ;;  %v2652_v12 = vsel %vm2620_vm1, %v2604_v6, %v2636_v1 }
 0x176   : > { %v2537_v47 = vadd.f32 %v2460_v46, %v2017_v55  ;;  %v2544_v13 = vadd.f32 %v2448_v54, %v2024_v17  ;;  %v2667_v7 = vpack.c.bf16 %v2652_v12, %v2651_v8  ;;  %v2558_v62 = vperm.slane %v6236_v4, 5 }
 0x177   : > { %v2572_v25 = vmul.f32 %v2556_v60, %v2538_v9  ;;  %v2577_v28 = vmul.f32 %v2553_v31, %v2543_v34  ;;  %v6290_v31 = vadd.f32 %v2012_v33, %v6229_v29  ;;  %v2557_v33 = vperm.slane %v6236_v4, 4 }
 0x178   : > { %v2571_v38 = vmul.f32 %v2555_v23, %v2537_v47  ;;  %v2578_v35 = vmul.f32 %v2554_v36, %v2544_v13  ;;  %2675 = vst [vmem:[%s6270_s13] sm:$0xff] %v2667_v7  ;;  %v2592_v1 = vperm.slane %v6245_v26, 5 }
 0x179   : > { %v2606_v59 = vadd.f32 %v2590_v10, %v2572_v25  ;;  %v2611_v44 = vadd.f32 %v2587_v50, %v2577_v28 }
 0x17a   : > { %v2605_v15 = vadd.f32 %v2589_v48, %v2571_v38  ;;  %v2612_v16 = vadd.f32 %v2588_v39, %v2578_v35 }
 0x17b   : > { %vm2622_vm3 = vcmp.gt.f32.partialorder %v2606_v59, 0.0  ;;  %v2638_v53 = vmul.f32 0.2, %v2606_v59  ;;  %vm2627_vm4 = vcmp.gt.f32.partialorder %v2611_v44, 0.0  ;;  %v2643_v19 = vmul.f32 0.2, %v2611_v44 }
 0x17c   : > { %vm2621_vm2 = vcmp.gt.f32.partialorder %v2605_v15, 0.0  ;;  %v2637_v63 = vmul.f32 0.2, %v2605_v15  ;;  %vm2628_vm5 = vcmp.gt.f32.partialorder %v2612_v16, 0.0  ;;  %v2644_v3 = vmul.f32 0.2, %v2612_v16  ;;  %v2476_v20 = vpop.f32.mrf.mxu3 }
 0x17d   : > { %v2462_v36 = vpop.f32.mrf.mxu2  ;;  %v6292_v30 = vsel %vm2622_vm3, %v2606_v59, %v2638_v53  ;;  %v2659_v50 = vsel %vm2627_vm4, %v2611_v44, %v2643_v19  ;;  %v2546_v29 = vadd.f32 %v2476_v20, %v2026_v2  ;;  %v2591_v2 = vperm.slane %v6245_v26, 4 }
 0x17e   : > { %v2653_v56 = vsel %vm2621_vm2, %v2605_v15, %v2637_v63  ;;  %v2545_v5 = vadd.f32 %v2462_v36, %v2025_v0  ;;  %v2683_v39 = vmax.f32 %v2651_v8, %v2659_v50  ;;  %v2739_v40 = vadd.f32 %v2659_v50, %v2651_v8 }
 0x17f   : > { %v2668_v21 = vpack.c.bf16 %v6292_v30, %v2653_v56  ;;  %v2660_v22 = vsel %vm2628_vm5, %v2612_v16, %v2644_v3  ;;  %v2580_v61 = vmul.f32 %v2556_v60, %v2546_v29  ;;  %v2560_v15 = vperm.slane %v6236_v4, 7 }
 0x180   : > { %v2671_v42 = vpack.c.bf16 %v2660_v22, %v2659_v50  ;;  %v2690_v41 = vmax.f32 %v2652_v12, %v2660_v22  ;;  %v2746_v45 = vadd.f32 %v2660_v22, %v2652_v12  ;;  %v2579_v52 = vmul.f32 %v2555_v23, %v2545_v5 }
 0x181   : > { %2676 = vst [vmem:[%s6270_s13 + $0x8] sm:$0xff] %v2668_v21  ;;  %v2684_v55 = vrot.slane %v2683_v39, 4  ;;  %v2740_v58 = vrot.slane %v2739_v40, 4  ;;  %v2614_v46 = vadd.f32 %v2590_v10, %v2580_v61  ;;  %vm2820_vm3 = vcmask 1044484  }
 0x182   : > { %2679 = vst [vmem:[%s6270_s13 + $0x20] sm:$0xff] %v2671_v42  ;;  %v2691_v17 = vrot.slane %v2690_v41, 4  ;;  %v2747_v43 = vrot.slane %v2746_v45, 4  ;;  %v2613_v0 = vadd.f32 %v2589_v48, %v2579_v52  ;;  %v2559_v48 = vperm.slane %v6236_v4, 6 }
 0x183   : > { %v2685_v6 = vmax.f32 %v2683_v39, %v2684_v55  ;;  %v2741_v27 = vadd.f32 %v2740_v58, %v2739_v40  ;;  %vm2630_vm8 = vcmp.gt.f32.partialorder %v2614_v46, 0.0  ;;  %v2646_v60 = vmul.f32 0.2, %v2614_v46 }
 0x184   : > { %v2692_v47 = vmax.f32 %v2690_v41, %v2691_v17  ;;  %v2748_v49 = vadd.f32 %v2747_v43, %v2746_v45  ;;  %vm2629_vm6 = vcmp.gt.f32.partialorder %v2613_v0, 0.0  ;;  %v2645_v23 = vmul.f32 0.2, %v2613_v0 }
 0x185   : > { %v2686_v51 = vrot.slane %v2685_v6, 2  ;;  %v2742_v8 = vrot.slane %v2741_v27, 2  ;;  %v2662_v28 = vsel %vm2630_vm8, %v2614_v46, %v2646_v60  ;;  %vm2822_vm4 = vcmask 1046534  }
 0x186   : > { %v2693_v9 = vrot.slane %v2692_v47, 2  ;;  %v2749_v34 = vrot.slane %v2748_v49, 2  ;;  %v2661_v54 = vsel %vm2629_vm6, %v2613_v0, %v2645_v23  ;;  %v2704_v36 = vmax.f32 %v6292_v30, %v2662_v28 }
 0x187   : > { %v2687_v12 = vmax.f32 %v2685_v6, %v2686_v51  ;;  %v2743_v38 = vadd.f32 %v2742_v8, %v2741_v27  ;;  %v2697_v13 = vmax.f32 %v2653_v56, %v2661_v54  ;;  %v2753_v10 = vadd.f32 %v2661_v54, %v2653_v56 }
 0x188   : > { %v2694_v7 = vmax.f32 %v2692_v47, %v2693_v9  ;;  %v2750_v25 = vadd.f32 %v2749_v34, %v2748_v49  ;;  %v2672_v19 = vpack.c.bf16 %v2662_v28, %v2661_v54  ;;  %v2705_v40 = vrot.slane %v2704_v36, 4 }
 0x189   : > { %v2688_v35 = vrot.slane %v2687_v12, 1  ;;  %v2744_v59 = vrot.slane %v2743_v38, 1  ;;  %v2698_v44 = vrot.slane %v2697_v13, 4  ;;  %v2754_v63 = vrot.slane %v2753_v10, 4 }
 0x18a   : > { %v2695_v16 = vrot.slane %v2694_v7, 1  ;;  %v2751_v53 = vrot.slane %v2750_v25, 1  ;;  %2680 = vst [vmem:[%s6270_s13 + $0x28] sm:$0xff] %v2672_v19  ;;  %v2760_v22 = vadd.f32 %v2662_v28, %v6292_v30  ;;  %v2706_v61 = vmax.f32 %v2704_v36, %v2705_v40 }
 0x18b   : > { %v2689_v5 = vmax.f32 %v2687_v12, %v2688_v35  ;;  %v2745_v20 = vadd.f32 %v2744_v59, %v2743_v38  ;;  %v2699_v50 = vmax.f32 %v2697_v13, %v2698_v44  ;;  %v2755_v56 = vadd.f32 %v2754_v63, %v2753_v10 }
 0x18c   : > { %v2488_v3 = vpop.f32.mrf.mxu0  ;;  %v2502_v29 = vpop.f32.mrf.mxu1  ;;  %v2696_v21 = vmax.f32 %v2694_v7, %v2695_v16  ;;  %v2752_v39 = vadd.f32 %v2751_v53, %v2750_v25  ;;  %v2761_v17 = vrot.slane %v2760_v22, 4  ;;  %v2593_v54 = vperm.slane %v6245_v26, 6 }
 0x18d   : > { %v2700_v42 = vrot.slane %v2699_v50, 2  ;;  %v2756_v41 = vrot.slane %v2755_v56, 2  ;;  %v2539_v45 = vadd.f32 %v2488_v3, %v6258_v24  ;;  %v2540_v52 = vadd.f32 %v2502_v29, %v6265_v11 }
 0x18e   : > { %v2807_v55 = vrot.slane %v2696_v21, 7  ;;  %v2838_v58 = vrot.slane %v2752_v39, 7  ;;  %v2707_v24 = vrot.slane %v2706_v61, 2  ;;  %v2762_v47 = vadd.f32 %v2761_v17, %v2760_v22 }
 0x18f   : > { %v2701_v43 = vmax.f32 %v2699_v50, %v2700_v42  ;;  %v2757_v0 = vadd.f32 %v2756_v41, %v2755_v56  ;;  %v2573_v6 = vmul.f32 %v2557_v33, %v2539_v45  ;;  %v2574_v27 = vmul.f32 %v2558_v62, %v2540_v52 }
 0x190   : > { %v2815_v30 = vsel %vm2814_vm7, %v2689_v5, %v2807_v55  ;;  %v2845_v46 = vsel %vm2814_vm7, %v2745_v20, %v2838_v58  ;;  %v2708_v60 = vmax.f32 %v2706_v61, %v2707_v24  ;;  %v2763_v9 = vrot.slane %v2762_v47, 2 }
 0x191   : > { %v2702_v11 = vrot.slane %v2701_v43, 1  ;;  %v2758_v49 = vrot.slane %v2757_v0, 1  ;;  %v2607_v23 = vadd.f32 %v2591_v2, %v2573_v6  ;;  %v2608_v51 = vadd.f32 %v2592_v1, %v2574_v27 }
 0x192   : > { %v2709_v7 = vrot.slane %v2708_v60, 1  ;;  %v2764_v25 = vadd.f32 %v2763_v9, %v2762_v47  ;;  %vm2824_vm5 = vcmask 1045508   ;;  %vm2826_vm6 = vcmask 1043456  }
 0x193   : > { %v2516_v8 = vpop.f32.mrf.mxu2  ;;  %v2703_v38 = vmax.f32 %v2701_v43, %v2702_v11  ;;  %v2759_v13 = vadd.f32 %v2758_v49, %v2757_v0  ;;  %vm2623_vm11 = vcmp.gt.f32.partialorder %v2607_v23, 0.0  ;;  %v2639_v10 = vmul.f32 0.2, %v2607_v23 }
 0x194   : > { %v2541_v34 = vadd.f32 %v2516_v8, %v6273_v14  ;;  %v2530_v12 = vpop.f32.mrf.mxu3  ;;  %vm2624_vm12 = vcmp.gt.f32.partialorder %v2608_v51, 0.0  ;;  %v2640_v28 = vmul.f32 0.2, %v2608_v51  ;;  %v2490_v35 = vpop.f32.mrf.mxu0  ;;  %v2594_v14 = vperm.slane %v6245_v26, 7 }
 0x195   : > { %v2504_v59 = vpop.f32.mrf.mxu1  ;;  %v2808_v44 = vrot.slane %v2703_v38, 6  ;;  %v2655_v63 = vsel %vm2623_vm11, %v2607_v23, %v2639_v10  ;;  %v2710_v53 = vmax.f32 %v2708_v60, %v2709_v7  ;;  %v2765_v19 = vrot.slane %v2764_v25, 1 }
 0x196   : > { %v2575_v16 = vmul.f32 %v2559_v48, %v2541_v34  ;;  %v2656_v36 = vsel %vm2624_vm12, %v2608_v51, %v2640_v28  ;;  %v2542_v3 = vadd.f32 %v2530_v12, %v6276_v32  ;;  %v2547_v50 = vadd.f32 %v2490_v35, %v6279_v57 }
 0x197   : > { %v2669_v5 = vpack.c.bf16 %v2656_v36, %v2655_v63  ;;  %v2548_v56 = vadd.f32 %v2504_v59, %v6283_v37  ;;  %v2839_v29 = vrot.slane %v2759_v13, 6  ;;  %v2766_v21 = vadd.f32 %v2765_v19, %v2764_v25 }
 0x198   : > { %v2609_v20 = vadd.f32 %v2593_v54, %v2575_v16  ;;  %v2809_v39 = vrot.slane %v2710_v53, 5  ;;  %v2576_v40 = vmul.f32 %v2560_v15, %v2542_v3  ;;  %v2581_v42 = vmul.f32 %v2557_v33, %v2547_v50 }
 0x199   : > { %2677 = vst [vmem:[%s6270_s13 + $0x10] sm:$0xff] %v2669_v5  ;;  %v2582_v32 = vmul.f32 %v2558_v62, %v2548_v56  ;;  %v2840_v45 = vrot.slane %v2766_v21, 5 }
 0x19a   : > { %vm2625_vm13 = vcmp.gt.f32.partialorder %v2609_v20, 0.0  ;;  %v2641_v22 = vmul.f32 0.2, %v2609_v20  ;;  %v2817_v57 = vsel %vm2816_vm9, %v2808_v44, %v2809_v39  ;;  %v2610_v37 = vadd.f32 %v2594_v14, %v2576_v40 }
 0x19b   : > { %v2518_v41 = vpop.f32.mrf.mxu2  ;;  %v6338_v55 = vsel %vm2818_vm10, %v2815_v30, %v2817_v57  ;;  %v2615_v61 = vadd.f32 %v2591_v2, %v2581_v42  ;;  %v2616_v33 = vadd.f32 %v2592_v1, %v2582_v32  ;;  %v2846_v17 = vsel %vm2816_vm9, %v2839_v29, %v2840_v45 }
 0x19c   : > { %v2549_v52 = vadd.f32 %v2518_v41, %v6286_v18  ;;  %v2657_v58 = vsel %vm2625_vm13, %v2609_v20, %v2641_v22  ;;  %v2532_v62 = vpop.f32.mrf.mxu3  ;;  %vm2626_vm14 = vcmp.gt.f32.partialorder %v2610_v37, 0.0  ;;  %v2642_v43 = vmul.f32 0.2, %v2610_v37 }
 0x19d   : > { %v6348_v18 = vsel %vm2818_vm10, %v2845_v46, %v2846_v17  ;;  %vm2631_vm15 = vcmp.gt.f32.partialorder %v2615_v61, 0.0  ;;  %v2647_v6 = vmul.f32 0.2, %v2615_v61  ;;  %vm2632_vm0 = vcmp.gt.f32.partialorder %v2616_v33, 0.0 }
 0x19e   : > { %v2583_v0 = vmul.f32 %v2559_v48, %v2549_v52  ;;  %v2658_v27 = vsel %vm2626_vm14, %v2610_v37, %v2642_v43  ;;  %v2648_v2 = vmul.f32 0.2, %v2616_v33  ;;  %v2550_v1 = vadd.f32 %v2532_v62, %v6290_v31 }
 0x19f   : > { %v2670_v24 = vpack.c.bf16 %v2658_v27, %v2657_v58  ;;  %v2663_v47 = vsel %vm2631_vm15, %v2615_v61, %v2647_v6 }
 0x1a0   : > { %v2617_v30 = vadd.f32 %v2593_v54, %v2583_v0  ;;  %v2711_v11 = vmax.f32 %v2655_v63, %v2663_v47  ;;  %v2767_v49 = vadd.f32 %v2663_v47, %v2655_v63  ;;  %v2664_v23 = vsel %vm2632_vm0, %v2616_v33, %v2648_v2 }
 0x1a1   : > { %2678 = vst [vmem:[%s6270_s13 + $0x18] sm:$0xff] %v2670_v24  ;;  %v2673_v48 = vpack.c.bf16 %v2664_v23, %v2663_v47  ;;  %v2718_v51 = vmax.f32 %v2656_v36, %v2664_v23  ;;  %v2774_v46 = vadd.f32 %v2664_v23, %v2656_v36  ;;  %v2584_v34 = vmul.f32 %v2560_v15, %v2550_v1 }
 0x1a2   : > { %vm2633_vm1 = vcmp.gt.f32.partialorder %v2617_v30, 0.0  ;;  %v2649_v8 = vmul.f32 0.2, %v2617_v30  ;;  %v2712_v60 = vrot.slane %v2711_v11, 4  ;;  %v2768_v9 = vrot.slane %v2767_v49, 4 }
 0x1a3   : > { %2681 = vst [vmem:[%s6270_s13 + $0x30] sm:$0xff] %v2673_v48  ;;  %v2719_v54 = vrot.slane %v2718_v51, 4  ;;  %v2775_v12 = vrot.slane %v2774_v46, 4  ;;  %v2618_v35 = vadd.f32 %v2594_v14, %v2584_v34 }
 0x1a4   : > { %v2665_v31 = vsel %vm2633_vm1, %v2617_v30, %v2649_v8  ;;  %v2713_v38 = vmax.f32 %v2711_v11, %v2712_v60  ;;  %v2769_v13 = vadd.f32 %v2768_v9, %v2767_v49 }
 0x1a5   : > { %v2725_v10 = vmax.f32 %v2657_v58, %v2665_v31  ;;  %v2781_v7 = vadd.f32 %v2665_v31, %v2657_v58  ;;  %v2720_v25 = vmax.f32 %v2718_v51, %v2719_v54  ;;  %v2776_v28 = vadd.f32 %v2775_v12, %v2774_v46 }
 0x1a6   : > { %v2714_v59 = vrot.slane %v2713_v38, 2  ;;  %v2770_v44 = vrot.slane %v2769_v13, 2  ;;  %vm2634_vm2 = vcmp.gt.f32.partialorder %v2618_v35, 0.0  ;;  %v2650_v15 = vmul.f32 0.2, %v2618_v35 }
 0x1a7   : > { %v2726_v63 = vrot.slane %v2725_v10, 4  ;;  %v2782_v16 = vrot.slane %v2781_v7, 4  ;;  %v2721_v53 = vrot.slane %v2720_v25, 2  ;;  %v2777_v4 = vrot.slane %v2776_v28, 2 }
 0x1a8   : > { %v2715_v19 = vmax.f32 %v2713_v38, %v2714_v59  ;;  %v2771_v36 = vadd.f32 %v2770_v44, %v2769_v13  ;;  %v2666_v56 = vsel %vm2634_vm2, %v2618_v35, %v2650_v15 }
 0x1a9   : > { %v2727_v3 = vmax.f32 %v2725_v10, %v2726_v63  ;;  %v2783_v5 = vadd.f32 %v2782_v16, %v2781_v7  ;;  %v2722_v20 = vmax.f32 %v2720_v25, %v2721_v53  ;;  %v2778_v50 = vadd.f32 %v2777_v4, %v2776_v28 }
 0x1aa   : > { %v2716_v29 = vrot.slane %v2715_v19, 1  ;;  %v2772_v21 = vrot.slane %v2771_v36, 1  ;;  %v2674_v22 = vpack.c.bf16 %v2666_v56, %v2665_v31  ;;  %v2732_v42 = vmax.f32 %v2658_v27, %v2666_v56 }
 0x1ab   : > { %v2728_v26 = vrot.slane %v2727_v3, 2  ;;  %v2784_v14 = vrot.slane %v2783_v5, 2  ;;  %v2723_v39 = vrot.slane %v2722_v20, 1  ;;  %v2779_v40 = vrot.slane %v2778_v50, 1 }
 0x1ac   : > { %v2717_v32 = vmax.f32 %v2715_v19, %v2716_v29  ;;  %v2773_v41 = vadd.f32 %v2772_v21, %v2771_v36  ;;  %2682 = vst [vmem:[%s6270_s13 + $0x38] sm:$0xff] %v2674_v22  ;;  %v2733_v58 = vrot.slane %v2732_v42, 4  ;;  %v2788_v61 = vadd.f32 %v2666_v56, %v2658_v27 }
 0x1ad   : > { %v2729_v57 = vmax.f32 %v2727_v3, %v2728_v26  ;;  %v2785_v45 = vadd.f32 %v2784_v14, %v2783_v5  ;;  %v2724_v37 = vmax.f32 %v2722_v20, %v2723_v39  ;;  %v2780_v52 = vadd.f32 %v2779_v40, %v2778_v50 }
 0x1ae   : > { %v2810_v33 = vrot.slane %v2717_v32, 4  ;;  %v2841_v62 = vrot.slane %v2773_v41, 4  ;;  %v2734_v6 = vmax.f32 %v2732_v42, %v2733_v58  ;;  %v2789_v2 = vrot.slane %v2788_v61, 4 }
 0x1af   : > { %v2730_v17 = vrot.slane %v2729_v57, 1  ;;  %v2811_v43 = vrot.slane %v2724_v37, 3  ;;  %v2842_v0 = vrot.slane %v2780_v52, 3  ;;  %v2786_v30 = vrot.slane %v2785_v45, 1 }
 0x1b0   : > { %v2735_v47 = vrot.slane %v2734_v6, 2  ;;  %v2790_v11 = vadd.f32 %v2789_v2, %v2788_v61 }
 0x1b1   : > { %v2821_v1 = vsel %vm2820_vm3, %v2810_v33, %v2811_v43  ;;  %v2848_v24 = vsel %vm2820_vm3, %v2841_v62, %v2842_v0  ;;  %v2731_v49 = vmax.f32 %v2729_v57, %v2730_v17  ;;  %v2787_v51 = vadd.f32 %v2786_v30, %v2785_v45 }
 0x1b2   : > { %v2736_v23 = vmax.f32 %v2734_v6, %v2735_v47  ;;  %v2791_v48 = vrot.slane %v2790_v11, 2 }
 0x1b3   : > { %v2812_v8 = vrot.slane %v2731_v49, 2  ;;  %v2843_v34 = vrot.slane %v2787_v51, 2 }
 0x1b4   : > { %v2737_v46 = vrot.slane %v2736_v23, 1  ;;  %v2792_v27 = vadd.f32 %v2791_v48, %v2790_v11 }
 0x1b6   : > { %v2738_v60 = vmax.f32 %v2736_v23, %v2737_v46  ;;  %v2793_v9 = vrot.slane %v2792_v27, 1 }
 0x1b8   : > { %v2794_v54 = vadd.f32 %v2793_v9, %v2792_v27  ;;  %v2813_v12 = vrot.slane %v2738_v60, 1 }
 0x1ba   : > { %v2823_v31 = vsel %vm2822_vm4, %v2812_v8, %v2813_v12  ;;  %v2844_v38 = vrot.slane %v2794_v54, 1 }
 0x1bb   : > { %v2825_v13 = vsel %vm2824_vm5, %v2821_v1, %v2823_v31 }
 0x1bc   : > { %v2827_v10 = vsel %vm2826_vm6, %v6338_v55, %v2825_v13  ;;  %v2849_v7 = vsel %vm2822_vm4, %v2843_v34, %v2844_v38 }
 0x1bd   : > { %2829 = vst [vmem:[%s498_s24] sm:$0xff] %v2827_v10  ;;  %v2850_v25 = vsel %vm2824_vm5, %v2848_v24, %v2849_v7 }
 0x1be   : > { %v2851_v28 = vsel %vm2826_vm6, %v6348_v18, %v2850_v25 }
 0x1bf   : > { %v2921_v35 = vmul.f32 0.0625, %v2851_v28 }
 0x1c1   : > { %2922 = vst [vmem:[%s502_s27] sm:$0xff] %v2921_v35 }
 0x1c2 PF: > { %s20_s11 = sadd.s32 1, %s4502_s11   ;;  %s6387_s30 = smov %s4498_s10 }
 0x1c3   : > { %p17_p5 = scmp.ge.s32.totalorder %s20_s11, 4   ;;  %s6388_s10 = smov %s6390_s12 }
 0x1c5   :  { %19 = sbr.rel (!%p17_p5) target bundleno = 2 (0x2), region = 123 }

// kernel: forward.11
= control target key start
LH: loop header
LB: loop body
LE: loop exit
PB: predicated region body
PF: predicated region fallthrough
CT: control target
= control target key end

     0   :  { %s5133_s13 = smov 0   ;;  %s5135_s14 = smov 0   ;;  %s7305_s0 = inlined_call_operand.vmem [shape: bf16[2,16,1024], index: 0, kind: input, shape index: {}]   ;;  %s7306_s1 = inlined_call_operand.vmem [shape: f32[2,1,512], index: 1, kind: input, shape index: {}]   ;;  %s7307_s2 = inlined_call_operand.vmem [shape: bf16[1024,512], index: 2, kind: input, shape index: {}]   ;;  %s7308_s3 = inlined_call_operand.vmem [shape: f32[1,512], index: 3, kind: input, shape index: {}]   ;;  %s7309_s4 = inlined_call_operand.vmem [shape: f32[1,512], index: 4, kind: input, shape index: {}]   ;;  %s7310_s5 = inlined_call_operand.vmem [shape: bf16[512,256], index: 5, kind: input, shape index: {}]   ;;  %s7311_s6 = inlined_call_operand.vmem [shape: f32[1,256], index: 6, kind: input, shape index: {}]   ;;  %s7312_s7 = inlined_call_operand.vmem [shape: f32[1,256], index: 7, kind: input, shape index: {}]   ;;  %s7313_s8 = inlined_call_operand.vmem [shape: bf16[256,128], index: 8, kind: input, shape index: {}]   ;;  %s7314_s9 = inlined_call_operand.vmem [shape: f32[1,128], index: 9, kind: input, shape index: {}]   ;;  %s7315_s10 = inlined_call_operand.vmem [shape: f32[2,16,128], index: 10, kind: output, shape index: {}]  }
   0x1   :  { %s5137_s15 = smov 0  }
   0x2 LB: > { %s32_s16 = sadd.s32 1, %s5072_s14  ;;  %p3299_p0 = scmp.ge.s32.totalorder %s5076_s15, 1  ;;  %s5076_s15 = sphi %s5137_s15, %s20_s15   ;;  %s5072_s14 = sphi %s5135_s14, %s7317_s14   ;;  %s5068_s13 = sphi %s5133_s13, %s7316_s13  }
   0x3   : > { %p34_p1 = scmp.ge.s32.totalorder %s32_s16, 2  ;;  %p343_p2 = scmp.lt.s32.totalorder %s5076_s15, 3 }
   0x5   : > { %s7319_s16 = smov (%p34_p1, %s32_s16), 0  ;;  %p344_p3 = pnand %p3299_p0, %p343_p2 }
   0x6   : > { %p395_p4 = scmp.lt.s32.totalorder (!%p344_p3), %s5068_s13, 1 }
   0x7   : > { %347 = sbr.rel (%p344_p3) target bundleno = 729 (0x2d9), region = 60 }
   0xc   : > { %v3451_v0 = vld [vmem:[%s7307_s2 + $0xe0] sm:$0xf]  ;;  %v4723_v1 = vld [vmem:[%s7307_s2 + $0xec] sm:$0xf0]  ;;  %s7321_s13 = smov (!%p395_p4, %s5068_s13), 1 }
   0xd   : > { %v3579_v2 = vld [vmem:[%s7307_s2 + $0x1e0] sm:$0xf]  ;;  %v3452_v3 = vor.u32 %v4723_v1, %v3451_v0  ;;  %v4755_v4 = vld [vmem:[%s7307_s2 + $0x1ec] sm:$0xf0]  ;;  %s4683_s21 = sshll.u32 %s7321_s13, 6  ;;  %s3302_s26 = sshll.u32 %s7321_s13, 2 }
   0xe   : > { %v3707_v5 = vld [vmem:[%s7307_s2 + $0x2e0] sm:$0xf]  ;;  %v4787_v6 = vld [vmem:[%s7307_s2 + $0x2ec] sm:$0xf0]  ;;  %v3580_v7 = vor.u32 %v4755_v4, %v3579_v2  ;;  %s5443_s12 = scalar_lea.vmem %s7305_s0, %s4683_s21  ;;  %s408_s30 = scalar_lea.vmem %s7306_s1, %s3302_s26 }
   0xf   : > { %v3708_v8 = vor.u32 %v4787_v6, %v3707_v5  ;;  %v3835_v9 = vld [vmem:[%s7307_s2 + $0x3e0] sm:$0xf]  ;;  %v4819_v10 = vld [vmem:[%s7307_s2 + $0x3ec] sm:$0xf0]  ;;  %2013 = vmatpush.bf16.msra.mxu0 %v3452_v3  ;;  %s4684_s24 = sshll.u32 %s7321_s13, 4 }
  0x10   : > { %v3435_v11 = vld [vmem:[%s7307_s2 + $0xc0] sm:$0xf]  ;;  %v3836_v12 = vor.u32 %v4819_v10, %v3835_v9  ;;  %v4719_v13 = vld [vmem:[%s7307_s2 + $0xcc] sm:$0xf0]  ;;  %2027 = vmatpush.bf16.msra.mxu1 %v3580_v7  ;;  %s417_s28 = scalar_lea.vmem %s7315_s10, %s4684_s24 }
  0x11   : > { %v3563_v14 = vld [vmem:[%s7307_s2 + $0x1c0] sm:$0xf]  ;;  %v4751_v15 = vld [vmem:[%s7307_s2 + $0x1cc] sm:$0xf0]  ;;  %2041 = vmatpush.bf16.msra.mxu2 %v3708_v8  ;;  %v3436_v16 = vor.u32 %v4719_v13, %v3435_v11 }
  0x12   : > { %v3564_v17 = vor.u32 %v4751_v15, %v3563_v14  ;;  %v3691_v18 = vld [vmem:[%s7307_s2 + $0x2c0] sm:$0xf]  ;;  %v4783_v19 = vld [vmem:[%s7307_s2 + $0x2cc] sm:$0xf0]  ;;  %2055 = vmatpush.bf16.msra.mxu3 %v3836_v12 }
  0x13   : > { %v3819_v20 = vld [vmem:[%s7307_s2 + $0x3c0] sm:$0xf]  ;;  %v3692_v21 = vor.u32 %v4783_v19, %v3691_v18  ;;  %v4815_v22 = vld [vmem:[%s7307_s2 + $0x3cc] sm:$0xf0]  ;;  %2014 = vmatpush.bf16.msra.mxu0 %v3436_v16 }
  0x14   : > { %v3419_v23 = vld [vmem:[%s7307_s2 + $0xa0] sm:$0xf]  ;;  %v4715_v24 = vld [vmem:[%s7307_s2 + $0xac] sm:$0xf0]  ;;  %v3820_v25 = vor.u32 %v4815_v22, %v3819_v20  ;;  %2028 = vmatpush.bf16.msra.mxu1 %v3564_v17 }
  0x15   : > { %v3547_v26 = vld [vmem:[%s7307_s2 + $0x1a0] sm:$0xf]  ;;  %v4747_v27 = vld [vmem:[%s7307_s2 + $0x1ac] sm:$0xf0]  ;;  %v3420_v29 = vor.u32 %v4715_v24, %v3419_v23  ;;  %2042 = vmatpush.bf16.msra.mxu2 %v3692_v21 }
  0x16   : > { %v3675_v28 = vld [vmem:[%s7307_s2 + $0x2a0] sm:$0xf]  ;;  %v4779_v30 = vld [vmem:[%s7307_s2 + $0x2ac] sm:$0xf0]  ;;  %v3548_v33 = vor.u32 %v4747_v27, %v3547_v26  ;;  %2056 = vmatpush.bf16.msra.mxu3 %v3820_v25 }
  0x17   : > { %v3803_v31 = vld [vmem:[%s7307_s2 + $0x3a0] sm:$0xf]  ;;  %v4811_v32 = vld [vmem:[%s7307_s2 + $0x3ac] sm:$0xf0]  ;;  %v3676_v34 = vor.u32 %v4779_v30, %v3675_v28  ;;  %2015 = vmatpush.bf16.msra.mxu0 %v3420_v29 }
  0x18   : > { %v3403_v35 = vld [vmem:[%s7307_s2 + $0x80] sm:$0xf]  ;;  %v4711_v36 = vld [vmem:[%s7307_s2 + $0x8c] sm:$0xf0]  ;;  %v3804_v38 = vor.u32 %v4811_v32, %v3803_v31  ;;  %2029 = vmatpush.bf16.msra.mxu1 %v3548_v33 }
  0x19   : > { %v3531_v37 = vld [vmem:[%s7307_s2 + $0x180] sm:$0xf]  ;;  %v4743_v39 = vld [vmem:[%s7307_s2 + $0x18c] sm:$0xf0]  ;;  %v3404_v44 = vor.u32 %v4711_v36, %v3403_v35  ;;  %2043 = vmatpush.bf16.msra.mxu2 %v3676_v34 }
  0x1a   : > { %v3659_v40 = vld [vmem:[%s7307_s2 + $0x280] sm:$0xf]  ;;  %v4775_v41 = vld [vmem:[%s7307_s2 + $0x28c] sm:$0xf0]  ;;  %v3532_v45 = vor.u32 %v4743_v39, %v3531_v37  ;;  %2057 = vmatpush.bf16.msra.mxu3 %v3804_v38 }
  0x1b   : > { %v3787_v42 = vld [vmem:[%s7307_s2 + $0x380] sm:$0xf]  ;;  %v4807_v43 = vld [vmem:[%s7307_s2 + $0x38c] sm:$0xf0]  ;;  %v3660_v46 = vor.u32 %v4775_v41, %v3659_v40  ;;  %2016 = vmatpush.bf16.msra.mxu0 %v3404_v44 }
  0x1c   : > { %v3387_v47 = vld [vmem:[%s7307_s2 + $0x60] sm:$0xf]  ;;  %v4707_v48 = vld [vmem:[%s7307_s2 + $0x6c] sm:$0xf0]  ;;  %v3788_v50 = vor.u32 %v4807_v43, %v3787_v42  ;;  %2030 = vmatpush.bf16.msra.mxu1 %v3532_v45 }
  0x1d   : > { %v3515_v49 = vld [vmem:[%s7307_s2 + $0x160] sm:$0xf]  ;;  %v4739_v51 = vld [vmem:[%s7307_s2 + $0x16c] sm:$0xf0]  ;;  %v3388_v56 = vor.u32 %v4707_v48, %v3387_v47  ;;  %2044 = vmatpush.bf16.msra.mxu2 %v3660_v46 }
  0x1e   : > { %v3643_v52 = vld [vmem:[%s7307_s2 + $0x260] sm:$0xf]  ;;  %v4771_v53 = vld [vmem:[%s7307_s2 + $0x26c] sm:$0xf0]  ;;  %v3516_v57 = vor.u32 %v4739_v51, %v3515_v49  ;;  %2058 = vmatpush.bf16.msra.mxu3 %v3788_v50 }
  0x1f   : > { %v3771_v54 = vld [vmem:[%s7307_s2 + $0x360] sm:$0xf]  ;;  %v4803_v55 = vld [vmem:[%s7307_s2 + $0x36c] sm:$0xf0]  ;;  %v3644_v58 = vor.u32 %v4771_v53, %v3643_v52  ;;  %2017 = vmatpush.bf16.msra.mxu0 %v3388_v56 }
  0x20   : > { %v3371_v59 = vld [vmem:[%s7307_s2 + $0x40] sm:$0xf]  ;;  %v4703_v60 = vld [vmem:[%s7307_s2 + $0x4c] sm:$0xf0]  ;;  %v3772_v62 = vor.u32 %v4803_v55, %v3771_v54  ;;  %2031 = vmatpush.bf16.msra.mxu1 %v3516_v57 }
  0x21   : > { %v3499_v61 = vld [vmem:[%s7307_s2 + $0x140] sm:$0xf]  ;;  %v4735_v63 = vld [vmem:[%s7307_s2 + $0x14c] sm:$0xf0]  ;;  %v3372_v4 = vor.u32 %v4703_v60, %v3371_v59  ;;  %2045 = vmatpush.bf16.msra.mxu2 %v3644_v58 }
  0x22   : > { %v3627_v0 = vld [vmem:[%s7307_s2 + $0x240] sm:$0xf]  ;;  %v4767_v1 = vld [vmem:[%s7307_s2 + $0x24c] sm:$0xf0]  ;;  %v3500_v5 = vor.u32 %v4735_v63, %v3499_v61  ;;  %2059 = vmatpush.bf16.msra.mxu3 %v3772_v62 }
  0x23   : > { %v3755_v2 = vld [vmem:[%s7307_s2 + $0x340] sm:$0xf]  ;;  %v4799_v3 = vld [vmem:[%s7307_s2 + $0x34c] sm:$0xf0]  ;;  %v3628_v6 = vor.u32 %v4767_v1, %v3627_v0  ;;  %2018 = vmatpush.bf16.msra.mxu0 %v3372_v4 }
  0x24   : > { %v3355_v7 = vld [vmem:[%s7307_s2 + $0x20] sm:$0xf]  ;;  %v4699_v8 = vld [vmem:[%s7307_s2 + $0x2c] sm:$0xf0]  ;;  %v3756_v10 = vor.u32 %v4799_v3, %v3755_v2  ;;  %2032 = vmatpush.bf16.msra.mxu1 %v3500_v5 }
  0x25   : > { %v3483_v9 = vld [vmem:[%s7307_s2 + $0x120] sm:$0xf]  ;;  %v4731_v11 = vld [vmem:[%s7307_s2 + $0x12c] sm:$0xf0]  ;;  %v3356_v16 = vor.u32 %v4699_v8, %v3355_v7  ;;  %2046 = vmatpush.bf16.msra.mxu2 %v3628_v6 }
  0x26   : > { %v3611_v12 = vld [vmem:[%s7307_s2 + $0x220] sm:$0xf]  ;;  %v4763_v13 = vld [vmem:[%s7307_s2 + $0x22c] sm:$0xf0]  ;;  %v3484_v19 = vor.u32 %v4731_v11, %v3483_v9  ;;  %2060 = vmatpush.bf16.msra.mxu3 %v3756_v10 }
  0x27   : > { %v3739_v14 = vld [vmem:[%s7307_s2 + $0x320] sm:$0xf]  ;;  %v4795_v15 = vld [vmem:[%s7307_s2 + $0x32c] sm:$0xf0]  ;;  %v3612_v20 = vor.u32 %v4763_v13, %v3611_v12  ;;  %2019 = vmatpush.bf16.msra.mxu0 %v3356_v16  ;;  %v3315_v12 = vld [vmem:[%s5443_s12 + $0x8] sm:$0xf] }
  0x28   : > { %v3339_v17 = vld [vmem:[%s7307_s2] sm:$0xf]  ;;  %v4695_v18 = vld [vmem:[%s7307_s2 + $0xc] sm:$0xf0]  ;;  %v3740_v24 = vor.u32 %v4795_v15, %v3739_v14  ;;  %2033 = vmatpush.bf16.msra.mxu1 %v3484_v19  ;;  %v4690_v15 = vld [vmem:[%s5443_s12 + $0x24] sm:$0xf0] }
  0x29   : > { %v3467_v21 = vld [vmem:[%s7307_s2 + $0x100] sm:$0xf]  ;;  %v4727_v22 = vld [vmem:[%s7307_s2 + $0x10c] sm:$0xf0]  ;;  %v3340_v31 = vor.u32 %v4695_v18, %v3339_v17  ;;  %2047 = vmatpush.bf16.msra.mxu2 %v3612_v20  ;;  %v4685_v16 = vld [vmem:[%s5443_s12 + $0x4] sm:$0xf]  ;;  %v5459_v19 = vor.u32 %v4690_v15, %v3315_v12 }
  0x2a   : > { %v3595_v23 = vld [vmem:[%s7307_s2 + $0x200] sm:$0xf]  ;;  %v4759_v25 = vld [vmem:[%s7307_s2 + $0x20c] sm:$0xf0]  ;;  %v3468_v35 = vor.u32 %v4727_v22, %v3467_v21  ;;  %2061 = vmatpush.bf16.msra.mxu3 %v3740_v24  ;;  %v3309_v17 = vld [vmem:[%s5443_s12 + $0x20] sm:$0xf0] }
  0x2b   : > { %v3723_v26 = vld [vmem:[%s7307_s2 + $0x300] sm:$0xf]  ;;  %v4791_v27 = vld [vmem:[%s7307_s2 + $0x30c] sm:$0xf0]  ;;  %v3596_v36 = vor.u32 %v4759_v25, %v3595_v23  ;;  %2020 = vmatpush.bf16.msra.mxu0 %v3340_v31  ;;  %v5461_v20 = vor.u32 %v4685_v16, %v3309_v17  ;;  %v4686_v21 = vld [vmem:[%s5443_s12 + $0xc] sm:$0xf] }
  0x2c   : > { %v3963_v28 = vld [vmem:[%s7307_s2 + $0x4e0] sm:$0xf]  ;;  %v4851_v29 = vld [vmem:[%s7307_s2 + $0x4ec] sm:$0xf0]  ;;  %v3724_v39 = vor.u32 %v4791_v27, %v3723_v26  ;;  %2034 = vmatpush.bf16.msra.mxu1 %v3468_v35  ;;  %v3317_v22 = vld [vmem:[%s5443_s12 + $0x28] sm:$0xf0] }
  0x2d   : > { %v4091_v30 = vld [vmem:[%s7307_s2 + $0x5e0] sm:$0xf]  ;;  %v4883_v32 = vld [vmem:[%s7307_s2 + $0x5ec] sm:$0xf0]  ;;  %v3964_v40 = vor.u32 %v4851_v29, %v3963_v28  ;;  %2048 = vmatpush.bf16.msra.mxu2 %v3596_v36  ;;  %v5465_v24 = vor.u32 %v4686_v21, %v3317_v22  ;;  %v4785_v12 = vld [vmem:[%s7307_s2 + $0x2e4] sm:$0xf] }
  0x2e   : > { %v4219_v33 = vld [vmem:[%s7307_s2 + $0x6e0] sm:$0xf]  ;;  %v4915_v34 = vld [vmem:[%s7307_s2 + $0x6ec] sm:$0xf0]  ;;  %v4092_v41 = vor.u32 %v4883_v32, %v4091_v30  ;;  %2062 = vmatpush.bf16.msra.mxu3 %v3724_v39  ;;  %v4817_v15 = vld [vmem:[%s7307_s2 + $0x3e4] sm:$0xf] }
  0x2f   : > { %v4347_v37 = vld [vmem:[%s7307_s2 + $0x7e0] sm:$0xf]  ;;  %v4947_v38 = vld [vmem:[%s7307_s2 + $0x7ec] sm:$0xf0]  ;;  %v4220_v42 = vor.u32 %v4915_v34, %v4219_v33  ;;  %2069 = vmatpush.bf16.msrb.mxu0 %v3964_v40  ;;  %2035 = vmatmul.bf16.vlgmr.msra.gmra.mxu1 %v5461_v20  ;;  %v3837_v17 = vld [vmem:[%s7307_s2 + $0x3f0] sm:$0xf0] }
  0x30   : > { %v3947_v43 = vld [vmem:[%s7307_s2 + $0x4c0] sm:$0xf]  ;;  %v4847_v44 = vld [vmem:[%s7307_s2 + $0x4cc] sm:$0xf0]  ;;  %v4348_v46 = vor.u32 %v4947_v38, %v4347_v37  ;;  %2083 = vmatpush.bf16.msrb.mxu1 %v4092_v41  ;;  %2049 = vmatmul.bf16.vlgmr.msra.gmra.mxu2 %v5459_v19 }
  0x31   : > { %v4075_v45 = vld [vmem:[%s7307_s2 + $0x5c0] sm:$0xf]  ;;  %v4879_v47 = vld [vmem:[%s7307_s2 + $0x5cc] sm:$0xf0]  ;;  %v3948_v52 = vor.u32 %v4847_v44, %v3947_v43  ;;  %2097 = vmatpush.bf16.msrb.mxu2 %v4220_v42  ;;  %2063 = vmatmul.bf16.vlgmr.msra.gmra.mxu3 %v5465_v24 }
  0x32   : > { %v4203_v48 = vld [vmem:[%s7307_s2 + $0x6c0] sm:$0xf]  ;;  %v4911_v49 = vld [vmem:[%s7307_s2 + $0x6cc] sm:$0xf0]  ;;  %v4076_v56 = vor.u32 %v4879_v47, %v4075_v45  ;;  %2111 = vmatpush.bf16.msrb.mxu3 %v4348_v46 }
  0x33   : > { %v4331_v50 = vld [vmem:[%s7307_s2 + $0x7c0] sm:$0xf]  ;;  %v4943_v51 = vld [vmem:[%s7307_s2 + $0x7cc] sm:$0xf0]  ;;  %v4204_v57 = vor.u32 %v4911_v49, %v4203_v48  ;;  %2070 = vmatpush.bf16.msrb.mxu0 %v3948_v52 }
  0x34   : > { %v3931_v53 = vld [vmem:[%s7307_s2 + $0x4a0] sm:$0xf]  ;;  %v4843_v54 = vld [vmem:[%s7307_s2 + $0x4ac] sm:$0xf0]  ;;  %v4332_v60 = vor.u32 %v4943_v51, %v4331_v50  ;;  %2084 = vmatpush.bf16.msrb.mxu1 %v4076_v56 }
  0x35   : > { %v4059_v55 = vld [vmem:[%s7307_s2 + $0x5a0] sm:$0xf]  ;;  %v4875_v58 = vld [vmem:[%s7307_s2 + $0x5ac] sm:$0xf0]  ;;  %v3932_v2 = vor.u32 %v4843_v54, %v3931_v53  ;;  %2098 = vmatpush.bf16.msrb.mxu2 %v4204_v57 }
  0x36   : > { %v4187_v59 = vld [vmem:[%s7307_s2 + $0x6a0] sm:$0xf]  ;;  %v4907_v61 = vld [vmem:[%s7307_s2 + $0x6ac] sm:$0xf0]  ;;  %v4060_v7 = vor.u32 %v4875_v58, %v4059_v55  ;;  %2112 = vmatpush.bf16.msrb.mxu3 %v4332_v60 }
  0x37   : > { %v4315_v62 = vld [vmem:[%s7307_s2 + $0x7a0] sm:$0xf]  ;;  %v4939_v63 = vld [vmem:[%s7307_s2 + $0x7ac] sm:$0xf0]  ;;  %v4188_v8 = vor.u32 %v4907_v61, %v4187_v59  ;;  %2071 = vmatpush.bf16.msrb.mxu0 %v3932_v2 }
  0x38   : > { %v3915_v0 = vld [vmem:[%s7307_s2 + $0x480] sm:$0xf]  ;;  %v4839_v1 = vld [vmem:[%s7307_s2 + $0x48c] sm:$0xf0]  ;;  %v4316_v13 = vor.u32 %v4939_v63, %v4315_v62  ;;  %2085 = vmatpush.bf16.msrb.mxu1 %v4060_v7  ;;  %v4721_v7 = vld [vmem:[%s7307_s2 + $0xe4] sm:$0xf] }
  0x39   : > { %v4043_v3 = vld [vmem:[%s7307_s2 + $0x580] sm:$0xf]  ;;  %v4871_v4 = vld [vmem:[%s7307_s2 + $0x58c] sm:$0xf0]  ;;  %v3916_v23 = vor.u32 %v4839_v1, %v3915_v0  ;;  %2099 = vmatpush.bf16.msrb.mxu2 %v4188_v8 }
  0x3a   : > { %v4171_v5 = vld [vmem:[%s7307_s2 + $0x680] sm:$0xf]  ;;  %v4903_v6 = vld [vmem:[%s7307_s2 + $0x68c] sm:$0xf0]  ;;  %v4044_v25 = vor.u32 %v4871_v4, %v4043_v3  ;;  %2113 = vmatpush.bf16.msrb.mxu3 %v4316_v13  ;;  %v3709_v13 = vld [vmem:[%s7307_s2 + $0x2f0] sm:$0xf0] }
  0x3b   : > { %v4299_v9 = vld [vmem:[%s7307_s2 + $0x780] sm:$0xf]  ;;  %v4935_v18 = vld [vmem:[%s7307_s2 + $0x78c] sm:$0xf0]  ;;  %v4172_v26 = vor.u32 %v4903_v6, %v4171_v5  ;;  %2072 = vmatpush.bf16.msrb.mxu0 %v3916_v23 }
  0x3c   : > { %v3307_v10 = vld [vmem:[%s5443_s12] sm:$0xf]  ;;  %v4835_v28 = vld [vmem:[%s7307_s2 + $0x46c] sm:$0xf0]  ;;  %v4300_v30 = vor.u32 %v4935_v18, %v4299_v9  ;;  %2086 = vmatpush.bf16.msrb.mxu1 %v4044_v25  ;;  %v3453_v9 = vld [vmem:[%s7307_s2 + $0xf0] sm:$0xf0] }
  0x3d   : > { %v4689_v11 = vld [vmem:[%s5443_s12 + $0x1c] sm:$0xf0]  ;;  %v4867_v31 = vld [vmem:[%s7307_s2 + $0x56c] sm:$0xf0]  ;;  %2100 = vmatpush.bf16.msrb.mxu2 %v4172_v26  ;;  %v3331_v25 = vld [vmem:[%s5443_s12 + $0x18] sm:$0xf] }
  0x3e   : > { %v5451_v14 = vor.u32 %v4689_v11, %v3307_v10  ;;  %v3899_v27 = vld [vmem:[%s7307_s2 + $0x460] sm:$0xf]  ;;  %v4899_v33 = vld [vmem:[%s7307_s2 + $0x66c] sm:$0xf0]  ;;  %2114 = vmatpush.bf16.msrb.mxu3 %v4300_v30  ;;  %v4753_v10 = vld [vmem:[%s7307_s2 + $0x1e4] sm:$0xf] }
  0x3f   : > { %v4027_v29 = vld [vmem:[%s7307_s2 + $0x560] sm:$0xf]  ;;  %v4931_v35 = vld [vmem:[%s7307_s2 + $0x76c] sm:$0xf0]  ;;  %v3900_v36 = vor.u32 %v4835_v28, %v3899_v27  ;;  %v3581_v11 = vld [vmem:[%s7307_s2 + $0x1f0] sm:$0xf0] }
  0x40   : > { %2021 = vmatmul.bf16.vlgmr.msra.gmra.mxu0 %v5451_v14  ;;  %v4155_v32 = vld [vmem:[%s7307_s2 + $0x660] sm:$0xf]  ;;  %v4028_v37 = vor.u32 %v4867_v31, %v4027_v29  ;;  %v4831_v40 = vld [vmem:[%s7307_s2 + $0x44c] sm:$0xf0]  ;;  %v4692_v26 = vld [vmem:[%s5443_s12 + $0x34] sm:$0xf0]  ;;  %v3456_v29 = vor.u32 %v4721_v7, %v3453_v9 }
  0x41   : > { %v4283_v34 = vld [vmem:[%s7307_s2 + $0x760] sm:$0xf]  ;;  %v4156_v38 = vor.u32 %v4899_v33, %v4155_v32  ;;  %v4863_v43 = vld [vmem:[%s7307_s2 + $0x54c] sm:$0xf0]  ;;  %2073 = vmatpush.bf16.msrb.mxu0 %v3900_v36  ;;  %v4687_v27 = vld [vmem:[%s5443_s12 + $0x14] sm:$0xf]  ;;  %v3584_v33 = vor.u32 %v4753_v10, %v3581_v11 }
  0x42   : > { %v3883_v39 = vld [vmem:[%s7307_s2 + $0x440] sm:$0xf]  ;;  %v4284_v42 = vor.u32 %v4931_v35, %v4283_v34  ;;  %v4895_v45 = vld [vmem:[%s7307_s2 + $0x64c] sm:$0xf0]  ;;  %2087 = vmatpush.bf16.msrb.mxu1 %v4028_v37  ;;  %v3325_v30 = vld [vmem:[%s5443_s12 + $0x30] sm:$0xf0]  ;;  %v3712_v34 = vor.u32 %v4785_v12, %v3709_v13 }
  0x43   : > { %v4011_v41 = vld [vmem:[%s7307_s2 + $0x540] sm:$0xf]  ;;  %v4927_v47 = vld [vmem:[%s7307_s2 + $0x74c] sm:$0xf0]  ;;  %v3884_v48 = vor.u32 %v4831_v40, %v3883_v39  ;;  %2101 = vmatpush.bf16.msrb.mxu2 %v4156_v38  ;;  %v4688_v31 = vld [vmem:[%s5443_s12 + $0x1c] sm:$0xf]  ;;  %v3840_v38 = vor.u32 %v4817_v15, %v3837_v17 }
  0x44   : > { %v4139_v44 = vld [vmem:[%s7307_s2 + $0x640] sm:$0xf]  ;;  %v4012_v50 = vor.u32 %v4863_v43, %v4011_v41  ;;  %v4827_v52 = vld [vmem:[%s7307_s2 + $0x42c] sm:$0xf0]  ;;  %2115 = vmatpush.bf16.msrb.mxu3 %v4284_v42  ;;  %v3333_v32 = vld [vmem:[%s5443_s12 + $0x38] sm:$0xf0]  ;;  %v5619_v43 = vor.u32 %v4692_v26, %v3331_v25 }
  0x45   : > { %v4267_v46 = vld [vmem:[%s7307_s2 + $0x740] sm:$0xf]  ;;  %v4140_v51 = vor.u32 %v4895_v45, %v4139_v44  ;;  %v4859_v54 = vld [vmem:[%s7307_s2 + $0x52c] sm:$0xf0]  ;;  %2074 = vmatpush.bf16.msrb.mxu0 %v3884_v48  ;;  %v4717_v35 = vld [vmem:[%s7307_s2 + $0xc4] sm:$0xf]  ;;  %v5621_v44 = vor.u32 %v4687_v27, %v3325_v30 }
  0x46   : > { %v3867_v49 = vld [vmem:[%s7307_s2 + $0x420] sm:$0xf]  ;;  %v4268_v55 = vor.u32 %v4927_v47, %v4267_v46  ;;  %v4891_v57 = vld [vmem:[%s7307_s2 + $0x62c] sm:$0xf0]  ;;  %2088 = vmatpush.bf16.msrb.mxu1 %v4012_v50  ;;  %v3437_v36 = vld [vmem:[%s7307_s2 + $0xd0] sm:$0xf0]  ;;  %v5629_v47 = vor.u32 %v4688_v31, %v3333_v32 }
  0x47   : > { %v3995_v53 = vld [vmem:[%s7307_s2 + $0x520] sm:$0xf]  ;;  %v4923_v59 = vld [vmem:[%s7307_s2 + $0x72c] sm:$0xf0]  ;;  %v3868_v62 = vor.u32 %v4827_v52, %v3867_v49  ;;  %2102 = vmatpush.bf16.msrb.mxu2 %v4140_v51  ;;  %v4749_v37 = vld [vmem:[%s7307_s2 + $0x1c4] sm:$0xf]  ;;  %v3440_v48 = vor.u32 %v4717_v35, %v3437_v36 }
  0x48   : > { %v4123_v56 = vld [vmem:[%s7307_s2 + $0x620] sm:$0xf]  ;;  %v4823_v61 = vld [vmem:[%s7307_s2 + $0x40c] sm:$0xf0]  ;;  %v3996_v3 = vor.u32 %v4859_v54, %v3995_v53  ;;  %2116 = vmatpush.bf16.msrb.mxu3 %v4268_v55  ;;  %v3565_v40 = vld [vmem:[%s7307_s2 + $0x1d0] sm:$0xf0] }
  0x49   : > { %v4251_v58 = vld [vmem:[%s7307_s2 + $0x720] sm:$0xf]  ;;  %v4855_v0 = vld [vmem:[%s7307_s2 + $0x50c] sm:$0xf0]  ;;  %v4124_v4 = vor.u32 %v4891_v57, %v4123_v56  ;;  %2075 = vmatpush.bf16.msrb.mxu0 %v3868_v62  ;;  %v4781_v41 = vld [vmem:[%s7307_s2 + $0x2c4] sm:$0xf]  ;;  %v3568_v49 = vor.u32 %v4749_v37, %v3565_v40 }
  0x4a   : > { %v3851_v60 = vld [vmem:[%s7307_s2 + $0x400] sm:$0xf]  ;;  %v4887_v2 = vld [vmem:[%s7307_s2 + $0x60c] sm:$0xf0]  ;;  %v4252_v8 = vor.u32 %v4923_v59, %v4251_v58  ;;  %2089 = vmatpush.bf16.msrb.mxu1 %v3996_v3  ;;  %v3693_v42 = vld [vmem:[%s7307_s2 + $0x2d0] sm:$0xf0] }
  0x4b   : > { %v3979_v63 = vld [vmem:[%s7307_s2 + $0x500] sm:$0xf]  ;;  %v4919_v6 = vld [vmem:[%s7307_s2 + $0x70c] sm:$0xf0]  ;;  %v3852_v16 = vor.u32 %v4823_v61, %v3851_v60  ;;  %2103 = vmatpush.bf16.msrb.mxu2 %v4124_v4  ;;  %v4813_v45 = vld [vmem:[%s7307_s2 + $0x3c4] sm:$0xf]  ;;  %v3696_v50 = vor.u32 %v4781_v41, %v3693_v42 }
  0x4c   : > { %v4107_v1 = vld [vmem:[%s7307_s2 + $0x600] sm:$0xf]  ;;  %v3323_v18 = vld [vmem:[%s5443_s12 + $0x10] sm:$0xf]  ;;  %v3980_v22 = vor.u32 %v4855_v0, %v3979_v63  ;;  %2117 = vmatpush.bf16.msrb.mxu3 %v4252_v8  ;;  %v3821_v46 = vld [vmem:[%s7307_s2 + $0x3d0] sm:$0xf0] }
  0x4d   : > { %v4235_v5 = vld [vmem:[%s7307_s2 + $0x700] sm:$0xf]  ;;  %v4691_v21 = vld [vmem:[%s5443_s12 + $0x2c] sm:$0xf0]  ;;  %v4108_v23 = vor.u32 %v4887_v2, %v4107_v1  ;;  %2076 = vmatpush.bf16.msrb.mxu0 %v3852_v16  ;;  %v4713_v51 = vld [vmem:[%s7307_s2 + $0xa4] sm:$0xf]  ;;  %v3824_v54 = vor.u32 %v4813_v45, %v3821_v46 }
  0x4e   : > { %v4236_v28 = vor.u32 %v4919_v6, %v4235_v5  ;;  %v5608_v39 = vor.u32 %v4691_v21, %v3323_v18  ;;  %2090 = vmatpush.bf16.msrb.mxu1 %v3980_v22  ;;  %v3421_v52 = vld [vmem:[%s7307_s2 + $0xb0] sm:$0xf0]  ;;  %v4745_v53 = vld [vmem:[%s7307_s2 + $0x1a4] sm:$0xf] }
  0x4f   : > { %2104 = vmatpush.bf16.msrb.mxu2 %v4108_v23  ;;  %v3549_v55 = vld [vmem:[%s7307_s2 + $0x1b0] sm:$0xf0]  ;;  %v4777_v56 = vld [vmem:[%s7307_s2 + $0x2a4] sm:$0xf]  ;;  %v3424_v60 = vor.u32 %v4713_v51, %v3421_v52 }
  0x50   : > { %2118 = vmatpush.bf16.msrb.mxu3 %v4236_v28  ;;  %2077 = vmatmul.bf16.vlgmr.msrb.gmra.mxu0 %v5608_v39  ;;  %v3677_v57 = vld [vmem:[%s7307_s2 + $0x2b0] sm:$0xf0]  ;;  %v4809_v58 = vld [vmem:[%s7307_s2 + $0x3a4] sm:$0xf]  ;;  %v3552_v61 = vor.u32 %v4745_v53, %v3549_v55 }
  0x51   : > { %2125 = vmatpush.bf16.msra.mxu0 %v3456_v29  ;;  %2091 = vmatmul.bf16.vlgmr.msrb.gmra.mxu1 %v5621_v44  ;;  %v3805_v59 = vld [vmem:[%s7307_s2 + $0x3b0] sm:$0xf0]  ;;  %v3680_v62 = vor.u32 %v4777_v56, %v3677_v57  ;;  %v4709_v63 = vld [vmem:[%s7307_s2 + $0x84] sm:$0xf] }
  0x52   : > { %2139 = vmatpush.bf16.msra.mxu1 %v3584_v33  ;;  %2105 = vmatmul.bf16.vlgmr.msrb.gmra.mxu2 %v5619_v43  ;;  %v3405_v0 = vld [vmem:[%s7307_s2 + $0x90] sm:$0xf0]  ;;  %v4741_v1 = vld [vmem:[%s7307_s2 + $0x184] sm:$0xf]  ;;  %v3808_v2 = vor.u32 %v4809_v58, %v3805_v59 }
  0x53   : > { %2153 = vmatpush.bf16.msra.mxu2 %v3712_v34  ;;  %2119 = vmatmul.bf16.vlgmr.msrb.gmra.mxu3 %v5629_v47  ;;  %v3533_v3 = vld [vmem:[%s7307_s2 + $0x190] sm:$0xf0]  ;;  %v4773_v4 = vld [vmem:[%s7307_s2 + $0x284] sm:$0xf]  ;;  %v3408_v8 = vor.u32 %v4709_v63, %v3405_v0 }
  0x54   : > { %2167 = vmatpush.bf16.msra.mxu3 %v3840_v38  ;;  %v3661_v5 = vld [vmem:[%s7307_s2 + $0x290] sm:$0xf0]  ;;  %v4805_v6 = vld [vmem:[%s7307_s2 + $0x384] sm:$0xf]  ;;  %v3536_v9 = vor.u32 %v4741_v1, %v3533_v3 }
  0x55   : > { %2126 = vmatpush.bf16.msra.mxu0 %v3440_v48  ;;  %v3789_v7 = vld [vmem:[%s7307_s2 + $0x390] sm:$0xf0]  ;;  %v3664_v10 = vor.u32 %v4773_v4, %v3661_v5  ;;  %v4705_v11 = vld [vmem:[%s7307_s2 + $0x64] sm:$0xf] }
  0x56   : > { %2140 = vmatpush.bf16.msra.mxu1 %v3568_v49  ;;  %v3389_v12 = vld [vmem:[%s7307_s2 + $0x70] sm:$0xf0]  ;;  %v4737_v13 = vld [vmem:[%s7307_s2 + $0x164] sm:$0xf]  ;;  %v3792_v15 = vor.u32 %v4805_v6, %v3789_v7 }
  0x57   : > { %2154 = vmatpush.bf16.msra.mxu2 %v3696_v50  ;;  %v3517_v16 = vld [vmem:[%s7307_s2 + $0x170] sm:$0xf0]  ;;  %v4769_v17 = vld [vmem:[%s7307_s2 + $0x264] sm:$0xf]  ;;  %v3392_v23 = vor.u32 %v4705_v11, %v3389_v12 }
  0x58   : > { %2168 = vmatpush.bf16.msra.mxu3 %v3824_v54  ;;  %v3645_v18 = vld [vmem:[%s7307_s2 + $0x270] sm:$0xf0]  ;;  %v4801_v21 = vld [vmem:[%s7307_s2 + $0x364] sm:$0xf]  ;;  %v3520_v25 = vor.u32 %v4737_v13, %v3517_v16 }
  0x59   : > { %2127 = vmatpush.bf16.msra.mxu0 %v3424_v60  ;;  %v3773_v22 = vld [vmem:[%s7307_s2 + $0x370] sm:$0xf0]  ;;  %v3648_v26 = vor.u32 %v4769_v17, %v3645_v18  ;;  %v4701_v27 = vld [vmem:[%s7307_s2 + $0x44] sm:$0xf] }
  0x5a   : > { %2141 = vmatpush.bf16.msra.mxu1 %v3552_v61  ;;  %v3373_v28 = vld [vmem:[%s7307_s2 + $0x50] sm:$0xf0]  ;;  %v4733_v29 = vld [vmem:[%s7307_s2 + $0x144] sm:$0xf]  ;;  %v3776_v30 = vor.u32 %v4801_v21, %v3773_v22 }
  0x5b   : > { %2155 = vmatpush.bf16.msra.mxu2 %v3680_v62  ;;  %v3501_v31 = vld [vmem:[%s7307_s2 + $0x150] sm:$0xf0]  ;;  %v4765_v32 = vld [vmem:[%s7307_s2 + $0x244] sm:$0xf]  ;;  %v3376_v36 = vor.u32 %v4701_v27, %v3373_v28 }
  0x5c   : > { %2169 = vmatpush.bf16.msra.mxu3 %v3808_v2  ;;  %v3629_v33 = vld [vmem:[%s7307_s2 + $0x250] sm:$0xf0]  ;;  %v4797_v34 = vld [vmem:[%s7307_s2 + $0x344] sm:$0xf]  ;;  %v3504_v37 = vor.u32 %v4733_v29, %v3501_v31 }
  0x5d   : > { %2128 = vmatpush.bf16.msra.mxu0 %v3408_v8  ;;  %v3757_v35 = vld [vmem:[%s7307_s2 + $0x350] sm:$0xf0]  ;;  %v3632_v38 = vor.u32 %v4765_v32, %v3629_v33  ;;  %v4697_v40 = vld [vmem:[%s7307_s2 + $0x24] sm:$0xf] }
  0x5e   : > { %2142 = vmatpush.bf16.msra.mxu1 %v3536_v9  ;;  %v3357_v41 = vld [vmem:[%s7307_s2 + $0x30] sm:$0xf0]  ;;  %v4729_v42 = vld [vmem:[%s7307_s2 + $0x124] sm:$0xf]  ;;  %v3760_v45 = vor.u32 %v4797_v34, %v3757_v35 }
  0x5f   : > { %2156 = vmatpush.bf16.msra.mxu2 %v3664_v10  ;;  %v3485_v46 = vld [vmem:[%s7307_s2 + $0x130] sm:$0xf0]  ;;  %v4761_v48 = vld [vmem:[%s7307_s2 + $0x224] sm:$0xf]  ;;  %v3360_v52 = vor.u32 %v4697_v40, %v3357_v41 }
  0x60   : > { %2170 = vmatpush.bf16.msra.mxu3 %v3792_v15  ;;  %v3613_v49 = vld [vmem:[%s7307_s2 + $0x230] sm:$0xf0]  ;;  %v4793_v50 = vld [vmem:[%s7307_s2 + $0x324] sm:$0xf]  ;;  %v3488_v55 = vor.u32 %v4729_v42, %v3485_v46 }
  0x61   : > { %2129 = vmatpush.bf16.msra.mxu0 %v3392_v23  ;;  %v3741_v51 = vld [vmem:[%s7307_s2 + $0x330] sm:$0xf0]  ;;  %v4693_v53 = vld [vmem:[%s7307_s2 + $0x4] sm:$0xf]  ;;  %v3616_v56 = vor.u32 %v4761_v48, %v3613_v49 }
  0x62   : > { %2143 = vmatpush.bf16.msra.mxu1 %v3520_v25  ;;  %v3341_v54 = vld [vmem:[%s7307_s2 + $0x10] sm:$0xf0]  ;;  %v4725_v57 = vld [vmem:[%s7307_s2 + $0x104] sm:$0xf]  ;;  %v3744_v60 = vor.u32 %v4793_v50, %v3741_v51 }
  0x63   : > { %2157 = vmatpush.bf16.msra.mxu2 %v3648_v26  ;;  %v3469_v58 = vld [vmem:[%s7307_s2 + $0x110] sm:$0xf0]  ;;  %v4757_v59 = vld [vmem:[%s7307_s2 + $0x204] sm:$0xf]  ;;  %v3344_v3 = vor.u32 %v4693_v53, %v3341_v54 }
  0x64   : > { %2171 = vmatpush.bf16.msra.mxu3 %v3776_v30  ;;  %v3597_v61 = vld [vmem:[%s7307_s2 + $0x210] sm:$0xf0]  ;;  %v4789_v62 = vld [vmem:[%s7307_s2 + $0x304] sm:$0xf]  ;;  %v3472_v7 = vor.u32 %v4725_v57, %v3469_v58 }
  0x65   : > { %2130 = vmatpush.bf16.msra.mxu0 %v3376_v36  ;;  %v3725_v63 = vld [vmem:[%s7307_s2 + $0x310] sm:$0xf0]  ;;  %v4849_v0 = vld [vmem:[%s7307_s2 + $0x4e4] sm:$0xf]  ;;  %v3600_v8 = vor.u32 %v4757_v59, %v3597_v61 }
  0x66   : > { %2144 = vmatpush.bf16.msra.mxu1 %v3504_v37  ;;  %v3965_v1 = vld [vmem:[%s7307_s2 + $0x4f0] sm:$0xf0]  ;;  %v4881_v2 = vld [vmem:[%s7307_s2 + $0x5e4] sm:$0xf]  ;;  %v3728_v11 = vor.u32 %v4789_v62, %v3725_v63 }
  0x67   : > { %2158 = vmatpush.bf16.msra.mxu2 %v3632_v38  ;;  %v4093_v4 = vld [vmem:[%s7307_s2 + $0x5f0] sm:$0xf0]  ;;  %v4913_v5 = vld [vmem:[%s7307_s2 + $0x6e4] sm:$0xf]  ;;  %v3968_v12 = vor.u32 %v4849_v0, %v3965_v1 }
  0x68   : > { %2172 = vmatpush.bf16.msra.mxu3 %v3760_v45  ;;  %v4221_v6 = vld [vmem:[%s7307_s2 + $0x6f0] sm:$0xf0]  ;;  %v4945_v9 = vld [vmem:[%s7307_s2 + $0x7e4] sm:$0xf]  ;;  %v4096_v13 = vor.u32 %v4881_v2, %v4093_v4 }
  0x69   : > { %2131 = vmatpush.bf16.msra.mxu0 %v3360_v52  ;;  %v4349_v10 = vld [vmem:[%s7307_s2 + $0x7f0] sm:$0xf0]  ;;  %v4224_v15 = vor.u32 %v4913_v5, %v4221_v6  ;;  %v4845_v16 = vld [vmem:[%s7307_s2 + $0x4c4] sm:$0xf] }
  0x6a   : > { %2145 = vmatpush.bf16.msra.mxu1 %v3488_v55  ;;  %v3949_v17 = vld [vmem:[%s7307_s2 + $0x4d0] sm:$0xf0]  ;;  %v4877_v18 = vld [vmem:[%s7307_s2 + $0x5c4] sm:$0xf]  ;;  %v4352_v21 = vor.u32 %v4945_v9, %v4349_v10 }
  0x6b   : > { %2159 = vmatpush.bf16.msra.mxu2 %v3616_v56  ;;  %v4077_v22 = vld [vmem:[%s7307_s2 + $0x5d0] sm:$0xf0]  ;;  %v4909_v23 = vld [vmem:[%s7307_s2 + $0x6c4] sm:$0xf]  ;;  %v3952_v28 = vor.u32 %v4845_v16, %v3949_v17 }
  0x6c   : > { %2173 = vmatpush.bf16.msra.mxu3 %v3744_v60  ;;  %v4205_v25 = vld [vmem:[%s7307_s2 + $0x6d0] sm:$0xf0]  ;;  %v4941_v26 = vld [vmem:[%s7307_s2 + $0x7c4] sm:$0xf]  ;;  %v4080_v29 = vor.u32 %v4877_v18, %v4077_v22 }
  0x6d   : > { %2132 = vmatpush.bf16.msra.mxu0 %v3344_v3  ;;  %v4333_v27 = vld [vmem:[%s7307_s2 + $0x7d0] sm:$0xf0]  ;;  %v4208_v30 = vor.u32 %v4909_v23, %v4205_v25  ;;  %v4841_v31 = vld [vmem:[%s7307_s2 + $0x4a4] sm:$0xf] }
  0x6e   : > { %2146 = vmatpush.bf16.msra.mxu1 %v3472_v7  ;;  %v3933_v32 = vld [vmem:[%s7307_s2 + $0x4b0] sm:$0xf0]  ;;  %v4873_v33 = vld [vmem:[%s7307_s2 + $0x5a4] sm:$0xf]  ;;  %v4336_v34 = vor.u32 %v4941_v26, %v4333_v27 }
  0x6f   : > { %2160 = vmatpush.bf16.msra.mxu2 %v3600_v8  ;;  %v4061_v35 = vld [vmem:[%s7307_s2 + $0x5b0] sm:$0xf0]  ;;  %v4905_v36 = vld [vmem:[%s7307_s2 + $0x6a4] sm:$0xf]  ;;  %v3936_v41 = vor.u32 %v4841_v31, %v3933_v32 }
  0x70   : > { %2174 = vmatpush.bf16.msra.mxu3 %v3728_v11  ;;  %v4189_v37 = vld [vmem:[%s7307_s2 + $0x6b0] sm:$0xf0]  ;;  %2133 = vmatmul.bf16.vlgmr.msra.gmra.mxu0 %v5451_v14  ;;  %v4937_v38 = vld [vmem:[%s7307_s2 + $0x7a4] sm:$0xf]  ;;  %v4064_v42 = vor.u32 %v4873_v33, %v4061_v35 }
  0x71   : > { %2181 = vmatpush.bf16.msrb.mxu0 %v3968_v12  ;;  %v4317_v40 = vld [vmem:[%s7307_s2 + $0x7b0] sm:$0xf0]  ;;  %2147 = vmatmul.bf16.vlgmr.msra.gmra.mxu1 %v5461_v20  ;;  %v4192_v45 = vor.u32 %v4905_v36, %v4189_v37  ;;  %v4837_v46 = vld [vmem:[%s7307_s2 + $0x484] sm:$0xf] }
  0x72   : > { %2195 = vmatpush.bf16.msrb.mxu1 %v4096_v13  ;;  %2161 = vmatmul.bf16.vlgmr.msra.gmra.mxu2 %v5459_v19  ;;  %v3917_v48 = vld [vmem:[%s7307_s2 + $0x490] sm:$0xf0]  ;;  %v4869_v49 = vld [vmem:[%s7307_s2 + $0x584] sm:$0xf]  ;;  %v4320_v50 = vor.u32 %v4937_v38, %v4317_v40 }
  0x73   : > { %2209 = vmatpush.bf16.msrb.mxu2 %v4224_v15  ;;  %2175 = vmatmul.bf16.vlgmr.msra.gmra.mxu3 %v5465_v24  ;;  %v4045_v51 = vld [vmem:[%s7307_s2 + $0x590] sm:$0xf0]  ;;  %v4901_v52 = vld [vmem:[%s7307_s2 + $0x684] sm:$0xf]  ;;  %v3920_v56 = vor.u32 %v4837_v46, %v3917_v48  ;;  %v3459_v48 = vld [vmem:[%s7307_s2 + $0xe8] sm:$0xf] }
  0x74   : > { %2223 = vmatpush.bf16.msrb.mxu3 %v4352_v21  ;;  %v4173_v53 = vld [vmem:[%s7307_s2 + $0x690] sm:$0xf0]  ;;  %v4933_v54 = vld [vmem:[%s7307_s2 + $0x784] sm:$0xf]  ;;  %v4048_v57 = vor.u32 %v4869_v49, %v4045_v51  ;;  %v4724_v49 = vld [vmem:[%s7307_s2 + $0xf4] sm:$0xf0] }
  0x75   : > { %2182 = vmatpush.bf16.msrb.mxu0 %v3952_v28  ;;  %v4301_v55 = vld [vmem:[%s7307_s2 + $0x790] sm:$0xf0]  ;;  %v4176_v58 = vor.u32 %v4901_v52, %v4173_v53  ;;  %v4833_v59 = vld [vmem:[%s7307_s2 + $0x464] sm:$0xf]  ;;  %v4756_v52 = vld [vmem:[%s7307_s2 + $0x1f4] sm:$0xf0] }
  0x76   : > { %2196 = vmatpush.bf16.msrb.mxu1 %v4080_v29  ;;  %v3901_v60 = vld [vmem:[%s7307_s2 + $0x470] sm:$0xf0]  ;;  %v4865_v61 = vld [vmem:[%s7307_s2 + $0x564] sm:$0xf]  ;;  %v4304_v62 = vor.u32 %v4933_v54, %v4301_v55  ;;  %v3715_v53 = vld [vmem:[%s7307_s2 + $0x2e8] sm:$0xf] }
  0x77   : > { %2210 = vmatpush.bf16.msrb.mxu2 %v4208_v30  ;;  %v4029_v63 = vld [vmem:[%s7307_s2 + $0x570] sm:$0xf0]  ;;  %v4897_v0 = vld [vmem:[%s7307_s2 + $0x664] sm:$0xf]  ;;  %v3904_v4 = vor.u32 %v4833_v59, %v3901_v60  ;;  %v4788_v54 = vld [vmem:[%s7307_s2 + $0x2f4] sm:$0xf0]  ;;  %v3460_v60 = vor.u32 %v4724_v49, %v3459_v48 }
  0x78   : > { %2224 = vmatpush.bf16.msrb.mxu3 %v4336_v34  ;;  %v4157_v1 = vld [vmem:[%s7307_s2 + $0x670] sm:$0xf0]  ;;  %v4929_v2 = vld [vmem:[%s7307_s2 + $0x764] sm:$0xf]  ;;  %v4032_v5 = vor.u32 %v4865_v61, %v4029_v63  ;;  %v3443_v63 = vld [vmem:[%s7307_s2 + $0xc8] sm:$0xf] }
  0x79   : > { %2183 = vmatpush.bf16.msrb.mxu0 %v3936_v41  ;;  %v4285_v3 = vld [vmem:[%s7307_s2 + $0x770] sm:$0xf0]  ;;  %v4160_v6 = vor.u32 %v4897_v0, %v4157_v1  ;;  %v4829_v7 = vld [vmem:[%s7307_s2 + $0x444] sm:$0xf]  ;;  %v4720_v0 = vld [vmem:[%s7307_s2 + $0xd4] sm:$0xf0] }
  0x7a   : > { %2197 = vmatpush.bf16.msrb.mxu1 %v4064_v42  ;;  %v3885_v8 = vld [vmem:[%s7307_s2 + $0x450] sm:$0xf0]  ;;  %v4861_v9 = vld [vmem:[%s7307_s2 + $0x544] sm:$0xf]  ;;  %v4288_v10 = vor.u32 %v4929_v2, %v4285_v3  ;;  %v3571_v1 = vld [vmem:[%s7307_s2 + $0x1c8] sm:$0xf] }
  0x7b   : > { %2211 = vmatpush.bf16.msrb.mxu2 %v4192_v45  ;;  %v4013_v11 = vld [vmem:[%s7307_s2 + $0x550] sm:$0xf0]  ;;  %v4893_v12 = vld [vmem:[%s7307_s2 + $0x644] sm:$0xf]  ;;  %v3888_v17 = vor.u32 %v4829_v7, %v3885_v8  ;;  %v4752_v3 = vld [vmem:[%s7307_s2 + $0x1d4] sm:$0xf0]  ;;  %v3444_v8 = vor.u32 %v4720_v0, %v3443_v63 }
  0x7c   : > { %2225 = vmatpush.bf16.msrb.mxu3 %v4320_v50  ;;  %v4141_v13 = vld [vmem:[%s7307_s2 + $0x650] sm:$0xf0]  ;;  %v4925_v15 = vld [vmem:[%s7307_s2 + $0x744] sm:$0xf]  ;;  %v4016_v18 = vor.u32 %v4861_v9, %v4013_v11  ;;  %v3587_v50 = vld [vmem:[%s7307_s2 + $0x1e8] sm:$0xf]  ;;  %v3572_v9 = vor.u32 %v4752_v3, %v3571_v1 }
  0x7d   : > { %2184 = vmatpush.bf16.msrb.mxu0 %v3920_v56  ;;  %v4269_v16 = vld [vmem:[%s7307_s2 + $0x750] sm:$0xf0]  ;;  %v4144_v21 = vor.u32 %v4893_v12, %v4141_v13  ;;  %v4825_v22 = vld [vmem:[%s7307_s2 + $0x424] sm:$0xf]  ;;  %v3588_v61 = vor.u32 %v4756_v52, %v3587_v50  ;;  %v4816_v7 = vld [vmem:[%s7307_s2 + $0x3d4] sm:$0xf0] }
  0x7e   : > { %2198 = vmatpush.bf16.msrb.mxu1 %v4048_v57  ;;  %v3869_v23 = vld [vmem:[%s7307_s2 + $0x430] sm:$0xf0]  ;;  %v4857_v25 = vld [vmem:[%s7307_s2 + $0x524] sm:$0xf]  ;;  %v4272_v26 = vor.u32 %v4925_v15, %v4269_v16  ;;  %v3843_v57 = vld [vmem:[%s7307_s2 + $0x3e8] sm:$0xf] }
  0x7f   : > { %2212 = vmatpush.bf16.msrb.mxu2 %v4176_v58  ;;  %v3997_v27 = vld [vmem:[%s7307_s2 + $0x530] sm:$0xf0]  ;;  %v4889_v28 = vld [vmem:[%s7307_s2 + $0x624] sm:$0xf]  ;;  %v3872_v32 = vor.u32 %v4825_v22, %v3869_v23  ;;  %v4820_v58 = vld [vmem:[%s7307_s2 + $0x3f4] sm:$0xf0] }
  0x80   : > { %2226 = vmatpush.bf16.msrb.mxu3 %v4304_v62  ;;  %v4125_v29 = vld [vmem:[%s7307_s2 + $0x630] sm:$0xf0]  ;;  %v4921_v30 = vld [vmem:[%s7307_s2 + $0x724] sm:$0xf]  ;;  %v4000_v35 = vor.u32 %v4857_v25, %v3997_v27  ;;  %v3716_v62 = vor.u32 %v4788_v54, %v3715_v53  ;;  %v3844_v2 = vor.u32 %v4820_v58, %v3843_v57  ;;  %v3427_v11 = vld [vmem:[%s7307_s2 + $0xa8] sm:$0xf] }
  0x81   : > { %2185 = vmatpush.bf16.msrb.mxu0 %v3904_v4  ;;  %v4253_v31 = vld [vmem:[%s7307_s2 + $0x730] sm:$0xf0]  ;;  %v4821_v33 = vld [vmem:[%s7307_s2 + $0x404] sm:$0xf]  ;;  %v4128_v36 = vor.u32 %v4889_v28, %v4125_v29  ;;  %v3699_v4 = vld [vmem:[%s7307_s2 + $0x2c8] sm:$0xf] }
  0x82   : > { %2199 = vmatpush.bf16.msrb.mxu1 %v4032_v5  ;;  %v3853_v34 = vld [vmem:[%s7307_s2 + $0x410] sm:$0xf0]  ;;  %v4853_v37 = vld [vmem:[%s7307_s2 + $0x504] sm:$0xf]  ;;  %v4256_v41 = vor.u32 %v4921_v30, %v4253_v31  ;;  %v4784_v5 = vld [vmem:[%s7307_s2 + $0x2d4] sm:$0xf0] }
  0x83   : > { %2213 = vmatpush.bf16.msrb.mxu2 %v4160_v6  ;;  %v3981_v38 = vld [vmem:[%s7307_s2 + $0x510] sm:$0xf0]  ;;  %v4885_v40 = vld [vmem:[%s7307_s2 + $0x604] sm:$0xf]  ;;  %v3856_v51 = vor.u32 %v4821_v33, %v3853_v34  ;;  %v3827_v6 = vld [vmem:[%s7307_s2 + $0x3c8] sm:$0xf] }
  0x84   : > { %2227 = vmatpush.bf16.msrb.mxu3 %v4288_v10  ;;  %v4109_v42 = vld [vmem:[%s7307_s2 + $0x610] sm:$0xf0]  ;;  %v4917_v45 = vld [vmem:[%s7307_s2 + $0x704] sm:$0xf]  ;;  %v3984_v55 = vor.u32 %v4853_v37, %v3981_v38  ;;  %v3700_v10 = vor.u32 %v4784_v5, %v3699_v4  ;;  %v4716_v12 = vld [vmem:[%s7307_s2 + $0xb4] sm:$0xf0]  ;;  %v3828_v15 = vor.u32 %v4816_v7, %v3827_v6 }
  0x85   : > { %2186 = vmatpush.bf16.msrb.mxu0 %v3888_v17  ;;  %v4237_v46 = vld [vmem:[%s7307_s2 + $0x710] sm:$0xf0]  ;;  %v4112_v56 = vor.u32 %v4885_v40, %v4109_v42  ;;  %v3555_v13 = vld [vmem:[%s7307_s2 + $0x1a8] sm:$0xf]  ;;  %v4748_v16 = vld [vmem:[%s7307_s2 + $0x1b4] sm:$0xf0]  ;;  %v3428_v23 = vor.u32 %v4716_v12, %v3427_v11 }
  0x86   : > { %2200 = vmatpush.bf16.msrb.mxu1 %v4016_v18  ;;  %v4240_v59 = vor.u32 %v4917_v45, %v4237_v46  ;;  %v3683_v17 = vld [vmem:[%s7307_s2 + $0x2a8] sm:$0xf]  ;;  %v4780_v18 = vld [vmem:[%s7307_s2 + $0x2b4] sm:$0xf0]  ;;  %v3556_v25 = vor.u32 %v4748_v16, %v3555_v13 }
  0x87   : > { %2214 = vmatpush.bf16.msrb.mxu2 %v4144_v21  ;;  %v3811_v21 = vld [vmem:[%s7307_s2 + $0x3a8] sm:$0xf]  ;;  %v4812_v22 = vld [vmem:[%s7307_s2 + $0x3b4] sm:$0xf0] }
  0x88   : > { %2228 = vmatpush.bf16.msrb.mxu3 %v4272_v26  ;;  %v3684_v26 = vor.u32 %v4780_v18, %v3683_v17  ;;  %v3411_v27 = vld [vmem:[%s7307_s2 + $0x88] sm:$0xf]  ;;  %v4712_v28 = vld [vmem:[%s7307_s2 + $0x94] sm:$0xf0]  ;;  %v3812_v30 = vor.u32 %v4812_v22, %v3811_v21 }
  0x89   : > { %2187 = vmatpush.bf16.msrb.mxu0 %v3872_v32  ;;  %v3539_v29 = vld [vmem:[%s7307_s2 + $0x188] sm:$0xf]  ;;  %v4744_v31 = vld [vmem:[%s7307_s2 + $0x194] sm:$0xf0] }
  0x8a   : > { %2201 = vmatpush.bf16.msrb.mxu1 %v4000_v35  ;;  %v3667_v32 = vld [vmem:[%s7307_s2 + $0x288] sm:$0xf]  ;;  %v4776_v33 = vld [vmem:[%s7307_s2 + $0x294] sm:$0xf0]  ;;  %v3540_v37 = vor.u32 %v4744_v31, %v3539_v29 }
  0x8b   : > { %2215 = vmatpush.bf16.msrb.mxu2 %v4128_v36  ;;  %v3795_v34 = vld [vmem:[%s7307_s2 + $0x388] sm:$0xf]  ;;  %v4808_v35 = vld [vmem:[%s7307_s2 + $0x394] sm:$0xf0]  ;;  %v3412_v36 = vor.u32 %v4712_v28, %v3411_v27  ;;  %v3668_v38 = vor.u32 %v4776_v33, %v3667_v32 }
  0x8c   : > { %2229 = vmatpush.bf16.msrb.mxu3 %v4256_v41  ;;  %v3395_v40 = vld [vmem:[%s7307_s2 + $0x68] sm:$0xf]  ;;  %v4708_v41 = vld [vmem:[%s7307_s2 + $0x74] sm:$0xf0]  ;;  %v3796_v45 = vor.u32 %v4808_v35, %v3795_v34 }
  0x8d   : > { %2188 = vmatpush.bf16.msrb.mxu0 %v3856_v51  ;;  %v3523_v42 = vld [vmem:[%s7307_s2 + $0x168] sm:$0xf]  ;;  %v4740_v46 = vld [vmem:[%s7307_s2 + $0x174] sm:$0xf0]  ;;  %v3396_v52 = vor.u32 %v4708_v41, %v3395_v40 }
  0x8e   : > { %2202 = vmatpush.bf16.msrb.mxu1 %v3984_v55  ;;  %v3651_v48 = vld [vmem:[%s7307_s2 + $0x268] sm:$0xf]  ;;  %v4772_v49 = vld [vmem:[%s7307_s2 + $0x274] sm:$0xf0]  ;;  %v3524_v53 = vor.u32 %v4740_v46, %v3523_v42 }
  0x8f   : > { %2216 = vmatpush.bf16.msrb.mxu2 %v4112_v56  ;;  %v3779_v50 = vld [vmem:[%s7307_s2 + $0x368] sm:$0xf]  ;;  %v4804_v51 = vld [vmem:[%s7307_s2 + $0x374] sm:$0xf0]  ;;  %v3652_v54 = vor.u32 %v4772_v49, %v3651_v48 }
  0x90   : > { %2230 = vmatpush.bf16.msrb.mxu3 %v4240_v59  ;;  %2189 = vmatmul.bf16.vlgmr.msrb.gmra.mxu0 %v5608_v39  ;;  %v3379_v55 = vld [vmem:[%s7307_s2 + $0x48] sm:$0xf]  ;;  %v4704_v56 = vld [vmem:[%s7307_s2 + $0x54] sm:$0xf0]  ;;  %v3780_v58 = vor.u32 %v4804_v51, %v3779_v50 }
  0x91   : > { %2237 = vmatpush.bf16.msra.mxu0 %v3460_v60  ;;  %2203 = vmatmul.bf16.vlgmr.msrb.gmra.mxu1 %v5621_v44  ;;  %v3507_v57 = vld [vmem:[%s7307_s2 + $0x148] sm:$0xf]  ;;  %v4736_v59 = vld [vmem:[%s7307_s2 + $0x154] sm:$0xf0]  ;;  %v3380_v0 = vor.u32 %v4704_v56, %v3379_v55 }
  0x92   : > { %2251 = vmatpush.bf16.msra.mxu1 %v3588_v61  ;;  %2217 = vmatmul.bf16.vlgmr.msrb.gmra.mxu2 %v5619_v43  ;;  %v3635_v60 = vld [vmem:[%s7307_s2 + $0x248] sm:$0xf]  ;;  %v4768_v61 = vld [vmem:[%s7307_s2 + $0x254] sm:$0xf0]  ;;  %v3508_v1 = vor.u32 %v4736_v59, %v3507_v57 }
  0x93   : > { %2265 = vmatpush.bf16.msra.mxu2 %v3716_v62  ;;  %2231 = vmatmul.bf16.vlgmr.msrb.gmra.mxu3 %v5629_v47  ;;  %v3763_v62 = vld [vmem:[%s7307_s2 + $0x348] sm:$0xf]  ;;  %v4800_v63 = vld [vmem:[%s7307_s2 + $0x354] sm:$0xf0] }
  0x94   : > { %2279 = vmatpush.bf16.msra.mxu3 %v3844_v2  ;;  %v3636_v2 = vor.u32 %v4768_v61, %v3635_v60  ;;  %v3363_v3 = vld [vmem:[%s7307_s2 + $0x28] sm:$0xf]  ;;  %v4700_v4 = vld [vmem:[%s7307_s2 + $0x34] sm:$0xf0]  ;;  %v3764_v6 = vor.u32 %v4800_v63, %v3763_v62 }
  0x95   : > { %2238 = vmatpush.bf16.msra.mxu0 %v3444_v8  ;;  %v3491_v5 = vld [vmem:[%s7307_s2 + $0x128] sm:$0xf]  ;;  %v4732_v7 = vld [vmem:[%s7307_s2 + $0x134] sm:$0xf0]  ;;  %v3364_v12 = vor.u32 %v4700_v4, %v3363_v3 }
  0x96   : > { %2252 = vmatpush.bf16.msra.mxu1 %v3572_v9  ;;  %v3619_v8 = vld [vmem:[%s7307_s2 + $0x228] sm:$0xf]  ;;  %v4764_v9 = vld [vmem:[%s7307_s2 + $0x234] sm:$0xf0]  ;;  %v3492_v16 = vor.u32 %v4732_v7, %v3491_v5 }
  0x97   : > { %2266 = vmatpush.bf16.msra.mxu2 %v3700_v10  ;;  %v3747_v10 = vld [vmem:[%s7307_s2 + $0x328] sm:$0xf]  ;;  %v4796_v11 = vld [vmem:[%s7307_s2 + $0x334] sm:$0xf0]  ;;  %v3620_v17 = vor.u32 %v4764_v9, %v3619_v8 }
  0x98   : > { %2280 = vmatpush.bf16.msra.mxu3 %v3828_v15  ;;  %v3347_v13 = vld [vmem:[%s7307_s2 + $0x8] sm:$0xf]  ;;  %v4696_v15 = vld [vmem:[%s7307_s2 + $0x14] sm:$0xf0] }
  0x99   : > { %2239 = vmatpush.bf16.msra.mxu0 %v3428_v23  ;;  %v3475_v18 = vld [vmem:[%s7307_s2 + $0x108] sm:$0xf]  ;;  %v4728_v21 = vld [vmem:[%s7307_s2 + $0x114] sm:$0xf0]  ;;  %v3748_v23 = vor.u32 %v4796_v11, %v3747_v10  ;;  %v3348_v31 = vor.u32 %v4696_v15, %v3347_v13 }
  0x9a   : > { %2253 = vmatpush.bf16.msra.mxu1 %v3556_v25  ;;  %v3603_v22 = vld [vmem:[%s7307_s2 + $0x208] sm:$0xf]  ;;  %v4760_v25 = vld [vmem:[%s7307_s2 + $0x214] sm:$0xf0]  ;;  %v3476_v35 = vor.u32 %v4728_v21, %v3475_v18 }
  0x9b   : > { %2267 = vmatpush.bf16.msra.mxu2 %v3684_v26  ;;  %v3731_v26 = vld [vmem:[%s7307_s2 + $0x308] sm:$0xf]  ;;  %v4792_v27 = vld [vmem:[%s7307_s2 + $0x314] sm:$0xf0] }
  0x9c   : > { %2281 = vmatpush.bf16.msra.mxu3 %v3812_v30  ;;  %v3971_v28 = vld [vmem:[%s7307_s2 + $0x4e8] sm:$0xf]  ;;  %v4852_v29 = vld [vmem:[%s7307_s2 + $0x4f4] sm:$0xf0]  ;;  %v3732_v40 = vor.u32 %v4792_v27, %v3731_v26 }
  0x9d   : > { %2240 = vmatpush.bf16.msra.mxu0 %v3412_v36  ;;  %v4099_v30 = vld [vmem:[%s7307_s2 + $0x5e8] sm:$0xf]  ;;  %v4884_v32 = vld [vmem:[%s7307_s2 + $0x5f4] sm:$0xf0]  ;;  %v3604_v36 = vor.u32 %v4760_v25, %v3603_v22  ;;  %v3972_v41 = vor.u32 %v4852_v29, %v3971_v28 }
  0x9e   : > { %2254 = vmatpush.bf16.msra.mxu1 %v3540_v37  ;;  %v4227_v33 = vld [vmem:[%s7307_s2 + $0x6e8] sm:$0xf]  ;;  %v4916_v34 = vld [vmem:[%s7307_s2 + $0x6f4] sm:$0xf0]  ;;  %v4100_v42 = vor.u32 %v4884_v32, %v4099_v30 }
  0x9f   : > { %2268 = vmatpush.bf16.msra.mxu2 %v3668_v38  ;;  %v4355_v37 = vld [vmem:[%s7307_s2 + $0x7e8] sm:$0xf]  ;;  %v4948_v38 = vld [vmem:[%s7307_s2 + $0x7f4] sm:$0xf0] }
  0xa0   : > { %2282 = vmatpush.bf16.msra.mxu3 %v3796_v45  ;;  %v4228_v45 = vor.u32 %v4916_v34, %v4227_v33  ;;  %v3955_v46 = vld [vmem:[%s7307_s2 + $0x4c8] sm:$0xf]  ;;  %v4848_v48 = vld [vmem:[%s7307_s2 + $0x4d4] sm:$0xf0]  ;;  %v4356_v50 = vor.u32 %v4948_v38, %v4355_v37 }
  0xa1   : > { %2241 = vmatpush.bf16.msra.mxu0 %v3396_v52  ;;  %v4083_v49 = vld [vmem:[%s7307_s2 + $0x5c8] sm:$0xf]  ;;  %v4880_v51 = vld [vmem:[%s7307_s2 + $0x5d4] sm:$0xf0]  ;;  %v3956_v56 = vor.u32 %v4848_v48, %v3955_v46 }
  0xa2   : > { %2255 = vmatpush.bf16.msra.mxu1 %v3524_v53  ;;  %v4211_v52 = vld [vmem:[%s7307_s2 + $0x6c8] sm:$0xf]  ;;  %v4912_v53 = vld [vmem:[%s7307_s2 + $0x6d4] sm:$0xf0]  ;;  %v4084_v57 = vor.u32 %v4880_v51, %v4083_v49 }
  0xa3   : > { %2269 = vmatpush.bf16.msra.mxu2 %v3652_v54  ;;  %v4339_v54 = vld [vmem:[%s7307_s2 + $0x7c8] sm:$0xf]  ;;  %v4944_v55 = vld [vmem:[%s7307_s2 + $0x7d4] sm:$0xf0] }
  0xa4   : > { %2283 = vmatpush.bf16.msra.mxu3 %v3780_v58  ;;  %v4212_v58 = vor.u32 %v4912_v53, %v4211_v52  ;;  %v3939_v59 = vld [vmem:[%s7307_s2 + $0x4a8] sm:$0xf]  ;;  %v4844_v60 = vld [vmem:[%s7307_s2 + $0x4b4] sm:$0xf0]  ;;  %v4340_v62 = vor.u32 %v4944_v55, %v4339_v54 }
  0xa5   : > { %2242 = vmatpush.bf16.msra.mxu0 %v3380_v0  ;;  %v4067_v61 = vld [vmem:[%s7307_s2 + $0x5a8] sm:$0xf]  ;;  %v4876_v63 = vld [vmem:[%s7307_s2 + $0x5b4] sm:$0xf0]  ;;  %v3940_v4 = vor.u32 %v4844_v60, %v3939_v59 }
  0xa6   : > { %2256 = vmatpush.bf16.msra.mxu1 %v3508_v1  ;;  %v4195_v0 = vld [vmem:[%s7307_s2 + $0x6a8] sm:$0xf]  ;;  %v4908_v1 = vld [vmem:[%s7307_s2 + $0x6b4] sm:$0xf0]  ;;  %v4068_v5 = vor.u32 %v4876_v63, %v4067_v61 }
  0xa7   : > { %2270 = vmatpush.bf16.msra.mxu2 %v3636_v2  ;;  %v4323_v2 = vld [vmem:[%s7307_s2 + $0x7a8] sm:$0xf]  ;;  %v4940_v3 = vld [vmem:[%s7307_s2 + $0x7b4] sm:$0xf0] }
  0xa8   : > { %2284 = vmatpush.bf16.msra.mxu3 %v3764_v6  ;;  %v4196_v6 = vor.u32 %v4908_v1, %v4195_v0  ;;  %v3923_v7 = vld [vmem:[%s7307_s2 + $0x488] sm:$0xf]  ;;  %v4840_v8 = vld [vmem:[%s7307_s2 + $0x494] sm:$0xf0]  ;;  %v4324_v10 = vor.u32 %v4940_v3, %v4323_v2 }
  0xa9   : > { %2243 = vmatpush.bf16.msra.mxu0 %v3364_v12  ;;  %v4051_v9 = vld [vmem:[%s7307_s2 + $0x588] sm:$0xf]  ;;  %v4872_v11 = vld [vmem:[%s7307_s2 + $0x594] sm:$0xf0] }
  0xaa   : > { %2257 = vmatpush.bf16.msra.mxu1 %v3492_v16  ;;  %v4179_v12 = vld [vmem:[%s7307_s2 + $0x688] sm:$0xf]  ;;  %v4904_v13 = vld [vmem:[%s7307_s2 + $0x694] sm:$0xf0]  ;;  %v4052_v18 = vor.u32 %v4872_v11, %v4051_v9  ;;  %v3461_v9 = vld [vmem:[%s7307_s2 + $0xf8] sm:$0xf0] }
  0xab   : > { %2271 = vmatpush.bf16.msra.mxu2 %v3620_v17  ;;  %v4307_v15 = vld [vmem:[%s7307_s2 + $0x788] sm:$0xf]  ;;  %v4936_v16 = vld [vmem:[%s7307_s2 + $0x794] sm:$0xf0]  ;;  %v3924_v17 = vor.u32 %v4840_v8, %v3923_v7  ;;  %v4180_v21 = vor.u32 %v4904_v13, %v4179_v12  ;;  %v4722_v8 = vld [vmem:[%s7307_s2 + $0xec] sm:$0xf] }
  0xac   : > { %2285 = vmatpush.bf16.msra.mxu3 %v3748_v23  ;;  %v3907_v22 = vld [vmem:[%s7307_s2 + $0x468] sm:$0xf]  ;;  %v4836_v23 = vld [vmem:[%s7307_s2 + $0x474] sm:$0xf0]  ;;  %v4308_v26 = vor.u32 %v4936_v16, %v4307_v15  ;;  %v3589_v12 = vld [vmem:[%s7307_s2 + $0x1f8] sm:$0xf0] }
  0xad   : > { %2244 = vmatpush.bf16.msra.mxu0 %v3348_v31  ;;  %v4035_v25 = vld [vmem:[%s7307_s2 + $0x568] sm:$0xf]  ;;  %v4868_v27 = vld [vmem:[%s7307_s2 + $0x574] sm:$0xf0]  ;;  %v3908_v32 = vor.u32 %v4836_v23, %v3907_v22  ;;  %v4786_v13 = vld [vmem:[%s7307_s2 + $0x2ec] sm:$0xf]  ;;  %v3464_v23 = vor.u32 %v4722_v8, %v3461_v9 }
  0xae   : > { %2258 = vmatpush.bf16.msra.mxu1 %v3476_v35  ;;  %v4163_v28 = vld [vmem:[%s7307_s2 + $0x668] sm:$0xf]  ;;  %v4900_v29 = vld [vmem:[%s7307_s2 + $0x674] sm:$0xf0]  ;;  %v4036_v33 = vor.u32 %v4868_v27, %v4035_v25  ;;  %v3717_v15 = vld [vmem:[%s7307_s2 + $0x2f8] sm:$0xf0] }
  0xaf   : > { %2272 = vmatpush.bf16.msra.mxu2 %v3604_v36  ;;  %v4291_v30 = vld [vmem:[%s7307_s2 + $0x768] sm:$0xf]  ;;  %v4932_v31 = vld [vmem:[%s7307_s2 + $0x774] sm:$0xf0]  ;;  %v4164_v34 = vor.u32 %v4900_v29, %v4163_v28  ;;  %v4718_v27 = vld [vmem:[%s7307_s2 + $0xcc] sm:$0xf] }
  0xb0   : > { %2286 = vmatpush.bf16.msra.mxu3 %v3732_v40  ;;  %2245 = vmatmul.bf16.vlgmr.msra.gmra.mxu0 %v5451_v14  ;;  %v3891_v35 = vld [vmem:[%s7307_s2 + $0x448] sm:$0xf]  ;;  %v4832_v36 = vld [vmem:[%s7307_s2 + $0x454] sm:$0xf0]  ;;  %v4292_v38 = vor.u32 %v4932_v31, %v4291_v30  ;;  %v3445_v28 = vld [vmem:[%s7307_s2 + $0xd8] sm:$0xf0] }
  0xb1   : > { %2293 = vmatpush.bf16.msrb.mxu0 %v3972_v41  ;;  %2259 = vmatmul.bf16.vlgmr.msra.gmra.mxu1 %v5461_v20  ;;  %v4019_v37 = vld [vmem:[%s7307_s2 + $0x548] sm:$0xf]  ;;  %v4864_v40 = vld [vmem:[%s7307_s2 + $0x554] sm:$0xf0]  ;;  %v3892_v48 = vor.u32 %v4832_v36, %v3891_v35  ;;  %v4750_v29 = vld [vmem:[%s7307_s2 + $0x1cc] sm:$0xf]  ;;  %v3448_v36 = vor.u32 %v4718_v27, %v3445_v28 }
  0xb2   : > { %2307 = vmatpush.bf16.msrb.mxu1 %v4100_v42  ;;  %2273 = vmatmul.bf16.vlgmr.msra.gmra.mxu2 %v5459_v19  ;;  %v4147_v41 = vld [vmem:[%s7307_s2 + $0x648] sm:$0xf]  ;;  %v4896_v42 = vld [vmem:[%s7307_s2 + $0x654] sm:$0xf0]  ;;  %v4020_v49 = vor.u32 %v4864_v40, %v4019_v37  ;;  %v3573_v31 = vld [vmem:[%s7307_s2 + $0x1d8] sm:$0xf0] }
  0xb3   : > { %2321 = vmatpush.bf16.msrb.mxu2 %v4228_v45  ;;  %2287 = vmatmul.bf16.vlgmr.msra.gmra.mxu3 %v5465_v24  ;;  %v4275_v45 = vld [vmem:[%s7307_s2 + $0x748] sm:$0xf]  ;;  %v4928_v46 = vld [vmem:[%s7307_s2 + $0x754] sm:$0xf0]  ;;  %v3829_v35 = vld [vmem:[%s7307_s2 + $0x3d8] sm:$0xf0]  ;;  %v3576_v37 = vor.u32 %v4750_v29, %v3573_v31 }
  0xb4   : > { %2335 = vmatpush.bf16.msrb.mxu3 %v4356_v50  ;;  %v4148_v50 = vor.u32 %v4896_v42, %v4147_v41  ;;  %v3875_v51 = vld [vmem:[%s7307_s2 + $0x428] sm:$0xf]  ;;  %v4828_v52 = vld [vmem:[%s7307_s2 + $0x434] sm:$0xf0]  ;;  %v4276_v54 = vor.u32 %v4928_v46, %v4275_v45  ;;  %v4714_v40 = vld [vmem:[%s7307_s2 + $0xac] sm:$0xf] }
  0xb5   : > { %2294 = vmatpush.bf16.msrb.mxu0 %v3956_v56  ;;  %v4003_v53 = vld [vmem:[%s7307_s2 + $0x528] sm:$0xf]  ;;  %v4860_v55 = vld [vmem:[%s7307_s2 + $0x534] sm:$0xf0]  ;;  %v3876_v60 = vor.u32 %v4828_v52, %v3875_v51  ;;  %v3429_v41 = vld [vmem:[%s7307_s2 + $0xb8] sm:$0xf0] }
  0xb6   : > { %2308 = vmatpush.bf16.msrb.mxu1 %v4084_v57  ;;  %v4131_v56 = vld [vmem:[%s7307_s2 + $0x628] sm:$0xf]  ;;  %v4892_v57 = vld [vmem:[%s7307_s2 + $0x634] sm:$0xf0]  ;;  %v4004_v63 = vor.u32 %v4860_v55, %v4003_v53  ;;  %v4746_v42 = vld [vmem:[%s7307_s2 + $0x1ac] sm:$0xf]  ;;  %v3432_v52 = vor.u32 %v4714_v40, %v3429_v41 }
  0xb7   : > { %2322 = vmatpush.bf16.msrb.mxu2 %v4212_v58  ;;  %v4259_v58 = vld [vmem:[%s7307_s2 + $0x728] sm:$0xf]  ;;  %v4924_v59 = vld [vmem:[%s7307_s2 + $0x734] sm:$0xf0]  ;;  %v4132_v0 = vor.u32 %v4892_v57, %v4131_v56  ;;  %v3557_v46 = vld [vmem:[%s7307_s2 + $0x1b8] sm:$0xf0] }
  0xb8   : > { %2336 = vmatpush.bf16.msrb.mxu3 %v4340_v62  ;;  %v3859_v61 = vld [vmem:[%s7307_s2 + $0x408] sm:$0xf]  ;;  %v4824_v62 = vld [vmem:[%s7307_s2 + $0x414] sm:$0xf0]  ;;  %v3813_v51 = vld [vmem:[%s7307_s2 + $0x3b8] sm:$0xf0]  ;;  %v3560_v53 = vor.u32 %v4746_v42, %v3557_v46 }
  0xb9   : > { %2295 = vmatpush.bf16.msrb.mxu0 %v3940_v4  ;;  %v3987_v1 = vld [vmem:[%s7307_s2 + $0x508] sm:$0xf]  ;;  %v4856_v2 = vld [vmem:[%s7307_s2 + $0x514] sm:$0xf0]  ;;  %v4260_v4 = vor.u32 %v4924_v59, %v4259_v58  ;;  %v3860_v11 = vor.u32 %v4824_v62, %v3859_v61  ;;  %v4710_v55 = vld [vmem:[%s7307_s2 + $0x8c] sm:$0xf] }
  0xba   : > { %2309 = vmatpush.bf16.msrb.mxu1 %v4068_v5  ;;  %v4115_v3 = vld [vmem:[%s7307_s2 + $0x608] sm:$0xf]  ;;  %v4888_v5 = vld [vmem:[%s7307_s2 + $0x614] sm:$0xf0]  ;;  %v3988_v16 = vor.u32 %v4856_v2, %v3987_v1  ;;  %v3413_v56 = vld [vmem:[%s7307_s2 + $0x98] sm:$0xf0] }
  0xbb   : > { %2323 = vmatpush.bf16.msrb.mxu2 %v4196_v6  ;;  %v4243_v6 = vld [vmem:[%s7307_s2 + $0x708] sm:$0xf]  ;;  %v4920_v7 = vld [vmem:[%s7307_s2 + $0x714] sm:$0xf0]  ;;  %v4742_v57 = vld [vmem:[%s7307_s2 + $0x18c] sm:$0xf] }
  0xbc   : > { %2337 = vmatpush.bf16.msrb.mxu3 %v4324_v10  ;;  %v4754_v10 = vld [vmem:[%s7307_s2 + $0x1ec] sm:$0xf]  ;;  %v4244_v22 = vor.u32 %v4920_v7, %v4243_v6  ;;  %v3541_v59 = vld [vmem:[%s7307_s2 + $0x198] sm:$0xf0]  ;;  %v6478_v7 = vpop.f32.mrf.mxu1 }
  0xbd   : > { %2296 = vmatpush.bf16.msrb.mxu0 %v3924_v17  ;;  %v4116_v17 = vor.u32 %v4888_v5, %v4115_v3  ;;  %v3592_v25 = vor.u32 %v4754_v10, %v3589_v12  ;;  %v3669_v61 = vld [vmem:[%s7307_s2 + $0x298] sm:$0xf0]  ;;  %v4806_v62 = vld [vmem:[%s7307_s2 + $0x38c] sm:$0xf]  ;;  %v6467_v1 = vpop.f32.mrf.mxu0  ;;  %v3544_v2 = vor.u32 %v4742_v57, %v3541_v59 }
  0xbe   : > { %2310 = vmatpush.bf16.msrb.mxu1 %v4052_v18  ;;  %v4818_v18 = vld [vmem:[%s7307_s2 + $0x3ec] sm:$0xf]  ;;  %v3397_v5 = vld [vmem:[%s7307_s2 + $0x78] sm:$0xf0] }
  0xbf   : > { %2324 = vmatpush.bf16.msrb.mxu2 %v4180_v21  ;;  %v3845_v21 = vld [vmem:[%s7307_s2 + $0x3f8] sm:$0xf0]  ;;  %v4738_v6 = vld [vmem:[%s7307_s2 + $0x16c] sm:$0xf] }
  0xc0   : > { %2338 = vmatpush.bf16.msrb.mxu3 %v4308_v26  ;;  %v3720_v26 = vor.u32 %v4786_v13, %v3717_v15  ;;  %v3848_v30 = vor.u32 %v4818_v18, %v3845_v21  ;;  %v3525_v9 = vld [vmem:[%s7307_s2 + $0x178] sm:$0xf0]  ;;  %v4770_v10 = vld [vmem:[%s7307_s2 + $0x26c] sm:$0xf] }
  0xc1   : > { %2297 = vmatpush.bf16.msrb.mxu0 %v3908_v32  ;;  %v4782_v32 = vld [vmem:[%s7307_s2 + $0x2cc] sm:$0xf]  ;;  %v3781_v13 = vld [vmem:[%s7307_s2 + $0x378] sm:$0xf0] }
  0xc2   : > { %2311 = vmatpush.bf16.msrb.mxu1 %v4036_v33  ;;  %v3701_v33 = vld [vmem:[%s7307_s2 + $0x2d8] sm:$0xf0]  ;;  %v4802_v12 = vld [vmem:[%s7307_s2 + $0x36c] sm:$0xf] }
  0xc3   : > { %2325 = vmatpush.bf16.msrb.mxu2 %v4164_v34  ;;  %v4814_v34 = vld [vmem:[%s7307_s2 + $0x3cc] sm:$0xf]  ;;  %v3381_v21 = vld [vmem:[%s7307_s2 + $0x58] sm:$0xf0] }
  0xc4   : > { %2339 = vmatpush.bf16.msrb.mxu3 %v4292_v38  ;;  %v3704_v38 = vor.u32 %v4782_v32, %v3701_v33  ;;  %v3832_v45 = vor.u32 %v4814_v34, %v3829_v35  ;;  %v4702_v18 = vld [vmem:[%s7307_s2 + $0x4c] sm:$0xf]  ;;  %v3637_v27 = vld [vmem:[%s7307_s2 + $0x258] sm:$0xf0]  ;;  %v6521_v32 = vpop.f32.mrf.mxu3 }
  0xc5   : > { %2298 = vmatpush.bf16.msrb.mxu0 %v3892_v48  ;;  %v4778_v48 = vld [vmem:[%s7307_s2 + $0x2ac] sm:$0xf]  ;;  %v3765_v29 = vld [vmem:[%s7307_s2 + $0x358] sm:$0xf0]  ;;  %v3384_v31 = vor.u32 %v4702_v18, %v3381_v21 }
  0xc6   : > { %2312 = vmatpush.bf16.msrb.mxu1 %v4020_v49  ;;  %v3685_v49 = vld [vmem:[%s7307_s2 + $0x2b8] sm:$0xf0]  ;;  %v4798_v28 = vld [vmem:[%s7307_s2 + $0x34c] sm:$0xf] }
  0xc7   : > { %2326 = vmatpush.bf16.msrb.mxu2 %v4148_v50  ;;  %v4810_v50 = vld [vmem:[%s7307_s2 + $0x3ac] sm:$0xf]  ;;  %v3493_v40 = vld [vmem:[%s7307_s2 + $0x138] sm:$0xf0] }
  0xc8   : > { %2340 = vmatpush.bf16.msrb.mxu3 %v4276_v54  ;;  %v3688_v54 = vor.u32 %v4778_v48, %v3685_v49  ;;  %v3816_v58 = vor.u32 %v4810_v50, %v3813_v51  ;;  %v4698_v35 = vld [vmem:[%s7307_s2 + $0x2c] sm:$0xf]  ;;  %v3621_v42 = vld [vmem:[%s7307_s2 + $0x238] sm:$0xf0]  ;;  %v6549_v49 = vpop.f32.mrf.mxu1 }
  0xc9   : > { %2299 = vmatpush.bf16.msrb.mxu0 %v3876_v60  ;;  %v4774_v60 = vld [vmem:[%s7307_s2 + $0x28c] sm:$0xf]  ;;  %v3749_v48 = vld [vmem:[%s7307_s2 + $0x338] sm:$0xf0] }
  0xca   : > { %2313 = vmatpush.bf16.msrb.mxu1 %v4004_v63  ;;  %v3797_v63 = vld [vmem:[%s7307_s2 + $0x398] sm:$0xf0]  ;;  %v3672_v3 = vor.u32 %v4774_v60, %v3669_v61  ;;  %v4762_v41 = vld [vmem:[%s7307_s2 + $0x22c] sm:$0xf] }
  0xcb   : > { %2327 = vmatpush.bf16.msrb.mxu2 %v4132_v0  ;;  %v3416_v0 = vor.u32 %v4710_v55, %v3413_v56  ;;  %v3800_v8 = vor.u32 %v4806_v62, %v3797_v63  ;;  %v4794_v46 = vld [vmem:[%s7307_s2 + $0x32c] sm:$0xf]  ;;  %v3477_v56 = vld [vmem:[%s7307_s2 + $0x118] sm:$0xf0] }
  0xcc   : > { %2341 = vmatpush.bf16.msrb.mxu3 %v4260_v4  ;;  %v4706_v4 = vld [vmem:[%s7307_s2 + $0x6c] sm:$0xf]  ;;  %v3605_v59 = vld [vmem:[%s7307_s2 + $0x218] sm:$0xf0] }
  0xcd   : > { %2300 = vmatpush.bf16.msrb.mxu0 %v3860_v11  ;;  %v3653_v11 = vld [vmem:[%s7307_s2 + $0x278] sm:$0xf0]  ;;  %v3400_v15 = vor.u32 %v4706_v4, %v3397_v5  ;;  %v4694_v51 = vld [vmem:[%s7307_s2 + $0xc] sm:$0xf] }
  0xce   : > { %2314 = vmatpush.bf16.msrb.mxu1 %v3988_v16  ;;  %v3528_v16 = vor.u32 %v4738_v6, %v3525_v9  ;;  %v4726_v55 = vld [vmem:[%s7307_s2 + $0x10c] sm:$0xf]  ;;  %v3733_v61 = vld [vmem:[%s7307_s2 + $0x318] sm:$0xf0] }
  0xcf   : > { %2328 = vmatpush.bf16.msrb.mxu2 %v4116_v17  ;;  %v3656_v17 = vor.u32 %v4770_v10, %v3653_v11  ;;  %v4758_v57 = vld [vmem:[%s7307_s2 + $0x20c] sm:$0xf]  ;;  %v3973_v63 = vld [vmem:[%s7307_s2 + $0x4f8] sm:$0xf0]  ;;  %v3480_v6 = vor.u32 %v4726_v55, %v3477_v56 }
  0xd0   : > { %2342 = vmatpush.bf16.msrb.mxu3 %v4244_v22  ;;  %2301 = vmatmul.bf16.vlgmr.msrb.gmra.mxu0 %v5608_v39  ;;  %v4734_v22 = vld [vmem:[%s7307_s2 + $0x14c] sm:$0xf]  ;;  %v4229_v5 = vld [vmem:[%s7307_s2 + $0x6f8] sm:$0xf0] }
  0xd1   : > { %2349 = vmatpush.bf16.msra.mxu0 %v3464_v23  ;;  %2315 = vmatmul.bf16.vlgmr.msrb.gmra.mxu1 %v5621_v44  ;;  %v3784_v23 = vor.u32 %v4802_v12, %v3781_v13  ;;  %v4790_v60 = vld [vmem:[%s7307_s2 + $0x30c] sm:$0xf]  ;;  %v4357_v10 = vld [vmem:[%s7307_s2 + $0x7f8] sm:$0xf0] }
  0xd2   : > { %2363 = vmatpush.bf16.msra.mxu1 %v3592_v25  ;;  %2329 = vmatmul.bf16.vlgmr.msrb.gmra.mxu2 %v5619_v43  ;;  %v3509_v25 = vld [vmem:[%s7307_s2 + $0x158] sm:$0xf0]  ;;  %v4850_v62 = vld [vmem:[%s7307_s2 + $0x4ec] sm:$0xf]  ;;  %v3736_v12 = vor.u32 %v4790_v60, %v3733_v61 }
  0xd3   : > { %2377 = vmatpush.bf16.msra.mxu2 %v3720_v26  ;;  %2343 = vmatmul.bf16.vlgmr.msrb.gmra.mxu3 %v5629_v47  ;;  %v4766_v26 = vld [vmem:[%s7307_s2 + $0x24c] sm:$0xf]  ;;  %v3512_v33 = vor.u32 %v4734_v22, %v3509_v25  ;;  %v3976_v13 = vor.u32 %v4850_v62, %v3973_v63  ;;  %v3957_v21 = vld [vmem:[%s7307_s2 + $0x4d8] sm:$0xf0]  ;;  %v6691_v62 = vld [vmem:[%s408_s30] sm:$0xf] }
  0xd4   : > { %2391 = vmatpush.bf16.msra.mxu3 %v3848_v30  ;;  %v6519_v30 = vpop.f32.mrf.mxu2  ;;  %v3640_v34 = vor.u32 %v4766_v26, %v3637_v27  ;;  %v4914_v4 = vld [vmem:[%s7307_s2 + $0x6ec] sm:$0xf]  ;;  %v4085_v25 = vld [vmem:[%s7307_s2 + $0x5d8] sm:$0xf0] }
  0xd5   : > { %2350 = vmatpush.bf16.msra.mxu0 %v3448_v36  ;;  %v3365_v36 = vld [vmem:[%s7307_s2 + $0x38] sm:$0xf0]  ;;  %v4946_v9 = vld [vmem:[%s7307_s2 + $0x7ec] sm:$0xf] }
  0xd6   : > { %2364 = vmatpush.bf16.msra.mxu1 %v3576_v37  ;;  %v4730_v37 = vld [vmem:[%s7307_s2 + $0x12c] sm:$0xf]  ;;  %v3368_v50 = vor.u32 %v4698_v35, %v3365_v36  ;;  %v4213_v27 = vld [vmem:[%s7307_s2 + $0x6d8] sm:$0xf0] }
  0xd7   : > { %2378 = vmatpush.bf16.msra.mxu2 %v3704_v38  ;;  %v3768_v38 = vor.u32 %v4798_v28, %v3765_v29  ;;  %v4846_v18 = vld [vmem:[%s7307_s2 + $0x4cc] sm:$0xf]  ;;  %v4053_v56 = vld [vmem:[%s7307_s2 + $0x598] sm:$0xf0] }
  0xd8   : > { %2392 = vmatpush.bf16.msra.mxu3 %v3832_v45  ;;  %v6541_v45 = vpop.f32.mrf.mxu0  ;;  %v4878_v22 = vld [vmem:[%s7307_s2 + $0x5cc] sm:$0xf]  ;;  %v4309_v61 = vld [vmem:[%s7307_s2 + $0x798] sm:$0xf0] }
  0xd9   : > { %2351 = vmatpush.bf16.msra.mxu0 %v3432_v52  ;;  %v3349_v52 = vld [vmem:[%s7307_s2 + $0x18] sm:$0xf0]  ;;  %v4910_v26 = vld [vmem:[%s7307_s2 + $0x6cc] sm:$0xf]  ;;  %v4088_v35 = vor.u32 %v4878_v22, %v4085_v25 }
  0xda   : > { %2365 = vmatpush.bf16.msra.mxu1 %v3560_v53  ;;  %v3496_v53 = vor.u32 %v4730_v37, %v3493_v40  ;;  %v4942_v29 = vld [vmem:[%s7307_s2 + $0x7cc] sm:$0xf]  ;;  %v4216_v36 = vor.u32 %v4910_v26, %v4213_v27  ;;  %v3893_v26 = vld [vmem:[%s7307_s2 + $0x458] sm:$0xf0] }
  0xdb   : > { %2379 = vmatpush.bf16.msra.mxu2 %v3688_v54  ;;  %v3624_v54 = vor.u32 %v4762_v41, %v3621_v42  ;;  %v4842_v37 = vld [vmem:[%s7307_s2 + $0x4ac] sm:$0xf]  ;;  %v4069_v42 = vld [vmem:[%s7307_s2 + $0x5b8] sm:$0xf0] }
  0xdc   : > { %2393 = vmatpush.bf16.msra.mxu3 %v3816_v58  ;;  %v3752_v58 = vor.u32 %v4794_v46, %v3749_v48  ;;  %v6599_v11 = vpop.f32.mrf.mxu2  ;;  %v4874_v40 = vld [vmem:[%s7307_s2 + $0x5ac] sm:$0xf]  ;;  %v4197_v48 = vld [vmem:[%s7307_s2 + $0x6b8] sm:$0xf0] }
  0xdd   : > { %2352 = vmatpush.bf16.msra.mxu0 %v3416_v0  ;;  %v4882_v0 = vld [vmem:[%s7307_s2 + $0x5ec] sm:$0xf] }
  0xde   : > { %2366 = vmatpush.bf16.msra.mxu1 %v3544_v2  ;;  %v3352_v2 = vor.u32 %v4694_v51, %v3349_v52  ;;  %v4906_v46 = vld [vmem:[%s7307_s2 + $0x6ac] sm:$0xf]  ;;  %v4072_v52 = vor.u32 %v4874_v40, %v4069_v42  ;;  %v686_v42 = vperm.slane %v6691_v62, 1 }
  0xdf   : > { %2380 = vmatpush.bf16.msra.mxu2 %v3672_v3  ;;  %v4101_v3 = vld [vmem:[%s7307_s2 + $0x5f8] sm:$0xf0]  ;;  %v4934_v60 = vld [vmem:[%s7307_s2 + $0x78c] sm:$0xf] }
  0xe0   : > { %2394 = vmatpush.bf16.msra.mxu3 %v3800_v8  ;;  %v3608_v8 = vor.u32 %v4758_v57, %v3605_v59  ;;  %v6621_v28 = vpop.f32.mrf.mxu0  ;;  %v4902_v57 = vld [vmem:[%s7307_s2 + $0x68c] sm:$0xf] }
  0xe1   : > { %2353 = vmatpush.bf16.msra.mxu0 %v3400_v15  ;;  %v6601_v15 = vpop.f32.mrf.mxu3  ;;  %v4830_v25 = vld [vmem:[%s7307_s2 + $0x44c] sm:$0xf] }
  0xe2   : > { %2367 = vmatpush.bf16.msra.mxu1 %v3528_v16  ;;  %v4104_v16 = vor.u32 %v4882_v0, %v4101_v3  ;;  %v4862_v27 = vld [vmem:[%s7307_s2 + $0x54c] sm:$0xf] }
  0xe3   : > { %2381 = vmatpush.bf16.msra.mxu2 %v3656_v17  ;;  %v4232_v17 = vor.u32 %v4914_v4, %v4229_v5  ;;  %v4834_v4 = vld [vmem:[%s7307_s2 + $0x46c] sm:$0xf]  ;;  %v3909_v5 = vld [vmem:[%s7307_s2 + $0x478] sm:$0xf0] }
  0xe4   : > { %2395 = vmatpush.bf16.msra.mxu3 %v3784_v23  ;;  %v4360_v23 = vor.u32 %v4946_v9, %v4357_v10  ;;  %v4312_v9 = vor.u32 %v4934_v60, %v4309_v61  ;;  %v4037_v10 = vld [vmem:[%s7307_s2 + $0x578] sm:$0xf0]  ;;  %v4822_v61 = vld [vmem:[%s7307_s2 + $0x40c] sm:$0xf] }
  0xe5   : > { %2354 = vmatpush.bf16.msra.mxu0 %v3384_v31  ;;  %v4341_v31 = vld [vmem:[%s7307_s2 + $0x7d8] sm:$0xf0] }
  0xe6   : > { %2368 = vmatpush.bf16.msra.mxu1 %v3512_v33  ;;  %v6630_v33 = vpop.f32.mrf.mxu1  ;;  %v4344_v41 = vor.u32 %v4942_v29, %v4341_v31  ;;  %v4021_v31 = vld [vmem:[%s7307_s2 + $0x558] sm:$0xf0] }
  0xe7   : > { %2382 = vmatpush.bf16.msra.mxu2 %v3640_v34  ;;  %v3960_v34 = vor.u32 %v4846_v18, %v3957_v21  ;;  %v685_v18 = vperm.slane %v6691_v62, 0  ;;  %v3912_v21 = vor.u32 %v4834_v4, %v3909_v5  ;;  %v3861_v4 = vld [vmem:[%s7307_s2 + $0x418] sm:$0xf0] }
  0xe8   : > { %2396 = vmatpush.bf16.msra.mxu3 %v3768_v38  ;;  %v3941_v38 = vld [vmem:[%s7307_s2 + $0x4b8] sm:$0xf0]  ;;  %v6693_v0 = vpop.f32.mrf.mxu0 }
  0xe9   : > { %2355 = vmatpush.bf16.msra.mxu0 %v3368_v50  ;;  %v4938_v50 = vld [vmem:[%s7307_s2 + $0x7ac] sm:$0xf]  ;;  %v3944_v51 = vor.u32 %v4842_v37, %v3941_v38  ;;  %v6683_v59 = vpop.f32.mrf.mxu3  ;;  %v4277_v37 = vld [vmem:[%s7307_s2 + $0x758] sm:$0xf0]  ;;  %v2023_v38 = vadd.f32 %v6467_v1, %v685_v18 }
  0xea   : > { %2369 = vmatpush.bf16.msra.mxu1 %v3496_v53  ;;  %v4200_v53 = vor.u32 %v4906_v46, %v4197_v48  ;;  %v2025_v46 = vadd.f32 %v6541_v45, %v685_v18  ;;  %v3877_v1 = vld [vmem:[%s7307_s2 + $0x438] sm:$0xf0] }
  0xeb   : > { %2383 = vmatpush.bf16.msra.mxu2 %v3624_v54  ;;  %v4838_v54 = vld [vmem:[%s7307_s2 + $0x48c] sm:$0xf]  ;;  %v3989_v5 = vld [vmem:[%s7307_s2 + $0x518] sm:$0xf0] }
  0xec   : > { %2397 = vmatpush.bf16.msra.mxu3 %v3752_v58  ;;  %v4181_v58 = vld [vmem:[%s7307_s2 + $0x698] sm:$0xf0] }
  0xed   : > { %2356 = vmatpush.bf16.msra.mxu0 %v3352_v2  ;;  %v4184_v3 = vor.u32 %v4902_v57, %v4181_v58  ;;  %v4261_v57 = vld [vmem:[%s7307_s2 + $0x738] sm:$0xf0]  ;;  %v2037_v58 = vadd.f32 %v6478_v7, %v2023_v38  ;;  %v4854_v7 = vld [vmem:[%s7307_s2 + $0x50c] sm:$0xf]  ;;  %v4411_v38 = vld [vmem:[%s7310_s5 + $0x60] sm:$0xf] }
  0xee   : > { %2370 = vmatpush.bf16.msra.mxu1 %v3480_v6  ;;  %v4866_v6 = vld [vmem:[%s7307_s2 + $0x56c] sm:$0xf] }
  0xef   : > { %2384 = vmatpush.bf16.msra.mxu2 %v3608_v8  ;;  %v6704_v8 = vpop.f32.mrf.mxu1  ;;  %v4040_v22 = vor.u32 %v4866_v6, %v4037_v10  ;;  %v4117_v10 = vld [vmem:[%s7307_s2 + $0x618] sm:$0xf0]  ;;  %v2051_v18 = vadd.f32 %v6519_v30, %v2037_v58  ;;  %v4958_v58 = vld [vmem:[%s7310_s5 + $0x44] sm:$0xf0] }
  0xf0   : > { %2398 = vmatpush.bf16.msra.mxu3 %v3736_v12  ;;  %2357 = vmatmul.bf16.vlgmr.msra.gmra.mxu0 %v5451_v14  ;;  %v3925_v14 = vld [vmem:[%s7307_s2 + $0x498] sm:$0xf0]  ;;  %v4898_v12 = vld [vmem:[%s7307_s2 + $0x66c] sm:$0xf] }
  0xf1   : > { %2405 = vmatpush.bf16.msrb.mxu0 %v3976_v13  ;;  %2371 = vmatmul.bf16.vlgmr.msra.gmra.mxu1 %v5461_v20  ;;  %v4870_v20 = vld [vmem:[%s7307_s2 + $0x58c] sm:$0xf]  ;;  %v3928_v63 = vor.u32 %v4838_v54, %v3925_v14  ;;  %v4165_v13 = vld [vmem:[%s7307_s2 + $0x678] sm:$0xf0]  ;;  %v6751_v48 = vpop.f32.mrf.mxu3 }
  0xf2   : > { %2419 = vmatpush.bf16.msrb.mxu1 %v4104_v16  ;;  %2385 = vmatmul.bf16.vlgmr.msra.gmra.mxu2 %v5459_v19  ;;  %v4325_v19 = vld [vmem:[%s7307_s2 + $0x7b8] sm:$0xf0]  ;;  %v4056_v2 = vor.u32 %v4870_v20, %v4053_v56  ;;  %v4930_v16 = vld [vmem:[%s7307_s2 + $0x76c] sm:$0xf] }
  0xf3   : > { %2433 = vmatpush.bf16.msrb.mxu2 %v4232_v17  ;;  %2399 = vmatmul.bf16.vlgmr.msra.gmra.mxu3 %v5465_v24  ;;  %v6672_v24 = vpop.f32.mrf.mxu2  ;;  %v4328_v55 = vor.u32 %v4938_v50, %v4325_v19  ;;  %v4293_v17 = vld [vmem:[%s7307_s2 + $0x778] sm:$0xf0]  ;;  %v4024_v50 = vor.u32 %v4862_v27, %v4021_v31  ;;  %v4890_v14 = vld [vmem:[%s7307_s2 + $0x62c] sm:$0xf]  ;;  %v3992_v27 = vor.u32 %v4854_v7, %v3989_v5 }
  0xf4   : > { %2447 = vmatpush.bf16.msrb.mxu3 %v4360_v23  ;;  %v4168_v23 = vor.u32 %v4898_v12, %v4165_v13  ;;  %v4296_v29 = vor.u32 %v4930_v16, %v4293_v17  ;;  %v4005_v54 = vld [vmem:[%s7307_s2 + $0x538] sm:$0xf0]  ;;  %v4922_v56 = vld [vmem:[%s7307_s2 + $0x72c] sm:$0xf]  ;;  %v4419_v16 = vld [vmem:[%s7310_s5 + $0x70] sm:$0xf] }
  0xf5   : > { %2406 = vmatpush.bf16.msrb.mxu0 %v3960_v34  ;;  %v4894_v34 = vld [vmem:[%s7307_s2 + $0x64c] sm:$0xf]  ;;  %v4133_v20 = vld [vmem:[%s7307_s2 + $0x638] sm:$0xf0]  ;;  %v4264_v6 = vor.u32 %v4922_v56, %v4261_v57  ;;  %v4964_v17 = vld [vmem:[%s7310_s5 + $0x74] sm:$0xf0] }
  0xf6   : > { %2420 = vmatpush.bf16.msrb.mxu1 %v4088_v35  ;;  %v4149_v35 = vld [vmem:[%s7307_s2 + $0x658] sm:$0xf0]  ;;  %v4918_v12 = vld [vmem:[%s7307_s2 + $0x70c] sm:$0xf]  ;;  %v4395_v57 = vld [vmem:[%s7310_s5 + $0x40] sm:$0xf] }
  0xf7   : > { %2434 = vmatpush.bf16.msrb.mxu2 %v4216_v36  ;;  %v4926_v36 = vld [vmem:[%s7307_s2 + $0x74c] sm:$0xf]  ;;  %v4152_v19 = vor.u32 %v4894_v34, %v4149_v35  ;;  %v4245_v13 = vld [vmem:[%s7307_s2 + $0x718] sm:$0xf0]  ;;  %v4420_v35 = vor.u32 %v4964_v17, %v4419_v16 }
  0xf8   : > { %2448 = vmatpush.bf16.msrb.mxu3 %v4344_v41  ;;  %v3896_v41 = vor.u32 %v4830_v25, %v3893_v26  ;;  %v4280_v45 = vor.u32 %v4926_v36, %v4277_v37  ;;  %v4248_v34 = vor.u32 %v4918_v12, %v4245_v13 }
  0xf9   : > { %2407 = vmatpush.bf16.msrb.mxu0 %v3944_v51  ;;  %v2134_v51 = vpop.f32.mrf.mxu0  ;;  %v2176_v31 = vpop.f32.mrf.mxu3 }
  0xfa   : > { %2421 = vmatpush.bf16.msrb.mxu1 %v4072_v52  ;;  %v4826_v52 = vld [vmem:[%s7307_s2 + $0x42c] sm:$0xf] }
  0xfb   : > { %2435 = vmatpush.bf16.msrb.mxu2 %v4200_v53  ;;  %v6747_v40 = vpop.f32.mrf.mxu2  ;;  %v4858_v53 = vld [vmem:[%s7307_s2 + $0x52c] sm:$0xf]  ;;  %v3880_v60 = vor.u32 %v4826_v52, %v3877_v1 }
  0xfc   : > { %2449 = vmatpush.bf16.msrb.mxu3 %v4328_v55  ;;  %v2148_v55 = vpop.f32.mrf.mxu1 }
  0xfd   : > { %2408 = vmatpush.bf16.msrb.mxu0 %v3928_v63  ;;  %v2039_v63 = vadd.f32 %v6549_v49, %v2025_v46  ;;  %v2135_v49 = vadd.f32 %v2134_v51, %v686_v42  ;;  %v4475_v46 = vld [vmem:[%s7310_s5 + $0xe0] sm:$0xf] }
  0xfe   : > { %2422 = vmatpush.bf16.msrb.mxu1 %v4056_v2  ;;  %v4008_v2 = vor.u32 %v4858_v53, %v4005_v54 }
  0xff   : > { %2436 = vmatpush.bf16.msrb.mxu2 %v4184_v3  ;;  %v4136_v3 = vor.u32 %v4890_v14, %v4133_v20  ;;  %v2053_v26 = vadd.f32 %v6599_v11, %v2039_v63  ;;  %v2149_v30 = vadd.f32 %v2148_v55, %v2135_v49  ;;  %v2065_v11 = vadd.f32 %v6521_v32, %v2051_v18  ;;  %v4387_v49 = vld [vmem:[%s7310_s5 + $0x30] sm:$0xf] }
 0x100   : > { %2450 = vmatpush.bf16.msrb.mxu3 %v4312_v9  ;;  %v4886_v9 = vld [vmem:[%s7307_s2 + $0x60c] sm:$0xf] }
 0x101   : > { %2409 = vmatpush.bf16.msrb.mxu0 %v3912_v21  ;;  %v3864_v21 = vor.u32 %v4822_v61, %v3861_v4  ;;  %v2136_v37 = vpop.f32.mrf.mxu0  ;;  %v2067_v51 = vadd.f32 %v6601_v15, %v2053_v26  ;;  %v4960_v15 = vld [vmem:[%s7310_s5 + $0x54] sm:$0xf0]  ;;  %v2079_v54 = vadd.f32 %v6621_v28, %v2065_v11  ;;  %v4435_v11 = vld [vmem:[%s7310_s5 + $0x90] sm:$0xf] }
 0x102   : > { %2423 = vmatpush.bf16.msrb.mxu1 %v4040_v22  ;;  %v4483_v22 = vld [vmem:[%s7310_s5 + $0xf0] sm:$0xf]  ;;  %v2137_v32 = vadd.f32 %v2136_v37, %v686_v42  ;;  %v4976_v42 = vld [vmem:[%s7310_s5 + $0xd4] sm:$0xf0] }
 0x103   : > { %2437 = vmatpush.bf16.msrb.mxu2 %v4168_v23  ;;  %v4980_v23 = vld [vmem:[%s7310_s5 + $0xf4] sm:$0xf0]  ;;  %v2162_v25 = vpop.f32.mrf.mxu2  ;;  %v2081_v14 = vadd.f32 %v6693_v0, %v2067_v51  ;;  %v2093_v0 = vadd.f32 %v6630_v33, %v2079_v54  ;;  %v4547_v51 = vld [vmem:[%s7310_s5 + $0x170] sm:$0xf]  ;;  %v4950_v54 = vld [vmem:[%s7310_s5 + $0x4] sm:$0xf0] }
 0x104   : > { %2451 = vmatpush.bf16.msrb.mxu3 %v4296_v29  ;;  %v4120_v29 = vor.u32 %v4886_v9, %v4117_v10  ;;  %v4484_v36 = vor.u32 %v4980_v23, %v4483_v22  ;;  %v2163_v52 = vadd.f32 %v2162_v25, %v2149_v30  ;;  %v4451_v9 = vld [vmem:[%s7310_s5 + $0xb0] sm:$0xf]  ;;  %v6884_v10 = vld [vmem:[%s7308_s3] sm:$0xf]  ;;  %v4954_v22 = vld [vmem:[%s7310_s5 + $0x24] sm:$0xf0] }
 0x105   : > { %2410 = vmatpush.bf16.msrb.mxu0 %v3896_v41  ;;  %v4962_v41 = vld [vmem:[%s7310_s5 + $0x64] sm:$0xf0]  ;;  %v2095_v61 = vadd.f32 %v6704_v8, %v2081_v14  ;;  %v2107_v8 = vadd.f32 %v6672_v24, %v2093_v0  ;;  %v6889_v24 = vld [vmem:[%s7309_s4] sm:$0xf]  ;;  %v2463_v25 = vperm.slane %v6884_v10, 0 }
 0x106   : > { %2424 = vmatpush.bf16.msrb.mxu1 %v4024_v50  ;;  %v4978_v50 = vld [vmem:[%s7310_s5 + $0xe4] sm:$0xf0]  ;;  %v4412_v1 = vor.u32 %v4962_v41, %v4411_v38  ;;  %v2177_v20 = vadd.f32 %v2176_v31, %v2163_v52  ;;  %v4371_v38 = vld [vmem:[%s7310_s5 + $0x10] sm:$0xf]  ;;  %v4952_v41 = vld [vmem:[%s7310_s5 + $0x14] sm:$0xf0] }
 0x107   : > { %2438 = vmatpush.bf16.msrb.mxu2 %v4152_v19  ;;  %v2150_v19 = vpop.f32.mrf.mxu1  ;;  %v4476_v53 = vor.u32 %v4978_v50, %v4475_v46  ;;  %v2109_v7 = vadd.f32 %v6747_v40, %v2095_v61  ;;  %v4972_v40 = vld [vmem:[%s7310_s5 + $0xb4] sm:$0xf0]  ;;  %v2121_v23 = vadd.f32 %v6683_v59, %v2107_v8 }
 0x108   : > { %2452 = vmatpush.bf16.msrb.mxu3 %v4280_v45  ;;  %v4403_v45 = vld [vmem:[%s7310_s5 + $0x50] sm:$0xf]  ;;  %v4452_v18 = vor.u32 %v4972_v40, %v4451_v9  ;;  %v4996_v52 = vld [vmem:[%s7310_s5 + $0x174] sm:$0xf0]  ;;  %v4413_v9 = vld [vmem:[%s7310_s5 + $0x68] sm:$0xf0] }
 0x109   : > { %2411 = vmatpush.bf16.msrb.mxu0 %v3880_v60  ;;  %v4404_v55 = vor.u32 %v4960_v15, %v4403_v45  ;;  %v4974_v60 = vld [vmem:[%s7310_s5 + $0xc4] sm:$0xf0]  ;;  %v2123_v16 = vadd.f32 %v6751_v48, %v2109_v7  ;;  %v4443_v48 = vld [vmem:[%s7310_s5 + $0xa0] sm:$0xf]  ;;  %v2471_v46 = vmul.f32 %v2463_v25, %v2121_v23  ;;  %v4372_v45 = vor.u32 %v4952_v41, %v4371_v38  ;;  %v4531_v40 = vld [vmem:[%s7310_s5 + $0x150] sm:$0xf] }
 0x10a   : > { %2425 = vmatpush.bf16.msrb.mxu1 %v4008_v2  ;;  %v4363_v15 = vld [vmem:[%s7310_s5] sm:$0xf]  ;;  %v4515_v38 = vld [vmem:[%s7310_s5 + $0x130] sm:$0xf]  ;;  %v4988_v41 = vld [vmem:[%s7310_s5 + $0x134] sm:$0xf0] }
 0x10b   : > { %2439 = vmatpush.bf16.msrb.mxu2 %v4136_v3  ;;  %v2164_v28 = vpop.f32.mrf.mxu2  ;;  %v4396_v3 = vor.u32 %v4958_v58, %v4395_v57  ;;  %v4539_v57 = vld [vmem:[%s7310_s5 + $0x160] sm:$0xf]  ;;  %v4994_v58 = vld [vmem:[%s7310_s5 + $0x164] sm:$0xf0] }
 0x10c   : > { %2453 = vmatpush.bf16.msrb.mxu3 %v4264_v6  ;;  %v4956_v6 = vld [vmem:[%s7310_s5 + $0x34] sm:$0xf0] }
 0x10d   : > { %2412 = vmatpush.bf16.msrb.mxu0 %v3864_v21  ;;  %v2190_v63 = vpop.f32.mrf.mxu0  ;;  %v4388_v13 = vor.u32 %v4956_v6, %v4387_v49  ;;  %v4379_v21 = vld [vmem:[%s7310_s5 + $0x20] sm:$0xf]  ;;  %v4961_v6 = vld [vmem:[%s7310_s5 + $0x64] sm:$0xf] }
 0x10e   : > { %2426 = vmatpush.bf16.msrb.mxu1 %v3992_v27  ;;  %v2191_v2 = vadd.f32 %v2190_v63, %v2177_v20  ;;  %v4970_v27 = vld [vmem:[%s7310_s5 + $0xa4] sm:$0xf0]  ;;  %v4427_v20 = vld [vmem:[%s7310_s5 + $0x80] sm:$0xf]  ;;  %v4979_v63 = vld [vmem:[%s7310_s5 + $0xf4] sm:$0xf] }
 0x10f   : > { %2440 = vmatpush.bf16.msrb.mxu2 %v4120_v29  ;;  %v2204_v4 = vpop.f32.mrf.mxu1  ;;  %v4444_v37 = vor.u32 %v4970_v27, %v4443_v48  ;;  %v4959_v48 = vld [vmem:[%s7310_s5 + $0x54] sm:$0xf]  ;;  %v4523_v27 = vld [vmem:[%s7310_s5 + $0x140] sm:$0xf] }
 0x110   : > { %2454 = vmatpush.bf16.msrb.mxu3 %v4248_v34  ;;  %2413 = vmatmul.bf16.vlgmr.msrb.gmra.mxu0 %v5608_v39  ;;  %v4467_v39 = vld [vmem:[%s7310_s5 + $0xd0] sm:$0xf]  ;;  %v2205_v12 = vadd.f32 %v2204_v4, %v2191_v2  ;;  %v2481_v34 = vperm.slane %v6889_v24, 0  ;;  %v4485_v2 = vld [vmem:[%s7310_s5 + $0xf8] sm:$0xf0]  ;;  %v4364_v4 = vor.u32 %v4950_v54, %v4363_v15 }
 0x111   : > { %2893 = vmatpush.bf16.msra.mxu0 %v4420_v35  ;;  %2427 = vmatmul.bf16.vlgmr.msrb.gmra.mxu1 %v5621_v44  ;;  %v2151_v44 = vadd.f32 %v2150_v19, %v2137_v32  ;;  %v4468_v56 = vor.u32 %v4976_v42, %v4467_v39  ;;  %v4380_v35 = vor.u32 %v4954_v22, %v4379_v21  ;;  %v4968_v19 = vld [vmem:[%s7310_s5 + $0x94] sm:$0xf0]  ;;  %v2464_v32 = vperm.slane %v6884_v10, 1  ;;  %v4477_v21 = vld [vmem:[%s7310_s5 + $0xe8] sm:$0xf0] }
 0x112   : > { %2907 = vmatpush.bf16.msra.mxu1 %v4484_v36  ;;  %2441 = vmatmul.bf16.vlgmr.msrb.gmra.mxu2 %v5619_v43  ;;  %v2178_v43 = vpop.f32.mrf.mxu3  ;;  %v2475_v36 = vmul.f32 %v2463_v25, %v2123_v16  ;;  %v4436_v14 = vor.u32 %v4968_v19, %v4435_v11  ;;  %v4488_v8 = vor.u32 %v4979_v63, %v4485_v2  ;;  %v4957_v19 = vld [vmem:[%s7310_s5 + $0x44] sm:$0xf]  ;;  %v4389_v54 = vld [vmem:[%s7310_s5 + $0x38] sm:$0xf0]  ;;  %v4951_v63 = vld [vmem:[%s7310_s5 + $0x14] sm:$0xf] }
 0x113   : > { %2455 = vmatmul.bf16.vlgmr.msrb.gmra.mxu3 %v5629_v47  ;;  %v4459_v47 = vld [vmem:[%s7310_s5 + $0xc0] sm:$0xf]  ;;  %v2165_v5 = vadd.f32 %v2164_v28, %v2151_v44  ;;  %v4963_v28 = vld [vmem:[%s7310_s5 + $0x74] sm:$0xf]  ;;  %v2489_v44 = vadd.f32 %v2481_v34, %v2471_v46  ;;  %v4373_v2 = vld [vmem:[%s7310_s5 + $0x18] sm:$0xf0] }
 0x114   : > { %v4460_v33 = vor.u32 %v4974_v60, %v4459_v47  ;;  %v2493_v39 = vadd.f32 %v2481_v34, %v2475_v36  ;;  %v2482_v47 = vperm.slane %v6889_v24, 1  ;;  %v4975_v34 = vld [vmem:[%s7310_s5 + $0xd4] sm:$0xf] }
 0x115   : > { %2894 = vmatpush.bf16.msra.mxu0 %v4412_v1  ;;  %v2179_v17 = vadd.f32 %v2178_v43, %v2165_v5  ;;  %v2218_v26 = vpop.f32.mrf.mxu2  ;;  %v2192_v31 = vpop.f32.mrf.mxu0  ;;  %v4421_v43 = vld [vmem:[%s7310_s5 + $0x78] sm:$0xf0] }
 0x116   : > { %2908 = vmatpush.bf16.msra.mxu1 %v4476_v53  ;;  %v2219_v29 = vadd.f32 %v2218_v26, %v2205_v12  ;;  %v4548_v53 = vor.u32 %v4996_v52, %v4547_v51  ;;  %v2501_v7 = vmax.f32 %v2493_v39, 0.0  ;;  %v4424_v49 = vor.u32 %v4963_v28, %v4421_v43  ;;  %v4992_v12 = vld [vmem:[%s7310_s5 + $0x154] sm:$0xf0]  ;;  %v4397_v51 = vld [vmem:[%s7310_s5 + $0x48] sm:$0xf0] }
 0x117   : > { %v2193_v59 = vadd.f32 %v2192_v31, %v2179_v17  ;;  %v2206_v50 = vpop.f32.mrf.mxu1  ;;  %v4532_v22 = vor.u32 %v4992_v12, %v4531_v40  ;;  %v4416_v26 = vor.u32 %v4961_v6, %v4413_v9  ;;  %v4516_v52 = vor.u32 %v4988_v41, %v4515_v38  ;;  %v4507_v39 = vld [vmem:[%s7310_s5 + $0x120] sm:$0xf]  ;;  %v4381_v43 = vld [vmem:[%s7310_s5 + $0x28] sm:$0xf0]  ;;  %v4549_v9 = vld [vmem:[%s7310_s5 + $0x178] sm:$0xf0] }
 0x118   : > { %2921 = vmatpush.bf16.msra.mxu2 %v4548_v53  ;;  %v4400_v53 = vor.u32 %v4957_v19, %v4397_v51  ;;  %v687_v40 = vperm.slane %v6691_v62, 2  ;;  %v4525_v19 = vld [vmem:[%s7310_s5 + $0x148] sm:$0xf0] }
 0x119   : > { %2895 = vmatpush.bf16.msra.mxu0 %v4404_v55  ;;  %v2207_v42 = vadd.f32 %v2206_v50, %v2193_v59  ;;  %v4966_v55 = vld [vmem:[%s7310_s5 + $0x84] sm:$0xf0] }
 0x11a   : > { %2909 = vmatpush.bf16.msra.mxu1 %v4468_v56  ;;  %v2232_v30 = vpop.f32.mrf.mxu3 }
 0x11b   : > { %v2233_v1 = vadd.f32 %v2232_v30, %v2219_v29  ;;  %v4990_v29 = vld [vmem:[%s7310_s5 + $0x144] sm:$0xf0]  ;;  %v4405_v30 = vld [vmem:[%s7310_s5 + $0x58] sm:$0xf0] }
 0x11c   : > { %v4524_v36 = vor.u32 %v4990_v29, %v4523_v27  ;;  %v4408_v46 = vor.u32 %v4959_v48, %v4405_v30  ;;  %v4541_v48 = vld [vmem:[%s7310_s5 + $0x168] sm:$0xf0] }
 0x11d   : > { %2896 = vmatpush.bf16.msra.mxu0 %v4396_v3  ;;  %v2220_v56 = vpop.f32.mrf.mxu2  ;;  %v2472_v0 = vmul.f32 %v2464_v32, %v2233_v1  ;;  %v4540_v3 = vor.u32 %v4994_v58, %v4539_v57  ;;  %v4973_v1 = vld [vmem:[%s7310_s5 + $0xc4] sm:$0xf]  ;;  %v4499_v57 = vld [vmem:[%s7310_s5 + $0x110] sm:$0xf]  ;;  %v4984_v58 = vld [vmem:[%s7310_s5 + $0x114] sm:$0xf0] }
 0x11e   : > { %2910 = vmatpush.bf16.msra.mxu1 %v4460_v33  ;;  %v2221_v60 = vadd.f32 %v2220_v56, %v2207_v42  ;;  %v4428_v33 = vor.u32 %v4966_v55, %v4427_v20  ;;  %v4986_v42 = vld [vmem:[%s7310_s5 + $0x124] sm:$0xf0]  ;;  %v4453_v20 = vld [vmem:[%s7310_s5 + $0xb8] sm:$0xf0] }
 0x11f   : > { %2922 = vmatpush.bf16.msra.mxu2 %v4540_v3  ;;  %v2490_v16 = vadd.f32 %v2482_v47, %v2472_v0  ;;  %v4508_v55 = vor.u32 %v4986_v42, %v4507_v39  ;;  %v4969_v0 = vld [vmem:[%s7310_s5 + $0xa4] sm:$0xf] }
 0x121   : > { %2897 = vmatpush.bf16.msra.mxu0 %v4388_v13  ;;  %v2497_v13 = vmax.f32 %v2489_v44, 0.0  ;;  %v2498_v59 = vmax.f32 %v2490_v16, 0.0  ;;  %v4953_v44 = vld [vmem:[%s7310_s5 + $0x24] sm:$0xf]  ;;  %v4376_v16 = vor.u32 %v4951_v63, %v4373_v2  ;;  %v5012_v63 = vld [vmem:[%s7310_s5 + $0x1f4] sm:$0xf0] }
 0x122   : > { %2911 = vmatpush.bf16.msra.mxu1 %v4452_v18  ;;  %v2234_v61 = vpop.f32.mrf.mxu3  ;;  %v4977_v18 = vld [vmem:[%s7310_s5 + $0xe4] sm:$0xf] }
 0x123   : > { %v2235_v5 = vadd.f32 %v2234_v61, %v2221_v60  ;;  %v6975_v23 = vpack.c.bf16 %v2501_v7, %v2497_v13  ;;  %v4480_v31 = vor.u32 %v4977_v18, %v4477_v21  ;;  %2923 = vmatpush.bf16.msra.mxu2 %v4532_v22  ;;  %v4500_v60 = vor.u32 %v4984_v58, %v4499_v57  ;;  %v4491_v7 = vld [vmem:[%s7310_s5 + $0x100] sm:$0xf]  ;;  %v4949_v18 = vld [vmem:[%s7310_s5 + $0x4] sm:$0xf]  ;;  %v4365_v21 = vld [vmem:[%s7310_s5 + $0x8] sm:$0xf0] }
 0x124   : > { %v4384_v61 = vor.u32 %v4953_v44, %v4381_v43  ;;  %v4965_v22 = vld [vmem:[%s7310_s5 + $0x84] sm:$0xf]  ;;  %v4983_v44 = vld [vmem:[%s7310_s5 + $0x114] sm:$0xf] }
 0x125   : > { %2898 = vmatpush.bf16.msra.mxu0 %v4380_v35  ;;  %v2476_v17 = vmul.f32 %v2464_v32, %v2235_v5  ;;  %v4469_v35 = vld [vmem:[%s7310_s5 + $0xd8] sm:$0xf0]  ;;  %v4461_v32 = vld [vmem:[%s7310_s5 + $0xc8] sm:$0xf0]  ;;  %v4982_v5 = vld [vmem:[%s7310_s5 + $0x104] sm:$0xf0] }
 0x126   : > { %2912 = vmatpush.bf16.msra.mxu1 %v4444_v37  ;;  %v4472_v50 = vor.u32 %v4975_v34, %v4469_v35  ;;  %v4464_v15 = vor.u32 %v4973_v1, %v4461_v32  ;;  %v4492_v6 = vor.u32 %v4982_v5, %v4491_v7  ;;  %v4987_v32 = vld [vmem:[%s7310_s5 + $0x134] sm:$0xf] }
 0x127   : > { %v2494_v25 = vadd.f32 %v2482_v47, %v2476_v17  ;;  %2924 = vmatpush.bf16.msra.mxu2 %v4524_v36  ;;  %v4445_v47 = vld [vmem:[%s7310_s5 + $0xa8] sm:$0xf0]  ;;  %v4991_v36 = vld [vmem:[%s7310_s5 + $0x154] sm:$0xf] }
 0x128   : > { %v4448_v3 = vor.u32 %v4969_v0, %v4445_v47  ;;  %v4981_v0 = vld [vmem:[%s7310_s5 + $0x104] sm:$0xf]  ;;  %v4493_v47 = vld [vmem:[%s7310_s5 + $0x108] sm:$0xf0] }
 0x129   : > { %2899 = vmatpush.bf16.msra.mxu0 %v4372_v45  ;;  %v2502_v37 = vmax.f32 %v2494_v25, 0.0  ;;  %v4955_v45 = vld [vmem:[%s7310_s5 + $0x34] sm:$0xf]  ;;  %v4429_v25 = vld [vmem:[%s7310_s5 + $0x88] sm:$0xf0] }
 0x12a   : > { %2913 = vmatpush.bf16.msra.mxu1 %v4436_v14  ;;  %v4971_v14 = vld [vmem:[%s7310_s5 + $0xb4] sm:$0xf]  ;;  %v4392_v28 = vor.u32 %v4955_v45, %v4389_v54  ;;  %v4432_v30 = vor.u32 %v4965_v22, %v4429_v25 }
 0x12b   : > { %v7002_v11 = vpack.c.bf16 %v2502_v37, %v2498_v59  ;;  %2925 = vmatpush.bf16.msra.mxu2 %v4516_v52  ;;  %v4456_v56 = vor.u32 %v4971_v14, %v4453_v20  ;;  %v4533_v59 = vld [vmem:[%s7310_s5 + $0x158] sm:$0xf0] }
 0x12c   : > { %v4536_v38 = vor.u32 %v4991_v36, %v4533_v59  ;;  %v4579_v59 = vld [vmem:[%s7310_s5 + $0x1b0] sm:$0xf] }
 0x12d   : > { %2900 = vmatpush.bf16.msra.mxu0 %v4364_v4  ;;  %v4967_v4 = vld [vmem:[%s7310_s5 + $0x94] sm:$0xf] }
 0x12e   : > { %2914 = vmatpush.bf16.msra.mxu1 %v4428_v33  ;;  %v2246_v33 = vpop.f32.mrf.mxu0  ;;  %v2260_v12 = vpop.f32.mrf.mxu1 }
 0x12f   : > { %2926 = vmatpush.bf16.msra.mxu2 %v4508_v55  ;;  %v2247_v27 = vadd.f32 %v2246_v33, %v687_v40  ;;  %v4496_v33 = vor.u32 %v4981_v0, %v4493_v47 }
 0x130   : > { %2901 = vmatmul.bf16.vlgmr.msra.gmra.mxu0 %v6975_v23 }
 0x131   : > { %2949 = vmatpush.bf16.msrb.mxu0 %v4424_v49  ;;  %2915 = vmatmul.bf16.vlgmr.msra.gmra.mxu1 %v7002_v11  ;;  %v4437_v49 = vld [vmem:[%s7310_s5 + $0x98] sm:$0xf0]  ;;  %v2261_v37 = vadd.f32 %v2260_v12, %v2247_v27  ;;  %v5010_v12 = vld [vmem:[%s7310_s5 + $0x1e4] sm:$0xf0] }
 0x132   : > { %2963 = vmatpush.bf16.msrb.mxu1 %v4488_v8  ;;  %v4995_v8 = vld [vmem:[%s7310_s5 + $0x174] sm:$0xf]  ;;  %v4440_v17 = vor.u32 %v4967_v4, %v4437_v49 }
 0x133   : > { %2927 = vmatpush.bf16.msra.mxu2 %v4500_v60  ;;  %v4552_v13 = vor.u32 %v4995_v8, %v4549_v9  ;;  %v4611_v60 = vld [vmem:[%s7310_s5 + $0x1f0] sm:$0xf]  ;;  %v2465_v9 = vperm.slane %v6884_v10, 2 }
 0x135   : > { %2950 = vmatpush.bf16.msrb.mxu0 %v4416_v26  ;;  %v4993_v26 = vld [vmem:[%s7310_s5 + $0x164] sm:$0xf]  ;;  %v2274_v34 = vpop.f32.mrf.mxu2 }
 0x136   : > { %2964 = vmatpush.bf16.msrb.mxu1 %v4480_v31  ;;  %v4544_v29 = vor.u32 %v4993_v26, %v4541_v48  ;;  %v4368_v31 = vor.u32 %v4949_v18, %v4365_v21  ;;  %v2288_v35 = vpop.f32.mrf.mxu3  ;;  %v2248_v41 = vpop.f32.mrf.mxu0  ;;  %v2275_v51 = vadd.f32 %v2274_v34, %v2261_v37  ;;  %v2483_v26 = vperm.slane %v6889_v24, 2  ;;  %v5004_v37 = vld [vmem:[%s7310_s5 + $0x1b4] sm:$0xf0] }
 0x137   : > { %2928 = vmatpush.bf16.msra.mxu2 %v4492_v6  ;;  %v2249_v1 = vadd.f32 %v2248_v41, %v687_v40  ;;  %v4603_v40 = vld [vmem:[%s7310_s5 + $0x1e0] sm:$0xf]  ;;  %v4580_v41 = vor.u32 %v5004_v37, %v4579_v59 }
 0x138   : > { %v2289_v45 = vadd.f32 %v2288_v35, %v2275_v51  ;;  %v4571_v51 = vld [vmem:[%s7310_s5 + $0x1a0] sm:$0xf] }
 0x139   : > { %2951 = vmatpush.bf16.msrb.mxu0 %v4408_v46  ;;  %v2262_v46 = vpop.f32.mrf.mxu1 }
 0x13a   : > { %2965 = vmatpush.bf16.msrb.mxu1 %v4472_v50  ;;  %v4989_v50 = vld [vmem:[%s7310_s5 + $0x144] sm:$0xf]  ;;  %v2263_v39 = vadd.f32 %v2262_v46, %v2249_v1 }
 0x13b   : > { %2977 = vmatpush.bf16.msrb.mxu2 %v4552_v13  ;;  %v4528_v52 = vor.u32 %v4989_v50, %v4525_v19  ;;  %v4604_v13 = vor.u32 %v5010_v12, %v4603_v40 }
 0x13d   : > { %2952 = vmatpush.bf16.msrb.mxu0 %v4400_v53  ;;  %v4517_v53 = vld [vmem:[%s7310_s5 + $0x138] sm:$0xf0] }
 0x13e   : > { %2966 = vmatpush.bf16.msrb.mxu1 %v4464_v15  ;;  %v2276_v15 = vpop.f32.mrf.mxu2  ;;  %v4520_v54 = vor.u32 %v4987_v32, %v4517_v53  ;;  %v2290_v42 = vpop.f32.mrf.mxu3  ;;  %v4563_v32 = vld [vmem:[%s7310_s5 + $0x190] sm:$0xf]  ;;  %v5000_v53 = vld [vmem:[%s7310_s5 + $0x194] sm:$0xf0] }
 0x13f   : > { %2978 = vmatpush.bf16.msrb.mxu2 %v4544_v29  ;;  %v2277_v43 = vadd.f32 %v2276_v15, %v2263_v39  ;;  %v4587_v29 = vld [vmem:[%s7310_s5 + $0x1c0] sm:$0xf]  ;;  %v4613_v39 = vld [vmem:[%s7310_s5 + $0x1f8] sm:$0xf0] }
 0x140   : > { %v4555_v15 = vld [vmem:[%s7310_s5 + $0x180] sm:$0xf] }
 0x141   : > { %2953 = vmatpush.bf16.msrb.mxu0 %v4392_v28 }
 0x142   : > { %2967 = vmatpush.bf16.msrb.mxu1 %v4456_v56  ;;  %v4501_v56 = vld [vmem:[%s7310_s5 + $0x118] sm:$0xf0] }
 0x143   : > { %2979 = vmatpush.bf16.msrb.mxu2 %v4536_v38  ;;  %v4504_v58 = vor.u32 %v4983_v44, %v4501_v56 }
 0x145   : > { %2954 = vmatpush.bf16.msrb.mxu0 %v4384_v61  ;;  %v2291_v61 = vadd.f32 %v2290_v42, %v2277_v43  ;;  %v5007_v43 = vld [vmem:[%s7310_s5 + $0x1d4] sm:$0xf] }
 0x146   : > { %2968 = vmatpush.bf16.msrb.mxu1 %v4448_v3  ;;  %v4612_v3 = vor.u32 %v5012_v63, %v4611_v60 }
 0x147   : > { %2980 = vmatpush.bf16.msrb.mxu2 %v4528_v52  ;;  %v5002_v52 = vld [vmem:[%s7310_s5 + $0x1a4] sm:$0xf0] }
 0x148   : > { %2935 = vmatpush.bf16.msra.mxu3 %v4612_v3  ;;  %v4572_v1 = vor.u32 %v5002_v52, %v4571_v51 }
 0x149   : > { %2955 = vmatpush.bf16.msrb.mxu0 %v4376_v16  ;;  %v4595_v16 = vld [vmem:[%s7310_s5 + $0x1d0] sm:$0xf] }
 0x14a   : > { %2969 = vmatpush.bf16.msrb.mxu1 %v4440_v17  ;;  %v5008_v17 = vld [vmem:[%s7310_s5 + $0x1d4] sm:$0xf0] }
 0x14b   : > { %2981 = vmatpush.bf16.msrb.mxu2 %v4520_v54  ;;  %v4596_v22 = vor.u32 %v5008_v17, %v4595_v16  ;;  %v4998_v54 = vld [vmem:[%s7310_s5 + $0x184] sm:$0xf0] }
 0x14c   : > { %2936 = vmatpush.bf16.msra.mxu3 %v4604_v13 }
 0x14d   : > { %2956 = vmatpush.bf16.msrb.mxu0 %v4368_v31  ;;  %v2302_v14 = vpop.f32.mrf.mxu0  ;;  %v5006_v31 = vld [vmem:[%s7310_s5 + $0x1c4] sm:$0xf0] }
 0x14e   : > { %2970 = vmatpush.bf16.msrb.mxu1 %v4432_v30  ;;  %v2303_v55 = vadd.f32 %v2302_v14, %v2289_v45  ;;  %v2316_v28 = vpop.f32.mrf.mxu1  ;;  %v4588_v34 = vor.u32 %v5006_v31, %v4587_v29  ;;  %v4564_v45 = vor.u32 %v5000_v53, %v4563_v32  ;;  %v4997_v31 = vld [vmem:[%s7310_s5 + $0x184] sm:$0xf]  ;;  %v2484_v32 = vperm.slane %v6889_v24, 3  ;;  %v5019_v24 = vld [vmem:[%s7313_s8 + $0x30] sm:$0xff] }
 0x150   : > { %2957 = vmatmul.bf16.vlgmr.msrb.gmra.mxu0 %v6975_v23  ;;  %v4985_v23 = vld [vmem:[%s7310_s5 + $0x124] sm:$0xf]  ;;  %v2317_v57 = vadd.f32 %v2316_v28, %v2303_v55  ;;  %2937 = vmatpush.bf16.msra.mxu3 %v4596_v22  ;;  %v4605_v55 = vld [vmem:[%s7310_s5 + $0x1e8] sm:$0xf0]  ;;  %v688_v28 = vperm.slane %v6691_v62, 3 }
 0x151   : > { %2971 = vmatmul.bf16.vlgmr.msrb.gmra.mxu1 %v7002_v11  ;;  %v4509_v11 = vld [vmem:[%s7310_s5 + $0x128] sm:$0xf0]  ;;  %v5005_v62 = vld [vmem:[%s7310_s5 + $0x1c4] sm:$0xf] }
 0x152   : > { %v4512_v20 = vor.u32 %v4985_v23, %v4509_v11  ;;  %v4556_v23 = vor.u32 %v4998_v54, %v4555_v15  ;;  %v5011_v11 = vld [vmem:[%s7310_s5 + $0x1f4] sm:$0xf] }
 0x153   : > { %v4616_v42 = vor.u32 %v5011_v11, %v4613_v39 }
 0x154   : > { %2982 = vmatpush.bf16.msrb.mxu2 %v4512_v20  ;;  %2938 = vmatpush.bf16.msra.mxu3 %v4588_v34  ;;  %v5009_v20 = vld [vmem:[%s7310_s5 + $0x1e4] sm:$0xf] }
 0x155   : > { %v2330_v2 = vpop.f32.mrf.mxu2  ;;  %v2304_v7 = vpop.f32.mrf.mxu0  ;;  %v4608_v44 = vor.u32 %v5009_v20, %v4605_v55  ;;  %v5018_v20 = vld [vmem:[%s7313_s8 + $0x28] sm:$0xff]  ;;  %v5017_v55 = vld [vmem:[%s7313_s8 + $0x20] sm:$0xff] }
 0x156   : > { %v2331_v4 = vadd.f32 %v2330_v2, %v2317_v57  ;;  %v2344_v5 = vpop.f32.mrf.mxu3  ;;  %v2305_v49 = vadd.f32 %v2304_v7, %v2291_v61  ;;  %v2318_v6 = vpop.f32.mrf.mxu1  ;;  %v4597_v57 = vld [vmem:[%s7310_s5 + $0x1d8] sm:$0xf0]  ;;  %v4589_v61 = vld [vmem:[%s7310_s5 + $0x1c8] sm:$0xf0]  ;;  %v5003_v7 = vld [vmem:[%s7310_s5 + $0x1b4] sm:$0xf] }
 0x157   : > { %v4600_v0 = vor.u32 %v5007_v43, %v4597_v57  ;;  %v4592_v3 = vor.u32 %v5005_v62, %v4589_v61  ;;  %v5027_v43 = vld [vmem:[%s7313_s8 + $0x70] sm:$0xff]  ;;  %v5014_v57 = vld [vmem:[%s7313_s8 + $0x8] sm:$0xff] }
 0x158   : > { %2983 = vmatpush.bf16.msrb.mxu2 %v4504_v58  ;;  %v2345_v8 = vadd.f32 %v2344_v5, %v2331_v4  ;;  %v2319_v18 = vadd.f32 %v2318_v6, %v2305_v49  ;;  %2939 = vmatpush.bf16.msra.mxu3 %v4580_v41  ;;  %v4581_v5 = vld [vmem:[%s7310_s5 + $0x1b8] sm:$0xf0] }
 0x159   : > { %v4584_v6 = vor.u32 %v5003_v7, %v4581_v5 }
 0x15a   : > { %v2473_v25 = vmul.f32 %v2465_v9, %v2345_v8  ;;  %v5001_v8 = vld [vmem:[%s7310_s5 + $0x1a4] sm:$0xf] }
 0x15c   : > { %2984 = vmatpush.bf16.msrb.mxu2 %v4496_v33  ;;  %v2491_v35 = vadd.f32 %v2483_v26, %v2473_v25  ;;  %2940 = vmatpush.bf16.msra.mxu3 %v4572_v1  ;;  %v4999_v25 = vld [vmem:[%s7310_s5 + $0x194] sm:$0xf] }
 0x15d   : > { %v2332_v21 = vpop.f32.mrf.mxu2 }
 0x15e   : > { %v2333_v48 = vadd.f32 %v2332_v21, %v2319_v18  ;;  %v2346_v27 = vpop.f32.mrf.mxu3  ;;  %v2499_v46 = vmax.f32 %v2491_v35, 0.0 }
 0x160   : > { %v2347_v30 = vadd.f32 %v2346_v27, %v2333_v48  ;;  %2941 = vmatpush.bf16.msra.mxu3 %v4564_v45 }
 0x162   : > { %v2477_v36 = vmul.f32 %v2465_v9, %v2347_v30  ;;  %v4573_v9 = vld [vmem:[%s7310_s5 + $0x1a8] sm:$0xf0] }
 0x163   : > { %v4576_v12 = vor.u32 %v5001_v8, %v4573_v9  ;;  %v4557_v30 = vld [vmem:[%s7310_s5 + $0x188] sm:$0xf0]  ;;  %v3005_v8 = vld [vmem:[%s7311_s6] sm:$0x3] }
 0x164   : > { %v2495_v38 = vadd.f32 %v2483_v26, %v2477_v36  ;;  %2942 = vmatpush.bf16.msra.mxu3 %v4556_v23  ;;  %v4565_v26 = vld [vmem:[%s7310_s5 + $0x198] sm:$0xf0]  ;;  %v4560_v35 = vor.u32 %v4997_v31, %v4557_v30 }
 0x165   : > { %v4568_v27 = vor.u32 %v4999_v25, %v4565_v26 }
 0x166   : > { %v2503_v50 = vmax.f32 %v2495_v38, 0.0 }
 0x168   : > { %v2507_v19 = vpack.c.bf16 %v2503_v50, %v2499_v46  ;;  %2991 = vmatpush.bf16.msrb.mxu3 %v4616_v42  ;;  %v2466_v50 = vperm.slane %v6884_v10, 3  ;;  %v5020_v10 = vld [vmem:[%s7313_s8 + $0x38] sm:$0xff] }
 0x169   : > { %3163 = vmatpush.bf16.msra.mxu0 %v5020_v10 }
 0x16a   : > { %2929 = vmatmul.bf16.vlgmr.msra.gmra.mxu2 %v2507_v19 }
 0x16c   : > { %2992 = vmatpush.bf16.msrb.mxu3 %v4608_v44  ;;  %v5028_v44 = vld [vmem:[%s7313_s8 + $0x78] sm:$0xff] }
 0x16d   : > { %v2358_v14 = vpop.f32.mrf.mxu0  ;;  %3164 = vmatpush.bf16.msra.mxu0 %v5019_v24  ;;  %3177 = vmatpush.bf16.msra.mxu1 %v5028_v44  ;;  %v5053_v24 = vld [vmem:[%s7314_s9] ss:$0 sm:$0xff] }
 0x16e   : > { %v2372_v56 = vpop.f32.mrf.mxu1  ;;  %v2359_v58 = vadd.f32 %v2358_v14, %v688_v28 }
 0x170   : > { %2993 = vmatpush.bf16.msrb.mxu3 %v4600_v0  ;;  %v2373_v63 = vadd.f32 %v2372_v56, %v2359_v58  ;;  %v5015_v56 = vld [vmem:[%s7313_s8 + $0x10] sm:$0xff]  ;;  %v5026_v58 = vld [vmem:[%s7313_s8 + $0x68] sm:$0xff]  ;;  %v5013_v0 = vld [vmem:[%s7313_s8] sm:$0xff] }
 0x171   : > { %3165 = vmatpush.bf16.msra.mxu0 %v5018_v20  ;;  %3178 = vmatpush.bf16.msra.mxu1 %v5027_v43 }
 0x174   : > { %2994 = vmatpush.bf16.msrb.mxu3 %v4592_v3  ;;  %v5022_v3 = vld [vmem:[%s7313_s8 + $0x48] sm:$0xff] }
 0x175   : > { %v2386_v47 = vpop.f32.mrf.mxu2  ;;  %v2360_v2 = vpop.f32.mrf.mxu0  ;;  %3166 = vmatpush.bf16.msra.mxu0 %v5017_v55  ;;  %3179 = vmatpush.bf16.msra.mxu1 %v5026_v58 }
 0x176   : > { %v2400_v60 = vpop.f32.mrf.mxu3  ;;  %v2374_v4 = vpop.f32.mrf.mxu1  ;;  %v2387_v33 = vadd.f32 %v2386_v47, %v2373_v63  ;;  %v2361_v49 = vadd.f32 %v2360_v2, %v688_v28  ;;  %v5016_v28 = vld [vmem:[%s7313_s8 + $0x18] sm:$0xff]  ;;  %v5025_v47 = vld [vmem:[%s7313_s8 + $0x60] sm:$0xff]  ;;  %v5023_v2 = vld [vmem:[%s7313_s8 + $0x50] sm:$0xff] }
 0x178   : > { %2995 = vmatpush.bf16.msrb.mxu3 %v4584_v6  ;;  %v2401_v13 = vadd.f32 %v2400_v60, %v2387_v33  ;;  %v2375_v16 = vadd.f32 %v2374_v4, %v2361_v49  ;;  %v5024_v60 = vld [vmem:[%s7313_s8 + $0x58] sm:$0xff]  ;;  %v5021_v33 = vld [vmem:[%s7313_s8 + $0x40] sm:$0xff] }
 0x179   : > { %3167 = vmatpush.bf16.msra.mxu0 %v5016_v28  ;;  %3180 = vmatpush.bf16.msra.mxu1 %v5025_v47 }
 0x17a   : > { %2985 = vmatmul.bf16.vlgmr.msrb.gmra.mxu2 %v2507_v19 }
 0x17c   : > { %2996 = vmatpush.bf16.msrb.mxu3 %v4576_v12  ;;  %v3007_v12 = vperm.slane %v3005_v8, 0 }
 0x17d   : > { %v2388_v40 = vpop.f32.mrf.mxu2  ;;  %3168 = vmatpush.bf16.msra.mxu0 %v5015_v56  ;;  %3181 = vmatpush.bf16.msra.mxu1 %v5024_v60 }
 0x17e   : > { %v2402_v17 = vpop.f32.mrf.mxu3  ;;  %v2389_v48 = vadd.f32 %v2388_v40, %v2375_v16 }
 0x180   : > { %2997 = vmatpush.bf16.msrb.mxu3 %v4568_v27  ;;  %v2403_v36 = vadd.f32 %v2402_v17, %v2389_v48 }
 0x181   : > { %3169 = vmatpush.bf16.msra.mxu0 %v5014_v57  ;;  %3182 = vmatpush.bf16.msra.mxu1 %v5023_v2 }
 0x184   : > { %2998 = vmatpush.bf16.msrb.mxu3 %v4560_v35 }
 0x185   : > { %3170 = vmatpush.bf16.msra.mxu0 %v5013_v0  ;;  %3183 = vmatpush.bf16.msra.mxu1 %v5022_v3 }
 0x189   : > { %3184 = vmatpush.bf16.msra.mxu1 %v5021_v33 }
 0x18d   : > { %v2414_v18 = vpop.f32.mrf.mxu0 }
 0x18e   : > { %v2415_v21 = vadd.f32 %v2414_v18, %v2401_v13  ;;  %v2428_v22 = vpop.f32.mrf.mxu1  ;;  %v3015_v13 = vld [vmem:[%s7312_s7] sm:$0x3] }
 0x190   : > { %v2429_v29 = vadd.f32 %v2428_v22, %v2415_v21  ;;  %v3017_v22 = vperm.slane %v3015_v13, 0 }
 0x195   : > { %v2442_v34 = vpop.f32.mrf.mxu2  ;;  %v2416_v38 = vpop.f32.mrf.mxu0 }
 0x196   : > { %v2443_v59 = vadd.f32 %v2442_v34, %v2429_v29  ;;  %v2456_v37 = vpop.f32.mrf.mxu3  ;;  %v2417_v41 = vadd.f32 %v2416_v38, %v2403_v36  ;;  %v2430_v19 = vpop.f32.mrf.mxu1 }
 0x198   : > { %v2457_v46 = vadd.f32 %v2456_v37, %v2443_v59  ;;  %v2431_v51 = vadd.f32 %v2430_v19, %v2417_v41  ;;  %v3008_v19 = vperm.slane %v3005_v8, 1 }
 0x19a   : > { %v2474_v1 = vmul.f32 %v2466_v50, %v2457_v46 }
 0x19c   : > { %v2492_v54 = vadd.f32 %v2484_v32, %v2474_v1 }
 0x19d   : > { %v2444_v52 = vpop.f32.mrf.mxu2 }
 0x19e   : > { %v2445_v53 = vadd.f32 %v2444_v52, %v2431_v51  ;;  %v2458_v45 = vpop.f32.mrf.mxu3  ;;  %v2500_v39 = vmax.f32 %v2492_v54, 0.0 }
 0x1a0   : > { %v2459_v15 = vadd.f32 %v2458_v45, %v2445_v53  ;;  %v3018_v53 = vperm.slane %v3015_v13, 1 }
 0x1a2   : > { %v2478_v23 = vmul.f32 %v2466_v50, %v2459_v15 }
 0x1a4   : > { %v2496_v11 = vadd.f32 %v2484_v32, %v2478_v23 }
 0x1a6   : > { %v2504_v42 = vmax.f32 %v2496_v11, 0.0 }
 0x1a8   : > { %v2508_v14 = vpack.c.bf16 %v2504_v42, %v2500_v39 }
 0x1aa   : > { %2943 = vmatmul.bf16.vlgmr.msra.gmra.mxu3 %v2508_v14 }
 0x1ad   : > { %v2902_v62 = vpop.f32.mrf.mxu0 }
 0x1ae   : > { %v2916_v61 = vpop.f32.mrf.mxu1 }
 0x1af   : > { %v2917_v4 = vadd.f32 %v2916_v61, %v2902_v62 }
 0x1b5   : > { %v2904_v7 = vpop.f32.mrf.mxu0 }
 0x1b6   : > { %v2918_v5 = vpop.f32.mrf.mxu1 }
 0x1b7   : > { %v2919_v16 = vadd.f32 %v2918_v5, %v2904_v7 }
 0x1ba   : > { %2999 = vmatmul.bf16.vlgmr.msrb.gmra.mxu3 %v2508_v14 }
 0x1cd   : > { %v2958_v17 = vpop.f32.mrf.mxu0 }
 0x1ce   : > { %v2972_v25 = vpop.f32.mrf.mxu1 }
 0x1cf   : > { %v2973_v34 = vadd.f32 %v2972_v25, %v2958_v17 }
 0x1d5   : > { %v2960_v41 = vpop.f32.mrf.mxu0 }
 0x1d6   : > { %v2974_v46 = vpop.f32.mrf.mxu1 }
 0x1d7   : > { %v2975_v52 = vadd.f32 %v2974_v46, %v2960_v41 }
 0x1ed   : > { %v2930_v63 = vpop.f32.mrf.mxu2 }
 0x1ee   : > { %v2931_v9 = vadd.f32 %v2930_v63, %v2917_v4 }
 0x1f5   : > { %v2932_v49 = vpop.f32.mrf.mxu2 }
 0x1f6   : > { %v2933_v18 = vadd.f32 %v2932_v49, %v2919_v16 }
 0x1fd   : > { %v2986_v27 = vpop.f32.mrf.mxu2 }
 0x1fe   : > { %v2987_v37 = vadd.f32 %v2986_v27, %v2973_v34 }
 0x205   : > { %v2988_v51 = vpop.f32.mrf.mxu2 }
 0x206   : > { %v2989_v1 = vadd.f32 %v2988_v51, %v2975_v52 }
 0x22d   : > { %v2944_v6 = vpop.f32.mrf.mxu3 }
 0x22e   : > { %v2945_v40 = vadd.f32 %v2944_v6, %v2931_v9 }
 0x230   : > { %v3011_v21 = vmul.f32 %v3007_v12, %v2945_v40 }
 0x232   : > { %v3021_v29 = vadd.f32 %v3017_v22, %v3011_v21 }
 0x234   : > { %v3025_v35 = vmax.f32 %v3021_v29, 0.0 }
 0x235   : > { %v2946_v26 = vpop.f32.mrf.mxu3 }
 0x236   : > { %v2947_v48 = vadd.f32 %v2946_v26, %v2933_v18 }
 0x238   : > { %v3013_v31 = vmul.f32 %v3007_v12, %v2947_v48 }
 0x23a   : > { %v3023_v30 = vadd.f32 %v3017_v22, %v3013_v31 }
 0x23c   : > { %v3027_v36 = vmax.f32 %v3023_v30, 0.0 }
 0x23d   : > { %v3000_v59 = vpop.f32.mrf.mxu3 }
 0x23e   : > { %v3029_v38 = vpack.c.bf16 %v3027_v36, %v3025_v35  ;;  %v3001_v50 = vadd.f32 %v3000_v59, %v2987_v37 }
 0x240   : > { %3171 = vmatmul.bf16.vlgmr.msra.gmra.mxu0 %v3029_v38  ;;  %v3012_v32 = vmul.f32 %v3008_v19, %v3001_v50 }
 0x242   : > { %v3022_v54 = vadd.f32 %v3018_v53, %v3012_v32 }
 0x244   : > { %v3026_v39 = vmax.f32 %v3022_v54, 0.0 }
 0x245   : > { %v3002_v45 = vpop.f32.mrf.mxu3 }
 0x246   : > { %v3003_v15 = vadd.f32 %v3002_v45, %v2989_v1 }
 0x248   : > { %v3014_v23 = vmul.f32 %v3008_v19, %v3003_v15 }
 0x24a   : > { %v3024_v11 = vadd.f32 %v3018_v53, %v3014_v23 }
 0x24c   : > { %v3028_v42 = vmax.f32 %v3024_v11, 0.0 }
 0x24e   : > { %v3030_v14 = vpack.c.bf16 %v3028_v42, %v3026_v39 }
 0x250   : > { %3185 = vmatmul.bf16.vlgmr.msra.gmra.mxu1 %v3030_v14 }
 0x2bd   : > { %v3172_v10 = vpop.f32.mrf.mxu0 }
 0x2be   : > { %v3173_v20 = vadd.f32 %v5053_v24, %v3172_v10 }
 0x2c5   : > { %v3174_v44 = vpop.f32.mrf.mxu0 }
 0x2c6   : > { %v3175_v56 = vadd.f32 %v5053_v24, %v3174_v44 }
 0x2cd   : > { %v3186_v55 = vpop.f32.mrf.mxu1 }
 0x2ce   : > { %v3187_v28 = vadd.f32 %v3186_v55, %v3173_v20 }
 0x2d0   : > { %3191 = vst [vmem:[%s417_s28] sm:$0xff] %v3187_v28 }
 0x2d5   : > { %v3188_v43 = vpop.f32.mrf.mxu1 }
 0x2d6   : > { %v3189_v57 = vadd.f32 %v3188_v43, %v3175_v56 }
 0x2d8   : > { %3192 = vst [vmem:[%s417_s28 + $0x8] sm:$0xff] %v3189_v57 }
 0x2d9 PF: > { %s20_s15 = sadd.s32 1, %s5076_s15   ;;  %s7316_s13 = smov %s5072_s14 }
 0x2da   : > { %p17_p5 = scmp.ge.s32.totalorder %s20_s15, 4   ;;  %s7317_s14 = smov %s7319_s16 }
 0x2dc   :  { %19 = sbr.rel (!%p17_p5) target bundleno = 2 (0x2), region = 93 }

</bundles_post_ra>
